<compile_context>
chip_gen: v5e
topology: v5e:2x2
jax: 0.10.0
libtpu: 0.0.40
codegen_flags: <defaults>
</compile_context>

<pallas_src>
import functools
import math

import jax
import jax.numpy as jnp
import numpy as np
from jax import lax
from jax.experimental import pallas as pl
from jax.experimental.pallas import tpu as pltpu


# ----------------------------- fused kernel --------------------------------

def _make_mhsa_kernel(n_heads, with_mask, infinity):
    def kernel(x_ref, wq_ref, wk_ref, wv_ref, wo_ref,
               bq_ref, bk_ref, bv_ref, bo_ref, *rest):
        if with_mask:
            mask_k_ref, mask_q_ref, o_ref = rest
        else:
            (o_ref,) = rest

        BB, S, E = x_ref.shape            # BB batch elements per grid step
        H = n_heads
        D = E // H
        M = BB * S

        x = x_ref[...].reshape(M, E).astype(jnp.bfloat16)          # (M, E) bf16

        def proj(w_ref, b_ref):
            y = jnp.dot(x, w_ref[...],
                        preferred_element_type=jnp.float32) + b_ref[...]
            return y.astype(jnp.bfloat16)                          # bf16 once, up front

        q = proj(wq_ref, bq_ref)          # 1/sqrt(D) already folded into wq/bq
        k = proj(wk_ref, bk_ref)
        v = proj(wv_ref, bv_ref)

        if with_mask:
            neg = (1.0 - mask_k_ref[...]) * infinity               # (BB, 1, S) f32

        # Q @ K^T without materializing a transpose: contract last dims.
        dn = (((1,), (1,)), ((), ()))

        acc = jnp.zeros((M, E), jnp.float32)                       # WO accumulator
        for h in range(H):                                         # static, unrolled
            lo, hi = h * D, (h + 1) * D
            rows = []
            for b in range(BB):                                    # static, unrolled
                r0, r1 = b * S, (b + 1) * S
                qh = q[r0:r1, lo:hi]                               # (S, D) bf16
                kh = k[r0:r1, lo:hi]                               # (S, D) bf16
                vh = v[r0:r1, lo:hi]                               # (S, D) bf16

                s = lax.dot_general(qh, kh, dn,
                                    preferred_element_type=jnp.float32)   # (S, S)
                if with_mask:
                    s = s - neg[b]                                 # (1, S) broadcast
                m = jnp.max(s, axis=-1, keepdims=True)
                p = jnp.exp(s - m)                                 # unnormalized
                l = jnp.sum(p, axis=-1, keepdims=True)             # (S, 1)
                pv = jnp.dot(p.astype(jnp.bfloat16), vh,
                             preferred_element_type=jnp.float32)   # (S, D)
                # TODO(synk): dropout on `p` (att_dropout > 0) not implemented.
                head = pv * pl.reciprocal(l, approx=True)          # deferred softmax norm (EUP)
                rows.append(head.astype(jnp.bfloat16))
            head_all = rows[0] if BB == 1 else jnp.concatenate(rows, axis=0)  # (M, D)
            acc = acc + jnp.dot(head_all, wo_ref[lo:hi, :],
                                preferred_element_type=jnp.float32)           # (M, E)

        out = (acc + bo_ref[...]).reshape(BB, S, E)
        if with_mask:
            out = jnp.abs(out * mask_q_ref[...])                   # (BB, S, 1) broadcast
        o_ref[...] = out.astype(o_ref.dtype)

    return kernel


# ----------------------------- wrapper --------------------------------------

def multihead_self_attention(x, params, *, n_heads, mask=None, infinity=1e6,
                             batch_block=None):
    """x: (B, S, E) f32. params: prepared (in,out)-layout bf16 weights + f32 biases
    (scale folded into wq/bq). mask: optional (B, S) bool key-padding mask."""
    B, S, E = x.shape
    assert E % n_heads == 0

    # M=2S projections fill the 256x256 MXU on v6e/v7x; only block when B >= 4 so the
    # "parallel" grid still gives both v7x TensorCores work.
    if batch_block is None:
        batch_block = 2 if (B % 2 == 0 and B >= 4) else 1
    assert B % batch_block == 0
    BB = batch_block

    wq, wk, wv, wo = params['wq'], params['wk'], params['wv'], params['wo']
    bq, bk, bv, bo = params['bq'], params['bk'], params['bv'], params['bo']

    inputs = [x, wq, wk, wv, wo, bq, bk, bv, bo]
    # TODO(synk): weights/biases have constant index_maps; pipeline_mode=pl.Buffered(1)
    # would single-buffer them (~2 MB VMEM saved) but is left at the default here.
    in_specs = ([pl.BlockSpec((BB, S, E), lambda b: (b, 0, 0))]
                + [pl.BlockSpec((E, E), lambda b: (0, 0)) for _ in range(4)]
                + [pl.BlockSpec((1, E), lambda b: (0, 0)) for _ in range(4)])

    if mask is not None:
        mf = mask.astype(jnp.float32)
        inputs += [mf.reshape(B, 1, S), mf.reshape(B, S, 1)]
        in_specs += [pl.BlockSpec((BB, 1, S), lambda b: (b, 0, 0)),
                     pl.BlockSpec((BB, S, 1), lambda b: (b, 0, 0))]

    kernel = _make_mhsa_kernel(n_heads=n_heads, with_mask=mask is not None,
                               infinity=float(infinity))

    flops = int(B * (8 * S * E * E + 4 * S * S * E))
    transcendentals = int(B * n_heads * S * S)
    bytes_accessed = int(2 * B * S * E * 4 + 4 * E * E * 2 + 4 * E * 4
                         + (2 * B * S * 4 if mask is not None else 0))

    return pl.pallas_call(
        kernel,
        out_shape=jax.ShapeDtypeStruct((B, S, E), jnp.float32),
        grid=(B // BB,),
        in_specs=in_specs,
        out_specs=pl.BlockSpec((BB, S, E), lambda b: (b, 0, 0)),
        compiler_params=pltpu.CompilerParams(
            dimension_semantics=("parallel",),          # batch blocks across TCs
            vmem_limit_bytes=32 * 1024 * 1024),
        cost_estimate=pl.CostEstimate(flops=flops,
                                      transcendentals=transcendentals,
                                      bytes_accessed=bytes_accessed),
    )(*inputs)


# ----------------------------- parameters -----------------------------------

def init_torch_params(key, emb_dim):
    """nn.Linear-style parameters: W (out, in), b (out,), PyTorch default init."""
    keys = jax.random.split(key, 8)
    bound = 1.0 / math.sqrt(emb_dim)

    def lin(kw, kb):
        w = jax.random.uniform(kw, (emb_dim, emb_dim), jnp.float32, -bound, bound)
        b = jax.random.uniform(kb, (emb_dim,), jnp.float32, -bound, bound)
        return w, b

    return {name: lin(keys[2 * i], keys[2 * i + 1])
            for i, name in enumerate(('q', 'k', 'v', 'o'))}


def prepare_params(torch_params, n_heads):
    """One-time prep (hoisted out of forward): transpose to (in, out), fold the
    1/sqrt(d_key) scale into Wq/bq in f32, then cast weights to bf16."""
    prepared = {}
    for name, (w, b) in torch_params.items():
        w = jnp.asarray(w, jnp.float32).T                    # (in, out)
        b = jnp.asarray(b, jnp.float32).reshape(1, -1)
        if name == 'q':
            emb = w.shape[0]
            scale = 1.0 / math.sqrt(emb // n_heads)
            w = w * scale
            b = b * scale
        prepared['w' + name] = w.astype(jnp.bfloat16)
        prepared['b' + name] = b
    return prepared


# ----------------------------- pure-JAX reference ----------------------------

def mhsa_reference(x, torch_params, n_heads, mask=None, infinity=1e6):
    """Mirrors the PyTorch forward (raw nn.Linear params, scale applied on scores),
    with bf16 matmul operands / f32 accumulation like the kernel."""
    B, S, E = x.shape
    D = E // n_heads

    def wb(name):
        w, b = torch_params[name]
        return (jnp.asarray(w, jnp.float32).T.astype(jnp.bfloat16),
                jnp.asarray(b, jnp.float32).reshape(1, 1, -1))

    def lin(a, name):
        w, b = wb(name)
        return jnp.einsum('bse,ef->bsf', a, w,
                          preferred_element_type=jnp.float32) + b

    xb = x.astype(jnp.bfloat16)

    def split(t):
        return t.reshape(B, S, n_heads, D).transpose(0, 2, 1, 3).astype(jnp.bfloat16)

    q = split(lin(xb, 'q'))
    k = split(lin(xb, 'k'))
    v = split(lin(xb, 'v'))

    s = jnp.einsum('bhqd,bhkd->bhqk', q, k,
                   preferred_element_type=jnp.float32) / math.sqrt(D)
    if mask is not None:
        s = s - (1.0 - mask.astype(jnp.float32))[:, None, None, :] * infinity
    p = jax.nn.softmax(s, axis=-1)
    o = jnp.einsum('bhqk,bhkd->bhqd', p.astype(jnp.bfloat16), v,
                   preferred_element_type=jnp.float32)
    o = o.transpose(0, 2, 1, 3).reshape(B, S, E).astype(jnp.bfloat16)
    out = lin(o, 'o')
    if mask is not None:
        out = jnp.abs(out * mask.astype(jnp.float32)[:, :, None])
    return out


# ----------------------------- main ------------------------------------------

if __name__ == "__main__":
    # Small, TPU-aligned shapes: emb_dim divisible by n_heads, d_key = 128 (lane-dense).
    B, S, E, H = 2, 128, 512, 4

    root = jax.random.PRNGKey(0)
    k_params, k_x, k_x4 = jax.random.split(root, 3)
    torch_params = init_torch_params(k_params, E)
    params = prepare_params(torch_params, n_heads=H)
    x = jax.random.normal(k_x, (B, S, E), dtype=jnp.float32)

    fwd = jax.jit(functools.partial(multihead_self_attention, n_heads=H))

    # Default module configuration: att_masking=False, mask=None, dropout=Identity.
    out = jax.block_until_ready(fwd(x, params))
    assert out.shape == (B, S, E)
    # Tolerance covers bf16 matmul operands, the pre-folded Wq scale, per-head WO
    # accumulation ordering and the approx EUP reciprocal in the softmax.
    np.testing.assert_allclose(np.asarray(out),
                               np.asarray(mhsa_reference(x, torch_params, H)),
                               rtol=2e-2, atol=2e-2)

    # Masked path (module's `mask` argument): batch 1 only attends to its first 96 tokens.
    lengths = jnp.array([S, 3 * S // 4], dtype=jnp.int32)
    mask = jnp.arange(S, dtype=jnp.int32)[None, :] < lengths[:, None]      # (B, S) bool
    out_m = jax.block_until_ready(fwd(x, params, mask=mask))
    np.testing.assert_allclose(np.asarray(out_m),
                               np.asarray(mhsa_reference(x, torch_params, H, mask=mask)),
                               rtol=2e-2, atol=2e-2)

    # B=4 exercises the batch-blocked (2 batch elements / grid step, M=256) path.
    x4 = jax.random.normal(k_x4, (4, S, E), dtype=jnp.float32)
    lengths4 = jnp.array([S, 3 * S // 4, S // 2, S], dtype=jnp.int32)
    mask4 = jnp.arange(S, dtype=jnp.int32)[None, :] < lengths4[:, None]
    out_b = jax.block_until_ready(fwd(x4, params, mask=mask4))
    np.testing.assert_allclose(np.asarray(out_b),
                               np.asarray(mhsa_reference(x4, torch_params, H, mask=mask4)),
                               rtol=2e-2, atol=2e-2)

    assert (bool(jnp.all(jnp.isfinite(out))) and bool(jnp.all(jnp.isfinite(out_m)))
            and bool(jnp.all(jnp.isfinite(out_b))))
    print("KERNEL_OK")
</pallas_src>

<mosaic_0001>
module attributes {stable_mosaic.version = 11 : i64} {
  func.func @kernel(%arg0: i32, %arg1: memref<1x128x512xf32, #tpu.memory_space<vmem>>, %arg2: memref<512x512xbf16, #tpu.memory_space<vmem>>, %arg3: memref<512x512xbf16, #tpu.memory_space<vmem>>, %arg4: memref<512x512xbf16, #tpu.memory_space<vmem>>, %arg5: memref<512x512xbf16, #tpu.memory_space<vmem>>, %arg6: memref<1x512xf32, #tpu.memory_space<vmem>>, %arg7: memref<1x512xf32, #tpu.memory_space<vmem>>, %arg8: memref<1x512xf32, #tpu.memory_space<vmem>>, %arg9: memref<1x512xf32, #tpu.memory_space<vmem>>, %arg10: memref<1x128x512xf32, #tpu.memory_space<vmem>>) attributes {dimension_semantics = [#tpu.dimension_semantics<parallel>], iteration_bounds = array<i64: 2>, scalar_prefetch = 0 : i64, scratch_operands = 0 : i64, tpu.core_type = #tpu.core_type<tc>, window_params = [{transform_indices = @transform_0, window_bounds = array<i64: 1, 128, 512>}, {pipeline_mode = #tpu.pipeline_mode<synchronous>, transform_indices = @transform_1, window_bounds = array<i64: 512, 512>}, {pipeline_mode = #tpu.pipeline_mode<synchronous>, transform_indices = @transform_2, window_bounds = array<i64: 512, 512>}, {pipeline_mode = #tpu.pipeline_mode<synchronous>, transform_indices = @transform_3, window_bounds = array<i64: 512, 512>}, {pipeline_mode = #tpu.pipeline_mode<synchronous>, transform_indices = @transform_4, window_bounds = array<i64: 512, 512>}, {pipeline_mode = #tpu.pipeline_mode<synchronous>, transform_indices = @transform_5, window_bounds = array<i64: 1, 512>}, {pipeline_mode = #tpu.pipeline_mode<synchronous>, transform_indices = @transform_6, window_bounds = array<i64: 1, 512>}, {pipeline_mode = #tpu.pipeline_mode<synchronous>, transform_indices = @transform_7, window_bounds = array<i64: 1, 512>}, {pipeline_mode = #tpu.pipeline_mode<synchronous>, transform_indices = @transform_8, window_bounds = array<i64: 1, 512>}, {transform_indices = @transform_9, window_bounds = array<i64: 1, 128, 512>}]} {
    %c0 = arith.constant 0 : index
    %c0_0 = arith.constant 0 : index
    %c0_1 = arith.constant 0 : index
    %0 = vector.load %arg1[%c0, %c0_0, %c0_1] : memref<1x128x512xf32, #tpu.memory_space<vmem>>, vector<1x128x512xf32>
    %1 = vector.shape_cast %0 : vector<1x128x512xf32> to vector<128x512xf32>
    %2 = arith.truncf %1 : vector<128x512xf32> to vector<128x512xbf16>
    %c0_2 = arith.constant 0 : index
    %c0_3 = arith.constant 0 : index
    %3 = vector.load %arg2[%c0_2, %c0_3] : memref<512x512xbf16, #tpu.memory_space<vmem>>, vector<512x512xbf16>
    %cst = arith.constant dense<0.000000e+00> : vector<128x512xf32>
    %4 = tpu.matmul %2, %3, %cst {dimension_numbers = #tpu.dot_dimension_numbers<[1], [0], [0], [1], [0, 0, 1, 1], [], []>} : vector<128x512xbf16>, vector<512x512xbf16>, vector<128x512xf32> -> vector<128x512xf32>
    %c0_4 = arith.constant 0 : index
    %c0_5 = arith.constant 0 : index
    %5 = vector.load %arg6[%c0_4, %c0_5] : memref<1x512xf32, #tpu.memory_space<vmem>>, vector<1x512xf32>
    %6 = vector.broadcast %5 : vector<1x512xf32> to vector<128x512xf32>
    %7 = arith.addf %4, %6 : vector<128x512xf32>
    %8 = arith.truncf %7 : vector<128x512xf32> to vector<128x512xbf16>
    %c0_6 = arith.constant 0 : index
    %c0_7 = arith.constant 0 : index
    %9 = vector.load %arg3[%c0_6, %c0_7] : memref<512x512xbf16, #tpu.memory_space<vmem>>, vector<512x512xbf16>
    %cst_8 = arith.constant dense<0.000000e+00> : vector<128x512xf32>
    %10 = tpu.matmul %2, %9, %cst_8 {dimension_numbers = #tpu.dot_dimension_numbers<[1], [0], [0], [1], [0, 0, 1, 1], [], []>} : vector<128x512xbf16>, vector<512x512xbf16>, vector<128x512xf32> -> vector<128x512xf32>
    %c0_9 = arith.constant 0 : index
    %c0_10 = arith.constant 0 : index
    %11 = vector.load %arg7[%c0_9, %c0_10] : memref<1x512xf32, #tpu.memory_space<vmem>>, vector<1x512xf32>
    %12 = vector.broadcast %11 : vector<1x512xf32> to vector<128x512xf32>
    %13 = arith.addf %10, %12 : vector<128x512xf32>
    %14 = arith.truncf %13 : vector<128x512xf32> to vector<128x512xbf16>
    %c0_11 = arith.constant 0 : index
    %c0_12 = arith.constant 0 : index
    %15 = vector.load %arg4[%c0_11, %c0_12] : memref<512x512xbf16, #tpu.memory_space<vmem>>, vector<512x512xbf16>
    %cst_13 = arith.constant dense<0.000000e+00> : vector<128x512xf32>
    %16 = tpu.matmul %2, %15, %cst_13 {dimension_numbers = #tpu.dot_dimension_numbers<[1], [0], [0], [1], [0, 0, 1, 1], [], []>} : vector<128x512xbf16>, vector<512x512xbf16>, vector<128x512xf32> -> vector<128x512xf32>
    %c0_14 = arith.constant 0 : index
    %c0_15 = arith.constant 0 : index
    %17 = vector.load %arg8[%c0_14, %c0_15] : memref<1x512xf32, #tpu.memory_space<vmem>>, vector<1x512xf32>
    %18 = vector.broadcast %17 : vector<1x512xf32> to vector<128x512xf32>
    %19 = arith.addf %16, %18 : vector<128x512xf32>
    %20 = arith.truncf %19 : vector<128x512xf32> to vector<128x512xbf16>
    %cst_16 = arith.constant 0.000000e+00 : f32
    %21 = vector.broadcast %cst_16 : f32 to vector<128x512xf32>
    %22 = vector.extract_strided_slice %8 {offsets = [0, 0], sizes = [128, 128], strides = [1, 1]} : vector<128x512xbf16> to vector<128x128xbf16>
    %23 = vector.extract_strided_slice %14 {offsets = [0, 0], sizes = [128, 128], strides = [1, 1]} : vector<128x512xbf16> to vector<128x128xbf16>
    %24 = vector.extract_strided_slice %20 {offsets = [0, 0], sizes = [128, 128], strides = [1, 1]} : vector<128x512xbf16> to vector<128x128xbf16>
    %cst_17 = arith.constant dense<0.000000e+00> : vector<128x128xf32>
    %25 = tpu.matmul %22, %23, %cst_17 {dimension_numbers = #tpu.dot_dimension_numbers<[1], [1], [0], [0], [0, 0, 1, 0], [], []>} : vector<128x128xbf16>, vector<128x128xbf16>, vector<128x128xf32> -> vector<128x128xf32>
    %cst_18 = arith.constant dense<0xFF800000> : vector<128xf32>
    %26 = vector.multi_reduction <maximumf>, %25, %cst_18 [1] : vector<128x128xf32> to vector<128xf32>
    %27 = vector.shape_cast %26 : vector<128xf32> to vector<128x1xf32>
    %28 = vector.broadcast %27 : vector<128x1xf32> to vector<128x128xf32>
    %29 = arith.subf %25, %28 : vector<128x128xf32>
    %30 = math.exp %29 : vector<128x128xf32>
    %cst_19 = arith.constant dense<0.000000e+00> : vector<128xf32>
    %31 = vector.multi_reduction <add>, %30, %cst_19 [1] : vector<128x128xf32> to vector<128xf32>
    %32 = vector.shape_cast %31 : vector<128xf32> to vector<128x1xf32>
    %33 = arith.truncf %30 : vector<128x128xf32> to vector<128x128xbf16>
    %cst_20 = arith.constant dense<0.000000e+00> : vector<128x128xf32>
    %34 = tpu.matmul %33, %24, %cst_20 {dimension_numbers = #tpu.dot_dimension_numbers<[1], [0], [0], [1], [0, 0, 1, 1], [], []>} : vector<128x128xbf16>, vector<128x128xbf16>, vector<128x128xf32> -> vector<128x128xf32>
    %35 = tpu.reciprocal %32 {approx = true} : vector<128x1xf32> -> vector<128x1xf32>
    %36 = vector.broadcast %35 : vector<128x1xf32> to vector<128x128xf32>
    %37 = arith.mulf %34, %36 : vector<128x128xf32>
    %38 = arith.truncf %37 : vector<128x128xf32> to vector<128x128xbf16>
    %c0_21 = arith.constant 0 : index
    %c0_22 = arith.constant 0 : index
    %39 = vector.load %arg5[%c0_21, %c0_22] : memref<512x512xbf16, #tpu.memory_space<vmem>>, vector<128x512xbf16>
    %cst_23 = arith.constant dense<0.000000e+00> : vector<128x512xf32>
    %40 = tpu.matmul %38, %39, %cst_23 {dimension_numbers = #tpu.dot_dimension_numbers<[1], [0], [0], [1], [0, 0, 1, 1], [], []>} : vector<128x128xbf16>, vector<128x512xbf16>, vector<128x512xf32> -> vector<128x512xf32>
    %41 = arith.addf %21, %40 : vector<128x512xf32>
    %42 = vector.extract_strided_slice %8 {offsets = [0, 128], sizes = [128, 128], strides = [1, 1]} : vector<128x512xbf16> to vector<128x128xbf16>
    %43 = vector.extract_strided_slice %14 {offsets = [0, 128], sizes = [128, 128], strides = [1, 1]} : vector<128x512xbf16> to vector<128x128xbf16>
    %44 = vector.extract_strided_slice %20 {offsets = [0, 128], sizes = [128, 128], strides = [1, 1]} : vector<128x512xbf16> to vector<128x128xbf16>
    %cst_24 = arith.constant dense<0.000000e+00> : vector<128x128xf32>
    %45 = tpu.matmul %42, %43, %cst_24 {dimension_numbers = #tpu.dot_dimension_numbers<[1], [1], [0], [0], [0, 0, 1, 0], [], []>} : vector<128x128xbf16>, vector<128x128xbf16>, vector<128x128xf32> -> vector<128x128xf32>
    %cst_25 = arith.constant dense<0xFF800000> : vector<128xf32>
    %46 = vector.multi_reduction <maximumf>, %45, %cst_25 [1] : vector<128x128xf32> to vector<128xf32>
    %47 = vector.shape_cast %46 : vector<128xf32> to vector<128x1xf32>
    %48 = vector.broadcast %47 : vector<128x1xf32> to vector<128x128xf32>
    %49 = arith.subf %45, %48 : vector<128x128xf32>
    %50 = math.exp %49 : vector<128x128xf32>
    %cst_26 = arith.constant dense<0.000000e+00> : vector<128xf32>
    %51 = vector.multi_reduction <add>, %50, %cst_26 [1] : vector<128x128xf32> to vector<128xf32>
    %52 = vector.shape_cast %51 : vector<128xf32> to vector<128x1xf32>
    %53 = arith.truncf %50 : vector<128x128xf32> to vector<128x128xbf16>
    %cst_27 = arith.constant dense<0.000000e+00> : vector<128x128xf32>
    %54 = tpu.matmul %53, %44, %cst_27 {dimension_numbers = #tpu.dot_dimension_numbers<[1], [0], [0], [1], [0, 0, 1, 1], [], []>} : vector<128x128xbf16>, vector<128x128xbf16>, vector<128x128xf32> -> vector<128x128xf32>
    %55 = tpu.reciprocal %52 {approx = true} : vector<128x1xf32> -> vector<128x1xf32>
    %56 = vector.broadcast %55 : vector<128x1xf32> to vector<128x128xf32>
    %57 = arith.mulf %54, %56 : vector<128x128xf32>
    %58 = arith.truncf %57 : vector<128x128xf32> to vector<128x128xbf16>
    %c128 = arith.constant 128 : index
    %c0_28 = arith.constant 0 : index
    %59 = vector.load %arg5[%c128, %c0_28] : memref<512x512xbf16, #tpu.memory_space<vmem>>, vector<128x512xbf16>
    %cst_29 = arith.constant dense<0.000000e+00> : vector<128x512xf32>
    %60 = tpu.matmul %58, %59, %cst_29 {dimension_numbers = #tpu.dot_dimension_numbers<[1], [0], [0], [1], [0, 0, 1, 1], [], []>} : vector<128x128xbf16>, vector<128x512xbf16>, vector<128x512xf32> -> vector<128x512xf32>
    %61 = arith.addf %41, %60 : vector<128x512xf32>
    %62 = vector.extract_strided_slice %8 {offsets = [0, 256], sizes = [128, 128], strides = [1, 1]} : vector<128x512xbf16> to vector<128x128xbf16>
    %63 = vector.extract_strided_slice %14 {offsets = [0, 256], sizes = [128, 128], strides = [1, 1]} : vector<128x512xbf16> to vector<128x128xbf16>
    %64 = vector.extract_strided_slice %20 {offsets = [0, 256], sizes = [128, 128], strides = [1, 1]} : vector<128x512xbf16> to vector<128x128xbf16>
    %cst_30 = arith.constant dense<0.000000e+00> : vector<128x128xf32>
    %65 = tpu.matmul %62, %63, %cst_30 {dimension_numbers = #tpu.dot_dimension_numbers<[1], [1], [0], [0], [0, 0, 1, 0], [], []>} : vector<128x128xbf16>, vector<128x128xbf16>, vector<128x128xf32> -> vector<128x128xf32>
    %cst_31 = arith.constant dense<0xFF800000> : vector<128xf32>
    %66 = vector.multi_reduction <maximumf>, %65, %cst_31 [1] : vector<128x128xf32> to vector<128xf32>
    %67 = vector.shape_cast %66 : vector<128xf32> to vector<128x1xf32>
    %68 = vector.broadcast %67 : vector<128x1xf32> to vector<128x128xf32>
    %69 = arith.subf %65, %68 : vector<128x128xf32>
    %70 = math.exp %69 : vector<128x128xf32>
    %cst_32 = arith.constant dense<0.000000e+00> : vector<128xf32>
    %71 = vector.multi_reduction <add>, %70, %cst_32 [1] : vector<128x128xf32> to vector<128xf32>
    %72 = vector.shape_cast %71 : vector<128xf32> to vector<128x1xf32>
    %73 = arith.truncf %70 : vector<128x128xf32> to vector<128x128xbf16>
    %cst_33 = arith.constant dense<0.000000e+00> : vector<128x128xf32>
    %74 = tpu.matmul %73, %64, %cst_33 {dimension_numbers = #tpu.dot_dimension_numbers<[1], [0], [0], [1], [0, 0, 1, 1], [], []>} : vector<128x128xbf16>, vector<128x128xbf16>, vector<128x128xf32> -> vector<128x128xf32>
    %75 = tpu.reciprocal %72 {approx = true} : vector<128x1xf32> -> vector<128x1xf32>
    %76 = vector.broadcast %75 : vector<128x1xf32> to vector<128x128xf32>
    %77 = arith.mulf %74, %76 : vector<128x128xf32>
    %78 = arith.truncf %77 : vector<128x128xf32> to vector<128x128xbf16>
    %c256 = arith.constant 256 : index
    %c0_34 = arith.constant 0 : index
    %79 = vector.load %arg5[%c256, %c0_34] : memref<512x512xbf16, #tpu.memory_space<vmem>>, vector<128x512xbf16>
    %cst_35 = arith.constant dense<0.000000e+00> : vector<128x512xf32>
    %80 = tpu.matmul %78, %79, %cst_35 {dimension_numbers = #tpu.dot_dimension_numbers<[1], [0], [0], [1], [0, 0, 1, 1], [], []>} : vector<128x128xbf16>, vector<128x512xbf16>, vector<128x512xf32> -> vector<128x512xf32>
    %81 = arith.addf %61, %80 : vector<128x512xf32>
    %82 = vector.extract_strided_slice %8 {offsets = [0, 384], sizes = [128, 128], strides = [1, 1]} : vector<128x512xbf16> to vector<128x128xbf16>
    %83 = vector.extract_strided_slice %14 {offsets = [0, 384], sizes = [128, 128], strides = [1, 1]} : vector<128x512xbf16> to vector<128x128xbf16>
    %84 = vector.extract_strided_slice %20 {offsets = [0, 384], sizes = [128, 128], strides = [1, 1]} : vector<128x512xbf16> to vector<128x128xbf16>
    %cst_36 = arith.constant dense<0.000000e+00> : vector<128x128xf32>
    %85 = tpu.matmul %82, %83, %cst_36 {dimension_numbers = #tpu.dot_dimension_numbers<[1], [1], [0], [0], [0, 0, 1, 0], [], []>} : vector<128x128xbf16>, vector<128x128xbf16>, vector<128x128xf32> -> vector<128x128xf32>
    %cst_37 = arith.constant dense<0xFF800000> : vector<128xf32>
    %86 = vector.multi_reduction <maximumf>, %85, %cst_37 [1] : vector<128x128xf32> to vector<128xf32>
    %87 = vector.shape_cast %86 : vector<128xf32> to vector<128x1xf32>
    %88 = vector.broadcast %87 : vector<128x1xf32> to vector<128x128xf32>
    %89 = arith.subf %85, %88 : vector<128x128xf32>
    %90 = math.exp %89 : vector<128x128xf32>
    %cst_38 = arith.constant dense<0.000000e+00> : vector<128xf32>
    %91 = vector.multi_reduction <add>, %90, %cst_38 [1] : vector<128x128xf32> to vector<128xf32>
    %92 = vector.shape_cast %91 : vector<128xf32> to vector<128x1xf32>
    %93 = arith.truncf %90 : vector<128x128xf32> to vector<128x128xbf16>
    %cst_39 = arith.constant dense<0.000000e+00> : vector<128x128xf32>
    %94 = tpu.matmul %93, %84, %cst_39 {dimension_numbers = #tpu.dot_dimension_numbers<[1], [0], [0], [1], [0, 0, 1, 1], [], []>} : vector<128x128xbf16>, vector<128x128xbf16>, vector<128x128xf32> -> vector<128x128xf32>
    %95 = tpu.reciprocal %92 {approx = true} : vector<128x1xf32> -> vector<128x1xf32>
    %96 = vector.broadcast %95 : vector<128x1xf32> to vector<128x128xf32>
    %97 = arith.mulf %94, %96 : vector<128x128xf32>
    %98 = arith.truncf %97 : vector<128x128xf32> to vector<128x128xbf16>
    %c384 = arith.constant 384 : index
    %c0_40 = arith.constant 0 : index
    %99 = vector.load %arg5[%c384, %c0_40] : memref<512x512xbf16, #tpu.memory_space<vmem>>, vector<128x512xbf16>
    %cst_41 = arith.constant dense<0.000000e+00> : vector<128x512xf32>
    %100 = tpu.matmul %98, %99, %cst_41 {dimension_numbers = #tpu.dot_dimension_numbers<[1], [0], [0], [1], [0, 0, 1, 1], [], []>} : vector<128x128xbf16>, vector<128x512xbf16>, vector<128x512xf32> -> vector<128x512xf32>
    %101 = arith.addf %81, %100 : vector<128x512xf32>
    %c0_42 = arith.constant 0 : index
    %c0_43 = arith.constant 0 : index
    %102 = vector.load %arg9[%c0_42, %c0_43] : memref<1x512xf32, #tpu.memory_space<vmem>>, vector<1x512xf32>
    %103 = vector.broadcast %102 : vector<1x512xf32> to vector<128x512xf32>
    %104 = arith.addf %101, %103 : vector<128x512xf32>
    %105 = vector.shape_cast %104 : vector<128x512xf32> to vector<1x128x512xf32>
    %c0_44 = arith.constant 0 : index
    %c0_45 = arith.constant 0 : index
    %c0_46 = arith.constant 0 : index
    %106 = vector.load %arg10[%c0_44, %c0_45, %c0_46] : memref<1x128x512xf32, #tpu.memory_space<vmem>>, vector<1x128x512xf32>
    tpu.vector_store %arg10[%c0_44, %c0_45, %c0_46], %105 {strides = array<i32>} : memref<1x128x512xf32, #tpu.memory_space<vmem>>, vector<1x128x512xf32>,
    return
  }
  func.func @transform_0(%arg0: i32) -> (i32, i32, i32) {
    %c0_i32 = arith.constant 0 : i32
    %c0_i32_0 = arith.constant 0 : i32
    %c0_i32_1 = arith.constant 0 : i32
    return %arg0, %c0_i32, %c0_i32_0 : i32, i32, i32
  }
  func.func @transform_1(%arg0: i32) -> (i32, i32) {
    %c0_i32 = arith.constant 0 : i32
    %c0_i32_0 = arith.constant 0 : i32
    %c0_i32_1 = arith.constant 0 : i32
    return %c0_i32, %c0_i32_0 : i32, i32
  }
  func.func @transform_2(%arg0: i32) -> (i32, i32) {
    %c0_i32 = arith.constant 0 : i32
    %c0_i32_0 = arith.constant 0 : i32
    %c0_i32_1 = arith.constant 0 : i32
    return %c0_i32, %c0_i32_0 : i32, i32
  }
  func.func @transform_3(%arg0: i32) -> (i32, i32) {
    %c0_i32 = arith.constant 0 : i32
    %c0_i32_0 = arith.constant 0 : i32
    %c0_i32_1 = arith.constant 0 : i32
    return %c0_i32, %c0_i32_0 : i32, i32
  }
  func.func @transform_4(%arg0: i32) -> (i32, i32) {
    %c0_i32 = arith.constant 0 : i32
    %c0_i32_0 = arith.constant 0 : i32
    %c0_i32_1 = arith.constant 0 : i32
    return %c0_i32, %c0_i32_0 : i32, i32
  }
  func.func @transform_5(%arg0: i32) -> (i32, i32) {
    %c0_i32 = arith.constant 0 : i32
    %c0_i32_0 = arith.constant 0 : i32
    %c0_i32_1 = arith.constant 0 : i32
    return %c0_i32, %c0_i32_0 : i32, i32
  }
  func.func @transform_6(%arg0: i32) -> (i32, i32) {
    %c0_i32 = arith.constant 0 : i32
    %c0_i32_0 = arith.constant 0 : i32
    %c0_i32_1 = arith.constant 0 : i32
    return %c0_i32, %c0_i32_0 : i32, i32
  }
  func.func @transform_7(%arg0: i32) -> (i32, i32) {
    %c0_i32 = arith.constant 0 : i32
    %c0_i32_0 = arith.constant 0 : i32
    %c0_i32_1 = arith.constant 0 : i32
    return %c0_i32, %c0_i32_0 : i32, i32
  }
  func.func @transform_8(%arg0: i32) -> (i32, i32) {
    %c0_i32 = arith.constant 0 : i32
    %c0_i32_0 = arith.constant 0 : i32
    %c0_i32_1 = arith.constant 0 : i32
    return %c0_i32, %c0_i32_0 : i32, i32
  }
  func.func @transform_9(%arg0: i32) -> (i32, i32, i32) {
    %c0_i32 = arith.constant 0 : i32
    %c0_i32_0 = arith.constant 0 : i32
    %c0_i32_1 = arith.constant 0 : i32
    return %arg0, %c0_i32, %c0_i32_0 : i32, i32, i32
  }
}

</mosaic_0001>

<bundles_post_ra>
// kernel: multihead_self_attention.1
= control target key start
LH: loop header
LB: loop body
LE: loop exit
PB: predicated region body
PF: predicated region fallthrough
CT: control target
= control target key end

     0   :  { %s14845_s0 = inlined_call_operand.hbm [shape: f32[2,128,512], index: 0, kind: input, shape index: {}]   ;;  %s14846_s1 = inlined_call_operand.hbm [shape: bf16[512,512], index: 1, kind: input, shape index: {}]   ;;  %s14847_s2 = inlined_call_operand.hbm [shape: bf16[512,512], index: 2, kind: input, shape index: {}]   ;;  %s14848_s3 = inlined_call_operand.hbm [shape: bf16[512,512], index: 3, kind: input, shape index: {}]   ;;  %s14849_s4 = inlined_call_operand.hbm [shape: bf16[512,512], index: 4, kind: input, shape index: {}]   ;;  %s14850_s5 = inlined_call_operand.hbm [shape: f32[1,512], index: 5, kind: input, shape index: {}]   ;;  %s14851_s6 = inlined_call_operand.hbm [shape: f32[1,512], index: 6, kind: input, shape index: {}]   ;;  %s14852_s7 = inlined_call_operand.hbm [shape: f32[1,512], index: 7, kind: input, shape index: {}]   ;;  %s14853_s8 = inlined_call_operand.hbm [shape: f32[1,512], index: 8, kind: input, shape index: {}]   ;;  %s14854_s9 = inlined_call_operand.hbm [shape: f32[2,128,512], index: 9, kind: output, shape index: {}]  }
   0x1   :  { %14886 = sst [smem:[#allocation112_spill]] %s14846_s1 }
   0x2   :  { %14887 = sst [smem:[#allocation113_spill]] %s14847_s2 }
   0x3   :  { %14888 = sst [smem:[#allocation114_spill]] %s14848_s3 }
   0x4   :  { %14889 = sst [smem:[#allocation115_spill]] %s14849_s4 }
   0x5   :  { %14 = vsyncpa [#allocation3], 0 }
   0x6   :  { %16 = vsyncpa [#allocation3 + $0x1], 0 }
   0x7   :  { %17 = vsyncpa [#allocation6], 0 }
   0x8   :  { %18 = vsyncpa [#allocation9], 0 }
   0x9   :  { %19 = vsyncpa [#allocation12], 0 }
   0xa   :  { %20 = vsyncpa [#allocation15], 0 }
   0xb   :  { %21 = vsyncpa [#allocation4], 0 }
   0xc   :  { %23 = vsyncpa [#allocation4 + $0x1], 0  ;;  %s12252_s30 = smov 0   ;;  %s12254_s10 = smov 0  }
   0xd   :  { %s12256_s11 = smov 0   ;;  %s12258_s12 = smov 0  }
   0xe LB: > { %s14890_s1 = sld [smem:[#allocation112_spill]]  ;;  %s12276_s16 = sadd.s32 4294967295, %s12186_s12   ;;  %s12186_s12 = sphi %s12258_s12, %s15301_s12   ;;  %s12182_s11 = sphi %s12256_s11, %s15300_s11   ;;  %s12178_s10 = sphi %s12254_s10, %s15299_s10   ;;  %s12174_s30 = sphi %s12252_s30, %s15298_s30  }
   0xf   : > { %p8851_p0 = scmp.ge.s32.totalorder %s12186_s12, 1  ;;  %p50_p1 = scmp.eq.s32.totalorder %s12276_s16, 0 }
  0x10   : > { %p254_p2 = scmp.lt.s32.totalorder %s12186_s12, 3  ;;  %s12188_s18 = smov [#allocation5]  }
  0x11   : > { %s267_s19 = sshll.u32 %s12188_s18, 4  ;;  %s14892_s3 = sld [smem:[#allocation114_spill]]  ;;  %s268_s19 = int_to_ptr.vmem [resolvable:$true] %s267_s19 }
  0x12   : > { %p12281_p3 = pnand %p8851_p0, %p254_p2  ;;  %s322_s26 = sshll.u32 %s14850_s5, 4  ;;  %s323_s26 = int_to_ptr.hbm [resolvable:$true] %s322_s26 }
  0x13   : > { %s12189_s27 = smov [#allocation8]   ;;  %s12190_s29 = smov 256  }
  0x14   : > { %s265_s15 = sshll.u32 %s14890_s1, 4  ;;  %p11478_p4 = pneg %p12281_p3  ;;  %s266_s15 = int_to_ptr.hbm [resolvable:$true] %s265_s15 }
  0x15   : > { %s295_s28 = sshll.u32 %s12189_s27, 4  ;;  %s12191_s13 = smov 16   ;;  %s296_s28 = int_to_ptr.vmem [resolvable:$true] %s295_s28 }
  0x16   : > { %p12293_p6 = pnand %p11478_p4, %p50_p1  ;;  %s346_s20 = sshll.u32 %s14852_s7, 4  ;;  %s347_s20 = int_to_ptr.hbm [resolvable:$true] %s346_s20 }
  0x17   : > { %s293_s22 = sshll.u32 %s14892_s3, 4  ;;  %s12192_s21 = smov [#allocation11]   ;;  %s294_s22 = int_to_ptr.hbm [resolvable:$true] %s293_s22 }
  0x18   : > { %11481 = dma.hbm_to_vmem [thread:$0]  (!%p12293_p6), %s266_s15, 16384, %s268_s19, [#allocation6], %s12190_s29, %s12190_s29, %s12191_s13  }
  0x19   : > { %11487 = dma.hbm_to_vmem [thread:$0]  (!%p12293_p6), %s294_s22, 16384, %s296_s28, [#allocation9], %s12190_s29, %s12190_s29, %s12191_s13  }
  0x1a   : > { %s324_s24 = sshll.u32 %s12192_s21, 4  ;;  %s12193_s25 = smov [#allocation14]   ;;  %s325_s24 = int_to_ptr.vmem [resolvable:$true] %s324_s24 }
  0x1b   : > { %11493 = dma.hbm_to_vmem [thread:$0]  (!%p12293_p6), %s323_s26, 64, %s325_s24, [#allocation12]  }
  0x1c   : > { %s348_s15 = sshll.u32 %s12193_s25, 4  ;;  %s14894_s2 = sld [smem:[#allocation113_spill]]  ;;  %s349_s15 = int_to_ptr.vmem [resolvable:$true] %s348_s15 }
  0x1d   : > { %11499 = dma.hbm_to_vmem [thread:$0]  (!%p12293_p6), %s347_s20, 64, %s349_s15, [#allocation15]  }
  0x1e   : > { %s14895_s4 = sld [smem:[#allocation115_spill]]  ;;  %s12194_s18 = smov [#allocation7]  }
  0x1f   : > { %s281_s21 = sshll.u32 %s12194_s18, 4  ;;  %s12195_s26 = smov [#allocation10]   ;;  %s282_s21 = int_to_ptr.vmem [resolvable:$true] %s281_s21 }
  0x20   : > { %s309_s24 = sshll.u32 %s12195_s26, 4  ;;  %s334_s15 = sshll.u32 %s14851_s6, 4  ;;  %s310_s24 = int_to_ptr.vmem [resolvable:$true] %s309_s24  ;;  %s335_s15 = int_to_ptr.hbm [resolvable:$true] %s334_s15 }
  0x21   : > { %s358_s27 = sshll.u32 %s14853_s8, 4  ;;  %s12196_s22 = smov [#allocation13]   ;;  %s359_s27 = int_to_ptr.hbm [resolvable:$true] %s358_s27 }
  0x22   : > { %s279_s1 = sshll.u32 %s14894_s2, 4  ;;  %s336_s28 = sshll.u32 %s12196_s22, 4  ;;  %s280_s1 = int_to_ptr.hbm [resolvable:$true] %s279_s1  ;;  %s337_s28 = int_to_ptr.vmem [resolvable:$true] %s336_s28 }
  0x23   : > { %11484 = dma.hbm_to_vmem [thread:$0]  (!%p12293_p6), %s280_s1, 16384, %s282_s21, [#allocation6], %s12190_s29, %s12190_s29, %s12191_s13  }
  0x24   : > { %s307_s14 = sshll.u32 %s14895_s4, 4  ;;  %s12197_s18 = smov [#allocation16]   ;;  %s308_s14 = int_to_ptr.hbm [resolvable:$true] %s307_s14 }
  0x25   : > { %11490 = dma.hbm_to_vmem [thread:$0]  (!%p12293_p6), %s308_s14, 16384, %s310_s24, [#allocation9], %s12190_s29, %s12190_s29, %s12191_s13  }
  0x26   : > { %11496 = dma.hbm_to_vmem [thread:$0]  (!%p12293_p6), %s335_s15, 64, %s337_s28, [#allocation12]  }
  0x27   : > { %s360_s29 = sshll.u32 %s12197_s18, 4  ;;  %s8850_s13 = sadd.s32 4294967294, %s12186_s12   ;;  %s361_s29 = int_to_ptr.vmem [resolvable:$true] %s360_s29 }
  0x28   : > { %11502 = dma.hbm_to_vmem [thread:$0]  (!%p12293_p6), %s359_s27, 64, %s361_s29, [#allocation15]  }
  0x29   : > { %s12345_s14 = sadd.s32 1, %s12186_s12   ;;  %s36_s26 = sadd.s32 1, %s12182_s11 }
  0x2a   : > { %s33_s21 = ssub.s32 %s12186_s12, %s12345_s14  ;;  %p43_p8 = scmp.ne.s32.totalorder %s12182_s11, %s12178_s10 }
  0x2b   : > { %p34_p7 = scmp.eq.s32.totalorder %s33_s21, 0  ;;  %p44_p9 = scmp.eq.s32.totalorder %s12186_s12, 0 }
  0x2c   : > { %p49_p10 = scmp.ne.s32.totalorder %s12178_s10, %s12174_s30  ;;  %p241_p13 = scmp.eq.s32.totalorder %s12276_s16, 1 }
  0x2d   : > { %s12356_s24 = scalar_select %p34_p7, %s12182_s11, %s36_s26  }
  0x2e   : > { %p12358_p11 = por %p44_p9, %p43_p8  ;;  %p12364_p12 = por %p50_p1, %p49_p10 }
  0x2f   : > { %p247_p0 = scmp.eq.s32.totalorder %s8850_s13, 1  ;;  %p11519_p2 = scmp.lt.s32.totalorder %s12186_s12, 2 }
  0x30   : > { %s371_s20 = sand.u32 1, %s12182_s11   ;;  %p12371_p4 = por %p241_p13, %p43_p8 }
  0x31   : > { %p12375_p6 = por %p247_p0, %p49_p10  ;;  %s8861_s1 = sshll.u32 %s371_s20, 9 }
  0x32   : > { %s10928_s27 = sshll.u32 %s12186_s12, 9  ;;  %s375_s29 = scalar_lea.vmem [#allocation2], %s8861_s1 }
  0x33   : > { %s380_s18 = scalar_lea.hbm %s14845_s0, %s10928_s27  ;;  %s383_s21 = sshll.u32 %s375_s29, 4  ;;  %s384_s21 = int_to_ptr.vmem [resolvable:$true] %s383_s21 }
  0x34   : > { %s381_s26 = sshll.u32 %s380_s18, 4  ;;  %p12385_p7 = pnand %p11519_p2, %p12358_p11  ;;  %s382_s26 = int_to_ptr.hbm [resolvable:$true] %s381_s26 }
  0x35   : > { %s372_s2 = scalar_lea.sflag [#allocation3], %s371_s20  ;;  %s12074_s3 = sshra.s32 %s382_s26, 4  ;;  %s12075_s3 = int_to_ptr.hbm [resolvable:$true] %s12074_s3 }
  0x36   : > { %s12076_s4 = scalar_lea.hbm %s12075_s3, 512  ;;  %p12078_p9 = pneg %p12385_p7 }
  0x37   : > { %p12077_p8 = scmp.ne.s32.totalorder %s12075_s3, %s12076_s4  ;;  %s12081_s22 = scalar_lea.hbm %s14845_s0, 1024 }
  0x38   : > { %p12082_p11 = scmp.lt.s32.totalorder %s12075_s3, %s14845_s0  ;;  %p12083_p0 = scmp.lt.s32.totalorder %s12081_s22, %s12076_s4 }
  0x39   : > { %p12079_p10 = pnand %p12078_p9, %p12077_p8 }
  0x3a   : > { %p12084_p2 = por %p12083_p0, %p12082_p11 }
  0x3b   : > { %p12080_p13 = pneg %p12079_p10 }
  0x3d   : > { %p12085_p5 = pnand %p12084_p2, %p12080_p13 }
  0x3f   : > { %12088 = shalt.err (!%p12085_p5)
}
  0x40   : > { %s12198_s20 = smov 512   ;;  %s12199_s18 = smov 32  }
  0x41   : > { %11506 = dma.hbm_to_vmem [thread:$0]  (!%p12385_p7), %s382_s26, 8192, %s384_s21, %s372_s2, %s12198_s20, %s12198_s20, %s12199_s18  }
  0x42   : > { %395 = sbr.rel (%p12281_p3) target bundleno = 3529 (0xdc9), region = 56 }
  0x47   : > { %s12402_s29 = sand.u32 1, %s12178_s10  }
  0x48   : > { %s8865_s3 = sshll.u32 %s12402_s29, 9  ;;  %s398_s4 = scalar_lea.sflag [#allocation3], %s12402_s29 }
  0x49   : > { %s12408_s1 = scalar_lea.vmem [#allocation2], %s8865_s3 }
  0x4a   : > { %12149 = dma.done.wait (%p12364_p12), %s398_s4, 8192  }
  0x4b   : > { %12151 = vsyncadd (%p12364_p12), %s398_s4, 4294959104 }
  0x4c   : > { %12153 = dma.done.wait (%p50_p1), [#allocation6], 32768  }
  0x4d   : > { %12155 = vsyncadd (%p50_p1), [#allocation6], 4294934528 }
  0x4e   : > { %12157 = dma.done.wait (%p50_p1), [#allocation9], 32768  }
  0x4f   : > { %12159 = vsyncadd (%p50_p1), [#allocation9], 4294934528 }
  0x50   : > { %12161 = dma.done.wait (%p50_p1), [#allocation12], 128  }
  0x51   : > { %12163 = vsyncadd (%p50_p1), [#allocation12], 4294967168 }
  0x52   : > { %12165 = dma.done.wait (%p50_p1), [#allocation15], 128  }
  0x53   : > { %12167 = vsyncadd (%p50_p1), [#allocation15], 4294967168  ;;  %v8989_v0 = vld [vmem:[#allocation5 + $0xe0] sm:$0xf]  ;;  %v10959_v1 = vld [vmem:[#allocation5 + $0xec] sm:$0xf0] }
  0x54   : > { %v9245_v2 = vld [vmem:[#allocation5 + $0x2e0] sm:$0xf]  ;;  %v8990_v3 = vor.u32 %v10959_v1, %v8989_v0  ;;  %v11023_v4 = vld [vmem:[#allocation5 + $0x2ec] sm:$0xf0]  ;;  %s14563_s2 = scalar_lea.vmem [#allocation17], %s8865_s3  ;;  %s11441_s17 = sshll.u32 %s12276_s16, 9 }
  0x55   : > { %v9373_v5 = vld [vmem:[#allocation5 + $0x3e0] sm:$0xf]  ;;  %v11055_v6 = vld [vmem:[#allocation5 + $0x3ec] sm:$0xf0]  ;;  %v9246_v7 = vor.u32 %v11023_v4, %v9245_v2  ;;  %s8697_s16 = scalar_lea.hbm %s14854_s9, %s11441_s17  ;;  %s8698_s26 = sshll.u32 %s14563_s2, 4  ;;  %s8699_s26 = int_to_ptr.vmem [resolvable:$true] %s8698_s26 }
  0x56   : > { %v9374_v8 = vor.u32 %v11055_v6, %v9373_v5  ;;  %v8973_v9 = vld [vmem:[#allocation5 + $0xc0] sm:$0xf]  ;;  %v10955_v10 = vld [vmem:[#allocation5 + $0xcc] sm:$0xf0]  ;;  %1351 = vmatpush.bf16.msra.mxu0 %v8990_v3  ;;  %s8700_s13 = sshll.u32 %s8697_s16, 4  ;;  %s8686_s27 = scalar_lea.sflag [#allocation4], %s12402_s29  ;;  %s8701_s13 = int_to_ptr.hbm [resolvable:$true] %s8700_s13 }
  0x57   : > { %v9117_v11 = vld [vmem:[#allocation5 + $0x1e0] sm:$0xf]  ;;  %v8974_v12 = vor.u32 %v10955_v10, %v8973_v9  ;;  %v10991_v13 = vld [vmem:[#allocation5 + $0x1ec] sm:$0xf0]  ;;  %1449 = vmatpush.bf16.msra.mxu2 %v9246_v7  ;;  %s12118_s22 = sshra.s32 %s8701_s13, 4  ;;  %s12124_s18 = scalar_lea.hbm %s14854_s9, 1024  ;;  %s12119_s22 = int_to_ptr.hbm [resolvable:$true] %s12118_s22 }
  0x58   : > { %v9229_v14 = vld [vmem:[#allocation5 + $0x2c0] sm:$0xf]  ;;  %v11019_v15 = vld [vmem:[#allocation5 + $0x2cc] sm:$0xf0]  ;;  %1498 = vmatpush.bf16.msra.mxu3 %v9374_v8  ;;  %v9118_v16 = vor.u32 %v10991_v13, %v9117_v11  ;;  %s12120_s28 = scalar_lea.hbm %s12119_s22, 512  ;;  %p12125_p12 = scmp.lt.s32.totalorder %s12119_s22, %s14854_s9 }
  0x59   : > { %v9230_v17 = vor.u32 %v11019_v15, %v9229_v14  ;;  %v9357_v18 = vld [vmem:[#allocation5 + $0x3c0] sm:$0xf]  ;;  %v11051_v19 = vld [vmem:[#allocation5 + $0x3cc] sm:$0xf0]  ;;  %p12121_p1 = scmp.ne.s32.totalorder %s12119_s22, %s12120_s28  ;;  %p12126_p7 = scmp.lt.s32.totalorder %s12124_s18, %s12120_s28 }
  0x5a   : > { %v8957_v20 = vld [vmem:[#allocation5 + $0xa0] sm:$0xf]  ;;  %v9358_v21 = vor.u32 %v11051_v19, %v9357_v18  ;;  %v10951_v22 = vld [vmem:[#allocation5 + $0xac] sm:$0xf0]  ;;  %1400 = vmatpush.bf16.msra.mxu1 %v9118_v16  ;;  %1352 = vmatpush.bf16.msra.mxu0 %v8974_v12 }
  0x5b   : > { %v9101_v23 = vld [vmem:[#allocation5 + $0x1c0] sm:$0xf]  ;;  %v10987_v24 = vld [vmem:[#allocation5 + $0x1cc] sm:$0xf0]  ;;  %v8958_v29 = vor.u32 %v10951_v22, %v8957_v20  ;;  %1450 = vmatpush.bf16.msra.mxu2 %v9230_v17  ;;  %p12122_p3 = pnand %p12121_p1, %p12371_p4  ;;  %p12127_p8 = por %p12126_p7, %p12125_p12 }
  0x5c   : > { %v9102_v25 = vor.u32 %v10987_v24, %v9101_v23  ;;  %v9213_v26 = vld [vmem:[#allocation5 + $0x2a0] sm:$0xf]  ;;  %v11015_v27 = vld [vmem:[#allocation5 + $0x2ac] sm:$0xf0]  ;;  %1499 = vmatpush.bf16.msra.mxu3 %v9358_v21 }
  0x5d   : > { %v9341_v28 = vld [vmem:[#allocation5 + $0x3a0] sm:$0xf]  ;;  %v11047_v30 = vld [vmem:[#allocation5 + $0x3ac] sm:$0xf0]  ;;  %v9214_v33 = vor.u32 %v11015_v27, %v9213_v26  ;;  %p12123_p5 = pneg %p12122_p3 }
  0x5e   : > { %v8941_v31 = vld [vmem:[#allocation5 + $0x80] sm:$0xf]  ;;  %v10947_v32 = vld [vmem:[#allocation5 + $0x8c] sm:$0xf0]  ;;  %v9342_v34 = vor.u32 %v11047_v30, %v9341_v28  ;;  %1401 = vmatpush.bf16.msra.mxu1 %v9102_v25  ;;  %1353 = vmatpush.bf16.msra.mxu0 %v8958_v29  ;;  %v11021_v28 = vld [vmem:[#allocation5 + $0x2e4] sm:$0xf] }
  0x5f   : > { %v9085_v35 = vld [vmem:[#allocation5 + $0x1a0] sm:$0xf]  ;;  %v10983_v36 = vld [vmem:[#allocation5 + $0x1ac] sm:$0xf0]  ;;  %v8942_v42 = vor.u32 %v10947_v32, %v8941_v31  ;;  %1451 = vmatpush.bf16.msra.mxu2 %v9214_v33  ;;  %v9247_v29 = vld [vmem:[#allocation5 + $0x2f0] sm:$0xf0]  ;;  %p12128_p9 = pnand %p12127_p8, %p12123_p5 }
  0x60   : > { %v9197_v37 = vld [vmem:[#allocation5 + $0x280] sm:$0xf]  ;;  %v11011_v38 = vld [vmem:[#allocation5 + $0x28c] sm:$0xf0]  ;;  %v9086_v41 = vor.u32 %v10983_v36, %v9085_v35  ;;  %1500 = vmatpush.bf16.msra.mxu3 %v9342_v34 }
  0x61   : > { %v9325_v39 = vld [vmem:[#allocation5 + $0x380] sm:$0xf]  ;;  %v11043_v40 = vld [vmem:[#allocation5 + $0x38c] sm:$0xf0]  ;;  %v9198_v45 = vor.u32 %v11011_v38, %v9197_v37  ;;  %v480_v37 = vld [vmem:[%s12408_s1 + $0x18] sm:$0xff] }
  0x62   : > { %v9069_v43 = vld [vmem:[#allocation5 + $0x180] sm:$0xf]  ;;  %v10979_v44 = vld [vmem:[#allocation5 + $0x18c] sm:$0xf0]  ;;  %v9326_v46 = vor.u32 %v11043_v40, %v9325_v39  ;;  %1402 = vmatpush.bf16.msra.mxu1 %v9086_v41  ;;  %1354 = vmatpush.bf16.msra.mxu0 %v8942_v42  ;;  %v484_v38 = vld [vmem:[%s12408_s1 + $0x38] sm:$0xff]  ;;  %v9250_v39 = vor.u32 %v11021_v28, %v9247_v29 }
  0x63   : > { %v8925_v47 = vld [vmem:[#allocation5 + $0x60] sm:$0xf]  ;;  %v10943_v48 = vld [vmem:[#allocation5 + $0x6c] sm:$0xf0]  ;;  %v9070_v53 = vor.u32 %v10979_v44, %v9069_v43  ;;  %1452 = vmatpush.bf16.msra.mxu2 %v9198_v45  ;;  %v478_v40 = vld [vmem:[%s12408_s1 + $0x8] sm:$0xff] }
  0x64   : > { %v9181_v49 = vld [vmem:[#allocation5 + $0x260] sm:$0xf]  ;;  %v11007_v50 = vld [vmem:[#allocation5 + $0x26c] sm:$0xf0]  ;;  %v8926_v54 = vor.u32 %v10943_v48, %v8925_v47  ;;  %1501 = vmatpush.bf16.msra.mxu3 %v9326_v46  ;;  %v482_v43 = vld [vmem:[%s12408_s1 + $0x28] sm:$0xff]  ;;  %v12442_v47 = vpack.c.bf16 %v484_v38, %v480_v37 }
  0x65   : > { %v9309_v51 = vld [vmem:[#allocation5 + $0x360] sm:$0xf]  ;;  %v11039_v52 = vld [vmem:[#allocation5 + $0x36c] sm:$0xf0]  ;;  %v9182_v57 = vor.u32 %v11007_v50, %v9181_v49  ;;  %v11017_v44 = vld [vmem:[#allocation5 + $0x2c4] sm:$0xf]  ;;  %v12444_v48 = vpack.c.bf16 %v482_v43, %v478_v40 }
  0x66   : > { %v9053_v55 = vld [vmem:[#allocation5 + $0x160] sm:$0xf]  ;;  %v10975_v56 = vld [vmem:[#allocation5 + $0x16c] sm:$0xf0]  ;;  %v9310_v58 = vor.u32 %v11039_v52, %v9309_v51  ;;  %1403 = vmatpush.bf16.msra.mxu1 %v9070_v53  ;;  %1355 = vmatpush.bf16.msra.mxu0 %v8926_v54  ;;  %v9231_v45 = vld [vmem:[#allocation5 + $0x2d0] sm:$0xf0] }
  0x67   : > { %v8909_v59 = vld [vmem:[#allocation5 + $0x40] sm:$0xf]  ;;  %v10939_v60 = vld [vmem:[#allocation5 + $0x4c] sm:$0xf0]  ;;  %v9054_v1 = vor.u32 %v10975_v56, %v9053_v55  ;;  %1453 = vmatpush.bf16.msra.mxu2 %v9182_v57  ;;  %v9234_v49 = vor.u32 %v11017_v44, %v9231_v45  ;;  %v11013_v50 = vld [vmem:[#allocation5 + $0x2a4] sm:$0xf] }
  0x68   : > { %v9165_v61 = vld [vmem:[#allocation5 + $0x240] sm:$0xf]  ;;  %v11003_v62 = vld [vmem:[#allocation5 + $0x24c] sm:$0xf0]  ;;  %v8910_v2 = vor.u32 %v10939_v60, %v8909_v59  ;;  %1502 = vmatpush.bf16.msra.mxu3 %v9310_v58  ;;  %v9215_v51 = vld [vmem:[#allocation5 + $0x2b0] sm:$0xf0] }
  0x69   : > { %v9293_v63 = vld [vmem:[#allocation5 + $0x340] sm:$0xf]  ;;  %v11035_v0 = vld [vmem:[#allocation5 + $0x34c] sm:$0xf0]  ;;  %v9166_v5 = vor.u32 %v11003_v62, %v9165_v61  ;;  %v9218_v52 = vor.u32 %v11013_v50, %v9215_v51  ;;  %v488_v57 = vld [vmem:[%s12408_s1 + $0x58] sm:$0xff] }
  0x6a   : > { %v9037_v3 = vld [vmem:[#allocation5 + $0x140] sm:$0xf]  ;;  %v10971_v4 = vld [vmem:[#allocation5 + $0x14c] sm:$0xf0]  ;;  %v9294_v6 = vor.u32 %v11035_v0, %v9293_v63  ;;  %1404 = vmatpush.bf16.msra.mxu1 %v9054_v1  ;;  %1356 = vmatpush.bf16.msra.mxu0 %v8910_v2  ;;  %v492_v58 = vld [vmem:[%s12408_s1 + $0x78] sm:$0xff] }
  0x6b   : > { %v8893_v7 = vld [vmem:[#allocation5 + $0x20] sm:$0xf]  ;;  %v10935_v8 = vld [vmem:[#allocation5 + $0x2c] sm:$0xf0]  ;;  %v9038_v13 = vor.u32 %v10971_v4, %v9037_v3  ;;  %1454 = vmatpush.bf16.msra.mxu2 %v9166_v5  ;;  %v486_v60 = vld [vmem:[%s12408_s1 + $0x48] sm:$0xff]  ;;  %v12462_v63 = vpack.c.bf16 %v492_v58, %v488_v57 }
  0x6c   : > { %v9149_v9 = vld [vmem:[#allocation5 + $0x220] sm:$0xf]  ;;  %v10999_v10 = vld [vmem:[#allocation5 + $0x22c] sm:$0xf0]  ;;  %v8894_v14 = vor.u32 %v10935_v8, %v8893_v7  ;;  %1503 = vmatpush.bf16.msra.mxu3 %v9294_v6  ;;  %v490_v61 = vld [vmem:[%s12408_s1 + $0x68] sm:$0xff] }
  0x6d   : > { %v9277_v11 = vld [vmem:[#allocation5 + $0x320] sm:$0xf]  ;;  %v11031_v12 = vld [vmem:[#allocation5 + $0x32c] sm:$0xf0]  ;;  %v9150_v18 = vor.u32 %v10999_v10, %v9149_v9  ;;  %14901 = vst [vmem:[#allocation24_spill] sm:$0xff] %v12462_v63  ;;  %v12464_v0 = vpack.c.bf16 %v490_v61, %v486_v60  ;;  %v496_v8 = vld [vmem:[%s12408_s1 + $0x98] sm:$0xff] }
  0x6e   : > { %v8877_v15 = vld [vmem:[#allocation5] sm:$0xf]  ;;  %v10967_v17 = vld [vmem:[#allocation5 + $0x12c] sm:$0xf0]  ;;  %v9278_v19 = vor.u32 %v11031_v12, %v9277_v11  ;;  %1405 = vmatpush.bf16.msra.mxu1 %v9038_v13  ;;  %1357 = vmatpush.bf16.msra.mxu0 %v8894_v14  ;;  %v11009_v1 = vld [vmem:[#allocation5 + $0x284] sm:$0xf] }
  0x6f   : > { %v9021_v16 = vld [vmem:[#allocation5 + $0x120] sm:$0xf]  ;;  %v10931_v20 = vld [vmem:[#allocation5 + $0xc] sm:$0xf0]  ;;  %1455 = vmatpush.bf16.msra.mxu2 %v9150_v18  ;;  %14902 = vst [vmem:[#allocation25_spill] sm:$0xff] %v12464_v0  ;;  %v500_v9 = vld [vmem:[%s12408_s1 + $0xb8] sm:$0xff] }
  0x70   : > { %v9133_v21 = vld [vmem:[#allocation5 + $0x200] sm:$0xf]  ;;  %v10995_v22 = vld [vmem:[#allocation5 + $0x20c] sm:$0xf0]  ;;  %v9022_v26 = vor.u32 %v10967_v17, %v9021_v16  ;;  %v8878_v30 = vor.u32 %v10931_v20, %v8877_v15  ;;  %1504 = vmatpush.bf16.msra.mxu3 %v9278_v19  ;;  %v9199_v2 = vld [vmem:[#allocation5 + $0x290] sm:$0xf0]  ;;  %v12482_v14 = vpack.c.bf16 %v500_v9, %v496_v8 }
  0x71   : > { %v9261_v23 = vld [vmem:[#allocation5 + $0x300] sm:$0xf]  ;;  %v11027_v24 = vld [vmem:[#allocation5 + $0x30c] sm:$0xf0]  ;;  %v9134_v34 = vor.u32 %v10995_v22, %v9133_v21  ;;  %v9202_v3 = vor.u32 %v11009_v1, %v9199_v2  ;;  %v494_v11 = vld [vmem:[%s12408_s1 + $0x88] sm:$0xff] }
  0x72   : > { %v477_v25 = vld [vmem:[%s12408_s1] sm:$0xff]  ;;  %v479_v31 = vld [vmem:[%s12408_s1 + $0x10] sm:$0xff]  ;;  %v9262_v35 = vor.u32 %v11027_v24, %v9261_v23  ;;  %1406 = vmatpush.bf16.msra.mxu1 %v9022_v26  ;;  %1358 = vmatpush.bf16.msra.mxu0 %v8878_v30  ;;  %v498_v12 = vld [vmem:[%s12408_s1 + $0xa8] sm:$0xff] }
  0x73   : > { %v481_v27 = vld [vmem:[%s12408_s1 + $0x20] sm:$0xff]  ;;  %v10963_v33 = vld [vmem:[#allocation5 + $0x10c] sm:$0xf0]  ;;  %1456 = vmatpush.bf16.msra.mxu2 %v9134_v34  ;;  %v12484_v15 = vpack.c.bf16 %v498_v12, %v494_v11  ;;  %v9183_v17 = vld [vmem:[#allocation5 + $0x270] sm:$0xf0] }
  0x74   : > { %v9005_v32 = vld [vmem:[#allocation5 + $0x100] sm:$0xf]  ;;  %v483_v36 = vld [vmem:[%s12408_s1 + $0x30] sm:$0xff]  ;;  %v12437_v41 = vpack.c.bf16 %v481_v27, %v477_v25  ;;  %1505 = vmatpush.bf16.msra.mxu3 %v9262_v35  ;;  %v11005_v16 = vld [vmem:[#allocation5 + $0x264] sm:$0xf] }
  0x75   : > { %v9006_v42 = vor.u32 %v10963_v33, %v9005_v32  ;;  %v12440_v46 = vpack.c.bf16 %v483_v36, %v479_v31  ;;  %v485_v53 = vld [vmem:[%s12408_s1 + $0x40] sm:$0xff]  ;;  %v487_v55 = vld [vmem:[%s12408_s1 + $0x50] sm:$0xff]  ;;  %v9186_v18 = vor.u32 %v11005_v16, %v9183_v17  ;;  %v504_v23 = vld [vmem:[%s12408_s1 + $0xd8] sm:$0xff] }
  0x76   : > { %1359 = vmatmul.bf16.vlgmr.msra.gmra.mxu0 %v12437_v41  ;;  %v489_v54 = vld [vmem:[%s12408_s1 + $0x60] sm:$0xff]  ;;  %v491_v56 = vld [vmem:[%s12408_s1 + $0x70] sm:$0xff]  ;;  %v508_v24 = vld [vmem:[%s12408_s1 + $0xf8] sm:$0xff] }
  0x77   : > { %1645 = vmatpush.bf16.msrb.mxu2 %v9250_v39  ;;  %1407 = vmatpush.bf16.msra.mxu1 %v9006_v42  ;;  %v12456_v59 = vpack.c.bf16 %v489_v54, %v485_v53  ;;  %v12460_v62 = vpack.c.bf16 %v491_v56, %v487_v55  ;;  %v493_v4 = vld [vmem:[%s12408_s1 + $0x80] sm:$0xff]  ;;  %v495_v6 = vld [vmem:[%s12408_s1 + $0x90] sm:$0xff]  ;;  %v502_v26 = vld [vmem:[%s12408_s1 + $0xc8] sm:$0xff]  ;;  %v12502_v29 = vpack.c.bf16 %v508_v24, %v504_v23 }
  0x78   : > { %1457 = vmatmul.bf16.vlgmr.msra.gmra.mxu2 %v12440_v46  ;;  %1506 = vmatmul.bf16.vlgmr.msra.gmra.mxu3 %v12442_v47  ;;  %v497_v5 = vld [vmem:[%s12408_s1 + $0xa0] sm:$0xff]  ;;  %v499_v7 = vld [vmem:[%s12408_s1 + $0xb0] sm:$0xff]  ;;  %v506_v27 = vld [vmem:[%s12408_s1 + $0xe8] sm:$0xff] }
  0x79   : > { %v12476_v10 = vpack.c.bf16 %v497_v5, %v493_v4  ;;  %v12480_v13 = vpack.c.bf16 %v499_v7, %v495_v6  ;;  %v501_v19 = vld [vmem:[%s12408_s1 + $0xc0] sm:$0xff]  ;;  %v503_v21 = vld [vmem:[%s12408_s1 + $0xd0] sm:$0xff]  ;;  %v12504_v30 = vpack.c.bf16 %v506_v27, %v502_v26  ;;  %v512_v38 = vld [vmem:[%s12408_s1 + $0x118] sm:$0xff] }
  0x7a   : > { %1408 = vmatmul.bf16.vlgmr.msra.gmra.mxu1 %v12444_v48  ;;  %v505_v20 = vld [vmem:[%s12408_s1 + $0xe0] sm:$0xff]  ;;  %v507_v22 = vld [vmem:[%s12408_s1 + $0xf0] sm:$0xff]  ;;  %v516_v39 = vld [vmem:[%s12408_s1 + $0x138] sm:$0xff] }
  0x7b   : > { %1646 = vmatpush.bf16.msrb.mxu2 %v9234_v49  ;;  %v12496_v25 = vpack.c.bf16 %v505_v20, %v501_v19  ;;  %v12500_v28 = vpack.c.bf16 %v507_v22, %v503_v21  ;;  %14903 = vst [vmem:[#allocation26_spill] sm:$0xff] %v12504_v30  ;;  %v11001_v31 = vld [vmem:[#allocation5 + $0x244] sm:$0xf]  ;;  %v9167_v32 = vld [vmem:[#allocation5 + $0x250] sm:$0xf0]  ;;  %v510_v42 = vld [vmem:[%s12408_s1 + $0x108] sm:$0xff]  ;;  %v12522_v45 = vpack.c.bf16 %v516_v39, %v512_v38 }
  0x7c   : > { %v9170_v33 = vor.u32 %v11001_v31, %v9167_v32  ;;  %v509_v34 = vld [vmem:[%s12408_s1 + $0x100] sm:$0xff]  ;;  %v511_v36 = vld [vmem:[%s12408_s1 + $0x110] sm:$0xff]  ;;  %v514_v43 = vld [vmem:[%s12408_s1 + $0x128] sm:$0xff] }
  0x7d   : > { %v513_v35 = vld [vmem:[%s12408_s1 + $0x120] sm:$0xff]  ;;  %v515_v37 = vld [vmem:[%s12408_s1 + $0x130] sm:$0xff]  ;;  %14906 = vst [vmem:[#allocation29_spill] sm:$0xff] %v12522_v45  ;;  %v12524_v49 = vpack.c.bf16 %v514_v43, %v510_v42  ;;  %v518_v42 = vld [vmem:[%s12408_s1 + $0x148] sm:$0xff] }
  0x7e   : > { %v12516_v40 = vpack.c.bf16 %v513_v35, %v509_v34  ;;  %v12520_v44 = vpack.c.bf16 %v515_v37, %v511_v36  ;;  %v10957_v50 = vld [vmem:[#allocation5 + $0xe4] sm:$0xf]  ;;  %v8991_v51 = vld [vmem:[#allocation5 + $0xf0] sm:$0xf0]  ;;  %v524_v34 = vld [vmem:[%s12408_s1 + $0x178] sm:$0xff] }
  0x7f   : > { %1647 = vmatpush.bf16.msrb.mxu2 %v9218_v52  ;;  %14907 = vst [vmem:[#allocation30_spill] sm:$0xff] %v12524_v49  ;;  %v8994_v52 = vor.u32 %v10957_v50, %v8991_v51  ;;  %v10997_v53 = vld [vmem:[#allocation5 + $0x224] sm:$0xf]  ;;  %v9151_v54 = vld [vmem:[#allocation5 + $0x230] sm:$0xf0]  ;;  %v522_v43 = vld [vmem:[%s12408_s1 + $0x168] sm:$0xff] }
  0x80   : > { %14904 = vst [vmem:[#allocation27_spill] sm:$0xff] %v12516_v40  ;;  %v11053_v55 = vld [vmem:[#allocation5 + $0x3e4] sm:$0xf]  ;;  %v9154_v56 = vor.u32 %v10997_v53, %v9151_v54  ;;  %v9375_v57 = vld [vmem:[#allocation5 + $0x3f0] sm:$0xf0]  ;;  %v12544_v53 = vpack.c.bf16 %v522_v43, %v518_v42 }
  0x81   : > { %14905 = vst [vmem:[#allocation28_spill] sm:$0xff] %v12520_v44  ;;  %1547 = vmatpush.bf16.msrb.mxu0 %v8994_v52  ;;  %v9378_v58 = vor.u32 %v11053_v55, %v9375_v57  ;;  %v10953_v60 = vld [vmem:[#allocation5 + $0xc4] sm:$0xf]  ;;  %v8975_v61 = vld [vmem:[#allocation5 + $0xd0] sm:$0xf0] }
  0x82   : > { %v10989_v1 = vld [vmem:[#allocation5 + $0x1e4] sm:$0xf]  ;;  %v8978_v2 = vor.u32 %v10953_v60, %v8975_v61  ;;  %v9359_v5 = vld [vmem:[#allocation5 + $0x3d0] sm:$0xf0]  ;;  %14911 = vst [vmem:[#allocation34_spill] sm:$0xff] %v12544_v53 }
  0x83   : > { %1648 = vmatpush.bf16.msrb.mxu2 %v9202_v3  ;;  %v9119_v3 = vld [vmem:[#allocation5 + $0x1f0] sm:$0xf0]  ;;  %v11049_v4 = vld [vmem:[#allocation5 + $0x3c4] sm:$0xf]  ;;  %1694 = vmatpush.bf16.msrb.mxu3 %v9378_v58 }
  0x84   : > { %v9122_v6 = vor.u32 %v10989_v1, %v9119_v3  ;;  %v9362_v7 = vor.u32 %v11049_v4, %v9359_v5  ;;  %v10949_v8 = vld [vmem:[#allocation5 + $0xa4] sm:$0xf]  ;;  %v8959_v9 = vld [vmem:[#allocation5 + $0xb0] sm:$0xf0] }
  0x85   : > { %v10985_v11 = vld [vmem:[#allocation5 + $0x1c4] sm:$0xf]  ;;  %1548 = vmatpush.bf16.msrb.mxu0 %v8978_v2  ;;  %v8962_v12 = vor.u32 %v10949_v8, %v8959_v9  ;;  %v9103_v16 = vld [vmem:[#allocation5 + $0x1d0] sm:$0xf0] }
  0x86   : > { %1364 = vmatmul.bf16.gmra.mxu0 %v12456_v59  ;;  %v11045_v17 = vld [vmem:[#allocation5 + $0x3a4] sm:$0xf]  ;;  %1596 = vmatpush.bf16.msrb.mxu1 %v9122_v6  ;;  %v9106_v19 = vor.u32 %v10985_v11, %v9103_v16  ;;  %v8943_v21 = vld [vmem:[#allocation5 + $0x90] sm:$0xf0] }
  0x87   : > { %1649 = vmatpush.bf16.msrb.mxu2 %v9186_v18  ;;  %v9343_v18 = vld [vmem:[#allocation5 + $0x3b0] sm:$0xf0]  ;;  %v10945_v20 = vld [vmem:[#allocation5 + $0x84] sm:$0xf]  ;;  %1695 = vmatpush.bf16.msrb.mxu3 %v9362_v7 }
  0x88   : > { %1462 = vmatmul.bf16.gmra.mxu2 %v12460_v62  ;;  %1511 = vmatmul.bf16.gmra.mxu3 %v12462_v63  ;;  %v10981_v22 = vld [vmem:[#allocation5 + $0x1a4] sm:$0xf]  ;;  %v9087_v23 = vld [vmem:[#allocation5 + $0x1b0] sm:$0xf0]  ;;  %v9346_v31 = vor.u32 %v11045_v17, %v9343_v18  ;;  %v8946_v35 = vor.u32 %v10945_v20, %v8943_v21 }
  0x89   : > { %v517_v24 = vld [vmem:[%s12408_s1 + $0x140] sm:$0xff]  ;;  %v519_v27 = vld [vmem:[%s12408_s1 + $0x150] sm:$0xff]  ;;  %1549 = vmatpush.bf16.msrb.mxu0 %v8962_v12  ;;  %v9090_v36 = vor.u32 %v10981_v22, %v9087_v23 }
  0x8a   : > { %1413 = vmatmul.bf16.gmra.mxu1 %v12464_v0  ;;  %v521_v26 = vld [vmem:[%s12408_s1 + $0x160] sm:$0xff]  ;;  %v523_v32 = vld [vmem:[%s12408_s1 + $0x170] sm:$0xff] }
  0x8b   : > { %1650 = vmatpush.bf16.msrb.mxu2 %v9170_v33  ;;  %v520_v33 = vld [vmem:[%s12408_s1 + $0x158] sm:$0xff]  ;;  %1597 = vmatpush.bf16.msrb.mxu1 %v9106_v19  ;;  %v11041_v37 = vld [vmem:[#allocation5 + $0x384] sm:$0xf]  ;;  %v9327_v38 = vld [vmem:[#allocation5 + $0x390] sm:$0xf0]  ;;  %v12536_v39 = vpack.c.bf16 %v521_v26, %v517_v24  ;;  %v12540_v50 = vpack.c.bf16 %v523_v32, %v519_v27 }
  0x8c   : > { %v12542_v51 = vpack.c.bf16 %v524_v34, %v520_v33  ;;  %1696 = vmatpush.bf16.msrb.mxu3 %v9346_v31  ;;  %v9330_v52 = vor.u32 %v11041_v37, %v9327_v38  ;;  %v10941_v54 = vld [vmem:[#allocation5 + $0x64] sm:$0xf]  ;;  %v8927_v55 = vld [vmem:[#allocation5 + $0x70] sm:$0xf0] }
  0x8d   : > { %14908 = vst [vmem:[#allocation31_spill] sm:$0xff] %v12536_v39  ;;  %1550 = vmatpush.bf16.msrb.mxu0 %v8946_v35  ;;  %v8930_v57 = vor.u32 %v10941_v54, %v8927_v55  ;;  %v9071_v58 = vld [vmem:[#allocation5 + $0x190] sm:$0xf0]  ;;  %v10993_v60 = vld [vmem:[#allocation5 + $0x204] sm:$0xf]  ;;  %v528_v35 = vld [vmem:[%s12408_s1 + $0x198] sm:$0xff] }
  0x8e   : > { %14909 = vst [vmem:[#allocation32_spill] sm:$0xff] %v12540_v50  ;;  %v9135_v61 = vld [vmem:[#allocation5 + $0x210] sm:$0xf0]  ;;  %v11037_v2 = vld [vmem:[#allocation5 + $0x364] sm:$0xf]  ;;  %v526_v54 = vld [vmem:[%s12408_s1 + $0x188] sm:$0xff] }
  0x8f   : > { %1651 = vmatpush.bf16.msrb.mxu2 %v9154_v56  ;;  %14910 = vst [vmem:[#allocation33_spill] sm:$0xff] %v12542_v51  ;;  %1598 = vmatpush.bf16.msrb.mxu1 %v9090_v36  ;;  %v10977_v56 = vld [vmem:[#allocation5 + $0x184] sm:$0xf]  ;;  %v9138_v3 = vor.u32 %v10993_v60, %v9135_v61  ;;  %v9311_v4 = vld [vmem:[#allocation5 + $0x370] sm:$0xf0]  ;;  %v532_v36 = vld [vmem:[%s12408_s1 + $0x1b8] sm:$0xff] }
  0x90   : > { %v9074_v1 = vor.u32 %v10977_v56, %v9071_v58  ;;  %1697 = vmatpush.bf16.msrb.mxu3 %v9330_v52  ;;  %v9314_v5 = vor.u32 %v11037_v2, %v9311_v4  ;;  %v10937_v6 = vld [vmem:[#allocation5 + $0x44] sm:$0xf]  ;;  %v8911_v7 = vld [vmem:[#allocation5 + $0x50] sm:$0xf0]  ;;  %v530_v55 = vld [vmem:[%s12408_s1 + $0x1a8] sm:$0xff]  ;;  %v12562_v60 = vpack.c.bf16 %v532_v36, %v528_v35 }
  0x91   : > { %1551 = vmatpush.bf16.msrb.mxu0 %v8930_v57  ;;  %v10973_v8 = vld [vmem:[#allocation5 + $0x164] sm:$0xf]  ;;  %v8914_v9 = vor.u32 %v10937_v6, %v8911_v7  ;;  %v9055_v11 = vld [vmem:[#allocation5 + $0x170] sm:$0xf0]  ;;  %v12564_v4 = vpack.c.bf16 %v530_v55, %v526_v54  ;;  %v11016_v54 = vld [vmem:[#allocation5 + $0x2b4] sm:$0xf0] }
  0x92   : > { %v11033_v12 = vld [vmem:[#allocation5 + $0x344] sm:$0xf]  ;;  %v9295_v16 = vld [vmem:[#allocation5 + $0x350] sm:$0xf0]  ;;  %v9058_v17 = vor.u32 %v10973_v8, %v9055_v11  ;;  %v9253_v8 = vld [vmem:[#allocation5 + $0x2e8] sm:$0xf] }
  0x93   : > { %1652 = vmatpush.bf16.msrb.mxu2 %v9138_v3  ;;  %1599 = vmatpush.bf16.msrb.mxu1 %v9074_v1  ;;  %v10933_v18 = vld [vmem:[#allocation5 + $0x24] sm:$0xf]  ;;  %v8895_v19 = vld [vmem:[#allocation5 + $0x30] sm:$0xf0]  ;;  %v9298_v21 = vor.u32 %v11033_v12, %v9295_v16 }
  0x94   : > { %v10969_v20 = vld [vmem:[#allocation5 + $0x144] sm:$0xf]  ;;  %1698 = vmatpush.bf16.msrb.mxu3 %v9314_v5  ;;  %v8898_v22 = vor.u32 %v10933_v18, %v8895_v19  ;;  %v9039_v23 = vld [vmem:[#allocation5 + $0x150] sm:$0xf0]  ;;  %v536_v19 = vld [vmem:[%s12408_s1 + $0x1d8] sm:$0xff] }
  0x95   : > { %1552 = vmatpush.bf16.msrb.mxu0 %v8914_v9  ;;  %v11029_v24 = vld [vmem:[#allocation5 + $0x324] sm:$0xf]  ;;  %v9279_v26 = vld [vmem:[#allocation5 + $0x330] sm:$0xf0]  ;;  %v9042_v27 = vor.u32 %v10969_v20, %v9039_v23  ;;  %v11024_v9 = vld [vmem:[#allocation5 + $0x2f4] sm:$0xf0] }
  0x96   : > { %1369 = vmatmul.bf16.gmra.mxu0 %v12476_v10  ;;  %v525_v31 = vld [vmem:[%s12408_s1 + $0x180] sm:$0xff]  ;;  %v527_v33 = vld [vmem:[%s12408_s1 + $0x190] sm:$0xff]  ;;  %v9282_v37 = vor.u32 %v11029_v24, %v9279_v26  ;;  %v9254_v11 = vor.u32 %v11024_v9, %v9253_v8  ;;  %v540_v20 = vld [vmem:[%s12408_s1 + $0x1f8] sm:$0xff] }
  0x97   : > { %1600 = vmatpush.bf16.msrb.mxu1 %v9058_v17  ;;  %v529_v32 = vld [vmem:[%s12408_s1 + $0x1a0] sm:$0xff]  ;;  %v531_v34 = vld [vmem:[%s12408_s1 + $0x1b0] sm:$0xff]  ;;  %v538_v23 = vld [vmem:[%s12408_s1 + $0x1e8] sm:$0xff]  ;;  %v12582_v26 = vpack.c.bf16 %v540_v20, %v536_v19 }
  0x98   : > { %1467 = vmatmul.bf16.gmra.mxu2 %v12480_v13  ;;  %1516 = vmatmul.bf16.gmra.mxu3 %v12482_v14  ;;  %v10929_v38 = vld [vmem:[#allocation5 + $0x4] sm:$0xf]  ;;  %v8879_v42 = vld [vmem:[#allocation5 + $0x10] sm:$0xf0]  ;;  %v12556_v52 = vpack.c.bf16 %v529_v32, %v525_v31  ;;  %v12560_v58 = vpack.c.bf16 %v531_v34, %v527_v33  ;;  %v9237_v31 = vld [vmem:[#allocation5 + $0x2c8] sm:$0xf] }
  0x99   : > { %1699 = vmatpush.bf16.msrb.mxu3 %v9298_v21  ;;  %1553 = vmatpush.bf16.msrb.mxu0 %v8898_v22  ;;  %v10965_v43 = vld [vmem:[#allocation5 + $0x124] sm:$0xf]  ;;  %v8882_v56 = vor.u32 %v10929_v38, %v8879_v42  ;;  %v9023_v57 = vld [vmem:[#allocation5 + $0x130] sm:$0xf0]  ;;  %v534_v22 = vld [vmem:[%s12408_s1 + $0x1c8] sm:$0xff] }
  0x9a   : > { %1418 = vmatmul.bf16.gmra.mxu1 %v12484_v15  ;;  %v9026_v61 = vor.u32 %v10965_v43, %v9023_v57  ;;  %v11025_v1 = vld [vmem:[#allocation5 + $0x304] sm:$0xf]  ;;  %v9263_v2 = vld [vmem:[#allocation5 + $0x310] sm:$0xf0]  ;;  %1841 = vmatpush.bf16.msra.mxu2 %v9254_v11  ;;  %v11020_v32 = vld [vmem:[#allocation5 + $0x2d4] sm:$0xf0] }
  0x9b   : > { %1601 = vmatpush.bf16.msrb.mxu1 %v9042_v27  ;;  %v9266_v3 = vor.u32 %v11025_v1, %v9263_v2  ;;  %v10961_v5 = vld [vmem:[#allocation5 + $0x104] sm:$0xf]  ;;  %v9007_v6 = vld [vmem:[#allocation5 + $0x110] sm:$0xf0]  ;;  %v12584_v27 = vpack.c.bf16 %v538_v23, %v534_v22  ;;  %v9238_v33 = vor.u32 %v11020_v32, %v9237_v31  ;;  %v12590_v34 = vld [vmem:[#allocation11] sm:$0xf] }
  0x9c   : > { %v9010_v7 = vor.u32 %v10961_v5, %v9007_v6  ;;  %v533_v12 = vld [vmem:[%s12408_s1 + $0x1c0] sm:$0xff]  ;;  %v535_v17 = vld [vmem:[%s12408_s1 + $0x1d0] sm:$0xff]  ;;  %v12593_v35 = vperm.slane %v12590_v34, 0  ;;  %v9221_v43 = vld [vmem:[#allocation5 + $0x2a8] sm:$0xf] }
  0x9d   : > { %1700 = vmatpush.bf16.msrb.mxu3 %v9282_v37  ;;  %1554 = vmatpush.bf16.msrb.mxu0 %v8882_v56  ;;  %v537_v16 = vld [vmem:[%s12408_s1 + $0x1e0] sm:$0xff]  ;;  %v539_v18 = vld [vmem:[%s12408_s1 + $0x1f0] sm:$0xff]  ;;  %v9222_v55 = vor.u32 %v11016_v54, %v9221_v43  ;;  %v9205_v19 = vld [vmem:[#allocation5 + $0x288] sm:$0xf] }
  0x9e   : > { %v12576_v21 = vpack.c.bf16 %v537_v16, %v533_v12  ;;  %v12580_v24 = vpack.c.bf16 %v539_v18, %v535_v17  ;;  %1842 = vmatpush.bf16.msra.mxu2 %v9238_v33  ;;  %v11012_v20 = vld [vmem:[#allocation5 + $0x294] sm:$0xf0] }
  0x9f   : > { %1602 = vmatpush.bf16.msrb.mxu1 %v9026_v61  ;;  %v9206_v22 = vor.u32 %v11012_v20, %v9205_v19 }
  0xa1   : > { %1701 = vmatpush.bf16.msrb.mxu3 %v9266_v3 }
  0xa2   : > { %1843 = vmatpush.bf16.msra.mxu2 %v9222_v55 }
  0xa3   : > { %1603 = vmatpush.bf16.msrb.mxu1 %v9010_v7 }
  0xa6   : > { %1374 = vmatmul.bf16.gmra.mxu0 %v12496_v25  ;;  %1844 = vmatpush.bf16.msra.mxu2 %v9206_v22 }
  0xa8   : > { %1472 = vmatmul.bf16.gmra.mxu2 %v12500_v28  ;;  %1521 = vmatmul.bf16.gmra.mxu3 %v12502_v29 }
  0xaa   : > { %1423 = vmatmul.bf16.gmra.mxu1 %v12504_v30 }
  0xb6   : > { %1379 = vmatmul.bf16.gmra.mxu0 %v12516_v40 }
  0xb8   : > { %1477 = vmatmul.bf16.gmra.mxu2 %v12520_v44  ;;  %1526 = vmatmul.bf16.gmra.mxu3 %v12522_v45 }
  0xba   : > { %1428 = vmatmul.bf16.gmra.mxu1 %v12524_v49 }
  0xc6   : > { %1384 = vmatmul.bf16.gmra.mxu0 %v12536_v39 }
  0xc8   : > { %1482 = vmatmul.bf16.gmra.mxu2 %v12540_v50  ;;  %1531 = vmatmul.bf16.gmra.mxu3 %v12542_v51 }
  0xca   : > { %1433 = vmatmul.bf16.gmra.mxu1 %v12544_v53 }
  0xd6   : > { %1389 = vmatmul.bf16.gmra.mxu0 %v12556_v52 }
  0xd8   : > { %1487 = vmatmul.bf16.gmra.mxu2 %v12560_v58  ;;  %1536 = vmatmul.bf16.gmra.mxu3 %v12562_v60 }
  0xda   : > { %1438 = vmatmul.bf16.gmra.mxu1 %v12564_v4 }
  0xe6   : > { %1394 = vmatmul.bf16.gmra.mxu0 %v12576_v21 }
  0xe8   : > { %1492 = vmatmul.bf16.gmra.mxu2 %v12580_v24  ;;  %1541 = vmatmul.bf16.gmra.mxu3 %v12582_v26 }
  0xea   : > { %1443 = vmatmul.bf16.gmra.mxu1 %v12584_v27 }
  0xf3   : > { %v1360_v36 = vpop.f32.mrf.mxu0 }
  0xf4   : > { %v1361_v37 = vadd.f32 %v1360_v36, %v12593_v35 }
  0xf6   : > { %1555 = vmatmul.bf16.vlgmr.msrb.gmra.mxu0 %v12437_v41 }
  0xf7   : > { %v1409_v38 = vpop.f32.mrf.mxu1 }
  0xf8   : > { %1653 = vmatmul.bf16.vlgmr.msrb.gmra.mxu2 %v12440_v46  ;;  %v1410_v42 = vadd.f32 %v1409_v38, %v1361_v37  ;;  %1702 = vmatmul.bf16.vlgmr.msrb.gmra.mxu3 %v12442_v47 }
  0xfa   : > { %1604 = vmatmul.bf16.vlgmr.msrb.gmra.mxu1 %v12444_v48 }
  0xfb   : > { %v1458_v56 = vpop.f32.mrf.mxu2  ;;  %v1507_v57 = vpop.f32.mrf.mxu3 }
  0xfc   : > { %v1459_v61 = vadd.f32 %v1458_v56, %v1410_v42  ;;  %v1362_v1 = vpop.f32.mrf.mxu0 }
  0xfd   : > { %v1363_v2 = vadd.f32 %v1362_v1, %v12593_v35 }
  0xfe   : > { %v12601_v3 = vadd.f32 %v1507_v57, %v1459_v61 }
  0xff   : > { %v1411_v5 = vpop.f32.mrf.mxu1 }
 0x100   : > { %v1412_v6 = vadd.f32 %v1411_v5, %v1363_v2  ;;  %v9189_v5 = vld [vmem:[#allocation5 + $0x268] sm:$0xf] }
 0x103   : > { %v1460_v7 = vpop.f32.mrf.mxu2  ;;  %v1509_v8 = vpop.f32.mrf.mxu3 }
 0x104   : > { %v1461_v9 = vadd.f32 %v1460_v7, %v1412_v6  ;;  %v1365_v11 = vpop.f32.mrf.mxu0  ;;  %v11008_v6 = vld [vmem:[#allocation5 + $0x274] sm:$0xf0] }
 0x105   : > { %v1366_v12 = vadd.f32 %v1365_v11, %v12593_v35  ;;  %v9190_v7 = vor.u32 %v11008_v6, %v9189_v5 }
 0x106   : > { %v12604_v16 = vadd.f32 %v1509_v8, %v1461_v9  ;;  %1560 = vmatmul.bf16.gmra.mxu0 %v12456_v59 }
 0x107   : > { %v1414_v17 = vpop.f32.mrf.mxu1  ;;  %1845 = vmatpush.bf16.msra.mxu2 %v9190_v7 }
 0x108   : > { %1658 = vmatmul.bf16.gmra.mxu2 %v12460_v62  ;;  %v1415_v18 = vadd.f32 %v1414_v17, %v1366_v12  ;;  %1707 = vmatmul.bf16.gmra.mxu3 %v12462_v63 }
 0x10a   : > { %1609 = vmatmul.bf16.gmra.mxu1 %v12464_v0 }
 0x10b   : > { %v1463_v23 = vpop.f32.mrf.mxu2  ;;  %v1512_v31 = vpop.f32.mrf.mxu3 }
 0x10c   : > { %v1464_v32 = vadd.f32 %v1463_v23, %v1415_v18  ;;  %v1367_v33 = vpop.f32.mrf.mxu0 }
 0x10d   : > { %v1368_v36 = vadd.f32 %v1367_v33, %v12593_v35 }
 0x10e   : > { %v12611_v37 = vadd.f32 %v1512_v31, %v1464_v32 }
 0x10f   : > { %v1416_v38 = vpop.f32.mrf.mxu1 }
 0x110   : > { %v1417_v42 = vadd.f32 %v1416_v38, %v1368_v36 }
 0x113   : > { %v1465_v43 = vpop.f32.mrf.mxu2  ;;  %v1514_v54 = vpop.f32.mrf.mxu3 }
 0x114   : > { %v1466_v55 = vadd.f32 %v1465_v43, %v1417_v42  ;;  %v1370_v56 = vpop.f32.mrf.mxu0  ;;  %v9173_v43 = vld [vmem:[#allocation5 + $0x248] sm:$0xf] }
 0x115   : > { %v1371_v57 = vadd.f32 %v1370_v56, %v12593_v35 }
 0x116   : > { %v12614_v61 = vadd.f32 %v1514_v54, %v1466_v55  ;;  %1565 = vmatmul.bf16.gmra.mxu0 %v12476_v10  ;;  %v11004_v54 = vld [vmem:[#allocation5 + $0x254] sm:$0xf0] }
 0x117   : > { %v1419_v1 = vpop.f32.mrf.mxu1  ;;  %v9174_v55 = vor.u32 %v11004_v54, %v9173_v43  ;;  %v9381_v43 = vld [vmem:[#allocation5 + $0x3e8] sm:$0xf] }
 0x118   : > { %1663 = vmatmul.bf16.gmra.mxu2 %v12480_v13  ;;  %v1420_v2 = vadd.f32 %v1419_v1, %v1371_v57  ;;  %1712 = vmatmul.bf16.gmra.mxu3 %v12482_v14 }
 0x119   : > { %1846 = vmatpush.bf16.msra.mxu2 %v9174_v55  ;;  %v11056_v55 = vld [vmem:[#allocation5 + $0x3f4] sm:$0xf0] }
 0x11a   : > { %1614 = vmatmul.bf16.gmra.mxu1 %v12484_v15 }
 0x11b   : > { %v1468_v8 = vpop.f32.mrf.mxu2  ;;  %v1517_v9 = vpop.f32.mrf.mxu3 }
 0x11c   : > { %v1469_v11 = vadd.f32 %v1468_v8, %v1420_v2  ;;  %v1372_v12 = vpop.f32.mrf.mxu0 }
 0x11d   : > { %v1373_v17 = vadd.f32 %v1372_v12, %v12593_v35 }
 0x11e   : > { %v12621_v18 = vadd.f32 %v1517_v9, %v1469_v11 }
 0x11f   : > { %v1421_v19 = vpop.f32.mrf.mxu1 }
 0x120   : > { %v1422_v20 = vadd.f32 %v1421_v19, %v1373_v17 }
 0x123   : > { %v1470_v22 = vpop.f32.mrf.mxu2  ;;  %v1519_v23 = vpop.f32.mrf.mxu3 }
 0x124   : > { %v1471_v31 = vadd.f32 %v1470_v22, %v1422_v20  ;;  %v1375_v32 = vpop.f32.mrf.mxu0  ;;  %v8997_v22 = vld [vmem:[#allocation5 + $0xe8] sm:$0xf] }
 0x125   : > { %v1376_v33 = vadd.f32 %v1375_v32, %v12593_v35 }
 0x126   : > { %v12624_v36 = vadd.f32 %v1519_v23, %v1471_v31  ;;  %1570 = vmatmul.bf16.gmra.mxu0 %v12496_v25  ;;  %v10960_v23 = vld [vmem:[#allocation5 + $0xf4] sm:$0xf0] }
 0x127   : > { %v1424_v38 = vpop.f32.mrf.mxu1  ;;  %v8998_v32 = vor.u32 %v10960_v23, %v8997_v22  ;;  %v11052_v22 = vld [vmem:[#allocation5 + $0x3d4] sm:$0xf0] }
 0x128   : > { %1668 = vmatmul.bf16.gmra.mxu2 %v12500_v28  ;;  %v1425_v42 = vadd.f32 %v1424_v38, %v1376_v33  ;;  %1717 = vmatmul.bf16.gmra.mxu3 %v12502_v29  ;;  %v9157_v38 = vld [vmem:[#allocation5 + $0x228] sm:$0xf] }
 0x129   : > { %1743 = vmatpush.bf16.msra.mxu0 %v8998_v32 }
 0x12a   : > { %1619 = vmatmul.bf16.gmra.mxu1 %v12504_v30 }
 0x12b   : > { %v1473_v56 = vpop.f32.mrf.mxu2  ;;  %v1522_v57 = vpop.f32.mrf.mxu3 }
 0x12c   : > { %v1474_v1 = vadd.f32 %v1473_v56, %v1425_v42  ;;  %v1377_v2 = vpop.f32.mrf.mxu0  ;;  %v11000_v42 = vld [vmem:[#allocation5 + $0x234] sm:$0xf0]  ;;  %v9382_v56 = vor.u32 %v11056_v55, %v9381_v43  ;;  %v9109_v43 = vld [vmem:[#allocation5 + $0x1c8] sm:$0xf] }
 0x12d   : > { %v1378_v5 = vadd.f32 %v1377_v2, %v12593_v35  ;;  %v9158_v54 = vor.u32 %v11000_v42, %v9157_v38  ;;  %v9125_v2 = vld [vmem:[#allocation5 + $0x1e8] sm:$0xf]  ;;  %v10952_v42 = vld [vmem:[#allocation5 + $0xb4] sm:$0xf0] }
 0x12e   : > { %v12631_v6 = vadd.f32 %v1522_v57, %v1474_v1  ;;  %v8981_v57 = vld [vmem:[#allocation5 + $0xc8] sm:$0xf]  ;;  %v10956_v1 = vld [vmem:[#allocation5 + $0xd4] sm:$0xf0]  ;;  %1890 = vmatpush.bf16.msra.mxu3 %v9382_v56 }
 0x12f   : > { %v1426_v7 = vpop.f32.mrf.mxu1  ;;  %1847 = vmatpush.bf16.msra.mxu2 %v9158_v54  ;;  %v8965_v38 = vld [vmem:[#allocation5 + $0xa8] sm:$0xf] }
 0x130   : > { %v1427_v8 = vadd.f32 %v1426_v7, %v1378_v5  ;;  %v8966_v54 = vor.u32 %v10952_v42, %v8965_v38  ;;  %v9349_v56 = vld [vmem:[#allocation5 + $0x3a8] sm:$0xf] }
 0x131   : > { %v9333_v42 = vld [vmem:[#allocation5 + $0x388] sm:$0xf] }
 0x133   : > { %v1475_v9 = vpop.f32.mrf.mxu2  ;;  %v1524_v11 = vpop.f32.mrf.mxu3 }
 0x134   : > { %v1476_v12 = vadd.f32 %v1475_v9, %v1427_v8  ;;  %v1380_v17 = vpop.f32.mrf.mxu0  ;;  %v8982_v8 = vor.u32 %v10956_v1, %v8981_v57  ;;  %v10992_v9 = vld [vmem:[#allocation5 + $0x1f4] sm:$0xf0] }
 0x135   : > { %v1381_v19 = vadd.f32 %v1380_v17, %v12593_v35  ;;  %v9126_v17 = vor.u32 %v10992_v9, %v9125_v2  ;;  %v10988_v57 = vld [vmem:[#allocation5 + $0x1d4] sm:$0xf0]  ;;  %v8949_v9 = vld [vmem:[#allocation5 + $0x88] sm:$0xf] }
 0x136   : > { %v12634_v20 = vadd.f32 %v1524_v11, %v1476_v12  ;;  %1575 = vmatmul.bf16.gmra.mxu0 %v12516_v40  ;;  %v11048_v2 = vld [vmem:[#allocation5 + $0x3b4] sm:$0xf0] }
 0x137   : > { %v1429_v31 = vpop.f32.mrf.mxu1  ;;  %1744 = vmatpush.bf16.msra.mxu0 %v8982_v8  ;;  %1792 = vmatpush.bf16.msra.mxu1 %v9126_v17  ;;  %v10948_v8 = vld [vmem:[#allocation5 + $0x94] sm:$0xf0] }
 0x138   : > { %1673 = vmatmul.bf16.gmra.mxu2 %v12520_v44  ;;  %v1430_v33 = vadd.f32 %v1429_v31, %v1381_v19  ;;  %1722 = vmatmul.bf16.gmra.mxu3 %v12522_v45  ;;  %v9365_v19 = vld [vmem:[#allocation5 + $0x3c8] sm:$0xf]  ;;  %v8950_v17 = vor.u32 %v10948_v8, %v8949_v9 }
 0x139   : > { %v9366_v31 = vor.u32 %v11052_v22, %v9365_v19  ;;  %v10984_v19 = vld [vmem:[#allocation5 + $0x1b4] sm:$0xf0]  ;;  %v9141_v9 = vld [vmem:[#allocation5 + $0x208] sm:$0xf] }
 0x13a   : > { %1624 = vmatmul.bf16.gmra.mxu1 %v12524_v49 }
 0x13b   : > { %v1478_v5 = vpop.f32.mrf.mxu2  ;;  %v1527_v7 = vpop.f32.mrf.mxu3  ;;  %1891 = vmatpush.bf16.msra.mxu3 %v9366_v31  ;;  %1745 = vmatpush.bf16.msra.mxu0 %v8966_v54  ;;  %v8933_v54 = vld [vmem:[#allocation5 + $0x68] sm:$0xf] }
 0x13c   : > { %v1479_v11 = vadd.f32 %v1478_v5, %v1430_v33  ;;  %v1382_v12 = vpop.f32.mrf.mxu0  ;;  %v9110_v33 = vor.u32 %v10988_v57, %v9109_v43  ;;  %v9350_v5 = vor.u32 %v11048_v2, %v9349_v56  ;;  %v10944_v57 = vld [vmem:[#allocation5 + $0x74] sm:$0xf0] }
 0x13d   : > { %v1383_v23 = vadd.f32 %v1382_v12, %v12593_v35  ;;  %v9093_v12 = vld [vmem:[#allocation5 + $0x1a8] sm:$0xf]  ;;  %v8934_v2 = vor.u32 %v10944_v57, %v8933_v54  ;;  %v10976_v54 = vld [vmem:[#allocation5 + $0x174] sm:$0xf0] }
 0x13e   : > { %v12641_v32 = vadd.f32 %v1527_v7, %v1479_v11  ;;  %1793 = vmatpush.bf16.msra.mxu1 %v9110_v33  ;;  %v9094_v38 = vor.u32 %v10984_v19, %v9093_v12  ;;  %v9077_v33 = vld [vmem:[#allocation5 + $0x188] sm:$0xf] }
 0x13f   : > { %v1431_v55 = vpop.f32.mrf.mxu1  ;;  %1892 = vmatpush.bf16.msra.mxu3 %v9350_v5  ;;  %1746 = vmatpush.bf16.msra.mxu0 %v8950_v17  ;;  %v9317_v12 = vld [vmem:[#allocation5 + $0x368] sm:$0xf] }
 0x140   : > { %14912 = vst [vmem:[#allocation35_spill] sm:$0xff] %v12641_v32  ;;  %v1432_v1 = vadd.f32 %v1431_v55, %v1383_v23  ;;  %v11044_v23 = vld [vmem:[#allocation5 + $0x394] sm:$0xf0]  ;;  %v8917_v19 = vld [vmem:[#allocation5 + $0x48] sm:$0xf] }
 0x141   : > { %v9334_v43 = vor.u32 %v11044_v23, %v9333_v42 }
 0x142   : > { %1794 = vmatpush.bf16.msra.mxu1 %v9094_v38  ;;  %v9061_v38 = vld [vmem:[#allocation5 + $0x168] sm:$0xf] }
 0x143   : > { %v1480_v7 = vpop.f32.mrf.mxu2  ;;  %v1529_v11 = vpop.f32.mrf.mxu3  ;;  %1893 = vmatpush.bf16.msra.mxu3 %v9334_v43  ;;  %1747 = vmatpush.bf16.msra.mxu0 %v8934_v2  ;;  %v11036_v43 = vld [vmem:[#allocation5 + $0x354] sm:$0xf0] }
 0x144   : > { %v1481_v22 = vadd.f32 %v1480_v7, %v1432_v1  ;;  %v1385_v32 = vpop.f32.mrf.mxu0  ;;  %v10980_v1 = vld [vmem:[#allocation5 + $0x194] sm:$0xf0] }
 0x145   : > { %v1386_v31 = vadd.f32 %v1385_v32, %v12593_v35  ;;  %v10996_v32 = vld [vmem:[#allocation5 + $0x214] sm:$0xf0]  ;;  %v9078_v8 = vor.u32 %v10980_v1, %v9077_v33  ;;  %v9062_v33 = vor.u32 %v10976_v54, %v9061_v38  ;;  %v9301_v1 = vld [vmem:[#allocation5 + $0x348] sm:$0xf] }
 0x146   : > { %v12644_v55 = vadd.f32 %v1529_v11, %v1481_v22  ;;  %1580 = vmatmul.bf16.gmra.mxu0 %v12536_v39  ;;  %v9142_v7 = vor.u32 %v10996_v32, %v9141_v9  ;;  %v11040_v11 = vld [vmem:[#allocation5 + $0x374] sm:$0xf0]  ;;  %v9302_v9 = vor.u32 %v11036_v43, %v9301_v1  ;;  %v8885_v54 = vld [vmem:[#allocation5 + $0x8] sm:$0xf] }
 0x147   : > { %v1434_v56 = vpop.f32.mrf.mxu1  ;;  %v9318_v17 = vor.u32 %v11040_v11, %v9317_v12  ;;  %v10940_v22 = vld [vmem:[#allocation5 + $0x54] sm:$0xf0]  ;;  %1795 = vmatpush.bf16.msra.mxu1 %v9078_v8  ;;  %v8901_v12 = vld [vmem:[#allocation5 + $0x28] sm:$0xf] }
 0x148   : > { %1678 = vmatmul.bf16.gmra.mxu2 %v12540_v50  ;;  %v1435_v5 = vadd.f32 %v1434_v56, %v1386_v31  ;;  %1727 = vmatmul.bf16.gmra.mxu3 %v12542_v51  ;;  %v8918_v31 = vor.u32 %v10940_v22, %v8917_v19  ;;  %v10936_v11 = vld [vmem:[#allocation5 + $0x34] sm:$0xf0]  ;;  %v9285_v22 = vld [vmem:[#allocation5 + $0x328] sm:$0xf] }
 0x149   : > { %1848 = vmatpush.bf16.msra.mxu2 %v9142_v7  ;;  %1894 = vmatpush.bf16.msra.mxu3 %v9318_v17  ;;  %v8902_v8 = vor.u32 %v10936_v11, %v8901_v12  ;;  %v10972_v7 = vld [vmem:[#allocation5 + $0x154] sm:$0xf0]  ;;  %v9269_v12 = vld [vmem:[#allocation5 + $0x308] sm:$0xf] }
 0x14a   : > { %1629 = vmatmul.bf16.gmra.mxu1 %v12544_v53  ;;  %1748 = vmatpush.bf16.msra.mxu0 %v8918_v31  ;;  %v9045_v53 = vld [vmem:[#allocation5 + $0x148] sm:$0xf]  ;;  %v11032_v38 = vld [vmem:[#allocation5 + $0x334] sm:$0xf0] }
 0x14b   : > { %v1483_v42 = vpop.f32.mrf.mxu2  ;;  %v1532_v23 = vpop.f32.mrf.mxu3  ;;  %1796 = vmatpush.bf16.msra.mxu1 %v9062_v33  ;;  %v10932_v17 = vld [vmem:[#allocation5 + $0x14] sm:$0xf0]  ;;  %v9029_v31 = vld [vmem:[#allocation5 + $0x128] sm:$0xf] }
 0x14c   : > { %v1484_v57 = vadd.f32 %v1483_v42, %v1435_v5  ;;  %v1387_v56 = vpop.f32.mrf.mxu0  ;;  %v9046_v5 = vor.u32 %v10972_v7, %v9045_v53  ;;  %v9286_v42 = vor.u32 %v11032_v38, %v9285_v22  ;;  %v10968_v1 = vld [vmem:[#allocation5 + $0x134] sm:$0xf0]  ;;  %v11022_v22 = vld [vmem:[#allocation5 + $0x2ec] sm:$0xf]  ;;  %v9255_v38 = vld [vmem:[#allocation5 + $0x2f8] sm:$0xf0] }
 0x14d   : > { %v1388_v2 = vadd.f32 %v1387_v56, %v12593_v35  ;;  %1895 = vmatpush.bf16.msra.mxu3 %v9302_v9  ;;  %v9030_v33 = vor.u32 %v10968_v1, %v9029_v31  ;;  %v11028_v11 = vld [vmem:[#allocation5 + $0x314] sm:$0xf0]  ;;  %v9013_v9 = vld [vmem:[#allocation5 + $0x108] sm:$0xf] }
 0x14e   : > { %v12651_v32 = vadd.f32 %v1532_v23, %v1484_v57  ;;  %1749 = vmatpush.bf16.msra.mxu0 %v8902_v8  ;;  %v8886_v57 = vor.u32 %v10932_v17, %v8885_v54  ;;  %v9270_v53 = vor.u32 %v11028_v11, %v9269_v12  ;;  %v10964_v8 = vld [vmem:[#allocation5 + $0x114] sm:$0xf0] }
 0x14f   : > { %v1436_v51 = vpop.f32.mrf.mxu1  ;;  %1797 = vmatpush.bf16.msra.mxu1 %v9046_v5  ;;  %v9014_v5 = vor.u32 %v10964_v8, %v9013_v9 }
 0x150   : > { %14913 = vst [vmem:[#allocation36_spill] sm:$0xff] %v12651_v32  ;;  %v1437_v19 = vadd.f32 %v1436_v51, %v1388_v2 }
 0x151   : > { %1896 = vmatpush.bf16.msra.mxu3 %v9286_v42 }
 0x152   : > { %1750 = vmatpush.bf16.msra.mxu0 %v8886_v57 }
 0x153   : > { %v1485_v56 = vpop.f32.mrf.mxu2  ;;  %v1534_v23 = vpop.f32.mrf.mxu3  ;;  %1798 = vmatpush.bf16.msra.mxu1 %v9030_v33 }
 0x154   : > { %v1486_v43 = vadd.f32 %v1485_v56, %v1437_v19  ;;  %v1390_v32 = vpop.f32.mrf.mxu0 }
 0x155   : > { %v1391_v51 = vadd.f32 %v1390_v32, %v12593_v35  ;;  %1897 = vmatpush.bf16.msra.mxu3 %v9270_v53  ;;  %v9258_v32 = vor.u32 %v11022_v22, %v9255_v38  ;;  %v11018_v38 = vld [vmem:[#allocation5 + $0x2cc] sm:$0xf] }
 0x156   : > { %v12654_v2 = vadd.f32 %v1534_v23, %v1486_v43  ;;  %1585 = vmatmul.bf16.gmra.mxu0 %v12556_v52 }
 0x157   : > { %v1439_v7 = vpop.f32.mrf.mxu1  ;;  %2037 = vmatpush.bf16.msrb.mxu2 %v9258_v32  ;;  %1799 = vmatpush.bf16.msra.mxu1 %v9014_v5  ;;  %v9239_v32 = vld [vmem:[#allocation5 + $0x2d8] sm:$0xf0] }
 0x158   : > { %1683 = vmatmul.bf16.gmra.mxu2 %v12560_v58  ;;  %v1440_v19 = vadd.f32 %v1439_v7, %v1391_v51  ;;  %1732 = vmatmul.bf16.gmra.mxu3 %v12562_v60 }
 0x15a   : > { %1634 = vmatmul.bf16.gmra.mxu1 %v12564_v4 }
 0x15b   : > { %v1488_v42 = vpop.f32.mrf.mxu2  ;;  %v1537_v54 = vpop.f32.mrf.mxu3 }
 0x15c   : > { %v1489_v17 = vadd.f32 %v1488_v42, %v1440_v19  ;;  %v1392_v31 = vpop.f32.mrf.mxu0 }
 0x15d   : > { %v1393_v56 = vadd.f32 %v1392_v31, %v12593_v35 }
 0x15e   : > { %v12661_v23 = vadd.f32 %v1537_v54, %v1489_v17  ;;  %v9242_v54 = vor.u32 %v11018_v38, %v9239_v32 }
 0x15f   : > { %v1441_v57 = vpop.f32.mrf.mxu1 }
 0x160   : > { %v1442_v1 = vadd.f32 %v1441_v57, %v1393_v56  ;;  %2038 = vmatpush.bf16.msrb.mxu2 %v9242_v54  ;;  %v12674_v57 = vperm.slane %v12590_v34, 1  ;;  %v11014_v34 = vld [vmem:[#allocation5 + $0x2ac] sm:$0xf] }
 0x163   : > { %v1490_v43 = vpop.f32.mrf.mxu2  ;;  %v1539_v33 = vpop.f32.mrf.mxu3 }
 0x164   : > { %v1491_v12 = vadd.f32 %v1490_v43, %v1442_v1  ;;  %v1395_v11 = vpop.f32.mrf.mxu0 }
 0x165   : > { %v1396_v51 = vadd.f32 %v1395_v11, %v12593_v35 }
 0x166   : > { %v12664_v53 = vadd.f32 %v1539_v33, %v1491_v12  ;;  %1590 = vmatmul.bf16.gmra.mxu0 %v12576_v21 }
 0x167   : > { %v1444_v9 = vpop.f32.mrf.mxu1 }
 0x168   : > { %1688 = vmatmul.bf16.gmra.mxu2 %v12580_v24  ;;  %v1445_v8 = vadd.f32 %v1444_v9, %v1396_v51  ;;  %1737 = vmatmul.bf16.gmra.mxu3 %v12582_v26 }
 0x16a   : > { %1639 = vmatmul.bf16.gmra.mxu1 %v12584_v27 }
 0x16b   : > { %v1493_v7 = vpop.f32.mrf.mxu2  ;;  %v1542_v5 = vpop.f32.mrf.mxu3 }
 0x16c   : > { %v1494_v19 = vadd.f32 %v1493_v7, %v1445_v8  ;;  %v1397_v22 = vpop.f32.mrf.mxu0  ;;  %v9223_v8 = vld [vmem:[#allocation5 + $0x2b8] sm:$0xf0] }
 0x16d   : > { %v1398_v42 = vadd.f32 %v1397_v22, %v12593_v35 }
 0x16e   : > { %v12671_v17 = vadd.f32 %v1542_v5, %v1494_v19  ;;  %v9226_v19 = vor.u32 %v11014_v34, %v9223_v8 }
 0x16f   : > { %v1446_v31 = vpop.f32.mrf.mxu1 }
 0x170   : > { %v1447_v56 = vadd.f32 %v1446_v31, %v1398_v42  ;;  %2039 = vmatpush.bf16.msrb.mxu2 %v9226_v19 }
 0x173   : > { %v1495_v1 = vpop.f32.mrf.mxu2  ;;  %v1544_v43 = vpop.f32.mrf.mxu3 }
 0x174   : > { %v1496_v33 = vadd.f32 %v1495_v1, %v1447_v56  ;;  %v1556_v12 = vpop.f32.mrf.mxu0 }
 0x175   : > { %v1557_v11 = vadd.f32 %v1556_v12, %v12674_v57 }
 0x176   : > { %v12677_v51 = vadd.f32 %v1544_v43, %v1496_v33  ;;  %1751 = vmatmul.bf16.vlgmr.msra.gmra.mxu0 %v12437_v41 }
 0x177   : > { %v1605_v35 = vpop.f32.mrf.mxu1 }
 0x178   : > { %1849 = vmatmul.bf16.vlgmr.msra.gmra.mxu2 %v12440_v46  ;;  %v1606_v9 = vadd.f32 %v1605_v35, %v1557_v11  ;;  %1898 = vmatmul.bf16.vlgmr.msra.gmra.mxu3 %v12442_v47 }
 0x17a   : > { %1800 = vmatmul.bf16.vlgmr.msra.gmra.mxu1 %v12444_v48 }
 0x17b   : > { %v1654_v7 = vpop.f32.mrf.mxu2  ;;  %v1703_v5 = vpop.f32.mrf.mxu3 }
 0x17c   : > { %v1655_v22 = vadd.f32 %v1654_v7, %v1606_v9  ;;  %v1558_v38 = vpop.f32.mrf.mxu0 }
 0x17d   : > { %v1559_v32 = vadd.f32 %v1558_v38, %v12674_v57  ;;  %v9207_v38 = vld [vmem:[#allocation5 + $0x298] sm:$0xf0] }
 0x17e   : > { %v1704_v42 = vadd.f32 %v1703_v5, %v1655_v22  ;;  %v11010_v22 = vld [vmem:[#allocation5 + $0x28c] sm:$0xf] }
 0x17f   : > { %v1607_v54 = vpop.f32.mrf.mxu1 }
 0x180   : > { %v2135_v31 = vpack.c.bf16 %v1704_v42, %v12601_v3  ;;  %v1608_v56 = vadd.f32 %v1607_v54, %v1559_v32  ;;  %v9210_v54 = vor.u32 %v11010_v22, %v9207_v38 }
 0x182   : > { %v5371_v7 = vunpack.c.l.b16 %v2135_v31  ;;  %v5789_v3 = vunpack.c.h.b16 %v2135_v31  ;;  %2040 = vmatpush.bf16.msrb.mxu2 %v9210_v54  ;;  %v9191_v54 = vld [vmem:[#allocation5 + $0x278] sm:$0xf0] }
 0x183   : > { %v1656_v1 = vpop.f32.mrf.mxu2  ;;  %v1705_v43 = vpop.f32.mrf.mxu3 }
 0x184   : > { %v1657_v33 = vadd.f32 %v1656_v1, %v1608_v56  ;;  %v1561_v12 = vpop.f32.mrf.mxu0 }
 0x185   : > { %v1562_v11 = vadd.f32 %v1561_v12, %v12674_v57 }
 0x186   : > { %v1706_v35 = vadd.f32 %v1705_v43, %v1657_v33  ;;  %1756 = vmatmul.bf16.gmra.mxu0 %v12456_v59 }
 0x187   : > { %v1610_v34 = vpop.f32.mrf.mxu1 }
 0x188   : > { %v2137_v9 = vpack.c.bf16 %v1706_v35, %v12604_v16  ;;  %1854 = vmatmul.bf16.gmra.mxu2 %v12460_v62  ;;  %v1611_v8 = vadd.f32 %v1610_v34, %v1562_v11  ;;  %1903 = vmatmul.bf16.gmra.mxu3 %v12462_v63 }
 0x18a   : > { %v5372_v5 = vunpack.c.l.b16 %v2137_v9  ;;  %v5790_v19 = vunpack.c.h.b16 %v2137_v9  ;;  %1805 = vmatmul.bf16.gmra.mxu1 %v12464_v0 }
 0x18b   : > { %v1659_v32 = vpop.f32.mrf.mxu2  ;;  %v1708_v42 = vpop.f32.mrf.mxu3 }
 0x18c   : > { %v12691_v56 = vpack.c.b16 %v5372_v5, %v5371_v7  ;;  %v12693_v1 = vpack.c.b16 %v5790_v19, %v5789_v3  ;;  %v1660_v16 = vadd.f32 %v1659_v32, %v1611_v8  ;;  %v1563_v43 = vpop.f32.mrf.mxu0 }
 0x18d   : > { %v1564_v33 = vadd.f32 %v1563_v43, %v12674_v57 }
 0x18e   : > { %14914 = vst [vmem:[#allocation37_spill] sm:$0xff] %v12691_v56  ;;  %v1709_v12 = vadd.f32 %v1708_v42, %v1660_v16  ;;  %v11006_v42 = vld [vmem:[#allocation5 + $0x26c] sm:$0xf] }
 0x18f   : > { %14915 = vst [vmem:[#allocation38_spill] sm:$0xff] %v12693_v1  ;;  %v1612_v31 = vpop.f32.mrf.mxu1  ;;  %v9194_v16 = vor.u32 %v11006_v42, %v9191_v54 }
 0x190   : > { %v2139_v11 = vpack.c.bf16 %v1709_v12, %v12611_v37  ;;  %v1613_v35 = vadd.f32 %v1612_v31, %v1564_v33 }
 0x191   : > { %2041 = vmatpush.bf16.msrb.mxu2 %v9194_v16  ;;  %v9175_v16 = vld [vmem:[#allocation5 + $0x258] sm:$0xf0] }
 0x192   : > { %v5373_v19 = vunpack.c.l.b16 %v2139_v11  ;;  %v5791_v37 = vunpack.c.h.b16 %v2139_v11 }
 0x193   : > { %v1661_v34 = vpop.f32.mrf.mxu2  ;;  %v1710_v9 = vpop.f32.mrf.mxu3 }
 0x194   : > { %v1662_v0 = vadd.f32 %v1661_v34, %v1613_v35  ;;  %v1566_v63 = vpop.f32.mrf.mxu0 }
 0x195   : > { %v1567_v22 = vadd.f32 %v1566_v63, %v12674_v57 }
 0x196   : > { %v1711_v7 = vadd.f32 %v1710_v9, %v1662_v0  ;;  %1761 = vmatmul.bf16.gmra.mxu0 %v12476_v10 }
 0x197   : > { %v1615_v3 = vpop.f32.mrf.mxu1 }
 0x198   : > { %v2141_v8 = vpack.c.bf16 %v1711_v7, %v12614_v61  ;;  %1859 = vmatmul.bf16.gmra.mxu2 %v12480_v13  ;;  %v1616_v5 = vadd.f32 %v1615_v3, %v1567_v22  ;;  %1908 = vmatmul.bf16.gmra.mxu3 %v12482_v14 }
 0x19a   : > { %v5374_v38 = vunpack.c.l.b16 %v2141_v8  ;;  %v5792_v32 = vunpack.c.h.b16 %v2141_v8  ;;  %1810 = vmatmul.bf16.gmra.mxu1 %v12484_v15 }
 0x19b   : > { %v1664_v63 = vpop.f32.mrf.mxu2  ;;  %v1713_v0 = vpop.f32.mrf.mxu3 }
 0x19c   : > { %v1665_v43 = vadd.f32 %v1664_v63, %v1616_v5  ;;  %v1568_v33 = vpop.f32.mrf.mxu0  ;;  %v12703_v12 = vpack.c.b16 %v5374_v38, %v5373_v19  ;;  %v12705_v61 = vpack.c.b16 %v5792_v32, %v5791_v37 }
 0x19d   : > { %v1569_v31 = vadd.f32 %v1568_v33, %v12674_v57 }
 0x19e   : > { %14916 = vst [vmem:[#allocation39_spill] sm:$0xff] %v12703_v12  ;;  %v1714_v35 = vadd.f32 %v1713_v0, %v1665_v43  ;;  %v11002_v0 = vld [vmem:[#allocation5 + $0x24c] sm:$0xf] }
 0x19f   : > { %14917 = vst [vmem:[#allocation40_spill] sm:$0xff] %v12705_v61  ;;  %v1617_v11 = vpop.f32.mrf.mxu1 }
 0x1a0   : > { %v2143_v34 = vpack.c.bf16 %v1714_v35, %v12621_v18  ;;  %v1618_v9 = vadd.f32 %v1617_v11, %v1569_v31  ;;  %v9178_v31 = vor.u32 %v11002_v0, %v9175_v16  ;;  %v10958_v16 = vld [vmem:[#allocation5 + $0xec] sm:$0xf] }
 0x1a2   : > { %v5375_v32 = vunpack.c.l.b16 %v2143_v34  ;;  %v5793_v18 = vunpack.c.h.b16 %v2143_v34  ;;  %2042 = vmatpush.bf16.msrb.mxu2 %v9178_v31 }
 0x1a3   : > { %v1666_v22 = vpop.f32.mrf.mxu2  ;;  %v1715_v7 = vpop.f32.mrf.mxu3 }
 0x1a4   : > { %v1667_v3 = vadd.f32 %v1666_v22, %v1618_v9  ;;  %v1571_v8 = vpop.f32.mrf.mxu0 }
 0x1a5   : > { %v1572_v42 = vadd.f32 %v1571_v8, %v12674_v57 }
 0x1a6   : > { %v1716_v5 = vadd.f32 %v1715_v7, %v1667_v3  ;;  %1766 = vmatmul.bf16.gmra.mxu0 %v12496_v25 }
 0x1a7   : > { %v1620_v19 = vpop.f32.mrf.mxu1 }
 0x1a8   : > { %v2145_v37 = vpack.c.bf16 %v1716_v5, %v12624_v36  ;;  %1864 = vmatmul.bf16.gmra.mxu2 %v12500_v28  ;;  %v1621_v38 = vadd.f32 %v1620_v19, %v1572_v42  ;;  %1913 = vmatmul.bf16.gmra.mxu3 %v12502_v29 }
 0x1aa   : > { %v5376_v54 = vunpack.c.l.b16 %v2145_v37  ;;  %v5794_v63 = vunpack.c.h.b16 %v2145_v37  ;;  %1815 = vmatmul.bf16.gmra.mxu1 %v12504_v30 }
 0x1ab   : > { %v1669_v43 = vpop.f32.mrf.mxu2  ;;  %v1718_v33 = vpop.f32.mrf.mxu3 }
 0x1ac   : > { %v1670_v35 = vadd.f32 %v1669_v43, %v1621_v38  ;;  %v1573_v11 = vpop.f32.mrf.mxu0  ;;  %v12715_v9 = vpack.c.b16 %v5376_v54, %v5375_v32  ;;  %v12717_v36 = vpack.c.b16 %v5794_v63, %v5793_v18  ;;  %v8999_v32 = vld [vmem:[#allocation5 + $0xf8] sm:$0xf0] }
 0x1ad   : > { %v1574_v22 = vadd.f32 %v1573_v11, %v12674_v57  ;;  %v9002_v54 = vor.u32 %v10958_v16, %v8999_v32 }
 0x1ae   : > { %14918 = vst [vmem:[#allocation41_spill] sm:$0xff] %v12715_v9  ;;  %v1719_v7 = vadd.f32 %v1718_v33, %v1670_v35  ;;  %v9383_v33 = vld [vmem:[#allocation5 + $0x3f8] sm:$0xf0] }
 0x1af   : > { %14919 = vst [vmem:[#allocation42_spill] sm:$0xff] %v12717_v36  ;;  %v1622_v34 = vpop.f32.mrf.mxu1  ;;  %1939 = vmatpush.bf16.msrb.mxu0 %v9002_v54 }
 0x1b0   : > { %v2147_v3 = vpack.c.bf16 %v1719_v7, %v12631_v6  ;;  %v1623_v8 = vadd.f32 %v1622_v34, %v1574_v22  ;;  %v11054_v6 = vld [vmem:[#allocation5 + $0x3ec] sm:$0xf]  ;;  %v9159_v34 = vld [vmem:[#allocation5 + $0x238] sm:$0xf0] }
 0x1b1   : > { %v9386_v31 = vor.u32 %v11054_v6, %v9383_v33  ;;  %v10998_v7 = vld [vmem:[#allocation5 + $0x22c] sm:$0xf]  ;;  %v9367_v33 = vld [vmem:[#allocation5 + $0x3d8] sm:$0xf0] }
 0x1b2   : > { %v5377_v35 = vunpack.c.l.b16 %v2147_v3  ;;  %v11050_v6 = vld [vmem:[#allocation5 + $0x3cc] sm:$0xf] }
 0x1b3   : > { %v1671_v42 = vpop.f32.mrf.mxu2  ;;  %v1720_v5 = vpop.f32.mrf.mxu3  ;;  %2086 = vmatpush.bf16.msrb.mxu3 %v9386_v31  ;;  %v9370_v9 = vor.u32 %v11050_v6, %v9367_v33  ;;  %v10950_v31 = vld [vmem:[#allocation5 + $0xac] sm:$0xf] }
 0x1b4   : > { %v1672_v19 = vadd.f32 %v1671_v42, %v1623_v8  ;;  %v1576_v37 = vpop.f32.mrf.mxu0  ;;  %v10954_v8 = vld [vmem:[#allocation5 + $0xcc] sm:$0xf]  ;;  %v5795_v42 = vunpack.c.h.b16 %v2147_v3 }
 0x1b5   : > { %v1577_v0 = vadd.f32 %v1576_v37, %v12674_v57  ;;  %v8983_v37 = vld [vmem:[#allocation5 + $0xd8] sm:$0xf0] }
 0x1b6   : > { %v1721_v38 = vadd.f32 %v1720_v5, %v1672_v19  ;;  %1771 = vmatmul.bf16.gmra.mxu0 %v12516_v40  ;;  %v9162_v19 = vor.u32 %v10998_v7, %v9159_v34  ;;  %v8967_v7 = vld [vmem:[#allocation5 + $0xb8] sm:$0xf0]  ;;  %v10986_v34 = vld [vmem:[#allocation5 + $0x1cc] sm:$0xf] }
 0x1b7   : > { %v1625_v18 = vpop.f32.mrf.mxu1  ;;  %2087 = vmatpush.bf16.msrb.mxu3 %v9370_v9  ;;  %v9095_v9 = vld [vmem:[#allocation5 + $0x1b8] sm:$0xf0] }
 0x1b8   : > { %v2149_v63 = vpack.c.bf16 %v1721_v38, %v12634_v20  ;;  %1869 = vmatmul.bf16.gmra.mxu2 %v12520_v44  ;;  %v1626_v43 = vadd.f32 %v1625_v18, %v1577_v0  ;;  %1918 = vmatmul.bf16.gmra.mxu3 %v12522_v45  ;;  %v10990_v0 = vld [vmem:[#allocation5 + $0x1ec] sm:$0xf]  ;;  %v9127_v38 = vld [vmem:[#allocation5 + $0x1f8] sm:$0xf0]  ;;  %v8986_v18 = vor.u32 %v10954_v8, %v8983_v37 }
 0x1b9   : > { %v9130_v54 = vor.u32 %v10990_v0, %v9127_v38  ;;  %2043 = vmatpush.bf16.msrb.mxu2 %v9162_v19  ;;  %v8970_v8 = vor.u32 %v10950_v31, %v8967_v7  ;;  %v14922_v37 = vld [vmem:[#allocation35_spill] sm:$0xff]  ;;  %v9351_v19 = vld [vmem:[#allocation5 + $0x3b8] sm:$0xf0] }
 0x1ba   : > { %v5378_v11 = vunpack.c.l.b16 %v2149_v63  ;;  %v5796_v22 = vunpack.c.h.b16 %v2149_v63  ;;  %1820 = vmatmul.bf16.gmra.mxu1 %v12524_v49  ;;  %1940 = vmatpush.bf16.msrb.mxu0 %v8986_v18  ;;  %v11046_v38 = vld [vmem:[#allocation5 + $0x3ac] sm:$0xf]  ;;  %v9335_v7 = vld [vmem:[#allocation5 + $0x398] sm:$0xf0] }
 0x1bb   : > { %v1674_v5 = vpop.f32.mrf.mxu2  ;;  %v1723_v20 = vpop.f32.mrf.mxu3  ;;  %1988 = vmatpush.bf16.msrb.mxu1 %v9130_v54 }
 0x1bc   : > { %v1675_v16 = vadd.f32 %v1674_v5, %v1626_v43  ;;  %v1578_v32 = vpop.f32.mrf.mxu0  ;;  %v12727_v63 = vpack.c.b16 %v5378_v11, %v5377_v35  ;;  %v12730_v3 = vpack.c.b16 %v5796_v22, %v5795_v42  ;;  %v9111_v5 = vld [vmem:[#allocation5 + $0x1d8] sm:$0xf0]  ;;  %v10946_v22 = vld [vmem:[#allocation5 + $0x8c] sm:$0xf] }
 0x1bd   : > { %v1579_v36 = vadd.f32 %v1578_v32, %v12674_v57  ;;  %v9114_v11 = vor.u32 %v10986_v34, %v9111_v5  ;;  %v9354_v32 = vor.u32 %v11046_v38, %v9351_v19  ;;  %v8951_v42 = vld [vmem:[#allocation5 + $0x98] sm:$0xf0] }
 0x1be   : > { %14920 = vst [vmem:[#allocation43_spill] sm:$0xff] %v12727_v63  ;;  %v1724_v61 = vadd.f32 %v1723_v20, %v1675_v16  ;;  %1941 = vmatpush.bf16.msrb.mxu0 %v8970_v8  ;;  %v10982_v20 = vld [vmem:[#allocation5 + $0x1ac] sm:$0xf]  ;;  %v8954_v54 = vor.u32 %v10946_v22, %v8951_v42  ;;  %v8935_v5 = vld [vmem:[#allocation5 + $0x78] sm:$0xf0] }
 0x1bf   : > { %14921 = vst [vmem:[#allocation44_spill] sm:$0xff] %v12730_v3  ;;  %v1627_v43 = vpop.f32.mrf.mxu1  ;;  %1989 = vmatpush.bf16.msrb.mxu1 %v9114_v11  ;;  %2088 = vmatpush.bf16.msrb.mxu3 %v9354_v32  ;;  %v9098_v31 = vor.u32 %v10982_v20, %v9095_v9  ;;  %v10942_v8 = vld [vmem:[#allocation5 + $0x6c] sm:$0xf]  ;;  %v9079_v19 = vld [vmem:[#allocation5 + $0x198] sm:$0xf0] }
 0x1c0   : > { %v12733_v0 = vpack.c.bf16 %v1724_v61, %v14922_v37  ;;  %v1628_v35 = vadd.f32 %v1627_v43, %v1579_v36  ;;  %v11042_v61 = vld [vmem:[#allocation5 + $0x38c] sm:$0xf]  ;;  %v8938_v38 = vor.u32 %v10942_v8, %v8935_v5  ;;  %v14923_v22 = vld [vmem:[#allocation33_spill] sm:$0xff] }
 0x1c1   : > { %v9338_v34 = vor.u32 %v11042_v61, %v9335_v7  ;;  %v10978_v37 = vld [vmem:[#allocation5 + $0x18c] sm:$0xf]  ;;  %v9143_v61 = vld [vmem:[#allocation5 + $0x218] sm:$0xf0] }
 0x1c2   : > { %1942 = vmatpush.bf16.msrb.mxu0 %v8954_v54  ;;  %v9082_v42 = vor.u32 %v10978_v37, %v9079_v19  ;;  %v11038_v20 = vld [vmem:[#allocation5 + $0x36c] sm:$0xf]  ;;  %v5379_v54 = vunpack.c.l.b16 %v12733_v0  ;;  %v8919_v8 = vld [vmem:[#allocation5 + $0x58] sm:$0xf0] }
 0x1c3   : > { %v1676_v16 = vpop.f32.mrf.mxu2  ;;  %v1725_v18 = vpop.f32.mrf.mxu3  ;;  %1990 = vmatpush.bf16.msrb.mxu1 %v9098_v31  ;;  %2089 = vmatpush.bf16.msrb.mxu3 %v9338_v34  ;;  %v10994_v31 = vld [vmem:[#allocation5 + $0x20c] sm:$0xf]  ;;  %v9063_v37 = vld [vmem:[#allocation5 + $0x178] sm:$0xf0] }
 0x1c4   : > { %v1677_v6 = vadd.f32 %v1676_v16, %v1628_v35  ;;  %v1581_v33 = vpop.f32.mrf.mxu0  ;;  %v9319_v16 = vld [vmem:[#allocation5 + $0x378] sm:$0xf0]  ;;  %v10938_v7 = vld [vmem:[#allocation5 + $0x4c] sm:$0xf] }
 0x1c5   : > { %v1582_v36 = vadd.f32 %v1581_v33, %v12674_v57  ;;  %v14924_v33 = vld [vmem:[#allocation34_spill] sm:$0xff]  ;;  %v10974_v5 = vld [vmem:[#allocation5 + $0x16c] sm:$0xf]  ;;  %v9303_v3 = vld [vmem:[#allocation5 + $0x358] sm:$0xf0] }
 0x1c6   : > { %v1726_v43 = vadd.f32 %v1725_v18, %v1677_v6  ;;  %1776 = vmatmul.bf16.gmra.mxu0 %v12536_v39  ;;  %v9322_v18 = vor.u32 %v11038_v20, %v9319_v16  ;;  %v8922_v20 = vor.u32 %v10938_v7, %v8919_v8  ;;  %v11034_v16 = vld [vmem:[#allocation5 + $0x34c] sm:$0xf]  ;;  %v9047_v7 = vld [vmem:[#allocation5 + $0x158] sm:$0xf0] }
 0x1c7   : > { %v1630_v11 = vpop.f32.mrf.mxu1  ;;  %1943 = vmatpush.bf16.msrb.mxu0 %v8938_v38  ;;  %1991 = vmatpush.bf16.msrb.mxu1 %v9082_v42  ;;  %v10934_v42 = vld [vmem:[#allocation5 + $0x2c] sm:$0xf] }
 0x1c8   : > { %v2153_v35 = vpack.c.bf16 %v1726_v43, %v12644_v55  ;;  %1874 = vmatmul.bf16.gmra.mxu2 %v12540_v50  ;;  %v1631_v32 = vadd.f32 %v1630_v11, %v1582_v36  ;;  %1923 = vmatmul.bf16.gmra.mxu3 %v14923_v22  ;;  %v5797_v55 = vunpack.c.h.b16 %v12733_v0  ;;  %v9146_v43 = vor.u32 %v10994_v31, %v9143_v61  ;;  %v10970_v61 = vld [vmem:[#allocation5 + $0x14c] sm:$0xf] }
 0x1c9   : > { %2090 = vmatpush.bf16.msrb.mxu3 %v9322_v18  ;;  %v9306_v0 = vor.u32 %v11034_v16, %v9303_v3  ;;  %v8903_v18 = vld [vmem:[#allocation5 + $0x38] sm:$0xf0]  ;;  %v10930_v3 = vld [vmem:[#allocation5 + $0xc] sm:$0xf] }
 0x1ca   : > { %v5380_v9 = vunpack.c.l.b16 %v2153_v35  ;;  %v5798_v6 = vunpack.c.h.b16 %v2153_v35  ;;  %1825 = vmatmul.bf16.gmra.mxu1 %v14924_v33  ;;  %v9066_v35 = vor.u32 %v10974_v5, %v9063_v37  ;;  %2044 = vmatpush.bf16.msrb.mxu2 %v9146_v43  ;;  %v11030_v5 = vld [vmem:[#allocation5 + $0x32c] sm:$0xf]  ;;  %v9287_v37 = vld [vmem:[#allocation5 + $0x338] sm:$0xf0] }
 0x1cb   : > { %v1679_v34 = vpop.f32.mrf.mxu2  ;;  %v1728_v36 = vpop.f32.mrf.mxu3  ;;  %1944 = vmatpush.bf16.msrb.mxu0 %v8922_v20  ;;  %v9290_v43 = vor.u32 %v11030_v5, %v9287_v37  ;;  %v9031_v20 = vld [vmem:[#allocation5 + $0x138] sm:$0xf0] }
 0x1cc   : > { %v1680_v11 = vadd.f32 %v1679_v34, %v1631_v32  ;;  %v1583_v19 = vpop.f32.mrf.mxu0  ;;  %v12743_v63 = vpack.c.b16 %v5380_v9, %v5379_v54  ;;  %v12746_v12 = vpack.c.b16 %v5798_v6, %v5797_v55  ;;  %1992 = vmatpush.bf16.msrb.mxu1 %v9066_v35  ;;  %v8906_v32 = vor.u32 %v10934_v42, %v8903_v18  ;;  %v14927_v34 = vld [vmem:[#allocation36_spill] sm:$0xff]  ;;  %v8887_v6 = vld [vmem:[#allocation5 + $0x18] sm:$0xf0]  ;;  %v10966_v55 = vld [vmem:[#allocation5 + $0x12c] sm:$0xf] }
 0x1cd   : > { %v1584_v38 = vadd.f32 %v1583_v19, %v12674_v57  ;;  %2091 = vmatpush.bf16.msrb.mxu3 %v9306_v0  ;;  %v9050_v9 = vor.u32 %v10970_v61, %v9047_v7  ;;  %v8890_v19 = vor.u32 %v10930_v3, %v8887_v6  ;;  %v9034_v0 = vor.u32 %v10966_v55, %v9031_v20  ;;  %v11026_v42 = vld [vmem:[#allocation5 + $0x30c] sm:$0xf]  ;;  %v9757_v6 = vld [vmem:[#allocation7 + $0x2e0] sm:$0xf]  ;;  %v11151_v55 = vld [vmem:[#allocation7 + $0x2ec] sm:$0xf0] }
 0x1ce   : > { %14925 = vst [vmem:[#allocation35_spill] sm:$0xff] %v12743_v63  ;;  %v1729_v31 = vadd.f32 %v1728_v36, %v1680_v11  ;;  %v10962_v61 = vld [vmem:[#allocation5 + $0x10c] sm:$0xf]  ;;  %v9613_v63 = vld [vmem:[#allocation7 + $0x1c0] sm:$0xf] }
 0x1cf   : > { %14926 = vst [vmem:[#allocation45_spill] sm:$0xff] %v12746_v12  ;;  %v1632_v1 = vpop.f32.mrf.mxu1  ;;  %1945 = vmatpush.bf16.msrb.mxu0 %v8906_v32  ;;  %v9015_v32 = vld [vmem:[#allocation5 + $0x118] sm:$0xf0]  ;;  %v11179_v12 = vld [vmem:[#allocation7 + $0x3cc] sm:$0xf0] }
 0x1d0   : > { %v2155_v8 = vpack.c.bf16 %v1729_v31, %v14927_v34  ;;  %v1633_v54 = vadd.f32 %v1632_v1, %v1584_v38  ;;  %1993 = vmatpush.bf16.msrb.mxu1 %v9050_v9  ;;  %v9271_v31 = vld [vmem:[#allocation5 + $0x318] sm:$0xf0]  ;;  %v9018_v34 = vor.u32 %v10962_v61, %v9015_v32 }
 0x1d1   : > { %2092 = vmatpush.bf16.msrb.mxu3 %v9290_v43  ;;  %v9274_v38 = vor.u32 %v11026_v42, %v9271_v31 }
 0x1d2   : > { %v5381_v5 = vunpack.c.l.b16 %v2155_v8  ;;  %v5799_v37 = vunpack.c.h.b16 %v2155_v8 }
 0x1d3   : > { %v1681_v36 = vpop.f32.mrf.mxu2  ;;  %v1730_v11 = vpop.f32.mrf.mxu3  ;;  %1946 = vmatpush.bf16.msrb.mxu0 %v8890_v19  ;;  %v9758_v19 = vor.u32 %v11151_v55, %v9757_v6 }
 0x1d4   : > { %v1682_v35 = vadd.f32 %v1681_v36, %v1633_v54  ;;  %v1586_v16 = vpop.f32.mrf.mxu0  ;;  %1994 = vmatpush.bf16.msrb.mxu1 %v9034_v0 }
 0x1d5   : > { %v1587_v1 = vadd.f32 %v1586_v16, %v12674_v57  ;;  %2093 = vmatpush.bf16.msrb.mxu3 %v9274_v38  ;;  %3043 = vmatpush.bf16.msra.mxu2 %v9758_v19 }
 0x1d6   : > { %v1731_v18 = vadd.f32 %v1730_v11, %v1682_v35  ;;  %1781 = vmatmul.bf16.gmra.mxu0 %v12556_v52 }
 0x1d7   : > { %v1635_v7 = vpop.f32.mrf.mxu1 }
 0x1d8   : > { %v2157_v9 = vpack.c.bf16 %v1731_v18, %v12654_v2  ;;  %1879 = vmatmul.bf16.gmra.mxu2 %v12560_v58  ;;  %v1636_v54 = vadd.f32 %v1635_v7, %v1587_v1  ;;  %1928 = vmatmul.bf16.gmra.mxu3 %v12562_v60 }
 0x1d9   : > { %1995 = vmatpush.bf16.msrb.mxu1 %v9018_v34 }
 0x1da   : > { %v5382_v43 = vunpack.c.l.b16 %v2157_v9  ;;  %v5800_v3 = vunpack.c.h.b16 %v2157_v9  ;;  %1830 = vmatmul.bf16.gmra.mxu1 %v12564_v4 }
 0x1db   : > { %v1684_v36 = vpop.f32.mrf.mxu2  ;;  %v1733_v11 = vpop.f32.mrf.mxu3 }
 0x1dc   : > { %v1685_v20 = vadd.f32 %v1684_v36, %v1636_v54  ;;  %v1588_v2 = vpop.f32.mrf.mxu0  ;;  %v12755_v35 = vpack.c.b16 %v5382_v43, %v5381_v5  ;;  %v12757_v16 = vpack.c.b16 %v5800_v3, %v5799_v37  ;;  %v9741_v37 = vld [vmem:[#allocation7 + $0x2c0] sm:$0xf] }
 0x1dd   : > { %v1589_v0 = vadd.f32 %v1588_v2, %v12674_v57 }
 0x1de   : > { %14928 = vst [vmem:[#allocation36_spill] sm:$0xff] %v12755_v35  ;;  %v1734_v8 = vadd.f32 %v1733_v11, %v1685_v20  ;;  %v9869_v35 = vld [vmem:[#allocation7 + $0x3c0] sm:$0xf] }
 0x1df   : > { %14929 = vst [vmem:[#allocation46_spill] sm:$0xff] %v12757_v16  ;;  %v1637_v42 = vpop.f32.mrf.mxu1 }
 0x1e0   : > { %v2159_v31 = vpack.c.bf16 %v1734_v8, %v12661_v23  ;;  %v1638_v1 = vadd.f32 %v1637_v42, %v1589_v0  ;;  %v11147_v23 = vld [vmem:[#allocation7 + $0x2cc] sm:$0xf0] }
 0x1e1   : > { %v9742_v43 = vor.u32 %v11147_v23, %v9741_v37  ;;  %v9725_v23 = vld [vmem:[#allocation7 + $0x2a0] sm:$0xf] }
 0x1e2   : > { %v5383_v3 = vunpack.c.l.b16 %v2159_v31  ;;  %v5801_v6 = vunpack.c.h.b16 %v2159_v31 }
 0x1e3   : > { %v1686_v38 = vpop.f32.mrf.mxu2  ;;  %v1735_v18 = vpop.f32.mrf.mxu3  ;;  %3044 = vmatpush.bf16.msra.mxu2 %v9742_v43  ;;  %v11143_v43 = vld [vmem:[#allocation7 + $0x2ac] sm:$0xf0] }
 0x1e4   : > { %v1687_v61 = vadd.f32 %v1686_v38, %v1638_v1  ;;  %v1591_v32 = vpop.f32.mrf.mxu0 }
 0x1e5   : > { %v1592_v7 = vadd.f32 %v1591_v32, %v12674_v57 }
 0x1e6   : > { %v1736_v34 = vadd.f32 %v1735_v18, %v1687_v61  ;;  %1786 = vmatmul.bf16.gmra.mxu0 %v12576_v21  ;;  %v12773_v18 = vld [vmem:[#allocation11] sm:$0xf] }
 0x1e7   : > { %v1640_v9 = vpop.f32.mrf.mxu1  ;;  %v12776_v61 = vperm.slane %v12773_v18, 2 }
 0x1e8   : > { %v2161_v54 = vpack.c.bf16 %v1736_v34, %v12664_v53  ;;  %1884 = vmatmul.bf16.gmra.mxu2 %v12580_v24  ;;  %v1641_v5 = vadd.f32 %v1640_v9, %v1592_v7  ;;  %1933 = vmatmul.bf16.gmra.mxu3 %v12582_v26 }
 0x1ea   : > { %v5384_v55 = vunpack.c.l.b16 %v2161_v54  ;;  %v5802_v36 = vunpack.c.h.b16 %v2161_v54  ;;  %1835 = vmatmul.bf16.gmra.mxu1 %v12584_v27 }
 0x1eb   : > { %v1689_v11 = vpop.f32.mrf.mxu2  ;;  %v1738_v19 = vpop.f32.mrf.mxu3 }
 0x1ec   : > { %v1690_v20 = vadd.f32 %v1689_v11, %v1641_v5  ;;  %v1593_v2 = vpop.f32.mrf.mxu0  ;;  %v12767_v53 = vpack.c.b16 %v5384_v55, %v5383_v3  ;;  %v12769_v0 = vpack.c.b16 %v5802_v36, %v5801_v6  ;;  %v9726_v3 = vor.u32 %v11143_v43, %v9725_v23  ;;  %v14934_v23 = vld [vmem:[#allocation24_spill] sm:$0xff]  ;;  %v9709_v43 = vld [vmem:[#allocation7 + $0x280] sm:$0xf] }
 0x1ed   : > { %v1594_v8 = vadd.f32 %v1593_v2, %v12674_v57 }
 0x1ee   : > { %14930 = vst [vmem:[#allocation47_spill] sm:$0xff] %v12767_v53  ;;  %v1739_v42 = vadd.f32 %v1738_v19, %v1690_v20  ;;  %3045 = vmatpush.bf16.msra.mxu2 %v9726_v3  ;;  %v11139_v3 = vld [vmem:[#allocation7 + $0x28c] sm:$0xf0] }
 0x1ef   : > { %14931 = vst [vmem:[#allocation48_spill] sm:$0xff] %v12769_v0  ;;  %v1642_v1 = vpop.f32.mrf.mxu1  ;;  %v11087_v0 = vld [vmem:[#allocation7 + $0xec] sm:$0xf0] }
 0x1f0   : > { %v2163_v38 = vpack.c.bf16 %v1739_v42, %v12671_v17  ;;  %v1643_v31 = vadd.f32 %v1642_v1, %v1594_v8 }
 0x1f2   : > { %v5385_v6 = vunpack.c.l.b16 %v2163_v38  ;;  %v5803_v55 = vunpack.c.h.b16 %v2163_v38 }
 0x1f3   : > { %v1691_v32 = vpop.f32.mrf.mxu2  ;;  %v1740_v7 = vpop.f32.mrf.mxu3 }
 0x1f4   : > { %v1692_v34 = vadd.f32 %v1691_v32, %v1643_v31  ;;  %v1752_v9 = vpop.f32.mrf.mxu0 }
 0x1f5   : > { %v1753_v54 = vadd.f32 %v1752_v9, %v12776_v61 }
 0x1f6   : > { %v1741_v5 = vadd.f32 %v1740_v7, %v1692_v34  ;;  %1947 = vmatmul.bf16.vlgmr.msrb.gmra.mxu0 %v12437_v41 }
 0x1f7   : > { %v1801_v57 = vpop.f32.mrf.mxu1 }
 0x1f8   : > { %v2165_v37 = vpack.c.bf16 %v1741_v5, %v12677_v51  ;;  %2045 = vmatmul.bf16.vlgmr.msrb.gmra.mxu2 %v12440_v46  ;;  %v1802_v17 = vadd.f32 %v1801_v57, %v1753_v54  ;;  %2094 = vmatmul.bf16.vlgmr.msrb.gmra.mxu3 %v12442_v47 }
 0x1fa   : > { %v5386_v36 = vunpack.c.l.b16 %v2165_v37  ;;  %v5804_v11 = vunpack.c.h.b16 %v2165_v37  ;;  %1996 = vmatmul.bf16.vlgmr.msrb.gmra.mxu1 %v12444_v48 }
 0x1fb   : > { %v1850_v19 = vpop.f32.mrf.mxu2  ;;  %v1899_v20 = vpop.f32.mrf.mxu3 }
 0x1fc   : > { %v1851_v2 = vadd.f32 %v1850_v19, %v1802_v17  ;;  %v1754_v8 = vpop.f32.mrf.mxu0  ;;  %v12784_v51 = vpack.c.b16 %v5386_v36, %v5385_v6  ;;  %v12786_v42 = vpack.c.b16 %v5804_v11, %v5803_v55  ;;  %v9710_v6 = vor.u32 %v11139_v3, %v9709_v43  ;;  %v14935_v55 = vld [vmem:[#allocation25_spill] sm:$0xff]  ;;  %v9693_v43 = vld [vmem:[#allocation7 + $0x260] sm:$0xf]  ;;  %v11135_v3 = vld [vmem:[#allocation7 + $0x26c] sm:$0xf0] }
 0x1fd   : > { %v1755_v1 = vadd.f32 %v1754_v8, %v12776_v61 }
 0x1fe   : > { %14932 = vst [vmem:[#allocation49_spill] sm:$0xff] %v12784_v51  ;;  %v12789_v31 = vadd.f32 %v1899_v20, %v1851_v2  ;;  %3046 = vmatpush.bf16.msra.mxu2 %v9710_v6  ;;  %v9694_v6 = vor.u32 %v11135_v3, %v9693_v43 }
 0x1ff   : > { %14933 = vst [vmem:[#allocation50_spill] sm:$0xff] %v12786_v42  ;;  %v1803_v32 = vpop.f32.mrf.mxu1 }
 0x200   : > { %v1804_v7 = vadd.f32 %v1803_v32, %v1755_v1 }
 0x202   : > { %3047 = vmatpush.bf16.msra.mxu2 %v9694_v6  ;;  %v9677_v6 = vld [vmem:[#allocation7 + $0x240] sm:$0xf] }
 0x203   : > { %v1852_v38 = vpop.f32.mrf.mxu2  ;;  %v1901_v34 = vpop.f32.mrf.mxu3 }
 0x204   : > { %v1853_v9 = vadd.f32 %v1852_v38, %v1804_v7  ;;  %v1757_v54 = vpop.f32.mrf.mxu0 }
 0x205   : > { %v1758_v5 = vadd.f32 %v1757_v54, %v12776_v61 }
 0x206   : > { %v12792_v57 = vadd.f32 %v1901_v34, %v1853_v9  ;;  %1952 = vmatmul.bf16.gmra.mxu0 %v12456_v59 }
 0x207   : > { %v1806_v37 = vpop.f32.mrf.mxu1 }
 0x208   : > { %2050 = vmatmul.bf16.gmra.mxu2 %v12460_v62  ;;  %v1807_v17 = vadd.f32 %v1806_v37, %v1758_v5  ;;  %2099 = vmatmul.bf16.gmra.mxu3 %v14934_v23 }
 0x20a   : > { %2001 = vmatmul.bf16.gmra.mxu1 %v14935_v55 }
 0x20b   : > { %v1855_v36 = vpop.f32.mrf.mxu2  ;;  %v1904_v11 = vpop.f32.mrf.mxu3 }
 0x20c   : > { %v1856_v19 = vadd.f32 %v1855_v36, %v1807_v17  ;;  %v1759_v20 = vpop.f32.mrf.mxu0 }
 0x20d   : > { %v1760_v2 = vadd.f32 %v1759_v20, %v12776_v61 }
 0x20e   : > { %v12799_v8 = vadd.f32 %v1904_v11, %v1856_v19 }
 0x20f   : > { %v1808_v1 = vpop.f32.mrf.mxu1 }
 0x210   : > { %v1809_v32 = vadd.f32 %v1808_v1, %v1760_v2 }
 0x213   : > { %v1857_v7 = vpop.f32.mrf.mxu2  ;;  %v1906_v38 = vpop.f32.mrf.mxu3 }
 0x214   : > { %v1858_v34 = vadd.f32 %v1857_v7, %v1809_v32  ;;  %v1762_v9 = vpop.f32.mrf.mxu0 }
 0x215   : > { %v1763_v54 = vadd.f32 %v1762_v9, %v12776_v61 }
 0x216   : > { %v12802_v5 = vadd.f32 %v1906_v38, %v1858_v34  ;;  %1957 = vmatmul.bf16.gmra.mxu0 %v12476_v10 }
 0x217   : > { %v1811_v37 = vpop.f32.mrf.mxu1 }
 0x218   : > { %2055 = vmatmul.bf16.gmra.mxu2 %v12480_v13  ;;  %v1812_v17 = vadd.f32 %v1811_v37, %v1763_v54  ;;  %2104 = vmatmul.bf16.gmra.mxu3 %v12482_v14 }
 0x21a   : > { %2006 = vmatmul.bf16.gmra.mxu1 %v12484_v15 }
 0x21b   : > { %v1860_v36 = vpop.f32.mrf.mxu2  ;;  %v1909_v11 = vpop.f32.mrf.mxu3 }
 0x21c   : > { %v1861_v19 = vadd.f32 %v1860_v36, %v1812_v17  ;;  %v1764_v20 = vpop.f32.mrf.mxu0  ;;  %v11131_v36 = vld [vmem:[#allocation7 + $0x24c] sm:$0xf0] }
 0x21d   : > { %v1765_v2 = vadd.f32 %v1764_v20, %v12776_v61 }
 0x21e   : > { %v12809_v1 = vadd.f32 %v1909_v11, %v1861_v19  ;;  %v9678_v11 = vor.u32 %v11131_v36, %v9677_v6  ;;  %v9501_v36 = vld [vmem:[#allocation7 + $0xe0] sm:$0xf] }
 0x21f   : > { %v1813_v32 = vpop.f32.mrf.mxu1 }
 0x220   : > { %v1814_v7 = vadd.f32 %v1813_v32, %v1765_v2  ;;  %3048 = vmatpush.bf16.msra.mxu2 %v9678_v11  ;;  %v9502_v11 = vor.u32 %v11087_v0, %v9501_v36  ;;  %v11119_v36 = vld [vmem:[#allocation7 + $0x1ec] sm:$0xf0] }
 0x222   : > { %2945 = vmatpush.bf16.msra.mxu0 %v9502_v11 }
 0x223   : > { %v1862_v38 = vpop.f32.mrf.mxu2  ;;  %v1911_v34 = vpop.f32.mrf.mxu3 }
 0x224   : > { %v1863_v9 = vadd.f32 %v1862_v38, %v1814_v7  ;;  %v1767_v54 = vpop.f32.mrf.mxu0 }
 0x225   : > { %v1768_v37 = vadd.f32 %v1767_v54, %v12776_v61 }
 0x226   : > { %v12812_v43 = vadd.f32 %v1911_v34, %v1863_v9  ;;  %1962 = vmatmul.bf16.gmra.mxu0 %v12496_v25 }
 0x227   : > { %v1816_v3 = vpop.f32.mrf.mxu1 }
 0x228   : > { %2060 = vmatmul.bf16.gmra.mxu2 %v12500_v28  ;;  %v1817_v17 = vadd.f32 %v1816_v3, %v1768_v37  ;;  %2109 = vmatmul.bf16.gmra.mxu3 %v12502_v29 }
 0x22a   : > { %2011 = vmatmul.bf16.gmra.mxu1 %v12504_v30 }
 0x22b   : > { %v1865_v19 = vpop.f32.mrf.mxu2  ;;  %v1914_v20 = vpop.f32.mrf.mxu3 }
 0x22c   : > { %v1866_v2 = vadd.f32 %v1865_v19, %v1817_v17  ;;  %v1769_v32 = vpop.f32.mrf.mxu0 }
 0x22d   : > { %v1770_v7 = vadd.f32 %v1769_v32, %v12776_v61  ;;  %v9885_v32 = vld [vmem:[#allocation7 + $0x3e0] sm:$0xf] }
 0x22e   : > { %v12819_v38 = vadd.f32 %v1914_v20, %v1866_v2  ;;  %v9661_v20 = vld [vmem:[#allocation7 + $0x220] sm:$0xf]  ;;  %v11127_v2 = vld [vmem:[#allocation7 + $0x22c] sm:$0xf0] }
 0x22f   : > { %v1818_v34 = vpop.f32.mrf.mxu1 }
 0x230   : > { %v1819_v9 = vadd.f32 %v1818_v34, %v1770_v7  ;;  %v9662_v7 = vor.u32 %v11127_v2, %v9661_v20  ;;  %v11183_v34 = vld [vmem:[#allocation7 + $0x3ec] sm:$0xf0]  ;;  %v9870_v20 = vor.u32 %v11179_v12, %v9869_v35  ;;  %v9597_v12 = vld [vmem:[#allocation7 + $0x1a0] sm:$0xf] }
 0x232   : > { %3049 = vmatpush.bf16.msra.mxu2 %v9662_v7 }
 0x233   : > { %v1867_v54 = vpop.f32.mrf.mxu2  ;;  %v1916_v37 = vpop.f32.mrf.mxu3 }
 0x234   : > { %v1868_v3 = vadd.f32 %v1867_v54, %v1819_v9  ;;  %v1772_v42 = vpop.f32.mrf.mxu0  ;;  %v9485_v9 = vld [vmem:[#allocation7 + $0xc0] sm:$0xf]  ;;  %v11083_v54 = vld [vmem:[#allocation7 + $0xcc] sm:$0xf0] }
 0x235   : > { %v1773_v51 = vadd.f32 %v1772_v42, %v12776_v61  ;;  %v9886_v42 = vor.u32 %v11183_v34, %v9885_v32  ;;  %v9486_v0 = vor.u32 %v11083_v54, %v9485_v9  ;;  %v9469_v32 = vld [vmem:[#allocation7 + $0xa0] sm:$0xf]  ;;  %v11079_v34 = vld [vmem:[#allocation7 + $0xac] sm:$0xf0] }
 0x236   : > { %v12822_v6 = vadd.f32 %v1916_v37, %v1868_v3  ;;  %1967 = vmatmul.bf16.gmra.mxu0 %v12516_v40  ;;  %v9629_v37 = vld [vmem:[#allocation7 + $0x1e0] sm:$0xf]  ;;  %v9470_v7 = vor.u32 %v11079_v34, %v9469_v32  ;;  %v11115_v9 = vld [vmem:[#allocation7 + $0x1cc] sm:$0xf0] }
 0x237   : > { %v1821_v17 = vpop.f32.mrf.mxu1  ;;  %3092 = vmatpush.bf16.msra.mxu3 %v9886_v42  ;;  %v9630_v16 = vor.u32 %v11119_v36, %v9629_v37  ;;  %2946 = vmatpush.bf16.msra.mxu0 %v9486_v0  ;;  %v9853_v42 = vld [vmem:[#allocation7 + $0x3a0] sm:$0xf]  ;;  %v11175_v37 = vld [vmem:[#allocation7 + $0x3ac] sm:$0xf0] }
 0x238   : > { %2065 = vmatmul.bf16.gmra.mxu2 %v12520_v44  ;;  %v1822_v19 = vadd.f32 %v1821_v17, %v1773_v51  ;;  %2114 = vmatmul.bf16.gmra.mxu3 %v12522_v45  ;;  %v9453_v36 = vld [vmem:[#allocation7 + $0x80] sm:$0xf]  ;;  %v11075_v0 = vld [vmem:[#allocation7 + $0x8c] sm:$0xf0] }
 0x239   : > { %2994 = vmatpush.bf16.msra.mxu1 %v9630_v16  ;;  %v9454_v16 = vor.u32 %v11075_v0, %v9453_v36  ;;  %v9837_v34 = vld [vmem:[#allocation7 + $0x380] sm:$0xf] }
 0x23a   : > { %2016 = vmatmul.bf16.gmra.mxu1 %v12524_v49  ;;  %v9645_v36 = vld [vmem:[#allocation7 + $0x200] sm:$0xf] }
 0x23b   : > { %v1870_v3 = vpop.f32.mrf.mxu2  ;;  %v1919_v53 = vpop.f32.mrf.mxu3  ;;  %3093 = vmatpush.bf16.msra.mxu3 %v9870_v20  ;;  %2947 = vmatpush.bf16.msra.mxu0 %v9470_v7  ;;  %v9437_v7 = vld [vmem:[#allocation7 + $0x60] sm:$0xf] }
 0x23c   : > { %v1871_v51 = vadd.f32 %v1870_v3, %v1822_v19  ;;  %v1774_v17 = vpop.f32.mrf.mxu0  ;;  %v9614_v19 = vor.u32 %v11115_v9, %v9613_v63  ;;  %v9854_v3 = vor.u32 %v11175_v37, %v9853_v42  ;;  %v11071_v9 = vld [vmem:[#allocation7 + $0x6c] sm:$0xf0] }
 0x23d   : > { %v1775_v11 = vadd.f32 %v1774_v17, %v12776_v61  ;;  %v9438_v37 = vor.u32 %v11071_v9, %v9437_v7  ;;  %v11103_v7 = vld [vmem:[#allocation7 + $0x16c] sm:$0xf0] }
 0x23e   : > { %v12829_v2 = vadd.f32 %v1919_v53, %v1871_v51  ;;  %2995 = vmatpush.bf16.msra.mxu1 %v9614_v19  ;;  %v11111_v51 = vld [vmem:[#allocation7 + $0x1ac] sm:$0xf0]  ;;  %v9581_v19 = vld [vmem:[#allocation7 + $0x180] sm:$0xf] }
 0x23f   : > { %v1823_v56 = vpop.f32.mrf.mxu1  ;;  %3094 = vmatpush.bf16.msra.mxu3 %v9854_v3  ;;  %v9598_v32 = vor.u32 %v11111_v51, %v9597_v12  ;;  %2948 = vmatpush.bf16.msra.mxu0 %v9454_v16  ;;  %v9821_v12 = vld [vmem:[#allocation7 + $0x360] sm:$0xf] }
 0x240   : > { %14936 = vst [vmem:[#allocation51_spill] sm:$0xff] %v12829_v2  ;;  %v1824_v54 = vadd.f32 %v1823_v56, %v1775_v11  ;;  %v11171_v56 = vld [vmem:[#allocation7 + $0x38c] sm:$0xf0]  ;;  %v9421_v51 = vld [vmem:[#allocation7 + $0x40] sm:$0xf] }
 0x241   : > { %v9838_v11 = vor.u32 %v11171_v56, %v9837_v34 }
 0x242   : > { %2996 = vmatpush.bf16.msra.mxu1 %v9598_v32  ;;  %v9565_v32 = vld [vmem:[#allocation7 + $0x160] sm:$0xf] }
 0x243   : > { %v1872_v35 = vpop.f32.mrf.mxu2  ;;  %v1921_v53 = vpop.f32.mrf.mxu3  ;;  %3095 = vmatpush.bf16.msra.mxu3 %v9838_v11  ;;  %2949 = vmatpush.bf16.msra.mxu0 %v9438_v37  ;;  %v11163_v11 = vld [vmem:[#allocation7 + $0x34c] sm:$0xf0] }
 0x244   : > { %v1873_v17 = vadd.f32 %v1872_v35, %v1824_v54  ;;  %v1777_v2 = vpop.f32.mrf.mxu0  ;;  %v11107_v54 = vld [vmem:[#allocation7 + $0x18c] sm:$0xf0] }
 0x245   : > { %v1778_v63 = vadd.f32 %v1777_v2, %v12776_v61  ;;  %v11123_v2 = vld [vmem:[#allocation7 + $0x20c] sm:$0xf0]  ;;  %v9582_v0 = vor.u32 %v11107_v54, %v9581_v19  ;;  %v9566_v19 = vor.u32 %v11103_v7, %v9565_v32  ;;  %v9805_v54 = vld [vmem:[#allocation7 + $0x340] sm:$0xf] }
 0x246   : > { %v12832_v20 = vadd.f32 %v1921_v53, %v1873_v17  ;;  %1972 = vmatmul.bf16.gmra.mxu0 %v12536_v39  ;;  %v9646_v35 = vor.u32 %v11123_v2, %v9645_v36  ;;  %v11167_v53 = vld [vmem:[#allocation7 + $0x36c] sm:$0xf0]  ;;  %v9806_v36 = vor.u32 %v11163_v11, %v9805_v54  ;;  %v9389_v7 = vld [vmem:[#allocation7] sm:$0xf] }
 0x247   : > { %v1826_v42 = vpop.f32.mrf.mxu1  ;;  %v9822_v16 = vor.u32 %v11167_v53, %v9821_v12  ;;  %v11067_v17 = vld [vmem:[#allocation7 + $0x4c] sm:$0xf0]  ;;  %2997 = vmatpush.bf16.msra.mxu1 %v9582_v0  ;;  %v9405_v12 = vld [vmem:[#allocation7 + $0x20] sm:$0xf] }
 0x248   : > { %2070 = vmatmul.bf16.gmra.mxu2 %v12540_v50  ;;  %v1827_v3 = vadd.f32 %v1826_v42, %v1778_v63  ;;  %2119 = vmatmul.bf16.gmra.mxu3 %v14923_v22  ;;  %v9422_v63 = vor.u32 %v11067_v17, %v9421_v51  ;;  %v11063_v53 = vld [vmem:[#allocation7 + $0x2c] sm:$0xf0]  ;;  %v9789_v17 = vld [vmem:[#allocation7 + $0x320] sm:$0xf] }
 0x249   : > { %3050 = vmatpush.bf16.msra.mxu2 %v9646_v35  ;;  %3096 = vmatpush.bf16.msra.mxu3 %v9822_v16  ;;  %v9406_v0 = vor.u32 %v11063_v53, %v9405_v12  ;;  %v11099_v35 = vld [vmem:[#allocation7 + $0x14c] sm:$0xf0]  ;;  %v9773_v12 = vld [vmem:[#allocation7 + $0x300] sm:$0xf] }
 0x24a   : > { %2021 = vmatmul.bf16.gmra.mxu1 %v14924_v33  ;;  %2950 = vmatpush.bf16.msra.mxu0 %v9422_v63  ;;  %v9549_v33 = vld [vmem:[#allocation7 + $0x140] sm:$0xf]  ;;  %v11159_v32 = vld [vmem:[#allocation7 + $0x32c] sm:$0xf0] }
 0x24b   : > { %v1875_v34 = vpop.f32.mrf.mxu2  ;;  %v1924_v56 = vpop.f32.mrf.mxu3  ;;  %2998 = vmatpush.bf16.msra.mxu1 %v9566_v19  ;;  %v11059_v16 = vld [vmem:[#allocation7 + $0xc] sm:$0xf0]  ;;  %v9533_v63 = vld [vmem:[#allocation7 + $0x120] sm:$0xf] }
 0x24c   : > { %v1876_v9 = vadd.f32 %v1875_v34, %v1827_v3  ;;  %v1779_v42 = vpop.f32.mrf.mxu0  ;;  %v9550_v3 = vor.u32 %v11099_v35, %v9549_v33  ;;  %v9790_v34 = vor.u32 %v11159_v32, %v9789_v17  ;;  %v11095_v54 = vld [vmem:[#allocation7 + $0x12c] sm:$0xf0]  ;;  %v11149_v17 = vld [vmem:[#allocation7 + $0x2e4] sm:$0xf]  ;;  %v9759_v32 = vld [vmem:[#allocation7 + $0x2f0] sm:$0xf0] }
 0x24d   : > { %v1780_v37 = vadd.f32 %v1779_v42, %v12776_v61  ;;  %3097 = vmatpush.bf16.msra.mxu3 %v9806_v36  ;;  %v9534_v19 = vor.u32 %v11095_v54, %v9533_v63  ;;  %v11155_v53 = vld [vmem:[#allocation7 + $0x30c] sm:$0xf0]  ;;  %v9517_v36 = vld [vmem:[#allocation7 + $0x100] sm:$0xf] }
 0x24e   : > { %v12839_v2 = vadd.f32 %v1924_v56, %v1876_v9  ;;  %2951 = vmatpush.bf16.msra.mxu0 %v9406_v0  ;;  %v9390_v9 = vor.u32 %v11059_v16, %v9389_v7  ;;  %v9774_v33 = vor.u32 %v11155_v53, %v9773_v12  ;;  %v11091_v0 = vld [vmem:[#allocation7 + $0x10c] sm:$0xf0] }
 0x24f   : > { %v1828_v22 = vpop.f32.mrf.mxu1  ;;  %2999 = vmatpush.bf16.msra.mxu1 %v9550_v3  ;;  %v9518_v3 = vor.u32 %v11091_v0, %v9517_v36 }
 0x250   : > { %14937 = vst [vmem:[#allocation52_spill] sm:$0xff] %v12839_v2  ;;  %v1829_v51 = vadd.f32 %v1828_v22, %v1780_v37 }
 0x251   : > { %3098 = vmatpush.bf16.msra.mxu3 %v9790_v34 }
 0x252   : > { %2952 = vmatpush.bf16.msra.mxu0 %v9390_v9 }
 0x253   : > { %v1877_v42 = vpop.f32.mrf.mxu2  ;;  %v1926_v56 = vpop.f32.mrf.mxu3  ;;  %3000 = vmatpush.bf16.msra.mxu1 %v9534_v19 }
 0x254   : > { %v1878_v11 = vadd.f32 %v1877_v42, %v1829_v51  ;;  %v1782_v2 = vpop.f32.mrf.mxu0 }
 0x255   : > { %v1783_v22 = vadd.f32 %v1782_v2, %v12776_v61  ;;  %3099 = vmatpush.bf16.msra.mxu3 %v9774_v33  ;;  %v9762_v2 = vor.u32 %v11149_v17, %v9759_v32  ;;  %v11145_v32 = vld [vmem:[#allocation7 + $0x2c4] sm:$0xf] }
 0x256   : > { %v12842_v37 = vadd.f32 %v1926_v56, %v1878_v11  ;;  %1977 = vmatmul.bf16.gmra.mxu0 %v12556_v52 }
 0x257   : > { %v1831_v35 = vpop.f32.mrf.mxu1  ;;  %3239 = vmatpush.bf16.msrb.mxu2 %v9762_v2  ;;  %3001 = vmatpush.bf16.msra.mxu1 %v9518_v3  ;;  %v9743_v2 = vld [vmem:[#allocation7 + $0x2d0] sm:$0xf0] }
 0x258   : > { %2075 = vmatmul.bf16.gmra.mxu2 %v12560_v58  ;;  %v1832_v51 = vadd.f32 %v1831_v35, %v1783_v22  ;;  %2124 = vmatmul.bf16.gmra.mxu3 %v12562_v60 }
 0x25a   : > { %2026 = vmatmul.bf16.gmra.mxu1 %v12564_v4 }
 0x25b   : > { %v1880_v34 = vpop.f32.mrf.mxu2  ;;  %v1929_v7 = vpop.f32.mrf.mxu3 }
 0x25c   : > { %v1881_v16 = vadd.f32 %v1880_v34, %v1832_v51  ;;  %v1784_v63 = vpop.f32.mrf.mxu0 }
 0x25d   : > { %v1785_v42 = vadd.f32 %v1784_v63, %v12776_v61 }
 0x25e   : > { %v12849_v56 = vadd.f32 %v1929_v7, %v1881_v16  ;;  %v9746_v7 = vor.u32 %v11145_v32, %v9743_v2 }
 0x25f   : > { %v1833_v9 = vpop.f32.mrf.mxu1 }
 0x260   : > { %v1834_v54 = vadd.f32 %v1833_v9, %v1785_v42  ;;  %3240 = vmatpush.bf16.msrb.mxu2 %v9746_v7  ;;  %v12862_v9 = vperm.slane %v12773_v18, 3  ;;  %v11141_v18 = vld [vmem:[#allocation7 + $0x2a4] sm:$0xf] }
 0x263   : > { %v1882_v11 = vpop.f32.mrf.mxu2  ;;  %v1931_v19 = vpop.f32.mrf.mxu3 }
 0x264   : > { %v1883_v12 = vadd.f32 %v1882_v11, %v1834_v54  ;;  %v1787_v53 = vpop.f32.mrf.mxu0 }
 0x265   : > { %v1788_v22 = vadd.f32 %v1787_v53, %v12776_v61 }
 0x266   : > { %v12852_v33 = vadd.f32 %v1931_v19, %v1883_v12  ;;  %1982 = vmatmul.bf16.gmra.mxu0 %v12576_v21 }
 0x267   : > { %v1836_v36 = vpop.f32.mrf.mxu1 }
 0x268   : > { %2080 = vmatmul.bf16.gmra.mxu2 %v12580_v24  ;;  %v1837_v0 = vadd.f32 %v1836_v36, %v1788_v22  ;;  %2129 = vmatmul.bf16.gmra.mxu3 %v12582_v26 }
 0x26a   : > { %2031 = vmatmul.bf16.gmra.mxu1 %v12584_v27 }
 0x26b   : > { %v1885_v35 = vpop.f32.mrf.mxu2  ;;  %v1934_v3 = vpop.f32.mrf.mxu3 }
 0x26c   : > { %v1886_v51 = vadd.f32 %v1885_v35, %v1837_v0  ;;  %v1789_v17 = vpop.f32.mrf.mxu0  ;;  %v9727_v0 = vld [vmem:[#allocation7 + $0x2b0] sm:$0xf0] }
 0x26d   : > { %v1790_v34 = vadd.f32 %v1789_v17, %v12776_v61 }
 0x26e   : > { %v12859_v16 = vadd.f32 %v1934_v3, %v1886_v51  ;;  %v9730_v51 = vor.u32 %v11141_v18, %v9727_v0 }
 0x26f   : > { %v1838_v63 = vpop.f32.mrf.mxu1 }
 0x270   : > { %v1839_v42 = vadd.f32 %v1838_v63, %v1790_v34  ;;  %3241 = vmatpush.bf16.msrb.mxu2 %v9730_v51 }
 0x273   : > { %v1887_v54 = vpop.f32.mrf.mxu2  ;;  %v1936_v11 = vpop.f32.mrf.mxu3 }
 0x274   : > { %v1888_v19 = vadd.f32 %v1887_v54, %v1839_v42  ;;  %v1948_v12 = vpop.f32.mrf.mxu0 }
 0x275   : > { %v1949_v53 = vadd.f32 %v1948_v12, %v12862_v9 }
 0x276   : > { %v12865_v22 = vadd.f32 %v1936_v11, %v1888_v19  ;;  %2953 = vmatmul.bf16.vlgmr.msra.gmra.mxu0 %v12437_v41 }
 0x277   : > { %v1997_v61 = vpop.f32.mrf.mxu1 }
 0x278   : > { %3051 = vmatmul.bf16.vlgmr.msra.gmra.mxu2 %v12440_v46  ;;  %v1998_v36 = vadd.f32 %v1997_v61, %v1949_v53  ;;  %3100 = vmatmul.bf16.vlgmr.msra.gmra.mxu3 %v12442_v47 }
 0x27a   : > { %3002 = vmatmul.bf16.vlgmr.msra.gmra.mxu1 %v12444_v48 }
 0x27b   : > { %v2046_v35 = vpop.f32.mrf.mxu2  ;;  %v2095_v3 = vpop.f32.mrf.mxu3 }
 0x27c   : > { %v2047_v17 = vadd.f32 %v2046_v35, %v1998_v36  ;;  %v1950_v32 = vpop.f32.mrf.mxu0 }
 0x27d   : > { %v1951_v2 = vadd.f32 %v1950_v32, %v12862_v9  ;;  %v9711_v32 = vld [vmem:[#allocation7 + $0x290] sm:$0xf0] }
 0x27e   : > { %v2096_v34 = vadd.f32 %v2095_v3, %v2047_v17  ;;  %v11137_v17 = vld [vmem:[#allocation7 + $0x284] sm:$0xf] }
 0x27f   : > { %v1999_v7 = vpop.f32.mrf.mxu1 }
 0x280   : > { %v2136_v63 = vpack.c.bf16 %v2096_v34, %v12789_v31  ;;  %v2000_v42 = vadd.f32 %v1999_v7, %v1951_v2  ;;  %v9714_v7 = vor.u32 %v11137_v17, %v9711_v32 }
 0x282   : > { %v6903_v35 = vunpack.c.l.b16 %v2136_v63  ;;  %v7741_v31 = vunpack.c.h.b16 %v2136_v63  ;;  %3242 = vmatpush.bf16.msrb.mxu2 %v9714_v7  ;;  %v9695_v7 = vld [vmem:[#allocation7 + $0x270] sm:$0xf0] }
 0x283   : > { %v2048_v54 = vpop.f32.mrf.mxu2  ;;  %v2097_v11 = vpop.f32.mrf.mxu3 }
 0x284   : > { %v2049_v19 = vadd.f32 %v2048_v54, %v2000_v42  ;;  %v1953_v12 = vpop.f32.mrf.mxu0 }
 0x285   : > { %v1954_v53 = vadd.f32 %v1953_v12, %v12862_v9 }
 0x286   : > { %v2098_v61 = vadd.f32 %v2097_v11, %v2049_v19  ;;  %2958 = vmatmul.bf16.gmra.mxu0 %v12456_v59 }
 0x287   : > { %v2002_v18 = vpop.f32.mrf.mxu1 }
 0x288   : > { %v2138_v36 = vpack.c.bf16 %v2098_v61, %v12792_v57  ;;  %3056 = vmatmul.bf16.gmra.mxu2 %v12460_v62  ;;  %v2003_v0 = vadd.f32 %v2002_v18, %v1954_v53  ;;  %3105 = vmatmul.bf16.gmra.mxu3 %v14934_v23 }
 0x28a   : > { %v6904_v3 = vunpack.c.l.b16 %v2138_v36  ;;  %v7742_v51 = vunpack.c.h.b16 %v2138_v36  ;;  %3007 = vmatmul.bf16.gmra.mxu1 %v14935_v55 }
 0x28b   : > { %v2051_v2 = vpop.f32.mrf.mxu2  ;;  %v2100_v34 = vpop.f32.mrf.mxu3 }
 0x28c   : > { %v12879_v42 = vpack.c.b16 %v6904_v3, %v6903_v35  ;;  %v12881_v54 = vpack.c.b16 %v7742_v51, %v7741_v31  ;;  %v2052_v57 = vadd.f32 %v2051_v2, %v2003_v0  ;;  %v1955_v11 = vpop.f32.mrf.mxu0 }
 0x28d   : > { %v1956_v19 = vadd.f32 %v1955_v11, %v12862_v9 }
 0x28e   : > { %14938 = vst [vmem:[#allocation53_spill] sm:$0xff] %v12879_v42  ;;  %v2101_v12 = vadd.f32 %v2100_v34, %v2052_v57  ;;  %v11133_v34 = vld [vmem:[#allocation7 + $0x264] sm:$0xf] }
 0x28f   : > { %14939 = vst [vmem:[#allocation54_spill] sm:$0xff] %v12881_v54  ;;  %v2004_v63 = vpop.f32.mrf.mxu1  ;;  %v9698_v57 = vor.u32 %v11133_v34, %v9695_v7 }
 0x290   : > { %v2140_v53 = vpack.c.bf16 %v2101_v12, %v12799_v8  ;;  %v2005_v61 = vadd.f32 %v2004_v63, %v1956_v19 }
 0x291   : > { %3243 = vmatpush.bf16.msrb.mxu2 %v9698_v57  ;;  %v9679_v57 = vld [vmem:[#allocation7 + $0x250] sm:$0xf0] }
 0x292   : > { %v6905_v51 = vunpack.c.l.b16 %v2140_v53  ;;  %v7743_v8 = vunpack.c.h.b16 %v2140_v53 }
 0x293   : > { %v2053_v18 = vpop.f32.mrf.mxu2  ;;  %v2102_v36 = vpop.f32.mrf.mxu3 }
 0x294   : > { %v2054_v55 = vadd.f32 %v2053_v18, %v2005_v61  ;;  %v1958_v23 = vpop.f32.mrf.mxu0 }
 0x295   : > { %v1959_v17 = vadd.f32 %v1958_v23, %v12862_v9 }
 0x296   : > { %v2103_v35 = vadd.f32 %v2102_v36, %v2054_v55  ;;  %2963 = vmatmul.bf16.gmra.mxu0 %v12476_v10 }
 0x297   : > { %v2007_v31 = vpop.f32.mrf.mxu1 }
 0x298   : > { %v2142_v0 = vpack.c.bf16 %v2103_v35, %v12802_v5  ;;  %3061 = vmatmul.bf16.gmra.mxu2 %v12480_v13  ;;  %v2008_v3 = vadd.f32 %v2007_v31, %v1959_v17  ;;  %3110 = vmatmul.bf16.gmra.mxu3 %v12482_v14 }
 0x29a   : > { %v6906_v32 = vunpack.c.l.b16 %v2142_v0  ;;  %v7744_v2 = vunpack.c.h.b16 %v2142_v0  ;;  %3012 = vmatmul.bf16.gmra.mxu1 %v12484_v15 }
 0x29b   : > { %v2056_v23 = vpop.f32.mrf.mxu2  ;;  %v2105_v55 = vpop.f32.mrf.mxu3 }
 0x29c   : > { %v2057_v11 = vadd.f32 %v2056_v23, %v2008_v3  ;;  %v1960_v19 = vpop.f32.mrf.mxu0  ;;  %v12891_v12 = vpack.c.b16 %v6906_v32, %v6905_v51  ;;  %v12893_v5 = vpack.c.b16 %v7744_v2, %v7743_v8 }
 0x29d   : > { %v1961_v63 = vadd.f32 %v1960_v19, %v12862_v9 }
 0x29e   : > { %14940 = vst [vmem:[#allocation55_spill] sm:$0xff] %v12891_v12  ;;  %v2106_v61 = vadd.f32 %v2105_v55, %v2057_v11  ;;  %v11129_v55 = vld [vmem:[#allocation7 + $0x244] sm:$0xf] }
 0x29f   : > { %14941 = vst [vmem:[#allocation56_spill] sm:$0xff] %v12893_v5  ;;  %v2009_v53 = vpop.f32.mrf.mxu1 }
 0x2a0   : > { %v2144_v18 = vpack.c.bf16 %v2106_v61, %v12809_v1  ;;  %v2010_v36 = vadd.f32 %v2009_v53, %v1961_v63  ;;  %v9682_v63 = vor.u32 %v11129_v55, %v9679_v57  ;;  %v11085_v57 = vld [vmem:[#allocation7 + $0xe4] sm:$0xf] }
 0x2a2   : > { %v6907_v2 = vunpack.c.l.b16 %v2144_v18  ;;  %v7745_v1 = vunpack.c.h.b16 %v2144_v18  ;;  %3244 = vmatpush.bf16.msrb.mxu2 %v9682_v63 }
 0x2a3   : > { %v2058_v17 = vpop.f32.mrf.mxu2  ;;  %v2107_v35 = vpop.f32.mrf.mxu3 }
 0x2a4   : > { %v2059_v31 = vadd.f32 %v2058_v17, %v2010_v36  ;;  %v1963_v0 = vpop.f32.mrf.mxu0 }
 0x2a5   : > { %v1964_v34 = vadd.f32 %v1963_v0, %v12862_v9 }
 0x2a6   : > { %v2108_v3 = vadd.f32 %v2107_v35, %v2059_v31  ;;  %2968 = vmatmul.bf16.gmra.mxu0 %v12496_v25 }
 0x2a7   : > { %v2012_v51 = vpop.f32.mrf.mxu1 }
 0x2a8   : > { %v2146_v8 = vpack.c.bf16 %v2108_v3, %v12812_v43  ;;  %3066 = vmatmul.bf16.gmra.mxu2 %v12500_v28  ;;  %v2013_v32 = vadd.f32 %v2012_v51, %v1964_v34  ;;  %3115 = vmatmul.bf16.gmra.mxu3 %v12502_v29 }
 0x2aa   : > { %v6908_v7 = vunpack.c.l.b16 %v2146_v8  ;;  %v7746_v23 = vunpack.c.h.b16 %v2146_v8  ;;  %3017 = vmatmul.bf16.gmra.mxu1 %v12504_v30 }
 0x2ab   : > { %v2061_v11 = vpop.f32.mrf.mxu2  ;;  %v2110_v19 = vpop.f32.mrf.mxu3 }
 0x2ac   : > { %v2062_v61 = vadd.f32 %v2061_v11, %v2013_v32  ;;  %v1965_v53 = vpop.f32.mrf.mxu0  ;;  %v12903_v36 = vpack.c.b16 %v6908_v7, %v6907_v2  ;;  %v12905_v43 = vpack.c.b16 %v7746_v23, %v7745_v1  ;;  %v9503_v2 = vld [vmem:[#allocation7 + $0xf0] sm:$0xf0] }
 0x2ad   : > { %v1966_v17 = vadd.f32 %v1965_v53, %v12862_v9  ;;  %v9506_v7 = vor.u32 %v11085_v57, %v9503_v2 }
 0x2ae   : > { %14942 = vst [vmem:[#allocation57_spill] sm:$0xff] %v12903_v36  ;;  %v2111_v35 = vadd.f32 %v2110_v19, %v2062_v61  ;;  %v9887_v19 = vld [vmem:[#allocation7 + $0x3f0] sm:$0xf0] }
 0x2af   : > { %14943 = vst [vmem:[#allocation58_spill] sm:$0xff] %v12905_v43  ;;  %v2014_v18 = vpop.f32.mrf.mxu1  ;;  %3141 = vmatpush.bf16.msrb.mxu0 %v9506_v7 }
 0x2b0   : > { %v2148_v31 = vpack.c.bf16 %v2111_v35, %v12819_v38  ;;  %v2015_v0 = vadd.f32 %v2014_v18, %v1966_v17  ;;  %v11181_v38 = vld [vmem:[#allocation7 + $0x3e4] sm:$0xf]  ;;  %v9663_v18 = vld [vmem:[#allocation7 + $0x230] sm:$0xf0] }
 0x2b1   : > { %v9890_v63 = vor.u32 %v11181_v38, %v9887_v19  ;;  %v11125_v35 = vld [vmem:[#allocation7 + $0x224] sm:$0xf]  ;;  %v9871_v19 = vld [vmem:[#allocation7 + $0x3d0] sm:$0xf0] }
 0x2b2   : > { %v6909_v61 = vunpack.c.l.b16 %v2148_v31  ;;  %v11177_v38 = vld [vmem:[#allocation7 + $0x3c4] sm:$0xf] }
 0x2b3   : > { %v2063_v34 = vpop.f32.mrf.mxu2  ;;  %v2112_v3 = vpop.f32.mrf.mxu3  ;;  %3288 = vmatpush.bf16.msrb.mxu3 %v9890_v63  ;;  %v9874_v5 = vor.u32 %v11177_v38, %v9871_v19  ;;  %v11077_v63 = vld [vmem:[#allocation7 + $0xa4] sm:$0xf] }
 0x2b4   : > { %v2064_v51 = vadd.f32 %v2063_v34, %v2015_v0  ;;  %v1968_v8 = vpop.f32.mrf.mxu0  ;;  %v11081_v0 = vld [vmem:[#allocation7 + $0xc4] sm:$0xf]  ;;  %v7747_v34 = vunpack.c.h.b16 %v2148_v31 }
 0x2b5   : > { %v1969_v55 = vadd.f32 %v1968_v8, %v12862_v9  ;;  %v9487_v8 = vld [vmem:[#allocation7 + $0xd0] sm:$0xf0] }
 0x2b6   : > { %v2113_v32 = vadd.f32 %v2112_v3, %v2064_v51  ;;  %2973 = vmatmul.bf16.gmra.mxu0 %v12516_v40  ;;  %v9666_v51 = vor.u32 %v11125_v35, %v9663_v18  ;;  %v9471_v35 = vld [vmem:[#allocation7 + $0xb0] sm:$0xf0]  ;;  %v11113_v18 = vld [vmem:[#allocation7 + $0x1c4] sm:$0xf] }
 0x2b7   : > { %v2017_v1 = vpop.f32.mrf.mxu1  ;;  %3289 = vmatpush.bf16.msrb.mxu3 %v9874_v5  ;;  %v9599_v5 = vld [vmem:[#allocation7 + $0x1b0] sm:$0xf0] }
 0x2b8   : > { %v2150_v23 = vpack.c.bf16 %v2113_v32, %v12822_v6  ;;  %3071 = vmatmul.bf16.gmra.mxu2 %v12520_v44  ;;  %v2018_v11 = vadd.f32 %v2017_v1, %v1969_v55  ;;  %3120 = vmatmul.bf16.gmra.mxu3 %v12522_v45  ;;  %v11117_v55 = vld [vmem:[#allocation7 + $0x1e4] sm:$0xf]  ;;  %v9631_v32 = vld [vmem:[#allocation7 + $0x1f0] sm:$0xf0]  ;;  %v9490_v1 = vor.u32 %v11081_v0, %v9487_v8  ;;  %v14946_v8 = vld [vmem:[#allocation51_spill] sm:$0xff] }
 0x2b9   : > { %v9634_v7 = vor.u32 %v11117_v55, %v9631_v32  ;;  %3245 = vmatpush.bf16.msrb.mxu2 %v9666_v51  ;;  %v9474_v0 = vor.u32 %v11077_v63, %v9471_v35  ;;  %v11173_v32 = vld [vmem:[#allocation7 + $0x3a4] sm:$0xf]  ;;  %v9855_v51 = vld [vmem:[#allocation7 + $0x3b0] sm:$0xf0] }
 0x2ba   : > { %v6910_v53 = vunpack.c.l.b16 %v2150_v23  ;;  %v7748_v17 = vunpack.c.h.b16 %v2150_v23  ;;  %3022 = vmatmul.bf16.gmra.mxu1 %v12524_v49  ;;  %3142 = vmatpush.bf16.msrb.mxu0 %v9490_v1  ;;  %v9839_v35 = vld [vmem:[#allocation7 + $0x390] sm:$0xf0] }
 0x2bb   : > { %v2066_v3 = vpop.f32.mrf.mxu2  ;;  %v2115_v6 = vpop.f32.mrf.mxu3  ;;  %3190 = vmatpush.bf16.msrb.mxu1 %v9634_v7 }
 0x2bc   : > { %v2067_v57 = vadd.f32 %v2066_v3, %v2018_v11  ;;  %v1970_v2 = vpop.f32.mrf.mxu0  ;;  %v12915_v23 = vpack.c.b16 %v6910_v53, %v6909_v61  ;;  %v12918_v31 = vpack.c.b16 %v7748_v17, %v7747_v34  ;;  %v9615_v3 = vld [vmem:[#allocation7 + $0x1d0] sm:$0xf0]  ;;  %v11073_v17 = vld [vmem:[#allocation7 + $0x84] sm:$0xf] }
 0x2bd   : > { %v1971_v43 = vadd.f32 %v1970_v2, %v12862_v9  ;;  %v9618_v53 = vor.u32 %v11113_v18, %v9615_v3  ;;  %v9858_v2 = vor.u32 %v11173_v32, %v9855_v51  ;;  %v9455_v34 = vld [vmem:[#allocation7 + $0x90] sm:$0xf0] }
 0x2be   : > { %14944 = vst [vmem:[#allocation59_spill] sm:$0xff] %v12915_v23  ;;  %v2116_v54 = vadd.f32 %v2115_v6, %v2067_v57  ;;  %3143 = vmatpush.bf16.msrb.mxu0 %v9474_v0  ;;  %v11109_v6 = vld [vmem:[#allocation7 + $0x1a4] sm:$0xf]  ;;  %v9458_v7 = vor.u32 %v11073_v17, %v9455_v34  ;;  %v9439_v3 = vld [vmem:[#allocation7 + $0x70] sm:$0xf0]  ;;  %v14947_v17 = vld [vmem:[#allocation33_spill] sm:$0xff] }
 0x2bf   : > { %14945 = vst [vmem:[#allocation60_spill] sm:$0xff] %v12918_v31  ;;  %v2019_v11 = vpop.f32.mrf.mxu1  ;;  %3191 = vmatpush.bf16.msrb.mxu1 %v9618_v53  ;;  %3290 = vmatpush.bf16.msrb.mxu3 %v9858_v2  ;;  %v9602_v63 = vor.u32 %v11109_v6, %v9599_v5  ;;  %v11069_v0 = vld [vmem:[#allocation7 + $0x64] sm:$0xf]  ;;  %v9583_v51 = vld [vmem:[#allocation7 + $0x190] sm:$0xf0] }
 0x2c0   : > { %v12921_v55 = vpack.c.bf16 %v2116_v54, %v14946_v8  ;;  %v2020_v61 = vadd.f32 %v2019_v11, %v1971_v43  ;;  %v11169_v54 = vld [vmem:[#allocation7 + $0x384] sm:$0xf]  ;;  %v9442_v32 = vor.u32 %v11069_v0, %v9439_v3  ;;  %v9423_v0 = vld [vmem:[#allocation7 + $0x50] sm:$0xf0] }
 0x2c1   : > { %v9842_v18 = vor.u32 %v11169_v54, %v9839_v35  ;;  %v11105_v8 = vld [vmem:[#allocation7 + $0x184] sm:$0xf]  ;;  %v9647_v54 = vld [vmem:[#allocation7 + $0x210] sm:$0xf0] }
 0x2c2   : > { %3144 = vmatpush.bf16.msrb.mxu0 %v9458_v7  ;;  %v9586_v34 = vor.u32 %v11105_v8, %v9583_v51  ;;  %v11165_v6 = vld [vmem:[#allocation7 + $0x364] sm:$0xf]  ;;  %v6911_v7 = vunpack.c.l.b16 %v12921_v55  ;;  %v9567_v8 = vld [vmem:[#allocation7 + $0x170] sm:$0xf0] }
 0x2c3   : > { %v2068_v57 = vpop.f32.mrf.mxu2  ;;  %v2117_v1 = vpop.f32.mrf.mxu3  ;;  %3192 = vmatpush.bf16.msrb.mxu1 %v9602_v63  ;;  %3291 = vmatpush.bf16.msrb.mxu3 %v9842_v18  ;;  %v11121_v63 = vld [vmem:[#allocation7 + $0x204] sm:$0xf]  ;;  %v9807_v31 = vld [vmem:[#allocation7 + $0x350] sm:$0xf0] }
 0x2c4   : > { %v2069_v38 = vadd.f32 %v2068_v57, %v2020_v61  ;;  %v1973_v19 = vpop.f32.mrf.mxu0  ;;  %v9823_v57 = vld [vmem:[#allocation7 + $0x370] sm:$0xf0]  ;;  %v11065_v35 = vld [vmem:[#allocation7 + $0x44] sm:$0xf] }
 0x2c5   : > { %v1974_v43 = vadd.f32 %v1973_v19, %v12862_v9  ;;  %v14948_v19 = vld [vmem:[#allocation34_spill] sm:$0xff] }
 0x2c6   : > { %v2118_v11 = vadd.f32 %v2117_v1, %v2069_v38  ;;  %2978 = vmatmul.bf16.gmra.mxu0 %v12536_v39  ;;  %v9826_v1 = vor.u32 %v11165_v6, %v9823_v57  ;;  %v11101_v3 = vld [vmem:[#allocation7 + $0x164] sm:$0xf]  ;;  %v9426_v6 = vor.u32 %v11065_v35, %v9423_v0  ;;  %v9551_v35 = vld [vmem:[#allocation7 + $0x150] sm:$0xf0] }
 0x2c7   : > { %v2022_v53 = vpop.f32.mrf.mxu1  ;;  %3145 = vmatpush.bf16.msrb.mxu0 %v9442_v32  ;;  %3193 = vmatpush.bf16.msrb.mxu1 %v9586_v34  ;;  %v11161_v57 = vld [vmem:[#allocation7 + $0x344] sm:$0xf] }
 0x2c8   : > { %v2154_v61 = vpack.c.bf16 %v2118_v11, %v12832_v20  ;;  %3076 = vmatmul.bf16.gmra.mxu2 %v12540_v50  ;;  %v2023_v2 = vadd.f32 %v2022_v53, %v1974_v43  ;;  %3125 = vmatmul.bf16.gmra.mxu3 %v14947_v17  ;;  %v7749_v20 = vunpack.c.h.b16 %v12921_v55  ;;  %v9650_v11 = vor.u32 %v11121_v63, %v9647_v54  ;;  %v11061_v34 = vld [vmem:[#allocation7 + $0x24] sm:$0xf] }
 0x2c9   : > { %3292 = vmatpush.bf16.msrb.mxu3 %v9826_v1  ;;  %v9810_v55 = vor.u32 %v11161_v57, %v9807_v31  ;;  %v9407_v1 = vld [vmem:[#allocation7 + $0x30] sm:$0xf0]  ;;  %v11097_v54 = vld [vmem:[#allocation7 + $0x144] sm:$0xf] }
 0x2ca   : > { %v6912_v5 = vunpack.c.l.b16 %v2154_v61  ;;  %v7750_v38 = vunpack.c.h.b16 %v2154_v61  ;;  %3027 = vmatmul.bf16.gmra.mxu1 %v14948_v19  ;;  %v9570_v61 = vor.u32 %v11101_v3, %v9567_v8  ;;  %3246 = vmatpush.bf16.msrb.mxu2 %v9650_v11  ;;  %v11157_v3 = vld [vmem:[#allocation7 + $0x324] sm:$0xf]  ;;  %v9791_v8 = vld [vmem:[#allocation7 + $0x330] sm:$0xf0] }
 0x2cb   : > { %v2071_v18 = vpop.f32.mrf.mxu2  ;;  %v2120_v43 = vpop.f32.mrf.mxu3  ;;  %3146 = vmatpush.bf16.msrb.mxu0 %v9426_v6  ;;  %v9794_v11 = vor.u32 %v11157_v3, %v9791_v8  ;;  %v11057_v31 = vld [vmem:[#allocation7 + $0x4] sm:$0xf]  ;;  %v9535_v6 = vld [vmem:[#allocation7 + $0x130] sm:$0xf0] }
 0x2cc   : > { %v2072_v53 = vadd.f32 %v2071_v18, %v2023_v2  ;;  %v1975_v51 = vpop.f32.mrf.mxu0  ;;  %v12931_v23 = vpack.c.b16 %v6912_v5, %v6911_v7  ;;  %v12934_v36 = vpack.c.b16 %v7750_v38, %v7749_v20  ;;  %3194 = vmatpush.bf16.msrb.mxu1 %v9570_v61  ;;  %v9410_v2 = vor.u32 %v11061_v34, %v9407_v1  ;;  %v14951_v18 = vld [vmem:[#allocation52_spill] sm:$0xff]  ;;  %v11093_v20 = vld [vmem:[#allocation7 + $0x124] sm:$0xf] }
 0x2cd   : > { %v1976_v32 = vadd.f32 %v1975_v51, %v12862_v9  ;;  %3293 = vmatpush.bf16.msrb.mxu3 %v9810_v55  ;;  %v9554_v5 = vor.u32 %v11097_v54, %v9551_v35  ;;  %v9391_v38 = vld [vmem:[#allocation7 + $0x10] sm:$0xf0]  ;;  %v9538_v55 = vor.u32 %v11093_v20, %v9535_v6  ;;  %v11153_v34 = vld [vmem:[#allocation7 + $0x304] sm:$0xf]  ;;  %v11152_v20 = vld [vmem:[#allocation7 + $0x2f4] sm:$0xf0] }
 0x2ce   : > { %14949 = vst [vmem:[#allocation51_spill] sm:$0xff] %v12931_v23  ;;  %v2121_v63 = vadd.f32 %v2120_v43, %v2072_v53  ;;  %v9394_v51 = vor.u32 %v11057_v31, %v9391_v38  ;;  %v11089_v54 = vld [vmem:[#allocation7 + $0x104] sm:$0xf]  ;;  %v9765_v38 = vld [vmem:[#allocation7 + $0x2e8] sm:$0xf] }
 0x2cf   : > { %14950 = vst [vmem:[#allocation61_spill] sm:$0xff] %v12934_v36  ;;  %v2024_v12 = vpop.f32.mrf.mxu1  ;;  %3147 = vmatpush.bf16.msrb.mxu0 %v9410_v2  ;;  %v9519_v2 = vld [vmem:[#allocation7 + $0x110] sm:$0xf0]  ;;  %v9621_v23 = vld [vmem:[#allocation7 + $0x1c8] sm:$0xf] }
 0x2d0   : > { %v2156_v0 = vpack.c.bf16 %v2121_v63, %v14951_v18  ;;  %v2025_v7 = vadd.f32 %v2024_v12, %v1976_v32  ;;  %3195 = vmatpush.bf16.msrb.mxu1 %v9554_v5  ;;  %v9775_v63 = vld [vmem:[#allocation7 + $0x310] sm:$0xf0]  ;;  %v9522_v18 = vor.u32 %v11089_v54, %v9519_v2 }
 0x2d1   : > { %3294 = vmatpush.bf16.msrb.mxu3 %v9794_v11  ;;  %v9778_v32 = vor.u32 %v11153_v34, %v9775_v63 }
 0x2d2   : > { %v6913_v3 = vunpack.c.l.b16 %v2156_v0  ;;  %v7751_v8 = vunpack.c.h.b16 %v2156_v0 }
 0x2d3   : > { %v2073_v43 = vpop.f32.mrf.mxu2  ;;  %v2122_v53 = vpop.f32.mrf.mxu3  ;;  %3148 = vmatpush.bf16.msrb.mxu0 %v9394_v51  ;;  %v9766_v51 = vor.u32 %v11152_v20, %v9765_v38 }
 0x2d4   : > { %v2074_v61 = vadd.f32 %v2073_v43, %v2025_v7  ;;  %v1978_v57 = vpop.f32.mrf.mxu0  ;;  %3196 = vmatpush.bf16.msrb.mxu1 %v9538_v55 }
 0x2d5   : > { %v1979_v12 = vadd.f32 %v1978_v57, %v12862_v9  ;;  %3295 = vmatpush.bf16.msrb.mxu3 %v9778_v32  ;;  %3435 = vmatpush.bf16.msra.mxu2 %v9766_v51 }
 0x2d6   : > { %v2123_v1 = vadd.f32 %v2122_v53, %v2074_v61  ;;  %2983 = vmatmul.bf16.gmra.mxu0 %v12556_v52 }
 0x2d7   : > { %v2027_v35 = vpop.f32.mrf.mxu1 }
 0x2d8   : > { %v2158_v5 = vpack.c.bf16 %v2123_v1, %v12842_v37  ;;  %3081 = vmatmul.bf16.gmra.mxu2 %v12560_v58  ;;  %v2028_v7 = vadd.f32 %v2027_v35, %v1979_v12  ;;  %3130 = vmatmul.bf16.gmra.mxu3 %v12562_v60 }
 0x2d9   : > { %3197 = vmatpush.bf16.msrb.mxu1 %v9522_v18 }
 0x2da   : > { %v6914_v11 = vunpack.c.l.b16 %v2158_v5  ;;  %v7752_v31 = vunpack.c.h.b16 %v2158_v5  ;;  %3032 = vmatmul.bf16.gmra.mxu1 %v12564_v4 }
 0x2db   : > { %v2076_v43 = vpop.f32.mrf.mxu2  ;;  %v2125_v53 = vpop.f32.mrf.mxu3 }
 0x2dc   : > { %v2077_v6 = vadd.f32 %v2076_v43, %v2028_v7  ;;  %v1980_v37 = vpop.f32.mrf.mxu0  ;;  %v12943_v61 = vpack.c.b16 %v6914_v11, %v6913_v3  ;;  %v12945_v57 = vpack.c.b16 %v7752_v31, %v7751_v8  ;;  %v9749_v8 = vld [vmem:[#allocation7 + $0x2c8] sm:$0xf] }
 0x2dd   : > { %v1981_v55 = vadd.f32 %v1980_v37, %v12862_v9 }
 0x2de   : > { %14952 = vst [vmem:[#allocation52_spill] sm:$0xff] %v12943_v61  ;;  %v2126_v0 = vadd.f32 %v2125_v53, %v2077_v6  ;;  %v11180_v61 = vld [vmem:[#allocation7 + $0x3d4] sm:$0xf0] }
 0x2df   : > { %14953 = vst [vmem:[#allocation62_spill] sm:$0xff] %v12945_v57  ;;  %v2029_v34 = vpop.f32.mrf.mxu1  ;;  %v11088_v57 = vld [vmem:[#allocation7 + $0xf4] sm:$0xf0] }
 0x2e0   : > { %v2160_v63 = vpack.c.bf16 %v2126_v0, %v12849_v56  ;;  %v2030_v12 = vadd.f32 %v2029_v34, %v1981_v55  ;;  %v11148_v56 = vld [vmem:[#allocation7 + $0x2d4] sm:$0xf0] }
 0x2e1   : > { %v9750_v11 = vor.u32 %v11148_v56, %v9749_v8 }
 0x2e2   : > { %v6915_v31 = vunpack.c.l.b16 %v2160_v63  ;;  %v7753_v38 = vunpack.c.h.b16 %v2160_v63 }
 0x2e3   : > { %v2078_v32 = vpop.f32.mrf.mxu2  ;;  %v2127_v1 = vpop.f32.mrf.mxu3  ;;  %3436 = vmatpush.bf16.msra.mxu2 %v9750_v11  ;;  %v11144_v11 = vld [vmem:[#allocation7 + $0x2b4] sm:$0xf0] }
 0x2e4   : > { %v2079_v54 = vadd.f32 %v2078_v32, %v2030_v12  ;;  %v1983_v2 = vpop.f32.mrf.mxu0  ;;  %v12960_v12 = vld [vmem:[#allocation13] sm:$0xf] }
 0x2e5   : > { %v1984_v35 = vadd.f32 %v1983_v2, %v12862_v9 }
 0x2e6   : > { %v2128_v18 = vadd.f32 %v2127_v1, %v2079_v54  ;;  %2988 = vmatmul.bf16.gmra.mxu0 %v12576_v21  ;;  %v12964_v54 = vperm.slane %v12960_v12, 0 }
 0x2e7   : > { %v2032_v5 = vpop.f32.mrf.mxu1 }
 0x2e8   : > { %v2162_v7 = vpack.c.bf16 %v2128_v18, %v12852_v33  ;;  %3086 = vmatmul.bf16.gmra.mxu2 %v12580_v24  ;;  %v2033_v3 = vadd.f32 %v2032_v5, %v1984_v35  ;;  %3135 = vmatmul.bf16.gmra.mxu3 %v12582_v26 }
 0x2ea   : > { %v6916_v20 = vunpack.c.l.b16 %v2162_v7  ;;  %v7754_v43 = vunpack.c.h.b16 %v2162_v7  ;;  %3037 = vmatmul.bf16.gmra.mxu1 %v12584_v27 }
 0x2eb   : > { %v2081_v53 = vpop.f32.mrf.mxu2  ;;  %v2130_v51 = vpop.f32.mrf.mxu3 }
 0x2ec   : > { %v2082_v6 = vadd.f32 %v2081_v53, %v2033_v3  ;;  %v1985_v37 = vpop.f32.mrf.mxu0  ;;  %v12955_v33 = vpack.c.b16 %v6916_v20, %v6915_v31  ;;  %v12957_v55 = vpack.c.b16 %v7754_v43, %v7753_v38 }
 0x2ed   : > { %v1986_v0 = vadd.f32 %v1985_v37, %v12862_v9 }
 0x2ee   : > { %14954 = vst [vmem:[#allocation63_spill] sm:$0xff] %v12955_v33  ;;  %v2131_v34 = vadd.f32 %v2130_v51, %v2082_v6  ;;  %v9877_v33 = vld [vmem:[#allocation7 + $0x3c8] sm:$0xf] }
 0x2ef   : > { %14955 = vst [vmem:[#allocation64_spill] sm:$0xff] %v12957_v55  ;;  %v2034_v32 = vpop.f32.mrf.mxu1 }
 0x2f0   : > { %v2164_v63 = vpack.c.bf16 %v2131_v34, %v12859_v16  ;;  %v2035_v1 = vadd.f32 %v2034_v32, %v1986_v0  ;;  %v9733_v16 = vld [vmem:[#allocation7 + $0x2a8] sm:$0xf] }
 0x2f1   : > { %v9734_v31 = vor.u32 %v11144_v11, %v9733_v16  ;;  %v14958_v16 = vld [vmem:[#allocation24_spill] sm:$0xff]  ;;  %v9717_v11 = vld [vmem:[#allocation7 + $0x288] sm:$0xf] }
 0x2f2   : > { %v6917_v38 = vunpack.c.l.b16 %v2164_v63  ;;  %v7755_v20 = vunpack.c.h.b16 %v2164_v63 }
 0x2f3   : > { %v2083_v2 = vpop.f32.mrf.mxu2  ;;  %v2132_v35 = vpop.f32.mrf.mxu3  ;;  %3437 = vmatpush.bf16.msra.mxu2 %v9734_v31  ;;  %v11140_v31 = vld [vmem:[#allocation7 + $0x294] sm:$0xf0] }
 0x2f4   : > { %v2084_v18 = vadd.f32 %v2083_v2, %v2035_v1  ;;  %v2954_v5 = vpop.f32.mrf.mxu0 }
 0x2f5   : > { %v2955_v7 = vadd.f32 %v2954_v5, %v12964_v54 }
 0x2f6   : > { %v2133_v3 = vadd.f32 %v2132_v35, %v2084_v18  ;;  %3149 = vmatmul.bf16.vlgmr.msrb.gmra.mxu0 %v12437_v41 }
 0x2f7   : > { %v3003_v9 = vpop.f32.mrf.mxu1 }
 0x2f8   : > { %v2166_v8 = vpack.c.bf16 %v2133_v3, %v12865_v22  ;;  %3247 = vmatmul.bf16.vlgmr.msrb.gmra.mxu2 %v12440_v46  ;;  %v3004_v56 = vadd.f32 %v3003_v9, %v2955_v7  ;;  %3296 = vmatmul.bf16.vlgmr.msrb.gmra.mxu3 %v12442_v47 }
 0x2fa   : > { %v6918_v43 = vunpack.c.l.b16 %v2166_v8  ;;  %v7756_v53 = vunpack.c.h.b16 %v2166_v8  ;;  %3198 = vmatmul.bf16.vlgmr.msrb.gmra.mxu1 %v12444_v48 }
 0x2fb   : > { %v3052_v51 = vpop.f32.mrf.mxu2  ;;  %v3101_v6 = vpop.f32.mrf.mxu3 }
 0x2fc   : > { %v3053_v37 = vadd.f32 %v3052_v51, %v3004_v56  ;;  %v2956_v0 = vpop.f32.mrf.mxu0  ;;  %v12972_v22 = vpack.c.b16 %v6918_v43, %v6917_v38  ;;  %v12974_v34 = vpack.c.b16 %v7756_v53, %v7755_v20  ;;  %v9718_v38 = vor.u32 %v11140_v31, %v9717_v11  ;;  %v14959_v20 = vld [vmem:[#allocation25_spill] sm:$0xff]  ;;  %v9701_v11 = vld [vmem:[#allocation7 + $0x268] sm:$0xf] }
 0x2fd   : > { %v2957_v32 = vadd.f32 %v2956_v0, %v12964_v54  ;;  %v11136_v31 = vld [vmem:[#allocation7 + $0x274] sm:$0xf0] }
 0x2fe   : > { %14956 = vst [vmem:[#allocation65_spill] sm:$0xff] %v12972_v22  ;;  %v12977_v1 = vadd.f32 %v3101_v6, %v3053_v37  ;;  %3438 = vmatpush.bf16.msra.mxu2 %v9718_v38  ;;  %v9702_v38 = vor.u32 %v11136_v31, %v9701_v11 }
 0x2ff   : > { %14957 = vst [vmem:[#allocation66_spill] sm:$0xff] %v12974_v34  ;;  %v3005_v2 = vpop.f32.mrf.mxu1 }
 0x300   : > { %v3006_v35 = vadd.f32 %v3005_v2, %v2957_v32 }
 0x302   : > { %3439 = vmatpush.bf16.msra.mxu2 %v9702_v38  ;;  %v9685_v38 = vld [vmem:[#allocation7 + $0x248] sm:$0xf] }
 0x303   : > { %v3054_v63 = vpop.f32.mrf.mxu2  ;;  %v3103_v18 = vpop.f32.mrf.mxu3 }
 0x304   : > { %v3055_v5 = vadd.f32 %v3054_v63, %v3006_v35  ;;  %v2959_v7 = vpop.f32.mrf.mxu0 }
 0x305   : > { %v2960_v3 = vadd.f32 %v2959_v7, %v12964_v54 }
 0x306   : > { %v12980_v9 = vadd.f32 %v3103_v18, %v3055_v5  ;;  %3154 = vmatmul.bf16.gmra.mxu0 %v12456_v59 }
 0x307   : > { %v3008_v8 = vpop.f32.mrf.mxu1 }
 0x308   : > { %3252 = vmatmul.bf16.gmra.mxu2 %v12460_v62  ;;  %v3009_v56 = vadd.f32 %v3008_v8, %v2960_v3  ;;  %3301 = vmatmul.bf16.gmra.mxu3 %v14958_v16 }
 0x30a   : > { %3203 = vmatmul.bf16.gmra.mxu1 %v14959_v20 }
 0x30b   : > { %v3057_v43 = vpop.f32.mrf.mxu2  ;;  %v3106_v53 = vpop.f32.mrf.mxu3 }
 0x30c   : > { %v3058_v51 = vadd.f32 %v3057_v43, %v3009_v56  ;;  %v2961_v6 = vpop.f32.mrf.mxu0 }
 0x30d   : > { %v2962_v37 = vadd.f32 %v2961_v6, %v12964_v54 }
 0x30e   : > { %v12987_v0 = vadd.f32 %v3106_v53, %v3058_v51 }
 0x30f   : > { %v3010_v32 = vpop.f32.mrf.mxu1 }
 0x310   : > { %v3011_v2 = vadd.f32 %v3010_v32, %v2962_v37 }
 0x313   : > { %v3059_v35 = vpop.f32.mrf.mxu2  ;;  %v3108_v63 = vpop.f32.mrf.mxu3 }
 0x314   : > { %v3060_v18 = vadd.f32 %v3059_v35, %v3011_v2  ;;  %v2964_v5 = vpop.f32.mrf.mxu0 }
 0x315   : > { %v2965_v7 = vadd.f32 %v2964_v5, %v12964_v54 }
 0x316   : > { %v12990_v3 = vadd.f32 %v3108_v63, %v3060_v18  ;;  %3159 = vmatmul.bf16.gmra.mxu0 %v12476_v10 }
 0x317   : > { %v3013_v8 = vpop.f32.mrf.mxu1 }
 0x318   : > { %3257 = vmatmul.bf16.gmra.mxu2 %v12480_v13  ;;  %v3014_v56 = vadd.f32 %v3013_v8, %v2965_v7  ;;  %3306 = vmatmul.bf16.gmra.mxu3 %v12482_v14 }
 0x31a   : > { %3208 = vmatmul.bf16.gmra.mxu1 %v12484_v15 }
 0x31b   : > { %v3062_v43 = vpop.f32.mrf.mxu2  ;;  %v3111_v53 = vpop.f32.mrf.mxu3 }
 0x31c   : > { %v3063_v51 = vadd.f32 %v3062_v43, %v3014_v56  ;;  %v2966_v6 = vpop.f32.mrf.mxu0  ;;  %v11132_v43 = vld [vmem:[#allocation7 + $0x254] sm:$0xf0] }
 0x31d   : > { %v2967_v37 = vadd.f32 %v2966_v6, %v12964_v54 }
 0x31e   : > { %v12997_v32 = vadd.f32 %v3111_v53, %v3063_v51  ;;  %v9686_v53 = vor.u32 %v11132_v43, %v9685_v38  ;;  %v9509_v43 = vld [vmem:[#allocation7 + $0xe8] sm:$0xf] }
 0x31f   : > { %v3015_v2 = vpop.f32.mrf.mxu1 }
 0x320   : > { %v3016_v35 = vadd.f32 %v3015_v2, %v2967_v37  ;;  %3440 = vmatpush.bf16.msra.mxu2 %v9686_v53  ;;  %v9510_v53 = vor.u32 %v11088_v57, %v9509_v43  ;;  %v11120_v43 = vld [vmem:[#allocation7 + $0x1f4] sm:$0xf0] }
 0x322   : > { %3337 = vmatpush.bf16.msra.mxu0 %v9510_v53 }
 0x323   : > { %v3064_v63 = vpop.f32.mrf.mxu2  ;;  %v3113_v18 = vpop.f32.mrf.mxu3 }
 0x324   : > { %v3065_v5 = vadd.f32 %v3064_v63, %v3016_v35  ;;  %v2969_v7 = vpop.f32.mrf.mxu0 }
 0x325   : > { %v2970_v8 = vadd.f32 %v2969_v7, %v12964_v54 }
 0x326   : > { %v13000_v11 = vadd.f32 %v3113_v18, %v3065_v5  ;;  %3164 = vmatmul.bf16.gmra.mxu0 %v12496_v25 }
 0x327   : > { %v3018_v31 = vpop.f32.mrf.mxu1 }
 0x328   : > { %3262 = vmatmul.bf16.gmra.mxu2 %v12500_v28  ;;  %v3019_v56 = vadd.f32 %v3018_v31, %v2970_v8  ;;  %3311 = vmatmul.bf16.gmra.mxu3 %v12502_v29 }
 0x32a   : > { %3213 = vmatmul.bf16.gmra.mxu1 %v12504_v30 }
 0x32b   : > { %v3067_v51 = vpop.f32.mrf.mxu2  ;;  %v3116_v6 = vpop.f32.mrf.mxu3 }
 0x32c   : > { %v3068_v37 = vadd.f32 %v3067_v51, %v3019_v56  ;;  %v2971_v2 = vpop.f32.mrf.mxu0 }
 0x32d   : > { %v2972_v35 = vadd.f32 %v2971_v2, %v12964_v54  ;;  %v9893_v2 = vld [vmem:[#allocation7 + $0x3e8] sm:$0xf] }
 0x32e   : > { %v13007_v63 = vadd.f32 %v3116_v6, %v3068_v37  ;;  %v9669_v6 = vld [vmem:[#allocation7 + $0x228] sm:$0xf]  ;;  %v11128_v37 = vld [vmem:[#allocation7 + $0x234] sm:$0xf0] }
 0x32f   : > { %v3020_v18 = vpop.f32.mrf.mxu1 }
 0x330   : > { %v3021_v5 = vadd.f32 %v3020_v18, %v2972_v35  ;;  %v9670_v35 = vor.u32 %v11128_v37, %v9669_v6  ;;  %v11184_v18 = vld [vmem:[#allocation7 + $0x3f4] sm:$0xf0]  ;;  %v9878_v6 = vor.u32 %v11180_v61, %v9877_v33  ;;  %v9605_v61 = vld [vmem:[#allocation7 + $0x1a8] sm:$0xf] }
 0x332   : > { %3441 = vmatpush.bf16.msra.mxu2 %v9670_v35 }
 0x333   : > { %v3069_v7 = vpop.f32.mrf.mxu2  ;;  %v3118_v8 = vpop.f32.mrf.mxu3 }
 0x334   : > { %v3070_v31 = vadd.f32 %v3069_v7, %v3021_v5  ;;  %v2974_v34 = vpop.f32.mrf.mxu0  ;;  %v9493_v5 = vld [vmem:[#allocation7 + $0xc8] sm:$0xf]  ;;  %v11084_v7 = vld [vmem:[#allocation7 + $0xd4] sm:$0xf0] }
 0x335   : > { %v2975_v55 = vadd.f32 %v2974_v34, %v12964_v54  ;;  %v9894_v34 = vor.u32 %v11184_v18, %v9893_v2  ;;  %v9494_v57 = vor.u32 %v11084_v7, %v9493_v5  ;;  %v9477_v2 = vld [vmem:[#allocation7 + $0xa8] sm:$0xf]  ;;  %v11080_v18 = vld [vmem:[#allocation7 + $0xb4] sm:$0xf0] }
 0x336   : > { %v13010_v38 = vadd.f32 %v3118_v8, %v3070_v31  ;;  %3169 = vmatmul.bf16.gmra.mxu0 %v12516_v40  ;;  %v9637_v8 = vld [vmem:[#allocation7 + $0x1e8] sm:$0xf]  ;;  %v9478_v35 = vor.u32 %v11080_v18, %v9477_v2  ;;  %v11116_v5 = vld [vmem:[#allocation7 + $0x1d4] sm:$0xf0] }
 0x337   : > { %v3023_v56 = vpop.f32.mrf.mxu1  ;;  %3484 = vmatpush.bf16.msra.mxu3 %v9894_v34  ;;  %v9638_v22 = vor.u32 %v11120_v43, %v9637_v8  ;;  %3338 = vmatpush.bf16.msra.mxu0 %v9494_v57  ;;  %v9861_v34 = vld [vmem:[#allocation7 + $0x3a8] sm:$0xf]  ;;  %v11176_v8 = vld [vmem:[#allocation7 + $0x3b4] sm:$0xf0] }
 0x338   : > { %3267 = vmatmul.bf16.gmra.mxu2 %v12520_v44  ;;  %v3024_v51 = vadd.f32 %v3023_v56, %v2975_v55  ;;  %3316 = vmatmul.bf16.gmra.mxu3 %v12522_v45  ;;  %v9461_v43 = vld [vmem:[#allocation7 + $0x88] sm:$0xf]  ;;  %v11076_v57 = vld [vmem:[#allocation7 + $0x94] sm:$0xf0] }
 0x339   : > { %3386 = vmatpush.bf16.msra.mxu1 %v9638_v22  ;;  %v9462_v22 = vor.u32 %v11076_v57, %v9461_v43  ;;  %v9845_v18 = vld [vmem:[#allocation7 + $0x388] sm:$0xf] }
 0x33a   : > { %3218 = vmatmul.bf16.gmra.mxu1 %v12524_v49  ;;  %v9653_v43 = vld [vmem:[#allocation7 + $0x208] sm:$0xf] }
 0x33b   : > { %v3072_v31 = vpop.f32.mrf.mxu2  ;;  %v3121_v36 = vpop.f32.mrf.mxu3  ;;  %3485 = vmatpush.bf16.msra.mxu3 %v9878_v6  ;;  %3339 = vmatpush.bf16.msra.mxu0 %v9478_v35  ;;  %v9445_v35 = vld [vmem:[#allocation7 + $0x68] sm:$0xf] }
 0x33c   : > { %v3073_v55 = vadd.f32 %v3072_v31, %v3024_v51  ;;  %v2976_v56 = vpop.f32.mrf.mxu0  ;;  %v9622_v51 = vor.u32 %v11116_v5, %v9621_v23  ;;  %v9862_v31 = vor.u32 %v11176_v8, %v9861_v34  ;;  %v11072_v5 = vld [vmem:[#allocation7 + $0x74] sm:$0xf0] }
 0x33d   : > { %v2977_v53 = vadd.f32 %v2976_v56, %v12964_v54  ;;  %v9446_v8 = vor.u32 %v11072_v5, %v9445_v35  ;;  %v11104_v35 = vld [vmem:[#allocation7 + $0x174] sm:$0xf0] }
 0x33e   : > { %v13017_v37 = vadd.f32 %v3121_v36, %v3073_v55  ;;  %3387 = vmatpush.bf16.msra.mxu1 %v9622_v51  ;;  %v11112_v55 = vld [vmem:[#allocation7 + $0x1b4] sm:$0xf0]  ;;  %v9589_v51 = vld [vmem:[#allocation7 + $0x188] sm:$0xf] }
 0x33f   : > { %v3025_v42 = vpop.f32.mrf.mxu1  ;;  %3486 = vmatpush.bf16.msra.mxu3 %v9862_v31  ;;  %v9606_v2 = vor.u32 %v11112_v55, %v9605_v61  ;;  %3340 = vmatpush.bf16.msra.mxu0 %v9462_v22  ;;  %v9829_v61 = vld [vmem:[#allocation7 + $0x368] sm:$0xf] }
 0x340   : > { %14960 = vst [vmem:[#allocation67_spill] sm:$0xff] %v13017_v37  ;;  %v3026_v7 = vadd.f32 %v3025_v42, %v2977_v53  ;;  %v11172_v42 = vld [vmem:[#allocation7 + $0x394] sm:$0xf0]  ;;  %v9429_v55 = vld [vmem:[#allocation7 + $0x48] sm:$0xf] }
 0x341   : > { %v9846_v53 = vor.u32 %v11172_v42, %v9845_v18 }
 0x342   : > { %3388 = vmatpush.bf16.msra.mxu1 %v9606_v2  ;;  %v9573_v2 = vld [vmem:[#allocation7 + $0x168] sm:$0xf] }
 0x343   : > { %v3074_v36 = vpop.f32.mrf.mxu2  ;;  %v3123_v33 = vpop.f32.mrf.mxu3  ;;  %3487 = vmatpush.bf16.msra.mxu3 %v9846_v53  ;;  %3341 = vmatpush.bf16.msra.mxu0 %v9446_v8  ;;  %v11164_v53 = vld [vmem:[#allocation7 + $0x354] sm:$0xf0] }
 0x344   : > { %v3075_v56 = vadd.f32 %v3074_v36, %v3026_v7  ;;  %v2979_v37 = vpop.f32.mrf.mxu0  ;;  %v11108_v7 = vld [vmem:[#allocation7 + $0x194] sm:$0xf0] }
 0x345   : > { %v2980_v23 = vadd.f32 %v2979_v37, %v12964_v54  ;;  %v11124_v37 = vld [vmem:[#allocation7 + $0x214] sm:$0xf0]  ;;  %v9590_v57 = vor.u32 %v11108_v7, %v9589_v51  ;;  %v9574_v51 = vor.u32 %v11104_v35, %v9573_v2  ;;  %v9813_v7 = vld [vmem:[#allocation7 + $0x348] sm:$0xf] }
 0x346   : > { %v13020_v6 = vadd.f32 %v3123_v33, %v3075_v56  ;;  %3174 = vmatmul.bf16.gmra.mxu0 %v12536_v39  ;;  %v9654_v36 = vor.u32 %v11124_v37, %v9653_v43  ;;  %v11168_v33 = vld [vmem:[#allocation7 + $0x374] sm:$0xf0]  ;;  %v9814_v43 = vor.u32 %v11164_v53, %v9813_v7  ;;  %v9397_v35 = vld [vmem:[#allocation7 + $0x8] sm:$0xf] }
 0x347   : > { %v3028_v34 = vpop.f32.mrf.mxu1  ;;  %v9830_v22 = vor.u32 %v11168_v33, %v9829_v61  ;;  %v11068_v56 = vld [vmem:[#allocation7 + $0x54] sm:$0xf0]  ;;  %3389 = vmatpush.bf16.msra.mxu1 %v9590_v57  ;;  %v9413_v61 = vld [vmem:[#allocation7 + $0x28] sm:$0xf] }
 0x348   : > { %3272 = vmatmul.bf16.gmra.mxu2 %v12540_v50  ;;  %v3029_v31 = vadd.f32 %v3028_v34, %v2980_v23  ;;  %3321 = vmatmul.bf16.gmra.mxu3 %v14947_v17  ;;  %v9430_v23 = vor.u32 %v11068_v56, %v9429_v55  ;;  %v11064_v33 = vld [vmem:[#allocation7 + $0x34] sm:$0xf0]  ;;  %v9797_v56 = vld [vmem:[#allocation7 + $0x328] sm:$0xf] }
 0x349   : > { %3442 = vmatpush.bf16.msra.mxu2 %v9654_v36  ;;  %3488 = vmatpush.bf16.msra.mxu3 %v9830_v22  ;;  %v9414_v57 = vor.u32 %v11064_v33, %v9413_v61  ;;  %v11100_v36 = vld [vmem:[#allocation7 + $0x154] sm:$0xf0]  ;;  %v9781_v61 = vld [vmem:[#allocation7 + $0x308] sm:$0xf] }
 0x34a   : > { %3223 = vmatmul.bf16.gmra.mxu1 %v14948_v19  ;;  %3342 = vmatpush.bf16.msra.mxu0 %v9430_v23  ;;  %v9557_v19 = vld [vmem:[#allocation7 + $0x148] sm:$0xf]  ;;  %v11160_v2 = vld [vmem:[#allocation7 + $0x334] sm:$0xf0] }
 0x34b   : > { %v3077_v18 = vpop.f32.mrf.mxu2  ;;  %v3126_v42 = vpop.f32.mrf.mxu3  ;;  %3390 = vmatpush.bf16.msra.mxu1 %v9574_v51  ;;  %v11060_v22 = vld [vmem:[#allocation7 + $0x14] sm:$0xf0]  ;;  %v9541_v23 = vld [vmem:[#allocation7 + $0x128] sm:$0xf] }
 0x34c   : > { %v3078_v5 = vadd.f32 %v3077_v18, %v3029_v31  ;;  %v2981_v34 = vpop.f32.mrf.mxu0  ;;  %v9558_v31 = vor.u32 %v11100_v36, %v9557_v19  ;;  %v9798_v18 = vor.u32 %v11160_v2, %v9797_v56  ;;  %v11096_v7 = vld [vmem:[#allocation7 + $0x134] sm:$0xf0]  ;;  %v11150_v56 = vld [vmem:[#allocation7 + $0x2ec] sm:$0xf]  ;;  %v9767_v2 = vld [vmem:[#allocation7 + $0x2f8] sm:$0xf0] }
 0x34d   : > { %v2982_v8 = vadd.f32 %v2981_v34, %v12964_v54  ;;  %3489 = vmatpush.bf16.msra.mxu3 %v9814_v43  ;;  %v9542_v51 = vor.u32 %v11096_v7, %v9541_v23  ;;  %v11156_v33 = vld [vmem:[#allocation7 + $0x314] sm:$0xf0]  ;;  %v9525_v43 = vld [vmem:[#allocation7 + $0x108] sm:$0xf] }
 0x34e   : > { %v13027_v37 = vadd.f32 %v3126_v42, %v3078_v5  ;;  %3343 = vmatpush.bf16.msra.mxu0 %v9414_v57  ;;  %v9398_v5 = vor.u32 %v11060_v22, %v9397_v35  ;;  %v9782_v19 = vor.u32 %v11156_v33, %v9781_v61  ;;  %v11092_v57 = vld [vmem:[#allocation7 + $0x114] sm:$0xf0] }
 0x34f   : > { %v3030_v17 = vpop.f32.mrf.mxu1  ;;  %3391 = vmatpush.bf16.msra.mxu1 %v9558_v31  ;;  %v9526_v31 = vor.u32 %v11092_v57, %v9525_v43 }
 0x350   : > { %14961 = vst [vmem:[#allocation68_spill] sm:$0xff] %v13027_v37  ;;  %v3031_v55 = vadd.f32 %v3030_v17, %v2982_v8 }
 0x351   : > { %3490 = vmatpush.bf16.msra.mxu3 %v9798_v18 }
 0x352   : > { %3344 = vmatpush.bf16.msra.mxu0 %v9398_v5 }
 0x353   : > { %v3079_v34 = vpop.f32.mrf.mxu2  ;;  %v3128_v42 = vpop.f32.mrf.mxu3  ;;  %3392 = vmatpush.bf16.msra.mxu1 %v9542_v51 }
 0x354   : > { %v3080_v53 = vadd.f32 %v3079_v34, %v3031_v55  ;;  %v2984_v37 = vpop.f32.mrf.mxu0 }
 0x355   : > { %v2985_v17 = vadd.f32 %v2984_v37, %v12964_v54  ;;  %3491 = vmatpush.bf16.msra.mxu3 %v9782_v19  ;;  %v9770_v37 = vor.u32 %v11150_v56, %v9767_v2 }
 0x356   : > { %v13030_v8 = vadd.f32 %v3128_v42, %v3080_v53  ;;  %3179 = vmatmul.bf16.gmra.mxu0 %v12556_v52 }
 0x357   : > { %v3033_v36 = vpop.f32.mrf.mxu1  ;;  %3631 = vmatpush.bf16.msrb.mxu2 %v9770_v37  ;;  %3393 = vmatpush.bf16.msra.mxu1 %v9526_v31  ;;  %v9751_v31 = vld [vmem:[#allocation7 + $0x2d8] sm:$0xf0] }
 0x358   : > { %3277 = vmatmul.bf16.gmra.mxu2 %v12560_v58  ;;  %v3034_v55 = vadd.f32 %v3033_v36, %v2985_v17  ;;  %3326 = vmatmul.bf16.gmra.mxu3 %v12562_v60  ;;  %v11146_v36 = vld [vmem:[#allocation7 + $0x2cc] sm:$0xf] }
 0x359   : > { %v9754_v2 = vor.u32 %v11146_v36, %v9751_v31 }
 0x35a   : > { %3228 = vmatmul.bf16.gmra.mxu1 %v12564_v4 }
 0x35b   : > { %v3082_v18 = vpop.f32.mrf.mxu2  ;;  %v3131_v35 = vpop.f32.mrf.mxu3  ;;  %3632 = vmatpush.bf16.msrb.mxu2 %v9754_v2 }
 0x35c   : > { %v3083_v22 = vadd.f32 %v3082_v18, %v3034_v55  ;;  %v2986_v23 = vpop.f32.mrf.mxu0 }
 0x35d   : > { %v2987_v34 = vadd.f32 %v2986_v23, %v12964_v54 }
 0x35e   : > { %v13037_v42 = vadd.f32 %v3131_v35, %v3083_v22 }
 0x35f   : > { %v3035_v5 = vpop.f32.mrf.mxu1 }
 0x360   : > { %v3036_v7 = vadd.f32 %v3035_v5, %v2987_v34  ;;  %v13050_v5 = vperm.slane %v12960_v12, 1  ;;  %v11142_v12 = vld [vmem:[#allocation7 + $0x2ac] sm:$0xf] }
 0x363   : > { %v3084_v53 = vpop.f32.mrf.mxu2  ;;  %v3133_v51 = vpop.f32.mrf.mxu3 }
 0x364   : > { %v3085_v61 = vadd.f32 %v3084_v53, %v3036_v7  ;;  %v2989_v33 = vpop.f32.mrf.mxu0 }
 0x365   : > { %v2990_v17 = vadd.f32 %v2989_v33, %v12964_v54 }
 0x366   : > { %v13040_v19 = vadd.f32 %v3133_v51, %v3085_v61  ;;  %3184 = vmatmul.bf16.gmra.mxu0 %v12576_v21 }
 0x367   : > { %v3038_v43 = vpop.f32.mrf.mxu1 }
 0x368   : > { %3282 = vmatmul.bf16.gmra.mxu2 %v12580_v24  ;;  %v3039_v57 = vadd.f32 %v3038_v43, %v2990_v17  ;;  %3331 = vmatmul.bf16.gmra.mxu3 %v12582_v26 }
 0x36a   : > { %3233 = vmatmul.bf16.gmra.mxu1 %v12584_v27 }
 0x36b   : > { %v3087_v55 = vpop.f32.mrf.mxu2  ;;  %v3136_v56 = vpop.f32.mrf.mxu3 }
 0x36c   : > { %v3088_v37 = vadd.f32 %v3087_v55, %v3039_v57  ;;  %v2991_v18 = vpop.f32.mrf.mxu0  ;;  %v9735_v57 = vld [vmem:[#allocation7 + $0x2b8] sm:$0xf0] }
 0x36d   : > { %v2992_v35 = vadd.f32 %v2991_v18, %v12964_v54  ;;  %v9738_v55 = vor.u32 %v11142_v12, %v9735_v57 }
 0x36e   : > { %v13047_v22 = vadd.f32 %v3136_v56, %v3088_v37 }
 0x36f   : > { %v3040_v23 = vpop.f32.mrf.mxu1  ;;  %3633 = vmatpush.bf16.msrb.mxu2 %v9738_v55 }
 0x370   : > { %v3041_v34 = vadd.f32 %v3040_v23, %v2992_v35 }
 0x373   : > { %v3089_v7 = vpop.f32.mrf.mxu2  ;;  %v3138_v53 = vpop.f32.mrf.mxu3 }
 0x374   : > { %v3090_v51 = vadd.f32 %v3089_v7, %v3041_v34  ;;  %v3150_v61 = vpop.f32.mrf.mxu0 }
 0x375   : > { %v3151_v33 = vadd.f32 %v3150_v61, %v13050_v5 }
 0x376   : > { %v13053_v17 = vadd.f32 %v3138_v53, %v3090_v51  ;;  %3345 = vmatmul.bf16.vlgmr.msra.gmra.mxu0 %v12437_v41 }
 0x377   : > { %v3199_v43 = vpop.f32.mrf.mxu1 }
 0x378   : > { %3443 = vmatmul.bf16.vlgmr.msra.gmra.mxu2 %v12440_v46  ;;  %v3200_v54 = vadd.f32 %v3199_v43, %v3151_v33  ;;  %3492 = vmatmul.bf16.vlgmr.msra.gmra.mxu3 %v12442_v47 }
 0x37a   : > { %3394 = vmatmul.bf16.vlgmr.msra.gmra.mxu1 %v12444_v48 }
 0x37b   : > { %v3248_v36 = vpop.f32.mrf.mxu2  ;;  %v3297_v31 = vpop.f32.mrf.mxu3 }
 0x37c   : > { %v3249_v56 = vadd.f32 %v3248_v36, %v3200_v54  ;;  %v3152_v2 = vpop.f32.mrf.mxu0 }
 0x37d   : > { %v3153_v37 = vadd.f32 %v3152_v2, %v13050_v5  ;;  %v9719_v2 = vld [vmem:[#allocation7 + $0x298] sm:$0xf0] }
 0x37e   : > { %v3298_v18 = vadd.f32 %v3297_v31, %v3249_v56  ;;  %v11138_v56 = vld [vmem:[#allocation7 + $0x28c] sm:$0xf] }
 0x37f   : > { %v3201_v35 = vpop.f32.mrf.mxu1 }
 0x380   : > { %v3729_v23 = vpack.c.bf16 %v3298_v18, %v12977_v1  ;;  %v3202_v34 = vadd.f32 %v3201_v35, %v3153_v37  ;;  %v9722_v35 = vor.u32 %v11138_v56, %v9719_v2 }
 0x382   : > { %v5419_v36 = vunpack.c.l.b16 %v3729_v23  ;;  %v5821_v1 = vunpack.c.h.b16 %v3729_v23  ;;  %3634 = vmatpush.bf16.msrb.mxu2 %v9722_v35  ;;  %v9703_v35 = vld [vmem:[#allocation7 + $0x278] sm:$0xf0] }
 0x383   : > { %v3250_v7 = vpop.f32.mrf.mxu2  ;;  %v3299_v53 = vpop.f32.mrf.mxu3 }
 0x384   : > { %v3251_v51 = vadd.f32 %v3250_v7, %v3202_v34  ;;  %v3155_v61 = vpop.f32.mrf.mxu0 }
 0x385   : > { %v3156_v33 = vadd.f32 %v3155_v61, %v13050_v5 }
 0x386   : > { %v3300_v43 = vadd.f32 %v3299_v53, %v3251_v51  ;;  %3350 = vmatmul.bf16.gmra.mxu0 %v12456_v59 }
 0x387   : > { %v3204_v12 = vpop.f32.mrf.mxu1 }
 0x388   : > { %v3731_v54 = vpack.c.bf16 %v3300_v43, %v12980_v9  ;;  %3448 = vmatmul.bf16.gmra.mxu2 %v12460_v62  ;;  %v3205_v57 = vadd.f32 %v3204_v12, %v3156_v33  ;;  %3497 = vmatmul.bf16.gmra.mxu3 %v14958_v16 }
 0x38a   : > { %v5420_v31 = vunpack.c.l.b16 %v3731_v54  ;;  %v5822_v55 = vunpack.c.h.b16 %v3731_v54  ;;  %3399 = vmatmul.bf16.gmra.mxu1 %v14959_v20 }
 0x38b   : > { %v3253_v37 = vpop.f32.mrf.mxu2  ;;  %v3302_v18 = vpop.f32.mrf.mxu3 }
 0x38c   : > { %v3254_v34 = vadd.f32 %v3253_v37, %v3205_v57  ;;  %v3157_v7 = vpop.f32.mrf.mxu0  ;;  %v13067_v53 = vpack.c.b16 %v5420_v31, %v5419_v36  ;;  %v13069_v9 = vpack.c.b16 %v5822_v55, %v5821_v1 }
 0x38d   : > { %v3158_v51 = vadd.f32 %v3157_v7, %v13050_v5 }
 0x38e   : > { %14962 = vst [vmem:[#allocation69_spill] sm:$0xff] %v13067_v53  ;;  %v3303_v61 = vadd.f32 %v3302_v18, %v3254_v34  ;;  %v11134_v18 = vld [vmem:[#allocation7 + $0x26c] sm:$0xf] }
 0x38f   : > { %14963 = vst [vmem:[#allocation70_spill] sm:$0xff] %v13069_v9  ;;  %v3206_v23 = vpop.f32.mrf.mxu1  ;;  %v9706_v34 = vor.u32 %v11134_v18, %v9703_v35 }
 0x390   : > { %v3733_v33 = vpack.c.bf16 %v3303_v61, %v12987_v0  ;;  %v3207_v43 = vadd.f32 %v3206_v23, %v3158_v51 }
 0x391   : > { %3635 = vmatpush.bf16.msrb.mxu2 %v9706_v34  ;;  %v9687_v34 = vld [vmem:[#allocation7 + $0x258] sm:$0xf0] }
 0x392   : > { %v5421_v55 = vunpack.c.l.b16 %v3733_v33  ;;  %v5823_v0 = vunpack.c.h.b16 %v3733_v33 }
 0x393   : > { %v3255_v12 = vpop.f32.mrf.mxu2  ;;  %v3304_v54 = vpop.f32.mrf.mxu3 }
 0x394   : > { %v3256_v20 = vadd.f32 %v3255_v12, %v3207_v43  ;;  %v3160_v16 = vpop.f32.mrf.mxu0 }
 0x395   : > { %v3161_v56 = vadd.f32 %v3160_v16, %v13050_v5 }
 0x396   : > { %v3305_v57 = vadd.f32 %v3304_v54, %v3256_v20  ;;  %3355 = vmatmul.bf16.gmra.mxu0 %v12476_v10 }
 0x397   : > { %v3209_v36 = vpop.f32.mrf.mxu1 }
 0x398   : > { %v3735_v1 = vpack.c.bf16 %v3305_v57, %v12990_v3  ;;  %3453 = vmatmul.bf16.gmra.mxu2 %v12480_v13  ;;  %v3210_v31 = vadd.f32 %v3209_v36, %v3161_v56  ;;  %3502 = vmatmul.bf16.gmra.mxu3 %v12482_v14 }
 0x39a   : > { %v5422_v2 = vunpack.c.l.b16 %v3735_v1  ;;  %v5824_v37 = vunpack.c.h.b16 %v3735_v1  ;;  %3404 = vmatmul.bf16.gmra.mxu1 %v12484_v15 }
 0x39b   : > { %v3258_v16 = vpop.f32.mrf.mxu2  ;;  %v3307_v20 = vpop.f32.mrf.mxu3 }
 0x39c   : > { %v3259_v7 = vadd.f32 %v3258_v16, %v3210_v31  ;;  %v3162_v51 = vpop.f32.mrf.mxu0  ;;  %v13079_v61 = vpack.c.b16 %v5422_v2, %v5421_v55  ;;  %v13081_v3 = vpack.c.b16 %v5824_v37, %v5823_v0 }
 0x39d   : > { %v3163_v23 = vadd.f32 %v3162_v51, %v13050_v5 }
 0x39e   : > { %14964 = vst [vmem:[#allocation71_spill] sm:$0xff] %v13079_v61  ;;  %v3308_v43 = vadd.f32 %v3307_v20, %v3259_v7  ;;  %v11130_v20 = vld [vmem:[#allocation7 + $0x24c] sm:$0xf]  ;;  %v9815_v61 = vld [vmem:[#allocation7 + $0x358] sm:$0xf0] }
 0x39f   : > { %14965 = vst [vmem:[#allocation72_spill] sm:$0xff] %v13081_v3  ;;  %v3211_v33 = vpop.f32.mrf.mxu1 }
 0x3a0   : > { %v3737_v12 = vpack.c.bf16 %v3308_v43, %v12997_v32  ;;  %v3212_v54 = vadd.f32 %v3211_v33, %v3163_v23  ;;  %v9690_v23 = vor.u32 %v11130_v20, %v9687_v34  ;;  %v11086_v34 = vld [vmem:[#allocation7 + $0xec] sm:$0xf] }
 0x3a2   : > { %v5423_v37 = vunpack.c.l.b16 %v3737_v12  ;;  %v5825_v32 = vunpack.c.h.b16 %v3737_v12  ;;  %3636 = vmatpush.bf16.msrb.mxu2 %v9690_v23 }
 0x3a3   : > { %v3260_v56 = vpop.f32.mrf.mxu2  ;;  %v3309_v57 = vpop.f32.mrf.mxu3 }
 0x3a4   : > { %v3261_v36 = vadd.f32 %v3260_v56, %v3212_v54  ;;  %v3165_v1 = vpop.f32.mrf.mxu0 }
 0x3a5   : > { %v3166_v18 = vadd.f32 %v3165_v1, %v13050_v5 }
 0x3a6   : > { %v3310_v31 = vadd.f32 %v3309_v57, %v3261_v36  ;;  %3360 = vmatmul.bf16.gmra.mxu0 %v12496_v25 }
 0x3a7   : > { %v3214_v55 = vpop.f32.mrf.mxu1 }
 0x3a8   : > { %v3739_v0 = vpack.c.bf16 %v3310_v31, %v13000_v11  ;;  %3458 = vmatmul.bf16.gmra.mxu2 %v12500_v28  ;;  %v3215_v2 = vadd.f32 %v3214_v55, %v3166_v18  ;;  %3507 = vmatmul.bf16.gmra.mxu3 %v12502_v29 }
 0x3aa   : > { %v5424_v35 = vunpack.c.l.b16 %v3739_v0  ;;  %v5826_v16 = vunpack.c.h.b16 %v3739_v0  ;;  %3409 = vmatmul.bf16.gmra.mxu1 %v12504_v30 }
 0x3ab   : > { %v3263_v7 = vpop.f32.mrf.mxu2  ;;  %v3312_v51 = vpop.f32.mrf.mxu3 }
 0x3ac   : > { %v3264_v43 = vadd.f32 %v3263_v7, %v3215_v2  ;;  %v3167_v33 = vpop.f32.mrf.mxu0  ;;  %v13091_v54 = vpack.c.b16 %v5424_v35, %v5423_v37  ;;  %v13093_v11 = vpack.c.b16 %v5826_v16, %v5825_v32  ;;  %v9511_v37 = vld [vmem:[#allocation7 + $0xf8] sm:$0xf0] }
 0x3ad   : > { %v3168_v56 = vadd.f32 %v3167_v33, %v13050_v5  ;;  %v9514_v35 = vor.u32 %v11086_v34, %v9511_v37 }
 0x3ae   : > { %14966 = vst [vmem:[#allocation73_spill] sm:$0xff] %v13091_v54  ;;  %v3313_v57 = vadd.f32 %v3312_v51, %v3264_v43  ;;  %v9895_v51 = vld [vmem:[#allocation7 + $0x3f8] sm:$0xf0] }
 0x3af   : > { %14967 = vst [vmem:[#allocation74_spill] sm:$0xff] %v13093_v11  ;;  %v3216_v12 = vpop.f32.mrf.mxu1  ;;  %3533 = vmatpush.bf16.msrb.mxu0 %v9514_v35 }
 0x3b0   : > { %v3741_v36 = vpack.c.bf16 %v3313_v57, %v13007_v63  ;;  %v3217_v1 = vadd.f32 %v3216_v12, %v3168_v56  ;;  %v11182_v63 = vld [vmem:[#allocation7 + $0x3ec] sm:$0xf]  ;;  %v9671_v12 = vld [vmem:[#allocation7 + $0x238] sm:$0xf0] }
 0x3b1   : > { %v9898_v23 = vor.u32 %v11182_v63, %v9895_v51  ;;  %v11126_v57 = vld [vmem:[#allocation7 + $0x22c] sm:$0xf]  ;;  %v9879_v51 = vld [vmem:[#allocation7 + $0x3d8] sm:$0xf0] }
 0x3b2   : > { %v5425_v43 = vunpack.c.l.b16 %v3741_v36  ;;  %v11178_v63 = vld [vmem:[#allocation7 + $0x3cc] sm:$0xf] }
 0x3b3   : > { %v3265_v18 = vpop.f32.mrf.mxu2  ;;  %v3314_v31 = vpop.f32.mrf.mxu3  ;;  %3680 = vmatpush.bf16.msrb.mxu3 %v9898_v23  ;;  %v9882_v53 = vor.u32 %v11178_v63, %v9879_v51  ;;  %v11078_v23 = vld [vmem:[#allocation7 + $0xac] sm:$0xf] }
 0x3b4   : > { %v3266_v55 = vadd.f32 %v3265_v18, %v3217_v1  ;;  %v3170_v0 = vpop.f32.mrf.mxu0  ;;  %v11082_v1 = vld [vmem:[#allocation7 + $0xcc] sm:$0xf]  ;;  %v5827_v18 = vunpack.c.h.b16 %v3741_v36 }
 0x3b5   : > { %v3171_v20 = vadd.f32 %v3170_v0, %v13050_v5  ;;  %v9495_v0 = vld [vmem:[#allocation7 + $0xd8] sm:$0xf0] }
 0x3b6   : > { %v3315_v2 = vadd.f32 %v3314_v31, %v3266_v55  ;;  %3365 = vmatmul.bf16.gmra.mxu0 %v12516_v40  ;;  %v9674_v55 = vor.u32 %v11126_v57, %v9671_v12  ;;  %v9479_v57 = vld [vmem:[#allocation7 + $0xb8] sm:$0xf0]  ;;  %v11114_v12 = vld [vmem:[#allocation7 + $0x1cc] sm:$0xf] }
 0x3b7   : > { %v3219_v32 = vpop.f32.mrf.mxu1  ;;  %3681 = vmatpush.bf16.msrb.mxu3 %v9882_v53  ;;  %v9607_v53 = vld [vmem:[#allocation7 + $0x1b8] sm:$0xf0] }
 0x3b8   : > { %v3743_v16 = vpack.c.bf16 %v3315_v2, %v13010_v38  ;;  %3463 = vmatmul.bf16.gmra.mxu2 %v12520_v44  ;;  %v3220_v7 = vadd.f32 %v3219_v32, %v3171_v20  ;;  %3512 = vmatmul.bf16.gmra.mxu3 %v12522_v45  ;;  %v11118_v20 = vld [vmem:[#allocation7 + $0x1ec] sm:$0xf]  ;;  %v9639_v2 = vld [vmem:[#allocation7 + $0x1f8] sm:$0xf0]  ;;  %v9498_v32 = vor.u32 %v11082_v1, %v9495_v0 }
 0x3b9   : > { %v9642_v35 = vor.u32 %v11118_v20, %v9639_v2  ;;  %3637 = vmatpush.bf16.msrb.mxu2 %v9674_v55  ;;  %v9482_v1 = vor.u32 %v11078_v23, %v9479_v57  ;;  %v14970_v0 = vld [vmem:[#allocation67_spill] sm:$0xff]  ;;  %v9863_v55 = vld [vmem:[#allocation7 + $0x3b8] sm:$0xf0] }
 0x3ba   : > { %v5426_v33 = vunpack.c.l.b16 %v3743_v16  ;;  %v5828_v56 = vunpack.c.h.b16 %v3743_v16  ;;  %3414 = vmatmul.bf16.gmra.mxu1 %v12524_v49  ;;  %3534 = vmatpush.bf16.msrb.mxu0 %v9498_v32  ;;  %v11174_v2 = vld [vmem:[#allocation7 + $0x3ac] sm:$0xf]  ;;  %v9847_v57 = vld [vmem:[#allocation7 + $0x398] sm:$0xf0] }
 0x3bb   : > { %v3268_v31 = vpop.f32.mrf.mxu2  ;;  %v3317_v38 = vpop.f32.mrf.mxu3  ;;  %3582 = vmatpush.bf16.msrb.mxu1 %v9642_v35 }
 0x3bc   : > { %v3269_v34 = vadd.f32 %v3268_v31, %v3220_v7  ;;  %v3172_v37 = vpop.f32.mrf.mxu0  ;;  %v13103_v16 = vpack.c.b16 %v5426_v33, %v5425_v43  ;;  %v13106_v36 = vpack.c.b16 %v5828_v56, %v5827_v18  ;;  %v9623_v31 = vld [vmem:[#allocation7 + $0x1d8] sm:$0xf0]  ;;  %v11074_v56 = vld [vmem:[#allocation7 + $0x8c] sm:$0xf] }
 0x3bd   : > { %v3173_v9 = vadd.f32 %v3172_v37, %v13050_v5  ;;  %v9626_v33 = vor.u32 %v11114_v12, %v9623_v31  ;;  %v9866_v37 = vor.u32 %v11174_v2, %v9863_v55  ;;  %v9463_v18 = vld [vmem:[#allocation7 + $0x98] sm:$0xf0] }
 0x3be   : > { %14968 = vst [vmem:[#allocation75_spill] sm:$0xff] %v13103_v16  ;;  %v3318_v3 = vadd.f32 %v3317_v38, %v3269_v34  ;;  %3535 = vmatpush.bf16.msrb.mxu0 %v9482_v1  ;;  %v11110_v38 = vld [vmem:[#allocation7 + $0x1ac] sm:$0xf]  ;;  %v9466_v35 = vor.u32 %v11074_v56, %v9463_v18  ;;  %v9447_v31 = vld [vmem:[#allocation7 + $0x78] sm:$0xf0] }
 0x3bf   : > { %14969 = vst [vmem:[#allocation76_spill] sm:$0xff] %v13106_v36  ;;  %v3221_v7 = vpop.f32.mrf.mxu1  ;;  %3583 = vmatpush.bf16.msrb.mxu1 %v9626_v33  ;;  %3682 = vmatpush.bf16.msrb.mxu3 %v9866_v37  ;;  %v9610_v23 = vor.u32 %v11110_v38, %v9607_v53  ;;  %v11070_v1 = vld [vmem:[#allocation7 + $0x6c] sm:$0xf]  ;;  %v9591_v55 = vld [vmem:[#allocation7 + $0x198] sm:$0xf0] }
 0x3c0   : > { %v13109_v20 = vpack.c.bf16 %v3318_v3, %v14970_v0  ;;  %v3222_v43 = vadd.f32 %v3221_v7, %v3173_v9  ;;  %v11170_v3 = vld [vmem:[#allocation7 + $0x38c] sm:$0xf]  ;;  %v9450_v2 = vor.u32 %v11070_v1, %v9447_v31  ;;  %v14971_v56 = vld [vmem:[#allocation33_spill] sm:$0xff] }
 0x3c1   : > { %v9850_v12 = vor.u32 %v11170_v3, %v9847_v57  ;;  %v11106_v0 = vld [vmem:[#allocation7 + $0x18c] sm:$0xf]  ;;  %v9655_v3 = vld [vmem:[#allocation7 + $0x218] sm:$0xf0] }
 0x3c2   : > { %3536 = vmatpush.bf16.msrb.mxu0 %v9466_v35  ;;  %v9594_v18 = vor.u32 %v11106_v0, %v9591_v55  ;;  %v11166_v38 = vld [vmem:[#allocation7 + $0x36c] sm:$0xf]  ;;  %v5427_v35 = vunpack.c.l.b16 %v13109_v20  ;;  %v9431_v1 = vld [vmem:[#allocation7 + $0x58] sm:$0xf0] }
 0x3c3   : > { %v3270_v34 = vpop.f32.mrf.mxu2  ;;  %v3319_v32 = vpop.f32.mrf.mxu3  ;;  %3584 = vmatpush.bf16.msrb.mxu1 %v9610_v23  ;;  %3683 = vmatpush.bf16.msrb.mxu3 %v9850_v12  ;;  %v11122_v23 = vld [vmem:[#allocation7 + $0x20c] sm:$0xf]  ;;  %v9575_v0 = vld [vmem:[#allocation7 + $0x178] sm:$0xf0] }
 0x3c4   : > { %v3271_v63 = vadd.f32 %v3270_v34, %v3222_v43  ;;  %v3175_v51 = vpop.f32.mrf.mxu0  ;;  %v9831_v34 = vld [vmem:[#allocation7 + $0x378] sm:$0xf0]  ;;  %v11066_v57 = vld [vmem:[#allocation7 + $0x4c] sm:$0xf] }
 0x3c5   : > { %v3176_v9 = vadd.f32 %v3175_v51, %v13050_v5  ;;  %v14972_v51 = vld [vmem:[#allocation34_spill] sm:$0xff]  ;;  %v11102_v31 = vld [vmem:[#allocation7 + $0x16c] sm:$0xf] }
 0x3c6   : > { %v3320_v7 = vadd.f32 %v3319_v32, %v3271_v63  ;;  %3370 = vmatmul.bf16.gmra.mxu0 %v12536_v39  ;;  %v9834_v32 = vor.u32 %v11166_v38, %v9831_v34  ;;  %v9434_v38 = vor.u32 %v11066_v57, %v9431_v1  ;;  %v11162_v34 = vld [vmem:[#allocation7 + $0x34c] sm:$0xf]  ;;  %v9559_v57 = vld [vmem:[#allocation7 + $0x158] sm:$0xf0] }
 0x3c7   : > { %v3224_v33 = vpop.f32.mrf.mxu1  ;;  %3537 = vmatpush.bf16.msrb.mxu0 %v9450_v2  ;;  %3585 = vmatpush.bf16.msrb.mxu1 %v9594_v18  ;;  %v11062_v18 = vld [vmem:[#allocation7 + $0x2c] sm:$0xf] }
 0x3c8   : > { %v3747_v43 = vpack.c.bf16 %v3320_v7, %v13020_v6  ;;  %3468 = vmatmul.bf16.gmra.mxu2 %v12540_v50  ;;  %v3225_v37 = vadd.f32 %v3224_v33, %v3176_v9  ;;  %3517 = vmatmul.bf16.gmra.mxu3 %v14971_v56  ;;  %v5829_v6 = vunpack.c.h.b16 %v13109_v20  ;;  %v9658_v7 = vor.u32 %v11122_v23, %v9655_v3  ;;  %v11098_v3 = vld [vmem:[#allocation7 + $0x14c] sm:$0xf] }
 0x3c9   : > { %3684 = vmatpush.bf16.msrb.mxu3 %v9834_v32  ;;  %v9818_v20 = vor.u32 %v11162_v34, %v9815_v61  ;;  %v9415_v32 = vld [vmem:[#allocation7 + $0x38] sm:$0xf0]  ;;  %v11058_v61 = vld [vmem:[#allocation7 + $0xc] sm:$0xf] }
 0x3ca   : > { %v5428_v53 = vunpack.c.l.b16 %v3747_v43  ;;  %v5830_v63 = vunpack.c.h.b16 %v3747_v43  ;;  %3419 = vmatmul.bf16.gmra.mxu1 %v14972_v51  ;;  %v9578_v43 = vor.u32 %v11102_v31, %v9575_v0  ;;  %3638 = vmatpush.bf16.msrb.mxu2 %v9658_v7  ;;  %v11158_v31 = vld [vmem:[#allocation7 + $0x32c] sm:$0xf]  ;;  %v9799_v0 = vld [vmem:[#allocation7 + $0x338] sm:$0xf0] }
 0x3cb   : > { %v3273_v12 = vpop.f32.mrf.mxu2  ;;  %v3322_v9 = vpop.f32.mrf.mxu3  ;;  %3538 = vmatpush.bf16.msrb.mxu0 %v9434_v38  ;;  %v9802_v7 = vor.u32 %v11158_v31, %v9799_v0  ;;  %v9543_v38 = vld [vmem:[#allocation7 + $0x138] sm:$0xf0] }
 0x3cc   : > { %v3274_v33 = vadd.f32 %v3273_v12, %v3225_v37  ;;  %v3177_v55 = vpop.f32.mrf.mxu0  ;;  %v13119_v11 = vpack.c.b16 %v5428_v53, %v5427_v35  ;;  %v13122_v54 = vpack.c.b16 %v5830_v63, %v5829_v6  ;;  %3586 = vmatpush.bf16.msrb.mxu1 %v9578_v43  ;;  %v9418_v37 = vor.u32 %v11062_v18, %v9415_v32  ;;  %v14975_v12 = vld [vmem:[#allocation68_spill] sm:$0xff]  ;;  %v9399_v63 = vld [vmem:[#allocation7 + $0x18] sm:$0xf0]  ;;  %v11094_v6 = vld [vmem:[#allocation7 + $0x12c] sm:$0xf] }
 0x3cd   : > { %v3178_v2 = vadd.f32 %v3177_v55, %v13050_v5  ;;  %3685 = vmatpush.bf16.msrb.mxu3 %v9818_v20  ;;  %v9562_v53 = vor.u32 %v11098_v3, %v9559_v57  ;;  %v9402_v55 = vor.u32 %v11058_v61, %v9399_v63  ;;  %v9546_v20 = vor.u32 %v11094_v6, %v9543_v38  ;;  %v11154_v18 = vld [vmem:[#allocation7 + $0x30c] sm:$0xf]  ;;  %v10269_v63 = vld [vmem:[#allocation8 + $0x2e0] sm:$0xf]  ;;  %v11279_v6 = vld [vmem:[#allocation8 + $0x2ec] sm:$0xf0] }
 0x3ce   : > { %14973 = vst [vmem:[#allocation67_spill] sm:$0xff] %v13119_v11  ;;  %v3323_v23 = vadd.f32 %v3322_v9, %v3274_v33  ;;  %v11090_v3 = vld [vmem:[#allocation7 + $0x10c] sm:$0xf]  ;;  %v11215_v11 = vld [vmem:[#allocation8 + $0xec] sm:$0xf0] }
 0x3cf   : > { %14974 = vst [vmem:[#allocation77_spill] sm:$0xff] %v13122_v54  ;;  %v3226_v36 = vpop.f32.mrf.mxu1  ;;  %3539 = vmatpush.bf16.msrb.mxu0 %v9418_v37  ;;  %v9527_v37 = vld [vmem:[#allocation7 + $0x118] sm:$0xf0] }
 0x3d0   : > { %v3749_v1 = vpack.c.bf16 %v3323_v23, %v14975_v12  ;;  %v3227_v35 = vadd.f32 %v3226_v36, %v3178_v2  ;;  %3587 = vmatpush.bf16.msrb.mxu1 %v9562_v53  ;;  %v9783_v23 = vld [vmem:[#allocation7 + $0x318] sm:$0xf0]  ;;  %v9530_v12 = vor.u32 %v11090_v3, %v9527_v37 }
 0x3d1   : > { %3686 = vmatpush.bf16.msrb.mxu3 %v9802_v7  ;;  %v9786_v2 = vor.u32 %v11154_v18, %v9783_v23 }
 0x3d2   : > { %v5429_v31 = vunpack.c.l.b16 %v3749_v1  ;;  %v5831_v0 = vunpack.c.h.b16 %v3749_v1 }
 0x3d3   : > { %v3275_v9 = vpop.f32.mrf.mxu2  ;;  %v3324_v33 = vpop.f32.mrf.mxu3  ;;  %3540 = vmatpush.bf16.msrb.mxu0 %v9402_v55  ;;  %v10270_v55 = vor.u32 %v11279_v6, %v10269_v63 }
 0x3d4   : > { %v3276_v43 = vadd.f32 %v3275_v9, %v3227_v35  ;;  %v3180_v34 = vpop.f32.mrf.mxu0  ;;  %3588 = vmatpush.bf16.msrb.mxu1 %v9546_v20 }
 0x3d5   : > { %v3181_v36 = vadd.f32 %v3180_v34, %v13050_v5  ;;  %3687 = vmatpush.bf16.msrb.mxu3 %v9786_v2  ;;  %4637 = vmatpush.bf16.msra.mxu2 %v10270_v55 }
 0x3d6   : > { %v3325_v32 = vadd.f32 %v3324_v33, %v3276_v43  ;;  %3375 = vmatmul.bf16.gmra.mxu0 %v12556_v52 }
 0x3d7   : > { %v3229_v57 = vpop.f32.mrf.mxu1 }
 0x3d8   : > { %v3751_v53 = vpack.c.bf16 %v3325_v32, %v13030_v8  ;;  %3473 = vmatmul.bf16.gmra.mxu2 %v12560_v58  ;;  %v3230_v35 = vadd.f32 %v3229_v57, %v3181_v36  ;;  %3522 = vmatmul.bf16.gmra.mxu3 %v12562_v60 }
 0x3d9   : > { %3589 = vmatpush.bf16.msrb.mxu1 %v9530_v12 }
 0x3da   : > { %v5430_v7 = vunpack.c.l.b16 %v3751_v53  ;;  %v5832_v61 = vunpack.c.h.b16 %v3751_v53  ;;  %3424 = vmatmul.bf16.gmra.mxu1 %v12564_v4 }
 0x3db   : > { %v3278_v9 = vpop.f32.mrf.mxu2  ;;  %v3327_v33 = vpop.f32.mrf.mxu3 }
 0x3dc   : > { %v3279_v38 = vadd.f32 %v3278_v9, %v3230_v35  ;;  %v3182_v8 = vpop.f32.mrf.mxu0  ;;  %v13131_v43 = vpack.c.b16 %v5430_v7, %v5429_v31  ;;  %v13133_v34 = vpack.c.b16 %v5832_v61, %v5831_v0  ;;  %v10253_v0 = vld [vmem:[#allocation8 + $0x2c0] sm:$0xf] }
 0x3dd   : > { %v3183_v20 = vadd.f32 %v3182_v8, %v13050_v5 }
 0x3de   : > { %14976 = vst [vmem:[#allocation68_spill] sm:$0xff] %v13131_v43  ;;  %v3328_v1 = vadd.f32 %v3327_v33, %v3279_v38 }
 0x3df   : > { %14977 = vst [vmem:[#allocation78_spill] sm:$0xff] %v13133_v34  ;;  %v3231_v18 = vpop.f32.mrf.mxu1 }
 0x3e0   : > { %v3753_v23 = vpack.c.bf16 %v3328_v1, %v13037_v42  ;;  %v3232_v36 = vadd.f32 %v3231_v18, %v3183_v20  ;;  %v11275_v42 = vld [vmem:[#allocation8 + $0x2cc] sm:$0xf0] }
 0x3e1   : > { %v10254_v7 = vor.u32 %v11275_v42, %v10253_v0  ;;  %v10237_v42 = vld [vmem:[#allocation8 + $0x2a0] sm:$0xf] }
 0x3e2   : > { %v5431_v61 = vunpack.c.l.b16 %v3753_v23  ;;  %v5833_v63 = vunpack.c.h.b16 %v3753_v23 }
 0x3e3   : > { %v3280_v2 = vpop.f32.mrf.mxu2  ;;  %v3329_v32 = vpop.f32.mrf.mxu3  ;;  %4638 = vmatpush.bf16.msra.mxu2 %v10254_v7  ;;  %v11271_v7 = vld [vmem:[#allocation8 + $0x2ac] sm:$0xf0] }
 0x3e4   : > { %v3281_v3 = vadd.f32 %v3280_v2, %v3232_v36  ;;  %v3185_v37 = vpop.f32.mrf.mxu0 }
 0x3e5   : > { %v3186_v57 = vadd.f32 %v3185_v37, %v13050_v5 }
 0x3e6   : > { %v3330_v12 = vadd.f32 %v3329_v32, %v3281_v3  ;;  %3380 = vmatmul.bf16.gmra.mxu0 %v12576_v21  ;;  %v13149_v32 = vld [vmem:[#allocation13] sm:$0xf] }
 0x3e7   : > { %v3234_v53 = vpop.f32.mrf.mxu1  ;;  %v13152_v3 = vperm.slane %v13149_v32, 2 }
 0x3e8   : > { %v3755_v35 = vpack.c.bf16 %v3330_v12, %v13040_v19  ;;  %3478 = vmatmul.bf16.gmra.mxu2 %v12580_v24  ;;  %v3235_v31 = vadd.f32 %v3234_v53, %v3186_v57  ;;  %3527 = vmatmul.bf16.gmra.mxu3 %v12582_v26 }
 0x3ea   : > { %v5432_v6 = vunpack.c.l.b16 %v3755_v35  ;;  %v5834_v9 = vunpack.c.h.b16 %v3755_v35  ;;  %3429 = vmatmul.bf16.gmra.mxu1 %v12584_v27 }
 0x3eb   : > { %v3283_v33 = vpop.f32.mrf.mxu2  ;;  %v3332_v55 = vpop.f32.mrf.mxu3 }
 0x3ec   : > { %v3284_v38 = vadd.f32 %v3283_v33, %v3235_v31  ;;  %v3187_v8 = vpop.f32.mrf.mxu0  ;;  %v13143_v19 = vpack.c.b16 %v5432_v6, %v5431_v61  ;;  %v13145_v20 = vpack.c.b16 %v5834_v9, %v5833_v63  ;;  %v10238_v61 = vor.u32 %v11271_v7, %v10237_v42  ;;  %v14982_v42 = vld [vmem:[#allocation24_spill] sm:$0xff]  ;;  %v10221_v7 = vld [vmem:[#allocation8 + $0x280] sm:$0xf] }
 0x3ed   : > { %v3188_v1 = vadd.f32 %v3187_v8, %v13050_v5 }
 0x3ee   : > { %14978 = vst [vmem:[#allocation79_spill] sm:$0xff] %v13143_v19  ;;  %v3333_v18 = vadd.f32 %v3332_v55, %v3284_v38  ;;  %4639 = vmatpush.bf16.msra.mxu2 %v10238_v61  ;;  %v11267_v61 = vld [vmem:[#allocation8 + $0x28c] sm:$0xf0] }
 0x3ef   : > { %14979 = vst [vmem:[#allocation80_spill] sm:$0xff] %v13145_v20  ;;  %v3236_v36 = vpop.f32.mrf.mxu1  ;;  %v10381_v20 = vld [vmem:[#allocation8 + $0x3c0] sm:$0xf]  ;;  %v11307_v19 = vld [vmem:[#allocation8 + $0x3cc] sm:$0xf0] }
 0x3f0   : > { %v3757_v2 = vpack.c.bf16 %v3333_v18, %v13047_v22  ;;  %v3237_v23 = vadd.f32 %v3236_v36, %v3188_v1 }
 0x3f2   : > { %v5433_v63 = vunpack.c.l.b16 %v3757_v2  ;;  %v5835_v6 = vunpack.c.h.b16 %v3757_v2 }
 0x3f3   : > { %v3285_v37 = vpop.f32.mrf.mxu2  ;;  %v3334_v57 = vpop.f32.mrf.mxu3 }
 0x3f4   : > { %v3286_v12 = vadd.f32 %v3285_v37, %v3237_v23  ;;  %v3346_v53 = vpop.f32.mrf.mxu0 }
 0x3f5   : > { %v3347_v35 = vadd.f32 %v3346_v53, %v13152_v3 }
 0x3f6   : > { %v3335_v31 = vadd.f32 %v3334_v57, %v3286_v12  ;;  %3541 = vmatmul.bf16.vlgmr.msrb.gmra.mxu0 %v12437_v41 }
 0x3f7   : > { %v3395_v5 = vpop.f32.mrf.mxu1 }
 0x3f8   : > { %v3759_v0 = vpack.c.bf16 %v3335_v31, %v13053_v17  ;;  %3639 = vmatmul.bf16.vlgmr.msrb.gmra.mxu2 %v12440_v46  ;;  %v3396_v22 = vadd.f32 %v3395_v5, %v3347_v35  ;;  %3688 = vmatmul.bf16.vlgmr.msrb.gmra.mxu3 %v12442_v47 }
 0x3fa   : > { %v5434_v9 = vunpack.c.l.b16 %v3759_v0  ;;  %v5836_v33 = vunpack.c.h.b16 %v3759_v0  ;;  %3590 = vmatmul.bf16.vlgmr.msrb.gmra.mxu1 %v12444_v48 }
 0x3fb   : > { %v3444_v55 = vpop.f32.mrf.mxu2  ;;  %v3493_v38 = vpop.f32.mrf.mxu3 }
 0x3fc   : > { %v3445_v8 = vadd.f32 %v3444_v55, %v3396_v22  ;;  %v3348_v1 = vpop.f32.mrf.mxu0  ;;  %v13160_v17 = vpack.c.b16 %v5434_v9, %v5433_v63  ;;  %v13162_v18 = vpack.c.b16 %v5836_v33, %v5835_v6  ;;  %v10222_v63 = vor.u32 %v11267_v61, %v10221_v7  ;;  %v14983_v6 = vld [vmem:[#allocation25_spill] sm:$0xff]  ;;  %v10205_v7 = vld [vmem:[#allocation8 + $0x260] sm:$0xf]  ;;  %v11263_v61 = vld [vmem:[#allocation8 + $0x26c] sm:$0xf0] }
 0x3fd   : > { %v3349_v36 = vadd.f32 %v3348_v1, %v13152_v3 }
 0x3fe   : > { %14980 = vst [vmem:[#allocation81_spill] sm:$0xff] %v13160_v17  ;;  %v13165_v23 = vadd.f32 %v3493_v38, %v3445_v8  ;;  %4640 = vmatpush.bf16.msra.mxu2 %v10222_v63  ;;  %v10206_v63 = vor.u32 %v11263_v61, %v10205_v7 }
 0x3ff   : > { %14981 = vst [vmem:[#allocation82_spill] sm:$0xff] %v13162_v18  ;;  %v3397_v37 = vpop.f32.mrf.mxu1  ;;  %v10125_v18 = vld [vmem:[#allocation8 + $0x1c0] sm:$0xf] }
 0x400   : > { %v3398_v57 = vadd.f32 %v3397_v37, %v3349_v36 }
 0x402   : > { %4641 = vmatpush.bf16.msra.mxu2 %v10206_v63  ;;  %v10189_v63 = vld [vmem:[#allocation8 + $0x240] sm:$0xf] }
 0x403   : > { %v3446_v2 = vpop.f32.mrf.mxu2  ;;  %v3495_v12 = vpop.f32.mrf.mxu3 }
 0x404   : > { %v3447_v53 = vadd.f32 %v3446_v2, %v3398_v57  ;;  %v3351_v35 = vpop.f32.mrf.mxu0 }
 0x405   : > { %v3352_v31 = vadd.f32 %v3351_v35, %v13152_v3 }
 0x406   : > { %v13168_v5 = vadd.f32 %v3495_v12, %v3447_v53  ;;  %3546 = vmatmul.bf16.gmra.mxu0 %v12456_v59 }
 0x407   : > { %v3400_v0 = vpop.f32.mrf.mxu1 }
 0x408   : > { %3644 = vmatmul.bf16.gmra.mxu2 %v12460_v62  ;;  %v3401_v22 = vadd.f32 %v3400_v0, %v3352_v31  ;;  %3693 = vmatmul.bf16.gmra.mxu3 %v14982_v42 }
 0x40a   : > { %3595 = vmatmul.bf16.gmra.mxu1 %v14983_v6 }
 0x40b   : > { %v3449_v9 = vpop.f32.mrf.mxu2  ;;  %v3498_v33 = vpop.f32.mrf.mxu3 }
 0x40c   : > { %v3450_v55 = vadd.f32 %v3449_v9, %v3401_v22  ;;  %v3353_v38 = vpop.f32.mrf.mxu0 }
 0x40d   : > { %v3354_v8 = vadd.f32 %v3353_v38, %v13152_v3 }
 0x40e   : > { %v13175_v1 = vadd.f32 %v3498_v33, %v3450_v55 }
 0x40f   : > { %v3402_v36 = vpop.f32.mrf.mxu1 }
 0x410   : > { %v3403_v37 = vadd.f32 %v3402_v36, %v3354_v8 }
 0x413   : > { %v3451_v57 = vpop.f32.mrf.mxu2  ;;  %v3500_v2 = vpop.f32.mrf.mxu3 }
 0x414   : > { %v3452_v12 = vadd.f32 %v3451_v57, %v3403_v37  ;;  %v3356_v53 = vpop.f32.mrf.mxu0 }
 0x415   : > { %v3357_v35 = vadd.f32 %v3356_v53, %v13152_v3 }
 0x416   : > { %v13178_v31 = vadd.f32 %v3500_v2, %v3452_v12  ;;  %3551 = vmatmul.bf16.gmra.mxu0 %v12476_v10 }
 0x417   : > { %v3405_v0 = vpop.f32.mrf.mxu1 }
 0x418   : > { %3649 = vmatmul.bf16.gmra.mxu2 %v12480_v13  ;;  %v3406_v22 = vadd.f32 %v3405_v0, %v3357_v35  ;;  %3698 = vmatmul.bf16.gmra.mxu3 %v12482_v14 }
 0x41a   : > { %3600 = vmatmul.bf16.gmra.mxu1 %v12484_v15 }
 0x41b   : > { %v3454_v9 = vpop.f32.mrf.mxu2  ;;  %v3503_v33 = vpop.f32.mrf.mxu3 }
 0x41c   : > { %v3455_v55 = vadd.f32 %v3454_v9, %v3406_v22  ;;  %v3358_v38 = vpop.f32.mrf.mxu0  ;;  %v11259_v9 = vld [vmem:[#allocation8 + $0x24c] sm:$0xf0] }
 0x41d   : > { %v3359_v8 = vadd.f32 %v3358_v38, %v13152_v3 }
 0x41e   : > { %v13185_v36 = vadd.f32 %v3503_v33, %v3455_v55  ;;  %v10190_v33 = vor.u32 %v11259_v9, %v10189_v63  ;;  %v10013_v9 = vld [vmem:[#allocation8 + $0xe0] sm:$0xf] }
 0x41f   : > { %v3407_v37 = vpop.f32.mrf.mxu1 }
 0x420   : > { %v3408_v57 = vadd.f32 %v3407_v37, %v3359_v8  ;;  %4642 = vmatpush.bf16.msra.mxu2 %v10190_v33  ;;  %v10014_v33 = vor.u32 %v11215_v11, %v10013_v9  ;;  %v11247_v9 = vld [vmem:[#allocation8 + $0x1ec] sm:$0xf0] }
 0x422   : > { %4539 = vmatpush.bf16.msra.mxu0 %v10014_v33 }
 0x423   : > { %v3456_v2 = vpop.f32.mrf.mxu2  ;;  %v3505_v12 = vpop.f32.mrf.mxu3 }
 0x424   : > { %v3457_v53 = vadd.f32 %v3456_v2, %v3408_v57  ;;  %v3361_v35 = vpop.f32.mrf.mxu0 }
 0x425   : > { %v3362_v0 = vadd.f32 %v3361_v35, %v13152_v3 }
 0x426   : > { %v13188_v7 = vadd.f32 %v3505_v12, %v3457_v53  ;;  %3556 = vmatmul.bf16.gmra.mxu0 %v12496_v25 }
 0x427   : > { %v3410_v61 = vpop.f32.mrf.mxu1 }
 0x428   : > { %3654 = vmatmul.bf16.gmra.mxu2 %v12500_v28  ;;  %v3411_v22 = vadd.f32 %v3410_v61, %v3362_v0  ;;  %3703 = vmatmul.bf16.gmra.mxu3 %v12502_v29 }
 0x42a   : > { %3605 = vmatmul.bf16.gmra.mxu1 %v12504_v30 }
 0x42b   : > { %v3459_v55 = vpop.f32.mrf.mxu2  ;;  %v3508_v38 = vpop.f32.mrf.mxu3 }
 0x42c   : > { %v3460_v8 = vadd.f32 %v3459_v55, %v3411_v22  ;;  %v3363_v37 = vpop.f32.mrf.mxu0 }
 0x42d   : > { %v3364_v57 = vadd.f32 %v3363_v37, %v13152_v3  ;;  %v10397_v37 = vld [vmem:[#allocation8 + $0x3e0] sm:$0xf] }
 0x42e   : > { %v13195_v2 = vadd.f32 %v3508_v38, %v3460_v8  ;;  %v10173_v38 = vld [vmem:[#allocation8 + $0x220] sm:$0xf]  ;;  %v11255_v8 = vld [vmem:[#allocation8 + $0x22c] sm:$0xf0] }
 0x42f   : > { %v3412_v12 = vpop.f32.mrf.mxu1 }
 0x430   : > { %v3413_v53 = vadd.f32 %v3412_v12, %v3364_v57  ;;  %v10174_v57 = vor.u32 %v11255_v8, %v10173_v38  ;;  %v11311_v12 = vld [vmem:[#allocation8 + $0x3ec] sm:$0xf0]  ;;  %v10382_v38 = vor.u32 %v11307_v19, %v10381_v20  ;;  %v10109_v19 = vld [vmem:[#allocation8 + $0x1a0] sm:$0xf] }
 0x432   : > { %4643 = vmatpush.bf16.msra.mxu2 %v10174_v57 }
 0x433   : > { %v3461_v35 = vpop.f32.mrf.mxu2  ;;  %v3510_v0 = vpop.f32.mrf.mxu3 }
 0x434   : > { %v3462_v61 = vadd.f32 %v3461_v35, %v3413_v53  ;;  %v3366_v16 = vpop.f32.mrf.mxu0  ;;  %v9997_v53 = vld [vmem:[#allocation8 + $0xc0] sm:$0xf]  ;;  %v11211_v35 = vld [vmem:[#allocation8 + $0xcc] sm:$0xf0] }
 0x435   : > { %v3367_v54 = vadd.f32 %v3366_v16, %v13152_v3  ;;  %v10398_v16 = vor.u32 %v11311_v12, %v10397_v37  ;;  %v9998_v11 = vor.u32 %v11211_v35, %v9997_v53  ;;  %v9981_v37 = vld [vmem:[#allocation8 + $0xa0] sm:$0xf]  ;;  %v11207_v12 = vld [vmem:[#allocation8 + $0xac] sm:$0xf0] }
 0x436   : > { %v13198_v63 = vadd.f32 %v3510_v0, %v3462_v61  ;;  %3561 = vmatmul.bf16.gmra.mxu0 %v12516_v40  ;;  %v10141_v0 = vld [vmem:[#allocation8 + $0x1e0] sm:$0xf]  ;;  %v9982_v57 = vor.u32 %v11207_v12, %v9981_v37  ;;  %v11243_v53 = vld [vmem:[#allocation8 + $0x1cc] sm:$0xf0] }
 0x437   : > { %v3415_v22 = vpop.f32.mrf.mxu1  ;;  %4686 = vmatpush.bf16.msra.mxu3 %v10398_v16  ;;  %v10142_v43 = vor.u32 %v11247_v9, %v10141_v0  ;;  %4540 = vmatpush.bf16.msra.mxu0 %v9998_v11  ;;  %v10365_v16 = vld [vmem:[#allocation8 + $0x3a0] sm:$0xf]  ;;  %v11303_v0 = vld [vmem:[#allocation8 + $0x3ac] sm:$0xf0] }
 0x438   : > { %3659 = vmatmul.bf16.gmra.mxu2 %v12520_v44  ;;  %v3416_v55 = vadd.f32 %v3415_v22, %v3367_v54  ;;  %3708 = vmatmul.bf16.gmra.mxu3 %v12522_v45  ;;  %v9965_v9 = vld [vmem:[#allocation8 + $0x80] sm:$0xf]  ;;  %v11203_v11 = vld [vmem:[#allocation8 + $0x8c] sm:$0xf0] }
 0x439   : > { %4588 = vmatpush.bf16.msra.mxu1 %v10142_v43  ;;  %v9966_v43 = vor.u32 %v11203_v11, %v9965_v9  ;;  %v10349_v12 = vld [vmem:[#allocation8 + $0x380] sm:$0xf] }
 0x43a   : > { %3610 = vmatmul.bf16.gmra.mxu1 %v12524_v49  ;;  %v10157_v9 = vld [vmem:[#allocation8 + $0x200] sm:$0xf] }
 0x43b   : > { %v3464_v61 = vpop.f32.mrf.mxu2  ;;  %v3513_v34 = vpop.f32.mrf.mxu3  ;;  %4687 = vmatpush.bf16.msra.mxu3 %v10382_v38  ;;  %4541 = vmatpush.bf16.msra.mxu0 %v9982_v57  ;;  %v9949_v57 = vld [vmem:[#allocation8 + $0x60] sm:$0xf] }
 0x43c   : > { %v3465_v54 = vadd.f32 %v3464_v61, %v3416_v55  ;;  %v3368_v22 = vpop.f32.mrf.mxu0  ;;  %v10126_v55 = vor.u32 %v11243_v53, %v10125_v18  ;;  %v10366_v61 = vor.u32 %v11303_v0, %v10365_v16  ;;  %v11199_v53 = vld [vmem:[#allocation8 + $0x6c] sm:$0xf0] }
 0x43d   : > { %v3369_v33 = vadd.f32 %v3368_v22, %v13152_v3  ;;  %v9950_v0 = vor.u32 %v11199_v53, %v9949_v57  ;;  %v11231_v57 = vld [vmem:[#allocation8 + $0x16c] sm:$0xf0] }
 0x43e   : > { %v13205_v8 = vadd.f32 %v3513_v34, %v3465_v54  ;;  %4589 = vmatpush.bf16.msra.mxu1 %v10126_v55  ;;  %v11239_v54 = vld [vmem:[#allocation8 + $0x1ac] sm:$0xf0]  ;;  %v10093_v55 = vld [vmem:[#allocation8 + $0x180] sm:$0xf] }
 0x43f   : > { %v3417_v17 = vpop.f32.mrf.mxu1  ;;  %4688 = vmatpush.bf16.msra.mxu3 %v10366_v61  ;;  %v10110_v37 = vor.u32 %v11239_v54, %v10109_v19  ;;  %4542 = vmatpush.bf16.msra.mxu0 %v9966_v43  ;;  %v10333_v19 = vld [vmem:[#allocation8 + $0x360] sm:$0xf] }
 0x440   : > { %14984 = vst [vmem:[#allocation83_spill] sm:$0xff] %v13205_v8  ;;  %v3418_v35 = vadd.f32 %v3417_v17, %v3369_v33  ;;  %v11299_v17 = vld [vmem:[#allocation8 + $0x38c] sm:$0xf0]  ;;  %v9933_v54 = vld [vmem:[#allocation8 + $0x40] sm:$0xf] }
 0x441   : > { %v10350_v33 = vor.u32 %v11299_v17, %v10349_v12 }
 0x442   : > { %4590 = vmatpush.bf16.msra.mxu1 %v10110_v37  ;;  %v10077_v37 = vld [vmem:[#allocation8 + $0x160] sm:$0xf] }
 0x443   : > { %v3466_v34 = vpop.f32.mrf.mxu2  ;;  %v3515_v20 = vpop.f32.mrf.mxu3  ;;  %4689 = vmatpush.bf16.msra.mxu3 %v10350_v33  ;;  %4543 = vmatpush.bf16.msra.mxu0 %v9950_v0  ;;  %v11291_v33 = vld [vmem:[#allocation8 + $0x34c] sm:$0xf0] }
 0x444   : > { %v3467_v22 = vadd.f32 %v3466_v34, %v3418_v35  ;;  %v3371_v8 = vpop.f32.mrf.mxu0  ;;  %v11235_v35 = vld [vmem:[#allocation8 + $0x18c] sm:$0xf0] }
 0x445   : > { %v3372_v18 = vadd.f32 %v3371_v8, %v13152_v3  ;;  %v11251_v8 = vld [vmem:[#allocation8 + $0x20c] sm:$0xf0]  ;;  %v10094_v11 = vor.u32 %v11235_v35, %v10093_v55  ;;  %v10078_v55 = vor.u32 %v11231_v57, %v10077_v37  ;;  %v10317_v35 = vld [vmem:[#allocation8 + $0x340] sm:$0xf] }
 0x446   : > { %v13208_v38 = vadd.f32 %v3515_v20, %v3467_v22  ;;  %3566 = vmatmul.bf16.gmra.mxu0 %v12536_v39  ;;  %v10158_v34 = vor.u32 %v11251_v8, %v10157_v9  ;;  %v11295_v20 = vld [vmem:[#allocation8 + $0x36c] sm:$0xf0]  ;;  %v10318_v9 = vor.u32 %v11291_v33, %v10317_v35  ;;  %v9901_v57 = vld [vmem:[#allocation8] sm:$0xf] }
 0x447   : > { %v3420_v16 = vpop.f32.mrf.mxu1  ;;  %v10334_v43 = vor.u32 %v11295_v20, %v10333_v19  ;;  %v11195_v22 = vld [vmem:[#allocation8 + $0x4c] sm:$0xf0]  ;;  %4591 = vmatpush.bf16.msra.mxu1 %v10094_v11  ;;  %v9917_v19 = vld [vmem:[#allocation8 + $0x20] sm:$0xf] }
 0x448   : > { %3664 = vmatmul.bf16.gmra.mxu2 %v12540_v50  ;;  %v3421_v61 = vadd.f32 %v3420_v16, %v3372_v18  ;;  %3713 = vmatmul.bf16.gmra.mxu3 %v14971_v56  ;;  %v9934_v18 = vor.u32 %v11195_v22, %v9933_v54  ;;  %v11191_v20 = vld [vmem:[#allocation8 + $0x2c] sm:$0xf0]  ;;  %v10301_v22 = vld [vmem:[#allocation8 + $0x320] sm:$0xf] }
 0x449   : > { %4644 = vmatpush.bf16.msra.mxu2 %v10158_v34  ;;  %4690 = vmatpush.bf16.msra.mxu3 %v10334_v43  ;;  %v9918_v11 = vor.u32 %v11191_v20, %v9917_v19  ;;  %v11227_v34 = vld [vmem:[#allocation8 + $0x14c] sm:$0xf0]  ;;  %v10285_v19 = vld [vmem:[#allocation8 + $0x300] sm:$0xf] }
 0x44a   : > { %3615 = vmatmul.bf16.gmra.mxu1 %v14972_v51  ;;  %4544 = vmatpush.bf16.msra.mxu0 %v9934_v18  ;;  %v10061_v51 = vld [vmem:[#allocation8 + $0x140] sm:$0xf]  ;;  %v11287_v37 = vld [vmem:[#allocation8 + $0x32c] sm:$0xf0] }
 0x44b   : > { %v3469_v12 = vpop.f32.mrf.mxu2  ;;  %v3518_v17 = vpop.f32.mrf.mxu3  ;;  %4592 = vmatpush.bf16.msra.mxu1 %v10078_v55  ;;  %v11187_v43 = vld [vmem:[#allocation8 + $0xc] sm:$0xf0]  ;;  %v10045_v18 = vld [vmem:[#allocation8 + $0x120] sm:$0xf] }
 0x44c   : > { %v3470_v53 = vadd.f32 %v3469_v12, %v3421_v61  ;;  %v3373_v16 = vpop.f32.mrf.mxu0  ;;  %v10062_v61 = vor.u32 %v11227_v34, %v10061_v51  ;;  %v10302_v12 = vor.u32 %v11287_v37, %v10301_v22  ;;  %v11223_v35 = vld [vmem:[#allocation8 + $0x12c] sm:$0xf0]  ;;  %v11277_v22 = vld [vmem:[#allocation8 + $0x2e4] sm:$0xf]  ;;  %v10271_v37 = vld [vmem:[#allocation8 + $0x2f0] sm:$0xf0] }
 0x44d   : > { %v3374_v0 = vadd.f32 %v3373_v16, %v13152_v3  ;;  %4691 = vmatpush.bf16.msra.mxu3 %v10318_v9  ;;  %v10046_v55 = vor.u32 %v11223_v35, %v10045_v18  ;;  %v11283_v20 = vld [vmem:[#allocation8 + $0x30c] sm:$0xf0]  ;;  %v10029_v9 = vld [vmem:[#allocation8 + $0x100] sm:$0xf] }
 0x44e   : > { %v13215_v8 = vadd.f32 %v3518_v17, %v3470_v53  ;;  %4545 = vmatpush.bf16.msra.mxu0 %v9918_v11  ;;  %v9902_v53 = vor.u32 %v11187_v43, %v9901_v57  ;;  %v10286_v51 = vor.u32 %v11283_v20, %v10285_v19  ;;  %v11219_v11 = vld [vmem:[#allocation8 + $0x10c] sm:$0xf0] }
 0x44f   : > { %v3422_v56 = vpop.f32.mrf.mxu1  ;;  %4593 = vmatpush.bf16.msra.mxu1 %v10062_v61  ;;  %v10030_v61 = vor.u32 %v11219_v11, %v10029_v9 }
 0x450   : > { %14985 = vst [vmem:[#allocation84_spill] sm:$0xff] %v13215_v8  ;;  %v3423_v54 = vadd.f32 %v3422_v56, %v3374_v0 }
 0x451   : > { %4692 = vmatpush.bf16.msra.mxu3 %v10302_v12 }
 0x452   : > { %4546 = vmatpush.bf16.msra.mxu0 %v9902_v53 }
 0x453   : > { %v3471_v16 = vpop.f32.mrf.mxu2  ;;  %v3520_v17 = vpop.f32.mrf.mxu3  ;;  %4594 = vmatpush.bf16.msra.mxu1 %v10046_v55 }
 0x454   : > { %v3472_v33 = vadd.f32 %v3471_v16, %v3423_v54  ;;  %v3376_v8 = vpop.f32.mrf.mxu0 }
 0x455   : > { %v3377_v56 = vadd.f32 %v3376_v8, %v13152_v3  ;;  %4693 = vmatpush.bf16.msra.mxu3 %v10286_v51  ;;  %v10274_v8 = vor.u32 %v11277_v22, %v10271_v37 }
 0x456   : > { %v13218_v0 = vadd.f32 %v3520_v17, %v3472_v33  ;;  %3571 = vmatmul.bf16.gmra.mxu0 %v12556_v52 }
 0x457   : > { %v3425_v34 = vpop.f32.mrf.mxu1  ;;  %4833 = vmatpush.bf16.msrb.mxu2 %v10274_v8  ;;  %4595 = vmatpush.bf16.msra.mxu1 %v10030_v61  ;;  %v10255_v61 = vld [vmem:[#allocation8 + $0x2d0] sm:$0xf0] }
 0x458   : > { %3669 = vmatmul.bf16.gmra.mxu2 %v12560_v58  ;;  %v3426_v54 = vadd.f32 %v3425_v34, %v3377_v56  ;;  %3718 = vmatmul.bf16.gmra.mxu3 %v12562_v60  ;;  %v11273_v34 = vld [vmem:[#allocation8 + $0x2c4] sm:$0xf] }
 0x459   : > { %v10258_v37 = vor.u32 %v11273_v34, %v10255_v61 }
 0x45a   : > { %3620 = vmatmul.bf16.gmra.mxu1 %v12564_v4 }
 0x45b   : > { %v3474_v12 = vpop.f32.mrf.mxu2  ;;  %v3523_v57 = vpop.f32.mrf.mxu3  ;;  %4834 = vmatpush.bf16.msrb.mxu2 %v10258_v37 }
 0x45c   : > { %v3475_v43 = vadd.f32 %v3474_v12, %v3426_v54  ;;  %v3378_v18 = vpop.f32.mrf.mxu0 }
 0x45d   : > { %v3379_v16 = vadd.f32 %v3378_v18, %v13152_v3 }
 0x45e   : > { %v13225_v17 = vadd.f32 %v3523_v57, %v3475_v43 }
 0x45f   : > { %v3427_v53 = vpop.f32.mrf.mxu1 }
 0x460   : > { %v3428_v35 = vadd.f32 %v3427_v53, %v3379_v16  ;;  %v13238_v53 = vperm.slane %v13149_v32, 3  ;;  %v11269_v32 = vld [vmem:[#allocation8 + $0x2a4] sm:$0xf] }
 0x463   : > { %v3476_v33 = vpop.f32.mrf.mxu2  ;;  %v3525_v55 = vpop.f32.mrf.mxu3 }
 0x464   : > { %v3477_v19 = vadd.f32 %v3476_v33, %v3428_v35  ;;  %v3381_v20 = vpop.f32.mrf.mxu0 }
 0x465   : > { %v3382_v56 = vadd.f32 %v3381_v20, %v13152_v3 }
 0x466   : > { %v13228_v51 = vadd.f32 %v3525_v55, %v3477_v19  ;;  %3576 = vmatmul.bf16.gmra.mxu0 %v12576_v21 }
 0x467   : > { %v3430_v9 = vpop.f32.mrf.mxu1 }
 0x468   : > { %3674 = vmatmul.bf16.gmra.mxu2 %v12580_v24  ;;  %v3431_v11 = vadd.f32 %v3430_v9, %v3382_v56  ;;  %3723 = vmatmul.bf16.gmra.mxu3 %v12582_v26 }
 0x46a   : > { %3625 = vmatmul.bf16.gmra.mxu1 %v12584_v27 }
 0x46b   : > { %v3479_v54 = vpop.f32.mrf.mxu2  ;;  %v3528_v22 = vpop.f32.mrf.mxu3 }
 0x46c   : > { %v3480_v8 = vadd.f32 %v3479_v54, %v3431_v11  ;;  %v3383_v12 = vpop.f32.mrf.mxu0  ;;  %v10239_v11 = vld [vmem:[#allocation8 + $0x2b0] sm:$0xf0] }
 0x46d   : > { %v3384_v57 = vadd.f32 %v3383_v12, %v13152_v3  ;;  %v10242_v54 = vor.u32 %v11269_v32, %v10239_v11 }
 0x46e   : > { %v13235_v43 = vadd.f32 %v3528_v22, %v3480_v8 }
 0x46f   : > { %v3432_v18 = vpop.f32.mrf.mxu1  ;;  %4835 = vmatpush.bf16.msrb.mxu2 %v10242_v54 }
 0x470   : > { %v3433_v16 = vadd.f32 %v3432_v18, %v3384_v57 }
 0x473   : > { %v3481_v35 = vpop.f32.mrf.mxu2  ;;  %v3530_v33 = vpop.f32.mrf.mxu3 }
 0x474   : > { %v3482_v55 = vadd.f32 %v3481_v35, %v3433_v16  ;;  %v3542_v19 = vpop.f32.mrf.mxu0 }
 0x475   : > { %v3543_v20 = vadd.f32 %v3542_v19, %v13238_v53 }
 0x476   : > { %v13241_v56 = vadd.f32 %v3530_v33, %v3482_v55  ;;  %4547 = vmatmul.bf16.vlgmr.msra.gmra.mxu0 %v12437_v41 }
 0x477   : > { %v3591_v9 = vpop.f32.mrf.mxu1 }
 0x478   : > { %4645 = vmatmul.bf16.vlgmr.msra.gmra.mxu2 %v12440_v46  ;;  %v3592_v3 = vadd.f32 %v3591_v9, %v3543_v20  ;;  %4694 = vmatmul.bf16.vlgmr.msra.gmra.mxu3 %v12442_v47 }
 0x47a   : > { %4596 = vmatmul.bf16.vlgmr.msra.gmra.mxu1 %v12444_v48 }
 0x47b   : > { %v3640_v34 = vpop.f32.mrf.mxu2  ;;  %v3689_v61 = vpop.f32.mrf.mxu3 }
 0x47c   : > { %v3641_v22 = vadd.f32 %v3640_v34, %v3592_v3  ;;  %v3544_v37 = vpop.f32.mrf.mxu0 }
 0x47d   : > { %v3545_v8 = vadd.f32 %v3544_v37, %v13238_v53  ;;  %v10223_v37 = vld [vmem:[#allocation8 + $0x290] sm:$0xf0] }
 0x47e   : > { %v3690_v12 = vadd.f32 %v3689_v61, %v3641_v22  ;;  %v11265_v22 = vld [vmem:[#allocation8 + $0x284] sm:$0xf] }
 0x47f   : > { %v3593_v57 = vpop.f32.mrf.mxu1 }
 0x480   : > { %v3730_v18 = vpack.c.bf16 %v3690_v12, %v13165_v23  ;;  %v3594_v16 = vadd.f32 %v3593_v57, %v3545_v8  ;;  %v10226_v57 = vor.u32 %v11265_v22, %v10223_v37 }
 0x482   : > { %v6951_v34 = vunpack.c.l.b16 %v3730_v18  ;;  %v7773_v23 = vunpack.c.h.b16 %v3730_v18  ;;  %4836 = vmatpush.bf16.msrb.mxu2 %v10226_v57  ;;  %v10207_v57 = vld [vmem:[#allocation8 + $0x270] sm:$0xf0] }
 0x483   : > { %v3642_v35 = vpop.f32.mrf.mxu2  ;;  %v3691_v33 = vpop.f32.mrf.mxu3 }
 0x484   : > { %v3643_v55 = vadd.f32 %v3642_v35, %v3594_v16  ;;  %v3547_v19 = vpop.f32.mrf.mxu0 }
 0x485   : > { %v3548_v20 = vadd.f32 %v3547_v19, %v13238_v53 }
 0x486   : > { %v3692_v9 = vadd.f32 %v3691_v33, %v3643_v55  ;;  %4552 = vmatmul.bf16.gmra.mxu0 %v12456_v59 }
 0x487   : > { %v3596_v32 = vpop.f32.mrf.mxu1 }
 0x488   : > { %v3732_v3 = vpack.c.bf16 %v3692_v9, %v13168_v5  ;;  %4650 = vmatmul.bf16.gmra.mxu2 %v12460_v62  ;;  %v3597_v11 = vadd.f32 %v3596_v32, %v3548_v20  ;;  %4699 = vmatmul.bf16.gmra.mxu3 %v14982_v42 }
 0x48a   : > { %v6952_v61 = vunpack.c.l.b16 %v3732_v3  ;;  %v7774_v54 = vunpack.c.h.b16 %v3732_v3  ;;  %4601 = vmatmul.bf16.gmra.mxu1 %v14983_v6 }
 0x48b   : > { %v3645_v8 = vpop.f32.mrf.mxu2  ;;  %v3694_v12 = vpop.f32.mrf.mxu3 }
 0x48c   : > { %v3646_v16 = vadd.f32 %v3645_v8, %v3597_v11  ;;  %v3549_v35 = vpop.f32.mrf.mxu0  ;;  %v13255_v33 = vpack.c.b16 %v6952_v61, %v6951_v34  ;;  %v13257_v5 = vpack.c.b16 %v7774_v54, %v7773_v23 }
 0x48d   : > { %v3550_v55 = vadd.f32 %v3549_v35, %v13238_v53 }
 0x48e   : > { %14986 = vst [vmem:[#allocation85_spill] sm:$0xff] %v13255_v33  ;;  %v3695_v19 = vadd.f32 %v3694_v12, %v3646_v16  ;;  %v11261_v12 = vld [vmem:[#allocation8 + $0x264] sm:$0xf] }
 0x48f   : > { %14987 = vst [vmem:[#allocation86_spill] sm:$0xff] %v13257_v5  ;;  %v3598_v18 = vpop.f32.mrf.mxu1  ;;  %v10210_v16 = vor.u32 %v11261_v12, %v10207_v57 }
 0x490   : > { %v3734_v20 = vpack.c.bf16 %v3695_v19, %v13175_v1  ;;  %v3599_v9 = vadd.f32 %v3598_v18, %v3550_v55 }
 0x491   : > { %4837 = vmatpush.bf16.msrb.mxu2 %v10210_v16  ;;  %v10191_v16 = vld [vmem:[#allocation8 + $0x250] sm:$0xf0] }
 0x492   : > { %v6953_v54 = vunpack.c.l.b16 %v3734_v20  ;;  %v7775_v1 = vunpack.c.h.b16 %v3734_v20 }
 0x493   : > { %v3647_v32 = vpop.f32.mrf.mxu2  ;;  %v3696_v3 = vpop.f32.mrf.mxu3 }
 0x494   : > { %v3648_v6 = vadd.f32 %v3647_v32, %v3599_v9  ;;  %v3552_v42 = vpop.f32.mrf.mxu0 }
 0x495   : > { %v3553_v22 = vadd.f32 %v3552_v42, %v13238_v53 }
 0x496   : > { %v3697_v11 = vadd.f32 %v3696_v3, %v3648_v6  ;;  %4557 = vmatmul.bf16.gmra.mxu0 %v12476_v10 }
 0x497   : > { %v3601_v34 = vpop.f32.mrf.mxu1 }
 0x498   : > { %v3736_v23 = vpack.c.bf16 %v3697_v11, %v13178_v31  ;;  %4655 = vmatmul.bf16.gmra.mxu2 %v12480_v13  ;;  %v3602_v61 = vadd.f32 %v3601_v34, %v3553_v22  ;;  %4704 = vmatmul.bf16.gmra.mxu3 %v12482_v14 }
 0x49a   : > { %v6954_v37 = vunpack.c.l.b16 %v3736_v23  ;;  %v7776_v8 = vunpack.c.h.b16 %v3736_v23  ;;  %4606 = vmatmul.bf16.gmra.mxu1 %v12484_v15 }
 0x49b   : > { %v3650_v42 = vpop.f32.mrf.mxu2  ;;  %v3699_v6 = vpop.f32.mrf.mxu3 }
 0x49c   : > { %v3651_v35 = vadd.f32 %v3650_v42, %v3602_v61  ;;  %v3554_v55 = vpop.f32.mrf.mxu0  ;;  %v13267_v19 = vpack.c.b16 %v6954_v37, %v6953_v54  ;;  %v13269_v31 = vpack.c.b16 %v7776_v8, %v7775_v1 }
 0x49d   : > { %v3555_v18 = vadd.f32 %v3554_v55, %v13238_v53 }
 0x49e   : > { %14988 = vst [vmem:[#allocation87_spill] sm:$0xff] %v13267_v19  ;;  %v3700_v9 = vadd.f32 %v3699_v6, %v3651_v35  ;;  %v11257_v6 = vld [vmem:[#allocation8 + $0x244] sm:$0xf] }
 0x49f   : > { %14989 = vst [vmem:[#allocation88_spill] sm:$0xff] %v13269_v31  ;;  %v3603_v20 = vpop.f32.mrf.mxu1 }
 0x4a0   : > { %v3738_v32 = vpack.c.bf16 %v3700_v9, %v13185_v36  ;;  %v3604_v3 = vadd.f32 %v3603_v20, %v3555_v18  ;;  %v10194_v18 = vor.u32 %v11257_v6, %v10191_v16  ;;  %v11213_v16 = vld [vmem:[#allocation8 + $0xe4] sm:$0xf] }
 0x4a2   : > { %v6955_v8 = vunpack.c.l.b16 %v3738_v32  ;;  %v7777_v36 = vunpack.c.h.b16 %v3738_v32  ;;  %4838 = vmatpush.bf16.msrb.mxu2 %v10194_v18 }
 0x4a3   : > { %v3652_v22 = vpop.f32.mrf.mxu2  ;;  %v3701_v11 = vpop.f32.mrf.mxu3 }
 0x4a4   : > { %v3653_v34 = vadd.f32 %v3652_v22, %v3604_v3  ;;  %v3557_v23 = vpop.f32.mrf.mxu0 }
 0x4a5   : > { %v3558_v12 = vadd.f32 %v3557_v23, %v13238_v53 }
 0x4a6   : > { %v3702_v61 = vadd.f32 %v3701_v11, %v3653_v34  ;;  %4562 = vmatmul.bf16.gmra.mxu0 %v12496_v25 }
 0x4a7   : > { %v3606_v54 = vpop.f32.mrf.mxu1 }
 0x4a8   : > { %v3740_v1 = vpack.c.bf16 %v3702_v61, %v13188_v7  ;;  %4660 = vmatmul.bf16.gmra.mxu2 %v12500_v28  ;;  %v3607_v37 = vadd.f32 %v3606_v54, %v3558_v12  ;;  %4709 = vmatmul.bf16.gmra.mxu3 %v12502_v29 }
 0x4aa   : > { %v6956_v57 = vunpack.c.l.b16 %v3740_v1  ;;  %v7778_v42 = vunpack.c.h.b16 %v3740_v1  ;;  %4611 = vmatmul.bf16.gmra.mxu1 %v12504_v30 }
 0x4ab   : > { %v3655_v35 = vpop.f32.mrf.mxu2  ;;  %v3704_v55 = vpop.f32.mrf.mxu3 }
 0x4ac   : > { %v3656_v9 = vadd.f32 %v3655_v35, %v3607_v37  ;;  %v3559_v20 = vpop.f32.mrf.mxu0  ;;  %v13279_v3 = vpack.c.b16 %v6956_v57, %v6955_v8  ;;  %v13281_v7 = vpack.c.b16 %v7778_v42, %v7777_v36  ;;  %v10015_v8 = vld [vmem:[#allocation8 + $0xf0] sm:$0xf0] }
 0x4ad   : > { %v3560_v22 = vadd.f32 %v3559_v20, %v13238_v53  ;;  %v10018_v57 = vor.u32 %v11213_v16, %v10015_v8 }
 0x4ae   : > { %14990 = vst [vmem:[#allocation89_spill] sm:$0xff] %v13279_v3  ;;  %v3705_v11 = vadd.f32 %v3704_v55, %v3656_v9  ;;  %v10399_v55 = vld [vmem:[#allocation8 + $0x3f0] sm:$0xf0] }
 0x4af   : > { %14991 = vst [vmem:[#allocation90_spill] sm:$0xff] %v13281_v7  ;;  %v3608_v32 = vpop.f32.mrf.mxu1  ;;  %4735 = vmatpush.bf16.msrb.mxu0 %v10018_v57 }
 0x4b0   : > { %v3742_v34 = vpack.c.bf16 %v3705_v11, %v13195_v2  ;;  %v3609_v23 = vadd.f32 %v3608_v32, %v3560_v22  ;;  %v11309_v2 = vld [vmem:[#allocation8 + $0x3e4] sm:$0xf]  ;;  %v10175_v32 = vld [vmem:[#allocation8 + $0x230] sm:$0xf0] }
 0x4b1   : > { %v10402_v18 = vor.u32 %v11309_v2, %v10399_v55  ;;  %v11253_v11 = vld [vmem:[#allocation8 + $0x224] sm:$0xf]  ;;  %v10383_v55 = vld [vmem:[#allocation8 + $0x3d0] sm:$0xf0] }
 0x4b2   : > { %v6957_v9 = vunpack.c.l.b16 %v3742_v34  ;;  %v11305_v2 = vld [vmem:[#allocation8 + $0x3c4] sm:$0xf] }
 0x4b3   : > { %v3657_v12 = vpop.f32.mrf.mxu2  ;;  %v3706_v61 = vpop.f32.mrf.mxu3  ;;  %4882 = vmatpush.bf16.msrb.mxu3 %v10402_v18  ;;  %v10386_v31 = vor.u32 %v11305_v2, %v10383_v55  ;;  %v11205_v18 = vld [vmem:[#allocation8 + $0xa4] sm:$0xf] }
 0x4b4   : > { %v3658_v54 = vadd.f32 %v3657_v12, %v3609_v23  ;;  %v3562_v1 = vpop.f32.mrf.mxu0  ;;  %v11209_v23 = vld [vmem:[#allocation8 + $0xc4] sm:$0xf]  ;;  %v7779_v12 = vunpack.c.h.b16 %v3742_v34 }
 0x4b5   : > { %v3563_v6 = vadd.f32 %v3562_v1, %v13238_v53  ;;  %v9999_v1 = vld [vmem:[#allocation8 + $0xd0] sm:$0xf0] }
 0x4b6   : > { %v3707_v37 = vadd.f32 %v3706_v61, %v3658_v54  ;;  %4567 = vmatmul.bf16.gmra.mxu0 %v12516_v40  ;;  %v10178_v54 = vor.u32 %v11253_v11, %v10175_v32  ;;  %v9983_v11 = vld [vmem:[#allocation8 + $0xb0] sm:$0xf0]  ;;  %v11241_v32 = vld [vmem:[#allocation8 + $0x1c4] sm:$0xf] }
 0x4b7   : > { %v3611_v36 = vpop.f32.mrf.mxu1  ;;  %4883 = vmatpush.bf16.msrb.mxu3 %v10386_v31  ;;  %v10111_v31 = vld [vmem:[#allocation8 + $0x1b0] sm:$0xf0] }
 0x4b8   : > { %v3744_v42 = vpack.c.bf16 %v3707_v37, %v13198_v63  ;;  %4665 = vmatmul.bf16.gmra.mxu2 %v12520_v44  ;;  %v3612_v35 = vadd.f32 %v3611_v36, %v3563_v6  ;;  %4714 = vmatmul.bf16.gmra.mxu3 %v12522_v45  ;;  %v11245_v6 = vld [vmem:[#allocation8 + $0x1e4] sm:$0xf]  ;;  %v10143_v37 = vld [vmem:[#allocation8 + $0x1f0] sm:$0xf0]  ;;  %v10002_v36 = vor.u32 %v11209_v23, %v9999_v1  ;;  %v14994_v1 = vld [vmem:[#allocation83_spill] sm:$0xff] }
 0x4b9   : > { %v10146_v57 = vor.u32 %v11245_v6, %v10143_v37  ;;  %4839 = vmatpush.bf16.msrb.mxu2 %v10178_v54  ;;  %v9986_v23 = vor.u32 %v11205_v18, %v9983_v11  ;;  %v11301_v37 = vld [vmem:[#allocation8 + $0x3a4] sm:$0xf]  ;;  %v10367_v54 = vld [vmem:[#allocation8 + $0x3b0] sm:$0xf0] }
 0x4ba   : > { %v6958_v20 = vunpack.c.l.b16 %v3744_v42  ;;  %v7780_v22 = vunpack.c.h.b16 %v3744_v42  ;;  %4616 = vmatmul.bf16.gmra.mxu1 %v12524_v49  ;;  %4736 = vmatpush.bf16.msrb.mxu0 %v10002_v36  ;;  %v10351_v11 = vld [vmem:[#allocation8 + $0x390] sm:$0xf0] }
 0x4bb   : > { %v3660_v61 = vpop.f32.mrf.mxu2  ;;  %v3709_v63 = vpop.f32.mrf.mxu3  ;;  %4784 = vmatpush.bf16.msrb.mxu1 %v10146_v57 }
 0x4bc   : > { %v3661_v16 = vadd.f32 %v3660_v61, %v3612_v35  ;;  %v3564_v8 = vpop.f32.mrf.mxu0  ;;  %v13291_v42 = vpack.c.b16 %v6958_v20, %v6957_v9  ;;  %v13294_v34 = vpack.c.b16 %v7780_v22, %v7779_v12  ;;  %v10127_v61 = vld [vmem:[#allocation8 + $0x1d0] sm:$0xf0]  ;;  %v11201_v22 = vld [vmem:[#allocation8 + $0x84] sm:$0xf] }
 0x4bd   : > { %v3565_v5 = vadd.f32 %v3564_v8, %v13238_v53  ;;  %v10130_v20 = vor.u32 %v11241_v32, %v10127_v61  ;;  %v10370_v8 = vor.u32 %v11301_v37, %v10367_v54  ;;  %v9967_v12 = vld [vmem:[#allocation8 + $0x90] sm:$0xf0] }
 0x4be   : > { %14992 = vst [vmem:[#allocation91_spill] sm:$0xff] %v13291_v42  ;;  %v3710_v7 = vadd.f32 %v3709_v63, %v3661_v16  ;;  %4737 = vmatpush.bf16.msrb.mxu0 %v9986_v23  ;;  %v11237_v63 = vld [vmem:[#allocation8 + $0x1a4] sm:$0xf]  ;;  %v9970_v57 = vor.u32 %v11201_v22, %v9967_v12  ;;  %v9951_v61 = vld [vmem:[#allocation8 + $0x70] sm:$0xf0]  ;;  %v14995_v22 = vld [vmem:[#allocation33_spill] sm:$0xff] }
 0x4bf   : > { %14993 = vst [vmem:[#allocation92_spill] sm:$0xff] %v13294_v34  ;;  %v3613_v35 = vpop.f32.mrf.mxu1  ;;  %4785 = vmatpush.bf16.msrb.mxu1 %v10130_v20  ;;  %4884 = vmatpush.bf16.msrb.mxu3 %v10370_v8  ;;  %v10114_v18 = vor.u32 %v11237_v63, %v10111_v31  ;;  %v11197_v23 = vld [vmem:[#allocation8 + $0x64] sm:$0xf]  ;;  %v10095_v54 = vld [vmem:[#allocation8 + $0x190] sm:$0xf0] }
 0x4c0   : > { %v13297_v6 = vpack.c.bf16 %v3710_v7, %v14994_v1  ;;  %v3614_v9 = vadd.f32 %v3613_v35, %v3565_v5  ;;  %v11297_v7 = vld [vmem:[#allocation8 + $0x384] sm:$0xf]  ;;  %v9954_v37 = vor.u32 %v11197_v23, %v9951_v61  ;;  %v9935_v23 = vld [vmem:[#allocation8 + $0x50] sm:$0xf0]  ;;  %v10181_v42 = vld [vmem:[#allocation8 + $0x228] sm:$0xf] }
 0x4c1   : > { %v10354_v32 = vor.u32 %v11297_v7, %v10351_v11  ;;  %v11233_v1 = vld [vmem:[#allocation8 + $0x184] sm:$0xf]  ;;  %v10159_v7 = vld [vmem:[#allocation8 + $0x210] sm:$0xf0] }
 0x4c2   : > { %4738 = vmatpush.bf16.msrb.mxu0 %v9970_v57  ;;  %v10098_v12 = vor.u32 %v11233_v1, %v10095_v54  ;;  %v11293_v63 = vld [vmem:[#allocation8 + $0x364] sm:$0xf]  ;;  %v6959_v57 = vunpack.c.l.b16 %v13297_v6  ;;  %v10079_v1 = vld [vmem:[#allocation8 + $0x170] sm:$0xf0] }
 0x4c3   : > { %v3662_v16 = vpop.f32.mrf.mxu2  ;;  %v3711_v36 = vpop.f32.mrf.mxu3  ;;  %4786 = vmatpush.bf16.msrb.mxu1 %v10114_v18  ;;  %4885 = vmatpush.bf16.msrb.mxu3 %v10354_v32  ;;  %v11249_v18 = vld [vmem:[#allocation8 + $0x204] sm:$0xf]  ;;  %v10319_v34 = vld [vmem:[#allocation8 + $0x350] sm:$0xf0] }
 0x4c4   : > { %v3663_v2 = vadd.f32 %v3662_v16, %v3614_v9  ;;  %v3567_v55 = vpop.f32.mrf.mxu0  ;;  %v10335_v16 = vld [vmem:[#allocation8 + $0x370] sm:$0xf0]  ;;  %v11193_v11 = vld [vmem:[#allocation8 + $0x44] sm:$0xf] }
 0x4c5   : > { %v3568_v5 = vadd.f32 %v3567_v55, %v13238_v53  ;;  %v14996_v55 = vld [vmem:[#allocation34_spill] sm:$0xff] }
 0x4c6   : > { %v3712_v35 = vadd.f32 %v3711_v36, %v3663_v2  ;;  %4572 = vmatmul.bf16.gmra.mxu0 %v12536_v39  ;;  %v10338_v36 = vor.u32 %v11293_v63, %v10335_v16  ;;  %v11229_v61 = vld [vmem:[#allocation8 + $0x164] sm:$0xf]  ;;  %v9938_v63 = vor.u32 %v11193_v11, %v9935_v23  ;;  %v10063_v11 = vld [vmem:[#allocation8 + $0x150] sm:$0xf0] }
 0x4c7   : > { %v3616_v20 = vpop.f32.mrf.mxu1  ;;  %4739 = vmatpush.bf16.msrb.mxu0 %v9954_v37  ;;  %4787 = vmatpush.bf16.msrb.mxu1 %v10098_v12  ;;  %v11289_v16 = vld [vmem:[#allocation8 + $0x344] sm:$0xf] }
 0x4c8   : > { %v3748_v9 = vpack.c.bf16 %v3712_v35, %v13208_v38  ;;  %4670 = vmatmul.bf16.gmra.mxu2 %v12540_v50  ;;  %v3617_v8 = vadd.f32 %v3616_v20, %v3568_v5  ;;  %4719 = vmatmul.bf16.gmra.mxu3 %v14995_v22  ;;  %v7781_v38 = vunpack.c.h.b16 %v13297_v6  ;;  %v10162_v35 = vor.u32 %v11249_v18, %v10159_v7  ;;  %v11189_v12 = vld [vmem:[#allocation8 + $0x24] sm:$0xf] }
 0x4c9   : > { %4886 = vmatpush.bf16.msrb.mxu3 %v10338_v36  ;;  %v10322_v6 = vor.u32 %v11289_v16, %v10319_v34  ;;  %v9919_v36 = vld [vmem:[#allocation8 + $0x30] sm:$0xf0]  ;;  %v11225_v7 = vld [vmem:[#allocation8 + $0x144] sm:$0xf] }
 0x4ca   : > { %v6960_v31 = vunpack.c.l.b16 %v3748_v9  ;;  %v7782_v2 = vunpack.c.h.b16 %v3748_v9  ;;  %4621 = vmatmul.bf16.gmra.mxu1 %v14996_v55  ;;  %v10082_v9 = vor.u32 %v11229_v61, %v10079_v1  ;;  %4840 = vmatpush.bf16.msrb.mxu2 %v10162_v35  ;;  %v11285_v61 = vld [vmem:[#allocation8 + $0x324] sm:$0xf]  ;;  %v10303_v1 = vld [vmem:[#allocation8 + $0x330] sm:$0xf0] }
 0x4cb   : > { %v3665_v32 = vpop.f32.mrf.mxu2  ;;  %v3714_v5 = vpop.f32.mrf.mxu3  ;;  %4740 = vmatpush.bf16.msrb.mxu0 %v9938_v63  ;;  %v10306_v35 = vor.u32 %v11285_v61, %v10303_v1  ;;  %v11185_v34 = vld [vmem:[#allocation8 + $0x4] sm:$0xf]  ;;  %v10047_v63 = vld [vmem:[#allocation8 + $0x130] sm:$0xf0] }
 0x4cc   : > { %v3666_v20 = vadd.f32 %v3665_v32, %v3617_v8  ;;  %v3569_v54 = vpop.f32.mrf.mxu0  ;;  %v13307_v33 = vpack.c.b16 %v6960_v31, %v6959_v57  ;;  %v13310_v19 = vpack.c.b16 %v7782_v2, %v7781_v38  ;;  %4788 = vmatpush.bf16.msrb.mxu1 %v10082_v9  ;;  %v9922_v8 = vor.u32 %v11189_v12, %v9919_v36  ;;  %v14999_v32 = vld [vmem:[#allocation84_spill] sm:$0xff]  ;;  %v11221_v38 = vld [vmem:[#allocation8 + $0x124] sm:$0xf] }
 0x4cd   : > { %v3570_v37 = vadd.f32 %v3569_v54, %v13238_v53  ;;  %4887 = vmatpush.bf16.msrb.mxu3 %v10322_v6  ;;  %v10066_v31 = vor.u32 %v11225_v7, %v10063_v11  ;;  %v9903_v2 = vld [vmem:[#allocation8 + $0x10] sm:$0xf0]  ;;  %v10050_v6 = vor.u32 %v11221_v38, %v10047_v63  ;;  %v11281_v12 = vld [vmem:[#allocation8 + $0x304] sm:$0xf]  ;;  %v11280_v38 = vld [vmem:[#allocation8 + $0x2f4] sm:$0xf0] }
 0x4ce   : > { %14997 = vst [vmem:[#allocation83_spill] sm:$0xff] %v13307_v33  ;;  %v3715_v18 = vadd.f32 %v3714_v5, %v3666_v20  ;;  %v9906_v54 = vor.u32 %v11185_v34, %v9903_v2  ;;  %v11217_v7 = vld [vmem:[#allocation8 + $0x104] sm:$0xf]  ;;  %v10277_v2 = vld [vmem:[#allocation8 + $0x2e8] sm:$0xf] }
 0x4cf   : > { %14998 = vst [vmem:[#allocation93_spill] sm:$0xff] %v13310_v19  ;;  %v3618_v3 = vpop.f32.mrf.mxu1  ;;  %4741 = vmatpush.bf16.msrb.mxu0 %v9922_v8  ;;  %v10031_v8 = vld [vmem:[#allocation8 + $0x110] sm:$0xf0] }
 0x4d0   : > { %v3750_v23 = vpack.c.bf16 %v3715_v18, %v14999_v32  ;;  %v3619_v57 = vadd.f32 %v3618_v3, %v3570_v37  ;;  %4789 = vmatpush.bf16.msrb.mxu1 %v10066_v31  ;;  %v10287_v18 = vld [vmem:[#allocation8 + $0x310] sm:$0xf0]  ;;  %v10034_v32 = vor.u32 %v11217_v7, %v10031_v8 }
 0x4d1   : > { %4888 = vmatpush.bf16.msrb.mxu3 %v10306_v35  ;;  %v10290_v37 = vor.u32 %v11281_v12, %v10287_v18 }
 0x4d2   : > { %v6961_v61 = vunpack.c.l.b16 %v3750_v23  ;;  %v7783_v1 = vunpack.c.h.b16 %v3750_v23 }
 0x4d3   : > { %v3667_v5 = vpop.f32.mrf.mxu2  ;;  %v3716_v20 = vpop.f32.mrf.mxu3  ;;  %4742 = vmatpush.bf16.msrb.mxu0 %v9906_v54  ;;  %v10278_v54 = vor.u32 %v11280_v38, %v10277_v2 }
 0x4d4   : > { %v3668_v9 = vadd.f32 %v3667_v5, %v3619_v57  ;;  %v3572_v16 = vpop.f32.mrf.mxu0  ;;  %4790 = vmatpush.bf16.msrb.mxu1 %v10050_v6 }
 0x4d5   : > { %v3573_v3 = vadd.f32 %v3572_v16, %v13238_v53  ;;  %4889 = vmatpush.bf16.msrb.mxu3 %v10290_v37  ;;  %5029 = vmatpush.bf16.msra.mxu2 %v10278_v54 }
 0x4d6   : > { %v3717_v36 = vadd.f32 %v3716_v20, %v3668_v9  ;;  %4577 = vmatmul.bf16.gmra.mxu0 %v12556_v52 }
 0x4d7   : > { %v3621_v11 = vpop.f32.mrf.mxu1 }
 0x4d8   : > { %v3752_v31 = vpack.c.bf16 %v3717_v36, %v13218_v0  ;;  %4675 = vmatmul.bf16.gmra.mxu2 %v12560_v58  ;;  %v3622_v57 = vadd.f32 %v3621_v11, %v3573_v3  ;;  %4724 = vmatmul.bf16.gmra.mxu3 %v12562_v60 }
 0x4d9   : > { %4791 = vmatpush.bf16.msrb.mxu1 %v10034_v32 }
 0x4da   : > { %v6962_v35 = vunpack.c.l.b16 %v3752_v31  ;;  %v7784_v34 = vunpack.c.h.b16 %v3752_v31  ;;  %4626 = vmatmul.bf16.gmra.mxu1 %v12564_v4 }
 0x4db   : > { %v3670_v5 = vpop.f32.mrf.mxu2  ;;  %v3719_v20 = vpop.f32.mrf.mxu3 }
 0x4dc   : > { %v3671_v63 = vadd.f32 %v3670_v5, %v3622_v57  ;;  %v3574_v0 = vpop.f32.mrf.mxu0  ;;  %v13319_v9 = vpack.c.b16 %v6962_v35, %v6961_v61  ;;  %v13321_v16 = vpack.c.b16 %v7784_v34, %v7783_v1  ;;  %v10261_v1 = vld [vmem:[#allocation8 + $0x2c8] sm:$0xf] }
 0x4dd   : > { %v3575_v6 = vadd.f32 %v3574_v0, %v13238_v53 }
 0x4de   : > { %15000 = vst [vmem:[#allocation84_spill] sm:$0xff] %v13319_v9  ;;  %v3720_v23 = vadd.f32 %v3719_v20, %v3671_v63 }
 0x4df   : > { %15001 = vst [vmem:[#allocation94_spill] sm:$0xff] %v13321_v16  ;;  %v3623_v12 = vpop.f32.mrf.mxu1  ;;  %v9989_v16 = vld [vmem:[#allocation8 + $0xa8] sm:$0xf] }
 0x4e0   : > { %v3754_v18 = vpack.c.bf16 %v3720_v23, %v13225_v17  ;;  %v3624_v3 = vadd.f32 %v3623_v12, %v3575_v6  ;;  %v11276_v17 = vld [vmem:[#allocation8 + $0x2d4] sm:$0xf0] }
 0x4e1   : > { %v10262_v35 = vor.u32 %v11276_v17, %v10261_v1 }
 0x4e2   : > { %v6963_v34 = vunpack.c.l.b16 %v3754_v18  ;;  %v7785_v2 = vunpack.c.h.b16 %v3754_v18 }
 0x4e3   : > { %v3672_v37 = vpop.f32.mrf.mxu2  ;;  %v3721_v36 = vpop.f32.mrf.mxu3  ;;  %5030 = vmatpush.bf16.msra.mxu2 %v10262_v35  ;;  %v11272_v35 = vld [vmem:[#allocation8 + $0x2b4] sm:$0xf0] }
 0x4e4   : > { %v3673_v7 = vadd.f32 %v3672_v37, %v3624_v3  ;;  %v3577_v8 = vpop.f32.mrf.mxu0  ;;  %v13336_v3 = vld [vmem:[#allocation14] sm:$0xf] }
 0x4e5   : > { %v3578_v11 = vadd.f32 %v3577_v8, %v13238_v53 }
 0x4e6   : > { %v3722_v32 = vadd.f32 %v3721_v36, %v3673_v7  ;;  %4582 = vmatmul.bf16.gmra.mxu0 %v12576_v21  ;;  %v13340_v7 = vperm.slane %v13336_v3, 0 }
 0x4e7   : > { %v3626_v31 = vpop.f32.mrf.mxu1 }
 0x4e8   : > { %v3756_v57 = vpack.c.bf16 %v3722_v32, %v13228_v51  ;;  %4680 = vmatmul.bf16.gmra.mxu2 %v12580_v24  ;;  %v3627_v61 = vadd.f32 %v3626_v31, %v3578_v11  ;;  %4729 = vmatmul.bf16.gmra.mxu3 %v12582_v26 }
 0x4ea   : > { %v6964_v38 = vunpack.c.l.b16 %v3756_v57  ;;  %v7786_v5 = vunpack.c.h.b16 %v3756_v57  ;;  %4631 = vmatmul.bf16.gmra.mxu1 %v12584_v27 }
 0x4eb   : > { %v3675_v20 = vpop.f32.mrf.mxu2  ;;  %v3724_v54 = vpop.f32.mrf.mxu3 }
 0x4ec   : > { %v3676_v63 = vadd.f32 %v3675_v20, %v3627_v61  ;;  %v3579_v0 = vpop.f32.mrf.mxu0  ;;  %v13331_v51 = vpack.c.b16 %v6964_v38, %v6963_v34  ;;  %v13333_v6 = vpack.c.b16 %v7786_v5, %v7785_v2 }
 0x4ed   : > { %v3580_v23 = vadd.f32 %v3579_v0, %v13238_v53 }
 0x4ee   : > { %15002 = vst [vmem:[#allocation95_spill] sm:$0xff] %v13331_v51  ;;  %v3725_v12 = vadd.f32 %v3724_v54, %v3676_v63 }
 0x4ef   : > { %15003 = vst [vmem:[#allocation96_spill] sm:$0xff] %v13333_v6  ;;  %v3628_v37 = vpop.f32.mrf.mxu1 }
 0x4f0   : > { %v3758_v18 = vpack.c.bf16 %v3725_v12, %v13235_v43  ;;  %v3629_v36 = vadd.f32 %v3628_v37, %v3580_v23  ;;  %v10245_v43 = vld [vmem:[#allocation8 + $0x2a8] sm:$0xf] }
 0x4f1   : > { %v10246_v34 = vor.u32 %v11272_v35, %v10245_v43  ;;  %v15006_v43 = vld [vmem:[#allocation24_spill] sm:$0xff]  ;;  %v10229_v35 = vld [vmem:[#allocation8 + $0x288] sm:$0xf] }
 0x4f2   : > { %v6965_v2 = vunpack.c.l.b16 %v3758_v18  ;;  %v7787_v38 = vunpack.c.h.b16 %v3758_v18 }
 0x4f3   : > { %v3677_v8 = vpop.f32.mrf.mxu2  ;;  %v3726_v11 = vpop.f32.mrf.mxu3  ;;  %5031 = vmatpush.bf16.msra.mxu2 %v10246_v34  ;;  %v11268_v34 = vld [vmem:[#allocation8 + $0x294] sm:$0xf0] }
 0x4f4   : > { %v3678_v32 = vadd.f32 %v3677_v8, %v3629_v36  ;;  %v4548_v31 = vpop.f32.mrf.mxu0 }
 0x4f5   : > { %v4549_v57 = vadd.f32 %v4548_v31, %v13340_v7 }
 0x4f6   : > { %v3727_v61 = vadd.f32 %v3726_v11, %v3678_v32  ;;  %4743 = vmatmul.bf16.vlgmr.msrb.gmra.mxu0 %v12437_v41 }
 0x4f7   : > { %v4597_v53 = vpop.f32.mrf.mxu1 }
 0x4f8   : > { %v3760_v1 = vpack.c.bf16 %v3727_v61, %v13241_v56  ;;  %4841 = vmatmul.bf16.vlgmr.msrb.gmra.mxu2 %v12440_v46  ;;  %v4598_v17 = vadd.f32 %v4597_v53, %v4549_v57  ;;  %4890 = vmatmul.bf16.vlgmr.msrb.gmra.mxu3 %v12442_v47 }
 0x4fa   : > { %v6966_v5 = vunpack.c.l.b16 %v3760_v1  ;;  %v7788_v20 = vunpack.c.h.b16 %v3760_v1  ;;  %4792 = vmatmul.bf16.vlgmr.msrb.gmra.mxu1 %v12444_v48 }
 0x4fb   : > { %v4646_v54 = vpop.f32.mrf.mxu2  ;;  %v4695_v63 = vpop.f32.mrf.mxu3 }
 0x4fc   : > { %v4647_v0 = vadd.f32 %v4646_v54, %v4598_v17  ;;  %v4550_v23 = vpop.f32.mrf.mxu0  ;;  %v13348_v56 = vpack.c.b16 %v6966_v5, %v6965_v2  ;;  %v13350_v12 = vpack.c.b16 %v7788_v20, %v7787_v38  ;;  %v10230_v2 = vor.u32 %v11268_v34, %v10229_v35  ;;  %v15007_v38 = vld [vmem:[#allocation25_spill] sm:$0xff]  ;;  %v10213_v35 = vld [vmem:[#allocation8 + $0x268] sm:$0xf] }
 0x4fd   : > { %v4551_v37 = vadd.f32 %v4550_v23, %v13340_v7  ;;  %v11264_v34 = vld [vmem:[#allocation8 + $0x274] sm:$0xf0] }
 0x4fe   : > { %15004 = vst [vmem:[#allocation97_spill] sm:$0xff] %v13348_v56  ;;  %v13353_v36 = vadd.f32 %v4695_v63, %v4647_v0  ;;  %5032 = vmatpush.bf16.msra.mxu2 %v10230_v2  ;;  %v10214_v2 = vor.u32 %v11264_v34, %v10213_v35  ;;  %v10263_v56 = vld [vmem:[#allocation8 + $0x2d8] sm:$0xf0] }
 0x4ff   : > { %15005 = vst [vmem:[#allocation98_spill] sm:$0xff] %v13350_v12  ;;  %v4599_v8 = vpop.f32.mrf.mxu1 }
 0x500   : > { %v4600_v11 = vadd.f32 %v4599_v8, %v4551_v37 }
 0x502   : > { %5033 = vmatpush.bf16.msra.mxu2 %v10214_v2  ;;  %v11208_v2 = vld [vmem:[#allocation8 + $0xb4] sm:$0xf0] }
 0x503   : > { %v4648_v18 = vpop.f32.mrf.mxu2  ;;  %v4697_v32 = vpop.f32.mrf.mxu3 }
 0x504   : > { %v4649_v31 = vadd.f32 %v4648_v18, %v4600_v11  ;;  %v4553_v57 = vpop.f32.mrf.mxu0 }
 0x505   : > { %v4554_v61 = vadd.f32 %v4553_v57, %v13340_v7 }
 0x506   : > { %v13356_v53 = vadd.f32 %v4697_v32, %v4649_v31  ;;  %4748 = vmatmul.bf16.gmra.mxu0 %v12456_v59 }
 0x507   : > { %v4602_v1 = vpop.f32.mrf.mxu1 }
 0x508   : > { %4846 = vmatmul.bf16.gmra.mxu2 %v12460_v62  ;;  %v4603_v17 = vadd.f32 %v4602_v1, %v4554_v61  ;;  %4895 = vmatmul.bf16.gmra.mxu3 %v15006_v43 }
 0x50a   : > { %4797 = vmatmul.bf16.gmra.mxu1 %v15007_v38 }
 0x50b   : > { %v4651_v5 = vpop.f32.mrf.mxu2  ;;  %v4700_v20 = vpop.f32.mrf.mxu3 }
 0x50c   : > { %v4652_v54 = vadd.f32 %v4651_v5, %v4603_v17  ;;  %v4555_v63 = vpop.f32.mrf.mxu0 }
 0x50d   : > { %v4556_v0 = vadd.f32 %v4555_v63, %v13340_v7  ;;  %v11216_v63 = vld [vmem:[#allocation8 + $0xf4] sm:$0xf0] }
 0x50e   : > { %v13363_v23 = vadd.f32 %v4700_v20, %v4652_v54  ;;  %v10021_v54 = vld [vmem:[#allocation8 + $0xe8] sm:$0xf] }
 0x50f   : > { %v4604_v37 = vpop.f32.mrf.mxu1 }
 0x510   : > { %v4605_v8 = vadd.f32 %v4604_v37, %v4556_v0 }
 0x513   : > { %v4653_v11 = vpop.f32.mrf.mxu2  ;;  %v4702_v18 = vpop.f32.mrf.mxu3 }
 0x514   : > { %v4654_v32 = vadd.f32 %v4653_v11, %v4605_v8  ;;  %v4558_v31 = vpop.f32.mrf.mxu0  ;;  %v10022_v8 = vor.u32 %v11216_v63, %v10021_v54  ;;  %v9973_v63 = vld [vmem:[#allocation8 + $0x88] sm:$0xf] }
 0x515   : > { %v4559_v57 = vadd.f32 %v4558_v31, %v13340_v7  ;;  %v10005_v31 = vld [vmem:[#allocation8 + $0xc8] sm:$0xf] }
 0x516   : > { %v13366_v61 = vadd.f32 %v4702_v18, %v4654_v32  ;;  %4753 = vmatmul.bf16.gmra.mxu0 %v12476_v10 }
 0x517   : > { %v4607_v1 = vpop.f32.mrf.mxu1  ;;  %4931 = vmatpush.bf16.msra.mxu0 %v10022_v8  ;;  %v10197_v8 = vld [vmem:[#allocation8 + $0x248] sm:$0xf] }
 0x518   : > { %4851 = vmatmul.bf16.gmra.mxu2 %v12480_v13  ;;  %v4608_v17 = vadd.f32 %v4607_v1, %v4559_v57  ;;  %4900 = vmatmul.bf16.gmra.mxu3 %v12482_v14  ;;  %v11212_v57 = vld [vmem:[#allocation8 + $0xd4] sm:$0xf0] }
 0x519   : > { %v10006_v35 = vor.u32 %v11212_v57, %v10005_v31 }
 0x51a   : > { %4802 = vmatmul.bf16.gmra.mxu1 %v12484_v15 }
 0x51b   : > { %v4656_v5 = vpop.f32.mrf.mxu2  ;;  %v4705_v20 = vpop.f32.mrf.mxu3  ;;  %4932 = vmatpush.bf16.msra.mxu0 %v10006_v35 }
 0x51c   : > { %v4657_v0 = vadd.f32 %v4656_v5, %v4608_v17  ;;  %v4560_v37 = vpop.f32.mrf.mxu0  ;;  %v9990_v17 = vor.u32 %v11208_v2, %v9989_v16 }
 0x51d   : > { %v4561_v11 = vadd.f32 %v4560_v37, %v13340_v7 }
 0x51e   : > { %v13373_v18 = vadd.f32 %v4705_v20, %v4657_v0  ;;  %v11204_v0 = vld [vmem:[#allocation8 + $0x94] sm:$0xf0] }
 0x51f   : > { %v4609_v32 = vpop.f32.mrf.mxu1  ;;  %4933 = vmatpush.bf16.msra.mxu0 %v9990_v17 }
 0x520   : > { %v4610_v1 = vadd.f32 %v4609_v32, %v4561_v11  ;;  %v11260_v11 = vld [vmem:[#allocation8 + $0x254] sm:$0xf0]  ;;  %v9974_v32 = vor.u32 %v11204_v0, %v9973_v63 }
 0x521   : > { %v10198_v31 = vor.u32 %v11260_v11, %v10197_v8 }
 0x523   : > { %v4658_v34 = vpop.f32.mrf.mxu2  ;;  %v4707_v19 = vpop.f32.mrf.mxu3  ;;  %4934 = vmatpush.bf16.msra.mxu0 %v9974_v32  ;;  %5034 = vmatpush.bf16.msra.mxu2 %v10198_v31  ;;  %v9925_v32 = vld [vmem:[#allocation8 + $0x28] sm:$0xf]  ;;  %v11192_v31 = vld [vmem:[#allocation8 + $0x34] sm:$0xf0] }
 0x524   : > { %v4659_v6 = vadd.f32 %v4658_v34, %v4610_v1  ;;  %v4563_v12 = vpop.f32.mrf.mxu0 }
 0x525   : > { %v4564_v5 = vadd.f32 %v4563_v12, %v13340_v7  ;;  %v11200_v12 = vld [vmem:[#allocation8 + $0x74] sm:$0xf0] }
 0x526   : > { %v13376_v54 = vadd.f32 %v4707_v19, %v4659_v6  ;;  %4758 = vmatmul.bf16.gmra.mxu0 %v12496_v25  ;;  %v9957_v6 = vld [vmem:[#allocation8 + $0x68] sm:$0xf] }
 0x527   : > { %v4612_v20 = vpop.f32.mrf.mxu1  ;;  %v9958_v35 = vor.u32 %v11200_v12, %v9957_v6  ;;  %v11256_v6 = vld [vmem:[#allocation8 + $0x234] sm:$0xf0] }
 0x528   : > { %4856 = vmatmul.bf16.gmra.mxu2 %v12500_v28  ;;  %v4613_v37 = vadd.f32 %v4612_v20, %v4564_v5  ;;  %4905 = vmatmul.bf16.gmra.mxu3 %v12502_v29  ;;  %v9941_v5 = vld [vmem:[#allocation8 + $0x48] sm:$0xf]  ;;  %v11196_v20 = vld [vmem:[#allocation8 + $0x54] sm:$0xf0] }
 0x529   : > { %4935 = vmatpush.bf16.msra.mxu0 %v9958_v35  ;;  %v9942_v0 = vor.u32 %v11196_v20, %v9941_v5  ;;  %v9909_v35 = vld [vmem:[#allocation8 + $0x8] sm:$0xf] }
 0x52a   : > { %4807 = vmatmul.bf16.gmra.mxu1 %v12504_v30 }
 0x52b   : > { %v4661_v19 = vpop.f32.mrf.mxu2  ;;  %v4710_v16 = vpop.f32.mrf.mxu3 }
 0x52c   : > { %v4662_v57 = vadd.f32 %v4661_v19, %v4613_v37  ;;  %v4565_v1 = vpop.f32.mrf.mxu0  ;;  %v9926_v19 = vor.u32 %v11192_v31, %v9925_v32  ;;  %v10023_v32 = vld [vmem:[#allocation8 + $0xf8] sm:$0xf0]  ;;  %v11278_v31 = vld [vmem:[#allocation8 + $0x2ec] sm:$0xf] }
 0x52d   : > { %v4566_v34 = vadd.f32 %v4565_v1, %v13340_v7  ;;  %4936 = vmatpush.bf16.msra.mxu0 %v9942_v0  ;;  %v10405_v0 = vld [vmem:[#allocation8 + $0x3e8] sm:$0xf] }
 0x52e   : > { %v13383_v2 = vadd.f32 %v4710_v16, %v4662_v57  ;;  %v10182_v16 = vor.u32 %v11256_v6, %v10181_v42  ;;  %v10149_v6 = vld [vmem:[#allocation8 + $0x1e8] sm:$0xf] }
 0x52f   : > { %v4614_v17 = vpop.f32.mrf.mxu1 }
 0x530   : > { %v4615_v63 = vadd.f32 %v4614_v17, %v4566_v34  ;;  %5035 = vmatpush.bf16.msra.mxu2 %v10182_v16  ;;  %v11188_v34 = vld [vmem:[#allocation8 + $0x14] sm:$0xf0]  ;;  %v10165_v17 = vld [vmem:[#allocation8 + $0x208] sm:$0xf] }
 0x531   : > { %4937 = vmatpush.bf16.msra.mxu0 %v9926_v19  ;;  %v9910_v20 = vor.u32 %v11188_v34, %v9909_v35  ;;  %v10279_v19 = vld [vmem:[#allocation8 + $0x2f8] sm:$0xf0]  ;;  %v11248_v16 = vld [vmem:[#allocation8 + $0x1f4] sm:$0xf0] }
 0x532   : > { %v10150_v35 = vor.u32 %v11248_v16, %v10149_v6  ;;  %v10373_v6 = vld [vmem:[#allocation8 + $0x3a8] sm:$0xf]  ;;  %v11304_v16 = vld [vmem:[#allocation8 + $0x3b4] sm:$0xf0] }
 0x533   : > { %v4663_v8 = vpop.f32.mrf.mxu2  ;;  %v4712_v11 = vpop.f32.mrf.mxu3 }
 0x534   : > { %v4664_v33 = vadd.f32 %v4663_v8, %v4615_v63  ;;  %v4568_v37 = vpop.f32.mrf.mxu0  ;;  %v11252_v63 = vld [vmem:[#allocation8 + $0x214] sm:$0xf0]  ;;  %4980 = vmatpush.bf16.msra.mxu1 %v10150_v35  ;;  %v9991_v35 = vld [vmem:[#allocation8 + $0xb8] sm:$0xf0] }
 0x535   : > { %v4569_v12 = vadd.f32 %v4568_v37, %v13340_v7  ;;  %v11312_v8 = vld [vmem:[#allocation8 + $0x3f4] sm:$0xf0]  ;;  %v10166_v42 = vor.u32 %v11252_v63, %v10165_v17  ;;  %4938 = vmatpush.bf16.msra.mxu0 %v9910_v20  ;;  %v10389_v17 = vld [vmem:[#allocation8 + $0x3c8] sm:$0xf] }
 0x536   : > { %v13386_v57 = vadd.f32 %v4712_v11, %v4664_v33  ;;  %4763 = vmatmul.bf16.gmra.mxu0 %v12516_v40  ;;  %v10406_v33 = vor.u32 %v11312_v8, %v10405_v0  ;;  %v11214_v11 = vld [vmem:[#allocation8 + $0xec] sm:$0xf]  ;;  %v11308_v63 = vld [vmem:[#allocation8 + $0x3d4] sm:$0xf0] }
 0x537   : > { %v4617_v1 = vpop.f32.mrf.mxu1  ;;  %v10026_v37 = vor.u32 %v11214_v11, %v10023_v32  ;;  %5036 = vmatpush.bf16.msra.mxu2 %v10166_v42  ;;  %v11210_v0 = vld [vmem:[#allocation8 + $0xcc] sm:$0xf]  ;;  %v10390_v20 = vor.u32 %v11308_v63, %v10389_v17  ;;  %v10007_v11 = vld [vmem:[#allocation8 + $0xd8] sm:$0xf0] }
 0x538   : > { %4861 = vmatmul.bf16.gmra.mxu2 %v12520_v44  ;;  %v4618_v5 = vadd.f32 %v4617_v1, %v4569_v12  ;;  %4910 = vmatmul.bf16.gmra.mxu3 %v12522_v45  ;;  %v10282_v1 = vor.u32 %v11278_v31, %v10279_v19  ;;  %v11274_v32 = vld [vmem:[#allocation8 + $0x2cc] sm:$0xf]  ;;  %v10010_v42 = vor.u32 %v11210_v0, %v10007_v11  ;;  %v10133_v31 = vld [vmem:[#allocation8 + $0x1c8] sm:$0xf]  ;;  %v11244_v19 = vld [vmem:[#allocation8 + $0x1d4] sm:$0xf0] }
 0x539   : > { %5078 = vmatpush.bf16.msra.mxu3 %v10406_v33  ;;  %5127 = vmatpush.bf16.msrb.mxu0 %v10026_v37  ;;  %v10266_v33 = vor.u32 %v11274_v32, %v10263_v56  ;;  %v11270_v17 = vld [vmem:[#allocation8 + $0x2ac] sm:$0xf]  ;;  %v10247_v63 = vld [vmem:[#allocation8 + $0x2b8] sm:$0xf0]  ;;  %v10117_v0 = vld [vmem:[#allocation8 + $0x1a8] sm:$0xf] }
 0x53a   : > { %4812 = vmatmul.bf16.gmra.mxu1 %v12524_v49  ;;  %v11240_v56 = vld [vmem:[#allocation8 + $0x1b4] sm:$0xf0] }
 0x53b   : > { %v4666_v9 = vpop.f32.mrf.mxu2  ;;  %v4715_v12 = vpop.f32.mrf.mxu3  ;;  %5225 = vmatpush.bf16.msrb.mxu2 %v10282_v1  ;;  %v10374_v1 = vor.u32 %v11304_v16, %v10373_v6  ;;  %v9975_v6 = vld [vmem:[#allocation8 + $0x98] sm:$0xf0]  ;;  %v11266_v16 = vld [vmem:[#allocation8 + $0x28c] sm:$0xf] }
 0x53c   : > { %v4667_v34 = vadd.f32 %v4666_v9, %v4618_v5  ;;  %v4570_v51 = vpop.f32.mrf.mxu0  ;;  %v10134_v5 = vor.u32 %v11244_v19, %v10133_v31  ;;  %v11300_v19 = vld [vmem:[#allocation8 + $0x394] sm:$0xf0] }
 0x53d   : > { %v4571_v8 = vadd.f32 %v4570_v51, %v13340_v7  ;;  %5079 = vmatpush.bf16.msra.mxu3 %v10390_v20  ;;  %5128 = vmatpush.bf16.msrb.mxu0 %v10010_v42  ;;  %v11206_v51 = vld [vmem:[#allocation8 + $0xac] sm:$0xf]  ;;  %v10118_v20 = vor.u32 %v11240_v56, %v10117_v0  ;;  %v10357_v42 = vld [vmem:[#allocation8 + $0x388] sm:$0xf]  ;;  %v11236_v0 = vld [vmem:[#allocation8 + $0x194] sm:$0xf0] }
 0x53e   : > { %v13393_v49 = vadd.f32 %v4715_v12, %v4667_v34  ;;  %4981 = vmatpush.bf16.msra.mxu1 %v10134_v5  ;;  %v9994_v12 = vor.u32 %v11206_v51, %v9991_v35  ;;  %v10250_v34 = vor.u32 %v11270_v17, %v10247_v63  ;;  %v10358_v5 = vor.u32 %v11300_v19, %v10357_v42  ;;  %v10231_v51 = vld [vmem:[#allocation8 + $0x298] sm:$0xf0] }
 0x53f   : > { %v4619_v9 = vpop.f32.mrf.mxu1  ;;  %5226 = vmatpush.bf16.msrb.mxu2 %v10266_v33  ;;  %v10234_v63 = vor.u32 %v11266_v16, %v10231_v51  ;;  %v10215_v42 = vld [vmem:[#allocation8 + $0x278] sm:$0xf0] }
 0x540   : > { %v4620_v37 = vadd.f32 %v4619_v9, %v4571_v8  ;;  %v11202_v9 = vld [vmem:[#allocation8 + $0x8c] sm:$0xf] }
 0x541   : > { %5080 = vmatpush.bf16.msra.mxu3 %v10374_v1  ;;  %5129 = vmatpush.bf16.msrb.mxu0 %v9994_v12  ;;  %v9978_v17 = vor.u32 %v11202_v9, %v9975_v6  ;;  %v10101_v1 = vld [vmem:[#allocation8 + $0x188] sm:$0xf]  ;;  %v11232_v6 = vld [vmem:[#allocation8 + $0x174] sm:$0xf0] }
 0x542   : > { %4982 = vmatpush.bf16.msra.mxu1 %v10118_v20  ;;  %v10102_v12 = vor.u32 %v11236_v0, %v10101_v1  ;;  %v11198_v20 = vld [vmem:[#allocation8 + $0x6c] sm:$0xf] }
 0x543   : > { %v4668_v11 = vpop.f32.mrf.mxu2  ;;  %v4717_v32 = vpop.f32.mrf.mxu3  ;;  %5227 = vmatpush.bf16.msrb.mxu2 %v10250_v34  ;;  %v10341_v34 = vld [vmem:[#allocation8 + $0x368] sm:$0xf] }
 0x544   : > { %v4669_v31 = vadd.f32 %v4668_v11, %v4620_v37  ;;  %v4573_v8 = vpop.f32.mrf.mxu0  ;;  %v11296_v11 = vld [vmem:[#allocation8 + $0x374] sm:$0xf0] }
 0x545   : > { %v4574_v33 = vadd.f32 %v4573_v8, %v13340_v7  ;;  %5081 = vmatpush.bf16.msra.mxu3 %v10358_v5  ;;  %5130 = vmatpush.bf16.msrb.mxu0 %v9978_v17  ;;  %v11262_v8 = vld [vmem:[#allocation8 + $0x26c] sm:$0xf]  ;;  %v10085_v5 = vld [vmem:[#allocation8 + $0x168] sm:$0xf]  ;;  %v11292_v17 = vld [vmem:[#allocation8 + $0x354] sm:$0xf0] }
 0x546   : > { %v13396_v35 = vadd.f32 %v4717_v32, %v4669_v31  ;;  %4768 = vmatmul.bf16.gmra.mxu0 %v12536_v39  ;;  %v10342_v32 = vor.u32 %v11296_v11, %v10341_v34  ;;  %v9959_v31 = vld [vmem:[#allocation8 + $0x78] sm:$0xf0]  ;;  %v10218_v9 = vor.u32 %v11262_v8, %v10215_v42  ;;  %4983 = vmatpush.bf16.msra.mxu1 %v10102_v12  ;;  %v10069_v12 = vld [vmem:[#allocation8 + $0x148] sm:$0xf] }
 0x547   : > { %v4622_v37 = vpop.f32.mrf.mxu1  ;;  %5228 = vmatpush.bf16.msrb.mxu2 %v10234_v63  ;;  %v9962_v19 = vor.u32 %v11198_v20, %v9959_v31  ;;  %v11194_v63 = vld [vmem:[#allocation8 + $0x4c] sm:$0xf]  ;;  %v10199_v31 = vld [vmem:[#allocation8 + $0x258] sm:$0xf0] }
 0x548   : > { %4866 = vmatmul.bf16.gmra.mxu2 %v12540_v50  ;;  %v4623_v56 = vadd.f32 %v4622_v37, %v4574_v33  ;;  %4915 = vmatmul.bf16.gmra.mxu3 %v14995_v22  ;;  %v10086_v33 = vor.u32 %v11232_v6, %v10085_v5  ;;  %v10325_v37 = vld [vmem:[#allocation8 + $0x348] sm:$0xf]  ;;  %v11258_v20 = vld [vmem:[#allocation8 + $0x24c] sm:$0xf]  ;;  %v11288_v50 = vld [vmem:[#allocation8 + $0x334] sm:$0xf0] }
 0x549   : > { %5082 = vmatpush.bf16.msra.mxu3 %v10342_v32  ;;  %5131 = vmatpush.bf16.msrb.mxu0 %v9962_v19  ;;  %v10326_v11 = vor.u32 %v11292_v17, %v10325_v37  ;;  %v10202_v22 = vor.u32 %v11258_v20, %v10199_v31  ;;  %v11228_v32 = vld [vmem:[#allocation8 + $0x154] sm:$0xf0]  ;;  %v11254_v37 = vld [vmem:[#allocation8 + $0x22c] sm:$0xf]  ;;  %v10183_v17 = vld [vmem:[#allocation8 + $0x238] sm:$0xf0] }
 0x54a   : > { %4817 = vmatmul.bf16.gmra.mxu1 %v14996_v55  ;;  %v9943_v55 = vld [vmem:[#allocation8 + $0x58] sm:$0xf0] }
 0x54b   : > { %v4671_v16 = vpop.f32.mrf.mxu2  ;;  %v4720_v51 = vpop.f32.mrf.mxu3  ;;  %5229 = vmatpush.bf16.msrb.mxu2 %v10218_v9  ;;  %v9946_v42 = vor.u32 %v11194_v63, %v9943_v55  ;;  %4984 = vmatpush.bf16.msra.mxu1 %v10086_v33  ;;  %v9927_v9 = vld [vmem:[#allocation8 + $0x38] sm:$0xf0]  ;;  %v10053_v55 = vld [vmem:[#allocation8 + $0x128] sm:$0xf]  ;;  %v11224_v63 = vld [vmem:[#allocation8 + $0x134] sm:$0xf0] }
 0x54c   : > { %v4672_v1 = vadd.f32 %v4671_v16, %v4623_v56  ;;  %v4575_v0 = vpop.f32.mrf.mxu0  ;;  %v10070_v56 = vor.u32 %v11228_v32, %v10069_v12  ;;  %v10309_v16 = vld [vmem:[#allocation8 + $0x328] sm:$0xf]  ;;  %v10054_v33 = vor.u32 %v11224_v63, %v10053_v55  ;;  %v11284_v32 = vld [vmem:[#allocation8 + $0x314] sm:$0xf0] }
 0x54d   : > { %v4576_v34 = vadd.f32 %v4575_v0, %v13340_v7  ;;  %5083 = vmatpush.bf16.msra.mxu3 %v10326_v11  ;;  %v11190_v0 = vld [vmem:[#allocation8 + $0x2c] sm:$0xf]  ;;  %5132 = vmatpush.bf16.msrb.mxu0 %v9946_v42  ;;  %v10310_v19 = vor.u32 %v11288_v50, %v10309_v16  ;;  %v10293_v12 = vld [vmem:[#allocation8 + $0x308] sm:$0xf]  ;;  %v9911_v42 = vld [vmem:[#allocation8 + $0x18] sm:$0xf0] }
 0x54e   : > { %v13403_v8 = vadd.f32 %v4720_v51, %v4672_v1  ;;  %v9930_v51 = vor.u32 %v11190_v0, %v9927_v9  ;;  %v10186_v1 = vor.u32 %v11254_v37, %v10183_v17  ;;  %v10294_v50 = vor.u32 %v11284_v32, %v10293_v12  ;;  %v11250_v16 = vld [vmem:[#allocation8 + $0x20c] sm:$0xf]  ;;  %v10167_v0 = vld [vmem:[#allocation8 + $0x218] sm:$0xf0] }
 0x54f   : > { %v4624_v5 = vpop.f32.mrf.mxu1  ;;  %5230 = vmatpush.bf16.msrb.mxu2 %v10202_v22  ;;  %4985 = vmatpush.bf16.msra.mxu1 %v10070_v56  ;;  %v10170_v17 = vor.u32 %v11250_v16, %v10167_v0 }
 0x550   : > { %v4625_v6 = vadd.f32 %v4624_v5, %v4576_v34  ;;  %v11186_v5 = vld [vmem:[#allocation8 + $0xc] sm:$0xf] }
 0x551   : > { %5084 = vmatpush.bf16.msra.mxu3 %v10310_v19  ;;  %5133 = vmatpush.bf16.msrb.mxu0 %v9930_v51  ;;  %v9914_v37 = vor.u32 %v11186_v5, %v9911_v42  ;;  %v11220_v19 = vld [vmem:[#allocation8 + $0x114] sm:$0xf0] }
 0x553   : > { %v4673_v20 = vpop.f32.mrf.mxu2  ;;  %v4722_v31 = vpop.f32.mrf.mxu3  ;;  %5231 = vmatpush.bf16.msrb.mxu2 %v10186_v1  ;;  %4986 = vmatpush.bf16.msra.mxu1 %v10054_v33 }
 0x554   : > { %v4674_v11 = vadd.f32 %v4673_v20, %v4625_v6  ;;  %v4578_v34 = vpop.f32.mrf.mxu0  ;;  %v10037_v6 = vld [vmem:[#allocation8 + $0x108] sm:$0xf] }
 0x555   : > { %v4579_v22 = vadd.f32 %v4578_v34, %v13340_v7  ;;  %v10038_v51 = vor.u32 %v11220_v19, %v10037_v6  ;;  %5085 = vmatpush.bf16.msra.mxu3 %v10294_v50  ;;  %5134 = vmatpush.bf16.msrb.mxu0 %v9914_v37 }
 0x556   : > { %v13406_v9 = vadd.f32 %v4722_v31, %v4674_v11  ;;  %4773 = vmatmul.bf16.gmra.mxu0 %v12556_v52 }
 0x557   : > { %v4627_v56 = vpop.f32.mrf.mxu1  ;;  %5232 = vmatpush.bf16.msrb.mxu2 %v10170_v17  ;;  %4987 = vmatpush.bf16.msra.mxu1 %v10038_v51 }
 0x558   : > { %4871 = vmatmul.bf16.gmra.mxu2 %v12560_v58  ;;  %v4628_v55 = vadd.f32 %v4627_v56, %v4579_v22  ;;  %4920 = vmatmul.bf16.gmra.mxu3 %v12562_v60 }
 0x55a   : > { %4822 = vmatmul.bf16.gmra.mxu1 %v12564_v4 }
 0x55b   : > { %v4676_v1 = vpop.f32.mrf.mxu2  ;;  %v4725_v63 = vpop.f32.mrf.mxu3 }
 0x55c   : > { %v4677_v20 = vadd.f32 %v4676_v1, %v4628_v55  ;;  %v4580_v31 = vpop.f32.mrf.mxu0 }
 0x55d   : > { %v4581_v33 = vadd.f32 %v4580_v31, %v13340_v7 }
 0x55e   : > { %v13413_v11 = vadd.f32 %v4725_v63, %v4677_v20  ;;  %v13426_v20 = vperm.slane %v13336_v3, 1 }
 0x55f   : > { %v4629_v34 = vpop.f32.mrf.mxu1 }
 0x560   : > { %v4630_v12 = vadd.f32 %v4629_v34, %v4581_v33 }
 0x563   : > { %v4678_v32 = vpop.f32.mrf.mxu2  ;;  %v4727_v5 = vpop.f32.mrf.mxu3 }
 0x564   : > { %v4679_v22 = vadd.f32 %v4678_v32, %v4630_v12  ;;  %v4583_v42 = vpop.f32.mrf.mxu0 }
 0x565   : > { %v4584_v50 = vadd.f32 %v4583_v42, %v13340_v7 }
 0x566   : > { %v13416_v16 = vadd.f32 %v4727_v5, %v4679_v22  ;;  %4778 = vmatmul.bf16.gmra.mxu0 %v12576_v21 }
 0x567   : > { %v4632_v0 = vpop.f32.mrf.mxu1 }
 0x568   : > { %4876 = vmatmul.bf16.gmra.mxu2 %v12580_v24  ;;  %v4633_v37 = vadd.f32 %v4632_v0, %v4584_v50  ;;  %4925 = vmatmul.bf16.gmra.mxu3 %v12582_v26  ;;  %v15009_v50 = vld [vmem:[#allocation82_spill] sm:$0xff] }
 0x56a   : > { %4827 = vmatmul.bf16.gmra.mxu1 %v12584_v27 }
 0x56b   : > { %v4681_v17 = vpop.f32.mrf.mxu2  ;;  %v4730_v56 = vpop.f32.mrf.mxu3 }
 0x56c   : > { %v4682_v6 = vadd.f32 %v4681_v17, %v4633_v37  ;;  %v4585_v19 = vpop.f32.mrf.mxu0 }
 0x56d   : > { %v4586_v55 = vadd.f32 %v4585_v19, %v13340_v7  ;;  %v15008_v7 = vld [vmem:[#allocation81_spill] sm:$0xff] }
 0x56e   : > { %v13423_v51 = vadd.f32 %v4730_v56, %v4682_v6 }
 0x56f   : > { %v4634_v1 = vpop.f32.mrf.mxu1 }
 0x570   : > { %v4635_v63 = vadd.f32 %v4634_v1, %v4586_v55  ;;  %v15010_v1 = vld [vmem:[#allocation79_spill] sm:$0xff] }
 0x573   : > { %v4683_v31 = vpop.f32.mrf.mxu2  ;;  %v4732_v33 = vpop.f32.mrf.mxu3 }
 0x574   : > { %v4684_v34 = vadd.f32 %v4683_v31, %v4635_v63  ;;  %v4744_v12 = vpop.f32.mrf.mxu0  ;;  %v15011_v31 = vld [vmem:[#allocation80_spill] sm:$0xff] }
 0x575   : > { %v4745_v32 = vadd.f32 %v4744_v12, %v13426_v20 }
 0x576   : > { %v13429_v5 = vadd.f32 %v4732_v33, %v4684_v34  ;;  %4939 = vmatmul.bf16.vlgmr.msra.gmra.mxu0 %v12437_v41 }
 0x577   : > { %v4793_v22 = vpop.f32.mrf.mxu1  ;;  %5451 = vmatpush.bf16.xpose.msra.mxu0 %v15008_v7 }
 0x578   : > { %5037 = vmatmul.bf16.vlgmr.msra.gmra.mxu2 %v12440_v46  ;;  %v4794_v42 = vadd.f32 %v4793_v22, %v4745_v32  ;;  %5086 = vmatmul.bf16.vlgmr.msra.gmra.mxu3 %v12442_v47 }
 0x579   : > { %5853 = vmatpush.bf16.xpose.msra.mxu2 %v15009_v50 }
 0x57a   : > { %4988 = vmatmul.bf16.vlgmr.msra.gmra.mxu1 %v12444_v48 }
 0x57b   : > { %v4842_v3 = vpop.f32.mrf.mxu2  ;;  %v4891_v0 = vpop.f32.mrf.mxu3 }
 0x57c   : > { %v4843_v37 = vadd.f32 %v4842_v3, %v4794_v42  ;;  %v4746_v17 = vpop.f32.mrf.mxu0 }
 0x57d   : > { %v4747_v56 = vadd.f32 %v4746_v17, %v13426_v20 }
 0x57e   : > { %v4892_v6 = vadd.f32 %v4891_v0, %v4843_v37  ;;  %v15013_v0 = vld [vmem:[#allocation78_spill] sm:$0xff] }
 0x57f   : > { %v4795_v19 = vpop.f32.mrf.mxu1  ;;  %5452 = vmatpush.bf16.xpose.msra.mxu0 %v15010_v1 }
 0x580   : > { %v5323_v55 = vpack.c.bf16 %v4892_v6, %v13353_v36  ;;  %v4796_v63 = vadd.f32 %v4795_v19, %v4747_v56  ;;  %v15012_v36 = vld [vmem:[#allocation68_spill] sm:$0xff] }
 0x581   : > { %5854 = vmatpush.bf16.xpose.msra.mxu2 %v15011_v31 }
 0x582   : > { %v5636_v37 = vunpack.c.l.b16 %v5323_v55  ;;  %v6022_v17 = vunpack.c.h.b16 %v5323_v55 }
 0x583   : > { %v4844_v33 = vpop.f32.mrf.mxu2  ;;  %v4893_v34 = vpop.f32.mrf.mxu3 }
 0x584   : > { %v4845_v12 = vadd.f32 %v4844_v33, %v4796_v63  ;;  %v4749_v32 = vpop.f32.mrf.mxu0 }
 0x585   : > { %v4750_v22 = vadd.f32 %v4749_v32, %v13426_v20 }
 0x586   : > { %v4894_v7 = vadd.f32 %v4893_v34, %v4845_v12  ;;  %4944 = vmatmul.bf16.gmra.mxu0 %v12456_v59 }
 0x587   : > { %v4798_v42 = vpop.f32.mrf.mxu1  ;;  %5453 = vmatpush.bf16.xpose.msra.mxu0 %v15012_v36 }
 0x588   : > { %v5325_v50 = vpack.c.bf16 %v4894_v7, %v13356_v53  ;;  %5042 = vmatmul.bf16.gmra.mxu2 %v12460_v62  ;;  %v4799_v3 = vadd.f32 %v4798_v42, %v4750_v22  ;;  %5091 = vmatmul.bf16.gmra.mxu3 %v15006_v43  ;;  %v15014_v7 = vld [vmem:[#allocation67_spill] sm:$0xff]  ;;  %v15015_v42 = vld [vmem:[#allocation77_spill] sm:$0xff] }
 0x589   : > { %5855 = vmatpush.bf16.xpose.msra.mxu2 %v15013_v0 }
 0x58a   : > { %v5637_v56 = vunpack.c.l.b16 %v5325_v50  ;;  %v6023_v6 = vunpack.c.h.b16 %v5325_v50  ;;  %4993 = vmatmul.bf16.gmra.mxu1 %v15007_v38 }
 0x58b   : > { %v4847_v19 = vpop.f32.mrf.mxu2  ;;  %v4896_v1 = vpop.f32.mrf.mxu3 }
 0x58c   : > { %v4848_v63 = vadd.f32 %v4847_v19, %v4799_v3  ;;  %v4751_v31 = vpop.f32.mrf.mxu0  ;;  %v13449_v53 = vpack.c.b16 %v5637_v56, %v5636_v37  ;;  %v13451_v33 = vpack.c.b16 %v6023_v6, %v6022_v17 }
 0x58d   : > { %v4752_v34 = vadd.f32 %v4751_v31, %v13426_v20 }
 0x58e   : > { %v4897_v12 = vadd.f32 %v4896_v1, %v4848_v63  ;;  %v15017_v1 = vld [vmem:[#allocation76_spill] sm:$0xff] }
 0x58f   : > { %v4800_v32 = vpop.f32.mrf.mxu1  ;;  %5454 = vmatpush.bf16.xpose.msra.mxu0 %v15014_v7 }
 0x590   : > { %v5327_v22 = vpack.c.bf16 %v4897_v12, %v13363_v23  ;;  %v4801_v55 = vadd.f32 %v4800_v32, %v4752_v34  ;;  %v15016_v23 = vld [vmem:[#allocation75_spill] sm:$0xff] }
 0x591   : > { %5856 = vmatpush.bf16.xpose.msra.mxu2 %v15015_v42 }
 0x592   : > { %v5638_v63 = vunpack.c.l.b16 %v5327_v22  ;;  %v6024_v31 = vunpack.c.h.b16 %v5327_v22 }
 0x593   : > { %v4849_v50 = vpop.f32.mrf.mxu2  ;;  %v4898_v36 = vpop.f32.mrf.mxu3 }
 0x594   : > { %v4850_v0 = vadd.f32 %v4849_v50, %v4801_v55  ;;  %v4754_v3 = vpop.f32.mrf.mxu0 }
 0x595   : > { %v4755_v37 = vadd.f32 %v4754_v3, %v13426_v20 }
 0x596   : > { %v4899_v56 = vadd.f32 %v4898_v36, %v4850_v0  ;;  %4949 = vmatmul.bf16.gmra.mxu0 %v12476_v10 }
 0x597   : > { %v4803_v17 = vpop.f32.mrf.mxu1  ;;  %5455 = vmatpush.bf16.xpose.msra.mxu0 %v15016_v23 }
 0x598   : > { %v5329_v6 = vpack.c.bf16 %v4899_v56, %v13366_v61  ;;  %5047 = vmatmul.bf16.gmra.mxu2 %v12480_v13  ;;  %v4804_v19 = vadd.f32 %v4803_v17, %v4755_v37  ;;  %5096 = vmatmul.bf16.gmra.mxu3 %v12482_v14  ;;  %v15018_v56 = vld [vmem:[#allocation73_spill] sm:$0xff]  ;;  %v15019_v17 = vld [vmem:[#allocation74_spill] sm:$0xff] }
 0x599   : > { %5857 = vmatpush.bf16.xpose.msra.mxu2 %v15017_v1 }
 0x59a   : > { %v5639_v34 = vunpack.c.l.b16 %v5329_v6  ;;  %v6025_v12 = vunpack.c.h.b16 %v5329_v6  ;;  %4998 = vmatmul.bf16.gmra.mxu1 %v12484_v15 }
 0x59b   : > { %v4852_v32 = vpop.f32.mrf.mxu2  ;;  %v4901_v7 = vpop.f32.mrf.mxu3 }
 0x59c   : > { %v4853_v55 = vadd.f32 %v4852_v32, %v4804_v19  ;;  %v4756_v42 = vpop.f32.mrf.mxu0  ;;  %v13465_v61 = vpack.c.b16 %v5639_v34, %v5638_v63  ;;  %v13467_v50 = vpack.c.b16 %v6025_v12, %v6024_v31 }
 0x59d   : > { %v4757_v36 = vadd.f32 %v4756_v42, %v13426_v20 }
 0x59e   : > { %v4902_v0 = vadd.f32 %v4901_v7, %v4853_v55  ;;  %v15021_v7 = vld [vmem:[#allocation72_spill] sm:$0xff] }
 0x59f   : > { %v4805_v3 = vpop.f32.mrf.mxu1  ;;  %5456 = vmatpush.bf16.xpose.msra.mxu0 %v15018_v56 }
 0x5a0   : > { %v5331_v37 = vpack.c.bf16 %v4902_v0, %v13373_v18  ;;  %v4806_v22 = vadd.f32 %v4805_v3, %v4757_v36  ;;  %v15020_v18 = vld [vmem:[#allocation71_spill] sm:$0xff] }
 0x5a1   : > { %5858 = vmatpush.bf16.xpose.msra.mxu2 %v15019_v17 }
 0x5a2   : > { %v5640_v55 = vunpack.c.l.b16 %v5331_v37  ;;  %v6026_v42 = vunpack.c.h.b16 %v5331_v37 }
 0x5a3   : > { %v4854_v6 = vpop.f32.mrf.mxu2  ;;  %v4903_v23 = vpop.f32.mrf.mxu3 }
 0x5a4   : > { %v4855_v1 = vadd.f32 %v4854_v6, %v4806_v22  ;;  %v4759_v19 = vpop.f32.mrf.mxu0 }
 0x5a5   : > { %v4760_v63 = vadd.f32 %v4759_v19, %v13426_v20 }
 0x5a6   : > { %v4904_v34 = vadd.f32 %v4903_v23, %v4855_v1  ;;  %4954 = vmatmul.bf16.gmra.mxu0 %v12496_v25 }
 0x5a7   : > { %v4808_v31 = vpop.f32.mrf.mxu1  ;;  %5457 = vmatpush.bf16.xpose.msra.mxu0 %v15020_v18 }
 0x5a8   : > { %v5333_v12 = vpack.c.bf16 %v4904_v34, %v13376_v54  ;;  %5052 = vmatmul.bf16.gmra.mxu2 %v12500_v28  ;;  %v4809_v32 = vadd.f32 %v4808_v31, %v4760_v63  ;;  %5101 = vmatmul.bf16.gmra.mxu3 %v12502_v29  ;;  %v15022_v34 = vld [vmem:[#allocation69_spill] sm:$0xff]  ;;  %v15023_v31 = vld [vmem:[#allocation70_spill] sm:$0xff] }
 0x5a9   : > { %5859 = vmatpush.bf16.xpose.msra.mxu2 %v15021_v7 }
 0x5aa   : > { %v5641_v36 = vunpack.c.l.b16 %v5333_v12  ;;  %v6027_v0 = vunpack.c.h.b16 %v5333_v12  ;;  %5003 = vmatmul.bf16.gmra.mxu1 %v12504_v30 }
 0x5ab   : > { %v4857_v3 = vpop.f32.mrf.mxu2  ;;  %v4906_v56 = vpop.f32.mrf.mxu3 }
 0x5ac   : > { %v4858_v22 = vadd.f32 %v4857_v3, %v4809_v32  ;;  %v4761_v17 = vpop.f32.mrf.mxu0  ;;  %v13481_v54 = vpack.c.b16 %v5641_v36, %v5640_v55  ;;  %v13483_v6 = vpack.c.b16 %v6027_v0, %v6026_v42 }
 0x5ad   : > { %v4762_v23 = vadd.f32 %v4761_v17, %v13426_v20 }
 0x5ae   : > { %v4907_v1 = vadd.f32 %v4906_v56, %v4858_v22  ;;  %v11310_v56 = vld [vmem:[#allocation8 + $0x3ec] sm:$0xf]  ;;  %v10407_v22 = vld [vmem:[#allocation8 + $0x3f8] sm:$0xf0] }
 0x5af   : > { %v4810_v19 = vpop.f32.mrf.mxu1  ;;  %5458 = vmatpush.bf16.xpose.msra.mxu0 %v15022_v34  ;;  %v10410_v34 = vor.u32 %v11310_v56, %v10407_v22  ;;  %v11242_v22 = vld [vmem:[#allocation8 + $0x1cc] sm:$0xf] }
 0x5b0   : > { %v5335_v63 = vpack.c.bf16 %v4907_v1, %v13383_v2  ;;  %v4811_v37 = vadd.f32 %v4810_v19, %v4762_v23  ;;  %v15024_v19 = vld [vmem:[#allocation30_spill] sm:$0xff] }
 0x5b1   : > { %5860 = vmatpush.bf16.xpose.msra.mxu2 %v15023_v31  ;;  %5274 = vmatpush.bf16.msrb.mxu3 %v10410_v34 }
 0x5b2   : > { %v5642_v3 = vunpack.c.l.b16 %v5335_v63  ;;  %v6028_v17 = vunpack.c.h.b16 %v5335_v63  ;;  %v11306_v63 = vld [vmem:[#allocation8 + $0x3cc] sm:$0xf] }
 0x5b3   : > { %v4859_v12 = vpop.f32.mrf.mxu2  ;;  %v4908_v18 = vpop.f32.mrf.mxu3 }
 0x5b4   : > { %v4860_v7 = vadd.f32 %v4859_v12, %v4811_v37  ;;  %v4764_v32 = vpop.f32.mrf.mxu0  ;;  %v11246_v12 = vld [vmem:[#allocation8 + $0x1ec] sm:$0xf] }
 0x5b5   : > { %v4765_v55 = vadd.f32 %v4764_v32, %v13426_v20 }
 0x5b6   : > { %v4909_v36 = vadd.f32 %v4908_v18, %v4860_v7  ;;  %4959 = vmatmul.bf16.gmra.mxu0 %v12516_v40  ;;  %v10151_v18 = vld [vmem:[#allocation8 + $0x1f8] sm:$0xf0] }
 0x5b7   : > { %v4813_v42 = vpop.f32.mrf.mxu1  ;;  %v10154_v32 = vor.u32 %v11246_v12, %v10151_v18  ;;  %v11238_v12 = vld [vmem:[#allocation8 + $0x1ac] sm:$0xf]  ;;  %v10119_v18 = vld [vmem:[#allocation8 + $0x1b8] sm:$0xf0] }
 0x5b8   : > { %v5337_v0 = vpack.c.bf16 %v4909_v36, %v13386_v57  ;;  %5057 = vmatmul.bf16.gmra.mxu2 %v12520_v44  ;;  %v4814_v2 = vadd.f32 %v4813_v42, %v4765_v55  ;;  %5106 = vmatmul.bf16.gmra.mxu3 %v12522_v45  ;;  %v10391_v45 = vld [vmem:[#allocation8 + $0x3d8] sm:$0xf0] }
 0x5b9   : > { %5176 = vmatpush.bf16.msrb.mxu1 %v10154_v32  ;;  %v10135_v44 = vld [vmem:[#allocation8 + $0x1d8] sm:$0xf0] }
 0x5ba   : > { %v5643_v23 = vunpack.c.l.b16 %v5337_v0  ;;  %v6029_v1 = vunpack.c.h.b16 %v5337_v0  ;;  %5008 = vmatmul.bf16.gmra.mxu1 %v15024_v19  ;;  %v10394_v19 = vor.u32 %v11306_v63, %v10391_v45  ;;  %v10138_v34 = vor.u32 %v11242_v22, %v10135_v44  ;;  %v10359_v32 = vld [vmem:[#allocation8 + $0x398] sm:$0xf0]  ;;  %v15025_v22 = vld [vmem:[#allocation32_spill] sm:$0xff] }
 0x5bb   : > { %v4862_v37 = vpop.f32.mrf.mxu2  ;;  %v4911_v31 = vpop.f32.mrf.mxu3  ;;  %v10122_v45 = vor.u32 %v11238_v12, %v10119_v18 }
 0x5bc   : > { %v4863_v7 = vadd.f32 %v4862_v37, %v4814_v2  ;;  %v4766_v57 = vpop.f32.mrf.mxu0  ;;  %v13495_v55 = vpack.c.b16 %v5643_v23, %v5642_v3  ;;  %v13497_v36 = vpack.c.b16 %v6029_v1, %v6028_v17  ;;  %5275 = vmatpush.bf16.msrb.mxu3 %v10394_v19  ;;  %v11302_v37 = vld [vmem:[#allocation8 + $0x3ac] sm:$0xf]  ;;  %v10375_v3 = vld [vmem:[#allocation8 + $0x3b8] sm:$0xf0] }
 0x5bd   : > { %v4767_v42 = vadd.f32 %v4766_v57, %v13426_v20  ;;  %5177 = vmatpush.bf16.msrb.mxu1 %v10138_v34  ;;  %v10378_v17 = vor.u32 %v11302_v37, %v10375_v3  ;;  %v15026_v3 = vld [vmem:[#allocation33_spill] sm:$0xff] }
 0x5be   : > { %v4912_v0 = vadd.f32 %v4911_v31, %v4863_v7  ;;  %v11298_v7 = vld [vmem:[#allocation8 + $0x38c] sm:$0xf] }
 0x5bf   : > { %v4815_v56 = vpop.f32.mrf.mxu1  ;;  %v10362_v19 = vor.u32 %v11298_v7, %v10359_v32  ;;  %v10087_v32 = vld [vmem:[#allocation8 + $0x178] sm:$0xf0] }
 0x5c0   : > { %v5339_v40 = vpack.c.bf16 %v4912_v0, %v13393_v49  ;;  %v4816_v2 = vadd.f32 %v4815_v56, %v4767_v42  ;;  %5276 = vmatpush.bf16.msrb.mxu3 %v10378_v17  ;;  %v11234_v42 = vld [vmem:[#allocation8 + $0x18c] sm:$0xf]  ;;  %v10103_v0 = vld [vmem:[#allocation8 + $0x198] sm:$0xf0] }
 0x5c1   : > { %5178 = vmatpush.bf16.msrb.mxu1 %v10122_v45  ;;  %v11294_v17 = vld [vmem:[#allocation8 + $0x36c] sm:$0xf] }
 0x5c2   : > { %v5644_v34 = vunpack.c.l.b16 %v5339_v40  ;;  %v6030_v37 = vunpack.c.h.b16 %v5339_v40 }
 0x5c3   : > { %v4864_v23 = vpop.f32.mrf.mxu2  ;;  %v4913_v1 = vpop.f32.mrf.mxu3 }
 0x5c4   : > { %v4865_v57 = vadd.f32 %v4864_v23, %v4816_v2  ;;  %v4769_v31 = vpop.f32.mrf.mxu0  ;;  %5277 = vmatpush.bf16.msrb.mxu3 %v10362_v19  ;;  %v10106_v2 = vor.u32 %v11234_v42, %v10103_v0  ;;  %v10343_v23 = vld [vmem:[#allocation8 + $0x378] sm:$0xf0] }
 0x5c5   : > { %v4770_v63 = vadd.f32 %v4769_v31, %v13426_v20  ;;  %v10346_v31 = vor.u32 %v11294_v17, %v10343_v23  ;;  %v11226_v17 = vld [vmem:[#allocation8 + $0x14c] sm:$0xf]  ;;  %v10071_v23 = vld [vmem:[#allocation8 + $0x158] sm:$0xf0] }
 0x5c6   : > { %v4914_v49 = vadd.f32 %v4913_v1, %v4865_v57  ;;  %4964 = vmatmul.bf16.gmra.mxu0 %v12536_v39  ;;  %v15027_v57 = vld [vmem:[#allocation34_spill] sm:$0xff]  ;;  %5179 = vmatpush.bf16.msrb.mxu1 %v10106_v2  ;;  %v11286_v39 = vld [vmem:[#allocation8 + $0x32c] sm:$0xf] }
 0x5c7   : > { %v4818_v44 = vpop.f32.mrf.mxu1 }
 0x5c8   : > { %v5341_v56 = vpack.c.bf16 %v4914_v49, %v13396_v35  ;;  %5062 = vmatmul.bf16.gmra.mxu2 %v15025_v22  ;;  %5111 = vmatmul.bf16.gmra.mxu3 %v15026_v3  ;;  %v4819_v18 = vadd.f32 %v4818_v44, %v4770_v63  ;;  %v11230_v35 = vld [vmem:[#allocation8 + $0x16c] sm:$0xf]  ;;  %v10074_v22 = vor.u32 %v11226_v17, %v10071_v23 }
 0x5c9   : > { %5278 = vmatpush.bf16.msrb.mxu3 %v10346_v31  ;;  %v10090_v19 = vor.u32 %v11230_v35, %v10087_v32  ;;  %v11290_v3 = vld [vmem:[#allocation8 + $0x34c] sm:$0xf]  ;;  %v10311_v31 = vld [vmem:[#allocation8 + $0x338] sm:$0xf0] }
 0x5ca   : > { %v5645_v1 = vunpack.c.l.b16 %v5341_v56  ;;  %v6031_v12 = vunpack.c.h.b16 %v5341_v56  ;;  %5013 = vmatmul.bf16.gmra.mxu1 %v15027_v57  ;;  %v10327_v56 = vld [vmem:[#allocation8 + $0x358] sm:$0xf0] }
 0x5cb   : > { %v4867_v45 = vpop.f32.mrf.mxu2  ;;  %v4916_v7 = vpop.f32.mrf.mxu3  ;;  %v10330_v44 = vor.u32 %v11290_v3, %v10327_v56  ;;  %5180 = vmatpush.bf16.msrb.mxu1 %v10090_v19  ;;  %v10055_v32 = vld [vmem:[#allocation8 + $0x138] sm:$0xf0] }
 0x5cc   : > { %v4771_v49 = vpop.f32.mrf.mxu0  ;;  %v13507_v42 = vpack.c.b16 %v5645_v1, %v5644_v34  ;;  %v13509_v40 = vpack.c.b16 %v6031_v12, %v6030_v37  ;;  %v4868_v63 = vadd.f32 %v4867_v45, %v4819_v18  ;;  %v10314_v34 = vor.u32 %v11286_v39, %v10311_v31  ;;  %v11222_v12 = vld [vmem:[#allocation8 + $0x12c] sm:$0xf]  ;;  %v10295_v19 = vld [vmem:[#allocation8 + $0x318] sm:$0xf0] }
 0x5cd   : > { %v4772_v0 = vadd.f32 %v4771_v49, %v13426_v20  ;;  %5279 = vmatpush.bf16.msrb.mxu3 %v10330_v44  ;;  %v10058_v3 = vor.u32 %v11222_v12, %v10055_v32  ;;  %v11282_v45 = vld [vmem:[#allocation8 + $0x30c] sm:$0xf] }
 0x5ce   : > { %v4917_v35 = vadd.f32 %v4916_v7, %v4868_v63  ;;  %v10298_v56 = vor.u32 %v11282_v45, %v10295_v19  ;;  %v11218_v7 = vld [vmem:[#allocation8 + $0x10c] sm:$0xf] }
 0x5cf   : > { %v4820_v57 = vpop.f32.mrf.mxu1  ;;  %5181 = vmatpush.bf16.msrb.mxu1 %v10074_v22  ;;  %v10039_v22 = vld [vmem:[#allocation8 + $0x118] sm:$0xf0] }
 0x5d0   : > { %v4821_v2 = vadd.f32 %v4820_v57, %v4772_v0  ;;  %v5343_v57 = vpack.c.bf16 %v4917_v35, %v13403_v8  ;;  %v10042_v44 = vor.u32 %v11218_v7, %v10039_v22 }
 0x5d1   : > { %5280 = vmatpush.bf16.msrb.mxu3 %v10314_v34 }
 0x5d2   : > { %v6032_v23 = vunpack.c.h.b16 %v5343_v57 }
 0x5d3   : > { %v4869_v1 = vpop.f32.mrf.mxu2  ;;  %v4918_v37 = vpop.f32.mrf.mxu3  ;;  %5182 = vmatpush.bf16.msrb.mxu1 %v10058_v3 }
 0x5d4   : > { %v4870_v49 = vadd.f32 %v4869_v1, %v4821_v2  ;;  %v4774_v30 = vpop.f32.mrf.mxu0 }
 0x5d5   : > { %v4775_v18 = vadd.f32 %v4774_v30, %v13426_v20  ;;  %5281 = vmatpush.bf16.msrb.mxu3 %v10298_v56  ;;  %v5646_v30 = vunpack.c.l.b16 %v5343_v57 }
 0x5d6   : > { %v4919_v0 = vadd.f32 %v4918_v37, %v4870_v49  ;;  %4969 = vmatmul.bf16.gmra.mxu0 %v12556_v52 }
 0x5d7   : > { %v4823_v39 = vpop.f32.mrf.mxu1  ;;  %5183 = vmatpush.bf16.msrb.mxu1 %v10042_v44 }
 0x5d8   : > { %v5345_v63 = vpack.c.bf16 %v4919_v0, %v13406_v9  ;;  %5067 = vmatmul.bf16.gmra.mxu2 %v12560_v58  ;;  %v4824_v17 = vadd.f32 %v4823_v39, %v4775_v18  ;;  %5116 = vmatmul.bf16.gmra.mxu3 %v12562_v60 }
 0x5da   : > { %v5647_v8 = vunpack.c.l.b16 %v5345_v63  ;;  %v6033_v2 = vunpack.c.h.b16 %v5345_v63  ;;  %5018 = vmatmul.bf16.gmra.mxu1 %v12564_v4 }
 0x5db   : > { %v4872_v31 = vpop.f32.mrf.mxu2  ;;  %v4921_v35 = vpop.f32.mrf.mxu3 }
 0x5dc   : > { %v4776_v34 = vpop.f32.mrf.mxu0  ;;  %v13519_v1 = vpack.c.b16 %v5647_v8, %v5646_v30  ;;  %v13521_v9 = vpack.c.b16 %v6033_v2, %v6032_v23  ;;  %v4873_v37 = vadd.f32 %v4872_v31, %v4824_v17 }
 0x5dd   : > { %v4777_v12 = vadd.f32 %v4776_v34, %v13426_v20 }
 0x5de   : > { %v4922_v3 = vadd.f32 %v4921_v35, %v4873_v37 }
 0x5df   : > { %v4825_v32 = vpop.f32.mrf.mxu1 }
 0x5e0   : > { %v4826_v49 = vadd.f32 %v4825_v32, %v4777_v12  ;;  %v5347_v0 = vpack.c.bf16 %v4922_v3, %v13413_v11  ;;  %v13532_v32 = vld [vmem:[#allocation14] sm:$0xf] }
 0x5e2   : > { %v5648_v63 = vunpack.c.l.b16 %v5347_v0  ;;  %v6034_v44 = vunpack.c.h.b16 %v5347_v0 }
 0x5e3   : > { %v4874_v18 = vpop.f32.mrf.mxu2  ;;  %v4923_v45 = vpop.f32.mrf.mxu3 }
 0x5e4   : > { %v4875_v19 = vadd.f32 %v4874_v18, %v4826_v49  ;;  %v4779_v57 = vpop.f32.mrf.mxu0  ;;  %v13535_v49 = vperm.slane %v13532_v32, 2 }
 0x5e5   : > { %v4780_v56 = vadd.f32 %v4779_v57, %v13426_v20 }
 0x5e6   : > { %v4924_v39 = vadd.f32 %v4923_v45, %v4875_v19  ;;  %4974 = vmatmul.bf16.gmra.mxu0 %v12576_v21 }
 0x5e7   : > { %v4828_v7 = vpop.f32.mrf.mxu1 }
 0x5e8   : > { %v5349_v22 = vpack.c.bf16 %v4924_v39, %v13416_v16  ;;  %5072 = vmatmul.bf16.gmra.mxu2 %v12580_v24  ;;  %5121 = vmatmul.bf16.gmra.mxu3 %v12582_v26  ;;  %v4829_v23 = vadd.f32 %v4828_v7, %v4780_v56 }
 0x5ea   : > { %v5649_v17 = vunpack.c.l.b16 %v5349_v22  ;;  %v6035_v30 = vunpack.c.h.b16 %v5349_v22  ;;  %5023 = vmatmul.bf16.gmra.mxu1 %v12584_v27 }
 0x5eb   : > { %v4877_v11 = vpop.f32.mrf.mxu2  ;;  %v4926_v8 = vpop.f32.mrf.mxu3 }
 0x5ec   : > { %v4781_v2 = vpop.f32.mrf.mxu0  ;;  %v5658_v31 = vpack.c.b16 %v5649_v17, %v5648_v63  ;;  %v6044_v35 = vpack.c.b16 %v6035_v30, %v6034_v44  ;;  %v4878_v37 = vadd.f32 %v4877_v11, %v4829_v23 }
 0x5ed   : > { %v4782_v34 = vadd.f32 %v4781_v2, %v13426_v20 }
 0x5ee   : > { %v4927_v3 = vadd.f32 %v4926_v8, %v4878_v37 }
 0x5ef   : > { %v4830_v16 = vpop.f32.mrf.mxu1 }
 0x5f0   : > { %v4831_v12 = vadd.f32 %v4830_v16, %v4782_v34  ;;  %v5351_v56 = vpack.c.bf16 %v4927_v3, %v13423_v51 }
 0x5f2   : > { %v5650_v63 = vunpack.c.l.b16 %v5351_v56  ;;  %v6036_v44 = vunpack.c.h.b16 %v5351_v56 }
 0x5f3   : > { %v4879_v18 = vpop.f32.mrf.mxu2  ;;  %v4928_v45 = vpop.f32.mrf.mxu3 }
 0x5f4   : > { %v4880_v19 = vadd.f32 %v4879_v18, %v4831_v12  ;;  %v4940_v57 = vpop.f32.mrf.mxu0 }
 0x5f5   : > { %v4941_v0 = vadd.f32 %v4940_v57, %v13535_v49 }
 0x5f6   : > { %v4929_v39 = vadd.f32 %v4928_v45, %v4880_v19  ;;  %5135 = vmatmul.bf16.vlgmr.msrb.gmra.mxu0 %v12437_v41 }
 0x5f7   : > { %v4989_v20 = vpop.f32.mrf.mxu1 }
 0x5f8   : > { %v5353_v7 = vpack.c.bf16 %v4929_v39, %v13429_v5  ;;  %5233 = vmatmul.bf16.vlgmr.msrb.gmra.mxu2 %v12440_v46  ;;  %v4990_v22 = vadd.f32 %v4989_v20, %v4941_v0  ;;  %5282 = vmatmul.bf16.vlgmr.msrb.gmra.mxu3 %v12442_v47 }
 0x5fa   : > { %v5651_v17 = vunpack.c.l.b16 %v5353_v7  ;;  %v6037_v30 = vunpack.c.h.b16 %v5353_v7  ;;  %5184 = vmatmul.bf16.vlgmr.msrb.gmra.mxu1 %v12444_v48 }
 0x5fb   : > { %v5038_v23 = vpop.f32.mrf.mxu2  ;;  %v5087_v8 = vpop.f32.mrf.mxu3 }
 0x5fc   : > { %v5039_v11 = vadd.f32 %v5038_v23, %v4990_v22  ;;  %v4942_v51 = vpop.f32.mrf.mxu0  ;;  %v5659_v2 = vpack.c.b16 %v5651_v17, %v5650_v63  ;;  %v6045_v41 = vpack.c.b16 %v6037_v30, %v6036_v44  ;;  %v15028_v23 = vld [vmem:[#allocation26_spill] sm:$0xff] }
 0x5fd   : > { %v4943_v34 = vadd.f32 %v4942_v51, %v13535_v49 }
 0x5fe   : > { %v13545_v5 = vadd.f32 %v5087_v8, %v5039_v11  ;;  %5668 = vmatpush.bf16.msra.mxu1 %v5659_v2  ;;  %6054 = vmatpush.bf16.msra.mxu3 %v6045_v41 }
 0x5ff   : > { %v4991_v46 = vpop.f32.mrf.mxu1 }
 0x600   : > { %v4992_v47 = vadd.f32 %v4991_v46, %v4943_v34 }
 0x602   : > { %5669 = vmatpush.bf16.msra.mxu1 %v5658_v31  ;;  %6055 = vmatpush.bf16.msra.mxu3 %v6044_v35 }
 0x603   : > { %v5040_v37 = vpop.f32.mrf.mxu2  ;;  %v5089_v48 = vpop.f32.mrf.mxu3 }
 0x604   : > { %v5041_v16 = vadd.f32 %v5040_v37, %v4992_v47  ;;  %v4945_v12 = vpop.f32.mrf.mxu0 }
 0x605   : > { %v4946_v3 = vadd.f32 %v4945_v12, %v13535_v49 }
 0x606   : > { %v13548_v18 = vadd.f32 %v5089_v48, %v5041_v16  ;;  %5670 = vmatpush.bf16.msra.mxu1 %v13519_v1  ;;  %6056 = vmatpush.bf16.msra.mxu3 %v13521_v9 }
 0x607   : > { %5140 = vmatmul.bf16.gmra.mxu0 %v12456_v59  ;;  %v4994_v45 = vpop.f32.mrf.mxu1 }
 0x608   : > { %5238 = vmatmul.bf16.gmra.mxu2 %v12460_v62  ;;  %v4995_v19 = vadd.f32 %v4994_v45, %v4946_v3  ;;  %5287 = vmatmul.bf16.gmra.mxu3 %v15006_v43  ;;  %v15030_v3 = vld [vmem:[#allocation28_spill] sm:$0xff] }
 0x60a   : > { %5671 = vmatpush.bf16.msra.mxu1 %v13507_v42  ;;  %6057 = vmatpush.bf16.msra.mxu3 %v13509_v40 }
 0x60b   : > { %v5043_v31 = vpop.f32.mrf.mxu2  ;;  %5189 = vmatmul.bf16.gmra.mxu1 %v15007_v38  ;;  %v5092_v1 = vpop.f32.mrf.mxu3 }
 0x60c   : > { %v5044_v35 = vadd.f32 %v5043_v31, %v4995_v19  ;;  %v4947_v57 = vpop.f32.mrf.mxu0  ;;  %v15031_v19 = vld [vmem:[#allocation29_spill] sm:$0xff] }
 0x60d   : > { %v4948_v9 = vadd.f32 %v4947_v57, %v13535_v49 }
 0x60e   : > { %v13559_v0 = vadd.f32 %v5092_v1, %v5044_v35  ;;  %5672 = vmatpush.bf16.msra.mxu1 %v13495_v55  ;;  %6058 = vmatpush.bf16.msra.mxu3 %v13497_v36  ;;  %v15032_v35 = vld [vmem:[#allocation30_spill] sm:$0xff] }
 0x60f   : > { %v4996_v59 = vpop.f32.mrf.mxu1 }
 0x610   : > { %v4997_v62 = vadd.f32 %v4996_v59, %v4948_v9 }
 0x612   : > { %5673 = vmatpush.bf16.msra.mxu1 %v13481_v54  ;;  %6059 = vmatpush.bf16.msra.mxu3 %v13483_v6 }
 0x613   : > { %v5045_v43 = vpop.f32.mrf.mxu2  ;;  %v5094_v40 = vpop.f32.mrf.mxu3 }
 0x614   : > { %v5046_v42 = vadd.f32 %v5045_v43, %v4997_v62  ;;  %v4950_v38 = vpop.f32.mrf.mxu0 }
 0x615   : > { %v4951_v56 = vadd.f32 %v4950_v38, %v13535_v49 }
 0x616   : > { %v13566_v39 = vadd.f32 %v5094_v40, %v5046_v42  ;;  %5674 = vmatpush.bf16.msra.mxu1 %v13465_v61  ;;  %6060 = vmatpush.bf16.msra.mxu3 %v13467_v50 }
 0x617   : > { %5145 = vmatmul.bf16.gmra.mxu0 %v12476_v10  ;;  %v4999_v55 = vpop.f32.mrf.mxu1 }
 0x618   : > { %5243 = vmatmul.bf16.gmra.mxu2 %v12480_v13  ;;  %v5000_v54 = vadd.f32 %v4999_v55, %v4951_v56  ;;  %5292 = vmatmul.bf16.gmra.mxu3 %v12482_v14 }
 0x61a   : > { %5675 = vmatpush.bf16.msra.mxu1 %v13449_v53  ;;  %6061 = vmatpush.bf16.msra.mxu3 %v13451_v33 }
 0x61b   : > { %v5048_v6 = vpop.f32.mrf.mxu2  ;;  %5194 = vmatmul.bf16.gmra.mxu1 %v12484_v15  ;;  %v5097_v61 = vpop.f32.mrf.mxu3 }
 0x61c   : > { %v5049_v36 = vadd.f32 %v5048_v6, %v5000_v54  ;;  %v4952_v20 = vpop.f32.mrf.mxu0  ;;  %v15033_v6 = vld [vmem:[#allocation31_spill] sm:$0xff] }
 0x61d   : > { %v4953_v50 = vadd.f32 %v4952_v20, %v13535_v49  ;;  %v15034_v20 = vld [vmem:[#allocation32_spill] sm:$0xff] }
 0x61e   : > { %v13577_v7 = vadd.f32 %v5097_v61, %v5049_v36 }
 0x61f   : > { %v5001_v10 = vpop.f32.mrf.mxu1 }
 0x620   : > { %v5002_v22 = vadd.f32 %v5001_v10, %v4953_v50  ;;  %v15035_v50 = vld [vmem:[#allocation33_spill] sm:$0xff] }
 0x623   : > { %v5050_v13 = vpop.f32.mrf.mxu2  ;;  %v5099_v14 = vpop.f32.mrf.mxu3 }
 0x624   : > { %v5051_v63 = vadd.f32 %v5050_v13, %v5002_v22  ;;  %v4955_v44 = vpop.f32.mrf.mxu0  ;;  %v15036_v22 = vld [vmem:[#allocation34_spill] sm:$0xff] }
 0x625   : > { %v4956_v53 = vadd.f32 %v4955_v44, %v13535_v49 }
 0x626   : > { %v13580_v17 = vadd.f32 %v5099_v14, %v5051_v63 }
 0x627   : > { %5150 = vmatmul.bf16.gmra.mxu0 %v12496_v25  ;;  %v5004_v15 = vpop.f32.mrf.mxu1 }
 0x628   : > { %5248 = vmatmul.bf16.gmra.mxu2 %v12500_v28  ;;  %v5005_v33 = vadd.f32 %v5004_v15, %v4956_v53  ;;  %5297 = vmatmul.bf16.gmra.mxu3 %v12502_v29  ;;  %v15029_v29 = vld [vmem:[#allocation27_spill] sm:$0xff] }
 0x62b   : > { %v5053_v30 = vpop.f32.mrf.mxu2  ;;  %5199 = vmatmul.bf16.gmra.mxu1 %v15028_v23  ;;  %v5102_v8 = vpop.f32.mrf.mxu3 }
 0x62c   : > { %v5054_v11 = vadd.f32 %v5053_v30, %v5005_v33  ;;  %v4957_v51 = vpop.f32.mrf.mxu0 }
 0x62d   : > { %v4958_v2 = vadd.f32 %v4957_v51, %v13535_v49 }
 0x62e   : > { %v13587_v41 = vadd.f32 %v5102_v8, %v5054_v11 }
 0x62f   : > { %v5006_v34 = vpop.f32.mrf.mxu1 }
 0x630   : > { %v5007_v46 = vadd.f32 %v5006_v34, %v4958_v2 }
 0x633   : > { %v5055_v47 = vpop.f32.mrf.mxu2  ;;  %v5104_v16 = vpop.f32.mrf.mxu3 }
 0x634   : > { %v5056_v25 = vadd.f32 %v5055_v47, %v5007_v46  ;;  %v4960_v37 = vpop.f32.mrf.mxu0 }
 0x635   : > { %v4961_v28 = vadd.f32 %v4960_v37, %v13535_v49 }
 0x636   : > { %v13590_v12 = vadd.f32 %v5104_v16, %v5056_v25 }
 0x637   : > { %5155 = vmatmul.bf16.gmra.mxu0 %v15029_v29  ;;  %v5009_v48 = vpop.f32.mrf.mxu1 }
 0x638   : > { %5253 = vmatmul.bf16.gmra.mxu2 %v15030_v3  ;;  %v5010_v45 = vadd.f32 %v5009_v48, %v4961_v28  ;;  %5302 = vmatmul.bf16.gmra.mxu3 %v15031_v19 }
 0x63b   : > { %v5058_v31 = vpop.f32.mrf.mxu2  ;;  %5204 = vmatmul.bf16.gmra.mxu1 %v15032_v35  ;;  %v5107_v9 = vpop.f32.mrf.mxu3 }
 0x63c   : > { %v5059_v57 = vadd.f32 %v5058_v31, %v5010_v45  ;;  %v4962_v1 = vpop.f32.mrf.mxu0 }
 0x63d   : > { %v4963_v59 = vadd.f32 %v4962_v1, %v13535_v49 }
 0x63e   : > { %v13597_v62 = vadd.f32 %v5107_v9, %v5059_v57 }
 0x63f   : > { %v5011_v43 = vpop.f32.mrf.mxu1 }
 0x640   : > { %v5012_v42 = vadd.f32 %v5011_v43, %v4963_v59 }
 0x643   : > { %v5060_v38 = vpop.f32.mrf.mxu2  ;;  %v13601_v55 = vpop.f32.mrf.mxu3 }
 0x644   : > { %v13599_v40 = vadd.f32 %v5060_v38, %v5012_v42  ;;  %v4965_v56 = vpop.f32.mrf.mxu0 }
 0x645   : > { %v4966_v54 = vadd.f32 %v4965_v56, %v13535_v49 }
 0x647   : > { %5160 = vmatmul.bf16.gmra.mxu0 %v15033_v6  ;;  %v5014_v36 = vpop.f32.mrf.mxu1 }
 0x648   : > { %5258 = vmatmul.bf16.gmra.mxu2 %v15034_v20  ;;  %v5015_v61 = vadd.f32 %v5014_v36, %v4966_v54  ;;  %5307 = vmatmul.bf16.gmra.mxu3 %v15035_v50  ;;  %v15037_v54 = vld [vmem:[#allocation37_spill] sm:$0xff]  ;;  %v15038_v36 = vld [vmem:[#allocation38_spill] sm:$0xff] }
 0x64b   : > { %v5063_v10 = vpop.f32.mrf.mxu2  ;;  %5209 = vmatmul.bf16.gmra.mxu1 %v15036_v22  ;;  %v5112_v44 = vpop.f32.mrf.mxu3 }
 0x64c   : > { %v5064_v13 = vadd.f32 %v5063_v10, %v5015_v61  ;;  %v4967_v63 = vpop.f32.mrf.mxu0 }
 0x64d   : > { %v4968_v14 = vadd.f32 %v4967_v63, %v13535_v49 }
 0x64e   : > { %v13609_v53 = vadd.f32 %v5112_v44, %v5064_v13 }
 0x64f   : > { %v5016_v15 = vpop.f32.mrf.mxu1 }
 0x650   : > { %v5017_v33 = vadd.f32 %v5016_v15, %v4968_v14 }
 0x653   : > { %v5065_v30 = vpop.f32.mrf.mxu2  ;;  %v13613_v51 = vpop.f32.mrf.mxu3 }
 0x654   : > { %v13611_v23 = vadd.f32 %v5065_v30, %v5017_v33  ;;  %v4970_v11 = vpop.f32.mrf.mxu0 }
 0x655   : > { %v4971_v8 = vadd.f32 %v4970_v11, %v13535_v49 }
 0x657   : > { %5165 = vmatmul.bf16.gmra.mxu0 %v12556_v52  ;;  %v5019_v2 = vpop.f32.mrf.mxu1 }
 0x658   : > { %5263 = vmatmul.bf16.gmra.mxu2 %v12560_v58  ;;  %v5020_v34 = vadd.f32 %v5019_v2, %v4971_v8  ;;  %5312 = vmatmul.bf16.gmra.mxu3 %v12562_v60  ;;  %v15039_v2 = vld [vmem:[#allocation39_spill] sm:$0xff] }
 0x65b   : > { %v5068_v46 = vpop.f32.mrf.mxu2  ;;  %5214 = vmatmul.bf16.gmra.mxu1 %v12564_v4  ;;  %v5117_v37 = vpop.f32.mrf.mxu3 }
 0x65c   : > { %v5069_v47 = vadd.f32 %v5068_v46, %v5020_v34  ;;  %v4972_v25 = vpop.f32.mrf.mxu0  ;;  %v15040_v46 = vld [vmem:[#allocation40_spill] sm:$0xff] }
 0x65d   : > { %v4973_v16 = vadd.f32 %v4972_v25, %v13535_v49 }
 0x65e   : > { %v13621_v28 = vadd.f32 %v5117_v37, %v5069_v47 }
 0x65f   : > { %v5021_v29 = vpop.f32.mrf.mxu1 }
 0x660   : > { %v5022_v48 = vadd.f32 %v5021_v29, %v4973_v16 }
 0x663   : > { %v5070_v3 = vpop.f32.mrf.mxu2  ;;  %v13625_v58 = vpop.f32.mrf.mxu3 }
 0x664   : > { %v13623_v52 = vadd.f32 %v5070_v3, %v5022_v48  ;;  %v4975_v45 = vpop.f32.mrf.mxu0 }
 0x665   : > { %v4976_v60 = vadd.f32 %v4975_v45, %v13535_v49 }
 0x667   : > { %5170 = vmatmul.bf16.gmra.mxu0 %v12576_v21  ;;  %v5024_v4 = vpop.f32.mrf.mxu1  ;;  %v13636_v21 = vperm.slane %v13532_v32, 3 }
 0x668   : > { %5268 = vmatmul.bf16.gmra.mxu2 %v12580_v24  ;;  %v5025_v19 = vadd.f32 %v5024_v4, %v4976_v60  ;;  %5317 = vmatmul.bf16.gmra.mxu3 %v12582_v26 }
 0x66b   : > { %v5073_v31 = vpop.f32.mrf.mxu2  ;;  %5219 = vmatmul.bf16.gmra.mxu1 %v12584_v27  ;;  %v5122_v1 = vpop.f32.mrf.mxu3 }
 0x66c   : > { %v5074_v35 = vadd.f32 %v5073_v31, %v5025_v19  ;;  %v4977_v57 = vpop.f32.mrf.mxu0 }
 0x66d   : > { %v4978_v9 = vadd.f32 %v4977_v57, %v13535_v49 }
 0x66e   : > { %v13633_v59 = vadd.f32 %v5122_v1, %v5074_v35 }
 0x66f   : > { %v5026_v43 = vpop.f32.mrf.mxu1 }
 0x670   : > { %v5027_v42 = vadd.f32 %v5026_v43, %v4978_v9 }
 0x673   : > { %v5075_v38 = vpop.f32.mrf.mxu2  ;;  %v13640_v56 = vpop.f32.mrf.mxu3 }
 0x674   : > { %v13638_v24 = vadd.f32 %v5075_v38, %v5027_v42  ;;  %v5136_v26 = vpop.f32.mrf.mxu0 }
 0x675   : > { %v5137_v27 = vadd.f32 %v5136_v26, %v13636_v21 }
 0x677   : > { %5459 = vmatmul.bf16.vlgmr.msra.gmra.mxu0 %v15037_v54  ;;  %v5185_v6 = vpop.f32.mrf.mxu1  ;;  %v15041_v54 = vld [vmem:[#allocation41_spill] sm:$0xff] }
 0x678   : > { %5861 = vmatmul.bf16.vlgmr.msra.gmra.mxu2 %v15038_v36  ;;  %v5186_v49 = vadd.f32 %v5185_v6, %v5137_v27  ;;  %v15042_v36 = vld [vmem:[#allocation42_spill] sm:$0xff] }
 0x67b   : > { %v5234_v20 = vpop.f32.mrf.mxu2  ;;  %v5283_v10 = vpop.f32.mrf.mxu3 }
 0x67c   : > { %v5235_v61 = vadd.f32 %v5234_v20, %v5186_v49  ;;  %v5138_v50 = vpop.f32.mrf.mxu0 }
 0x67d   : > { %v5139_v32 = vadd.f32 %v5138_v50, %v13636_v21 }
 0x67e   : > { %v5284_v22 = vadd.f32 %v5283_v10, %v5235_v61 }
 0x67f   : > { %v5187_v13 = vpop.f32.mrf.mxu1 }
 0x680   : > { %v5324_v63 = vpack.c.bf16 %v5284_v22, %v13545_v5  ;;  %v5188_v44 = vadd.f32 %v5187_v13, %v5139_v32 }
 0x682   : > { %v7168_v37 = vunpack.c.l.b16 %v5324_v63  ;;  %v7974_v16 = vunpack.c.h.b16 %v5324_v63 }
 0x683   : > { %v5236_v14 = vpop.f32.mrf.mxu2  ;;  %v5285_v30 = vpop.f32.mrf.mxu3 }
 0x684   : > { %v5237_v15 = vadd.f32 %v5236_v14, %v5188_v44  ;;  %v5141_v33 = vpop.f32.mrf.mxu0 }
 0x685   : > { %v5142_v11 = vadd.f32 %v5141_v33, %v13636_v21 }
 0x686   : > { %v5286_v8 = vadd.f32 %v5285_v30, %v5237_v15 }
 0x687   : > { %5464 = vmatmul.bf16.gmra.mxu0 %v15039_v2 }
 0x688   : > { %v5326_v34 = vpack.c.bf16 %v5286_v8, %v13548_v18  ;;  %5866 = vmatmul.bf16.gmra.mxu2 %v15040_v46  ;;  %v5190_v47 = vpop.f32.mrf.mxu1 }
 0x689   : > { %v5191_v25 = vadd.f32 %v5190_v47, %v5142_v11 }
 0x68a   : > { %v7169_v29 = vunpack.c.l.b16 %v5326_v34  ;;  %v7975_v5 = vunpack.c.h.b16 %v5326_v34 }
 0x68b   : > { %v5239_v48 = vpop.f32.mrf.mxu2  ;;  %v5288_v60 = vpop.f32.mrf.mxu3 }
 0x68c   : > { %v5240_v3 = vadd.f32 %v5239_v48, %v5191_v25  ;;  %v5143_v45 = vpop.f32.mrf.mxu0  ;;  %v13651_v4 = vpack.c.b16 %v7169_v29, %v7168_v37  ;;  %v13653_v19 = vpack.c.b16 %v7975_v5, %v7974_v16  ;;  %v15043_v37 = vld [vmem:[#allocation43_spill] sm:$0xff]  ;;  %v15044_v29 = vld [vmem:[#allocation44_spill] sm:$0xff] }
 0x68d   : > { %v5144_v31 = vadd.f32 %v5143_v45, %v13636_v21 }
 0x68e   : > { %v5289_v35 = vadd.f32 %v5288_v60, %v5240_v3 }
 0x690   : > { %v5328_v18 = vpack.c.bf16 %v5289_v35, %v13559_v0  ;;  %v5192_v57 = vpop.f32.mrf.mxu1 }
 0x691   : > { %v5193_v1 = vadd.f32 %v5192_v57, %v5144_v31 }
 0x692   : > { %v7170_v61 = vunpack.c.l.b16 %v5328_v18  ;;  %v7976_v50 = vunpack.c.h.b16 %v5328_v18 }
 0x693   : > { %v5241_v9 = vpop.f32.mrf.mxu2  ;;  %v5290_v38 = vpop.f32.mrf.mxu3 }
 0x694   : > { %v5242_v43 = vadd.f32 %v5241_v9, %v5193_v1  ;;  %v5146_v42 = vpop.f32.mrf.mxu0 }
 0x695   : > { %v5147_v26 = vadd.f32 %v5146_v42, %v13636_v21 }
 0x696   : > { %v5291_v27 = vadd.f32 %v5290_v38, %v5242_v43 }
 0x697   : > { %5469 = vmatmul.bf16.gmra.mxu0 %v15041_v54 }
 0x698   : > { %v5330_v6 = vpack.c.bf16 %v5291_v27, %v13566_v39  ;;  %5871 = vmatmul.bf16.gmra.mxu2 %v15042_v36  ;;  %v5195_v49 = vpop.f32.mrf.mxu1 }
 0x699   : > { %v5196_v20 = vadd.f32 %v5195_v49, %v5147_v26 }
 0x69a   : > { %v7171_v0 = vunpack.c.l.b16 %v5330_v6  ;;  %v7977_v10 = vunpack.c.h.b16 %v5330_v6 }
 0x69b   : > { %v5244_v32 = vpop.f32.mrf.mxu2  ;;  %v5293_v63 = vpop.f32.mrf.mxu3 }
 0x69c   : > { %v5245_v22 = vadd.f32 %v5244_v32, %v5196_v20  ;;  %v5148_v13 = vpop.f32.mrf.mxu0  ;;  %v13661_v44 = vpack.c.b16 %v7171_v0, %v7170_v61  ;;  %v13663_v14 = vpack.c.b16 %v7977_v10, %v7976_v50  ;;  %v15045_v61 = vld [vmem:[#allocation35_spill] sm:$0xff]  ;;  %v15046_v0 = vld [vmem:[#allocation45_spill] sm:$0xff] }
 0x69d   : > { %v5149_v15 = vadd.f32 %v5148_v13, %v13636_v21 }
 0x69e   : > { %v5294_v33 = vadd.f32 %v5293_v63, %v5245_v22 }
 0x6a0   : > { %v5332_v39 = vpack.c.bf16 %v5294_v33, %v13577_v7  ;;  %v5197_v30 = vpop.f32.mrf.mxu1 }
 0x6a1   : > { %v5198_v11 = vadd.f32 %v5197_v30, %v5149_v15 }
 0x6a2   : > { %v7172_v3 = vunpack.c.l.b16 %v5332_v39  ;;  %v7978_v45 = vunpack.c.h.b16 %v5332_v39 }
 0x6a3   : > { %v5246_v8 = vpop.f32.mrf.mxu2  ;;  %v5295_v46 = vpop.f32.mrf.mxu3 }
 0x6a4   : > { %v5247_v2 = vadd.f32 %v5246_v8, %v5198_v11  ;;  %v5151_v34 = vpop.f32.mrf.mxu0 }
 0x6a5   : > { %v5152_v47 = vadd.f32 %v5151_v34, %v13636_v21 }
 0x6a6   : > { %v5296_v25 = vadd.f32 %v5295_v46, %v5247_v2 }
 0x6a7   : > { %5474 = vmatmul.bf16.gmra.mxu0 %v15043_v37 }
 0x6a8   : > { %v5334_v16 = vpack.c.bf16 %v5296_v25, %v13580_v17  ;;  %5876 = vmatmul.bf16.gmra.mxu2 %v15044_v29  ;;  %v5200_v5 = vpop.f32.mrf.mxu1 }
 0x6a9   : > { %v5201_v48 = vadd.f32 %v5200_v5, %v5152_v47 }
 0x6aa   : > { %v7173_v7 = vunpack.c.l.b16 %v5334_v16  ;;  %v7979_v60 = vunpack.c.h.b16 %v5334_v16 }
 0x6ab   : > { %v5249_v31 = vpop.f32.mrf.mxu2  ;;  %v5298_v57 = vpop.f32.mrf.mxu3 }
 0x6ac   : > { %v5250_v35 = vadd.f32 %v5249_v31, %v5201_v48  ;;  %v5153_v18 = vpop.f32.mrf.mxu0  ;;  %v13671_v1 = vpack.c.b16 %v7173_v7, %v7172_v3  ;;  %v13673_v9 = vpack.c.b16 %v7979_v60, %v7978_v45  ;;  %v5110_v48 = vadd.f32 %v13601_v55, %v13599_v40  ;;  %v15047_v45 = vld [vmem:[#allocation36_spill] sm:$0xff]  ;;  %v15048_v60 = vld [vmem:[#allocation46_spill] sm:$0xff] }
 0x6ad   : > { %v5154_v43 = vadd.f32 %v5153_v18, %v13636_v21 }
 0x6ae   : > { %v5299_v42 = vadd.f32 %v5298_v57, %v5250_v35 }
 0x6b0   : > { %v5336_v17 = vpack.c.bf16 %v5299_v42, %v13587_v41  ;;  %v5202_v38 = vpop.f32.mrf.mxu1 }
 0x6b1   : > { %v5203_v26 = vadd.f32 %v5202_v38, %v5154_v43 }
 0x6b2   : > { %v7174_v22 = vunpack.c.l.b16 %v5336_v17  ;;  %v7980_v13 = vunpack.c.h.b16 %v5336_v17 }
 0x6b3   : > { %v5251_v27 = vpop.f32.mrf.mxu2  ;;  %v5300_v36 = vpop.f32.mrf.mxu3 }
 0x6b4   : > { %v5252_v54 = vadd.f32 %v5251_v27, %v5203_v26  ;;  %v5156_v6 = vpop.f32.mrf.mxu0 }
 0x6b5   : > { %v5157_v49 = vadd.f32 %v5156_v6, %v13636_v21 }
 0x6b6   : > { %v5301_v20 = vadd.f32 %v5300_v36, %v5252_v54 }
 0x6b7   : > { %5479 = vmatmul.bf16.gmra.mxu0 %v15045_v61 }
 0x6b8   : > { %v5338_v50 = vpack.c.bf16 %v5301_v20, %v13590_v12  ;;  %5881 = vmatmul.bf16.gmra.mxu2 %v15046_v0  ;;  %v5205_v10 = vpop.f32.mrf.mxu1 }
 0x6b9   : > { %v5206_v32 = vadd.f32 %v5205_v10, %v5157_v49 }
 0x6ba   : > { %v7175_v41 = vunpack.c.l.b16 %v5338_v50  ;;  %v7981_v63 = vunpack.c.h.b16 %v5338_v50 }
 0x6bb   : > { %v5254_v15 = vpop.f32.mrf.mxu2  ;;  %v5303_v30 = vpop.f32.mrf.mxu3 }
 0x6bc   : > { %v5255_v33 = vadd.f32 %v5254_v15, %v5206_v32  ;;  %v5158_v39 = vpop.f32.mrf.mxu0  ;;  %v13681_v11 = vpack.c.b16 %v7175_v41, %v7174_v22  ;;  %v13683_v8 = vpack.c.b16 %v7981_v63, %v7980_v13  ;;  %v5115_v32 = vadd.f32 %v13613_v51, %v13611_v23  ;;  %v15049_v13 = vld [vmem:[#allocation47_spill] sm:$0xff]  ;;  %v15050_v63 = vld [vmem:[#allocation48_spill] sm:$0xff] }
 0x6bd   : > { %v5159_v2 = vadd.f32 %v5158_v39, %v13636_v21 }
 0x6be   : > { %v5304_v34 = vadd.f32 %v5303_v30, %v5255_v33 }
 0x6c0   : > { %v5340_v12 = vpack.c.bf16 %v5304_v34, %v13597_v62  ;;  %v5207_v46 = vpop.f32.mrf.mxu1 }
 0x6c1   : > { %v5208_v47 = vadd.f32 %v5207_v46, %v5159_v2 }
 0x6c2   : > { %v7176_v62 = vunpack.c.l.b16 %v5340_v12  ;;  %v7982_v18 = vunpack.c.h.b16 %v5340_v12 }
 0x6c3   : > { %v5256_v25 = vpop.f32.mrf.mxu2  ;;  %v5305_v29 = vpop.f32.mrf.mxu3 }
 0x6c4   : > { %v5257_v37 = vadd.f32 %v5256_v25, %v5208_v47  ;;  %v5161_v16 = vpop.f32.mrf.mxu0 }
 0x6c5   : > { %v5162_v5 = vadd.f32 %v5161_v16, %v13636_v21 }
 0x6c6   : > { %v5306_v3 = vadd.f32 %v5305_v29, %v5257_v37 }
 0x6c7   : > { %5484 = vmatmul.bf16.gmra.mxu0 %v15047_v45 }
 0x6c8   : > { %v5342_v7 = vpack.c.bf16 %v5306_v3, %v5110_v48  ;;  %5886 = vmatmul.bf16.gmra.mxu2 %v15048_v60  ;;  %v5210_v31 = vpop.f32.mrf.mxu1 }
 0x6c9   : > { %v5211_v35 = vadd.f32 %v5210_v31, %v5162_v5  ;;  %v5120_v31 = vadd.f32 %v13625_v58, %v13623_v52 }
 0x6ca   : > { %v7177_v57 = vunpack.c.l.b16 %v5342_v7  ;;  %v7983_v43 = vunpack.c.h.b16 %v5342_v7 }
 0x6cb   : > { %v5259_v42 = vpop.f32.mrf.mxu2  ;;  %v5308_v26 = vpop.f32.mrf.mxu3 }
 0x6cc   : > { %v5260_v17 = vadd.f32 %v5259_v42, %v5211_v35  ;;  %v5163_v38 = vpop.f32.mrf.mxu0  ;;  %v13692_v27 = vpack.c.b16 %v7177_v57, %v7176_v62  ;;  %v13694_v54 = vpack.c.b16 %v7983_v43, %v7982_v18  ;;  %v15051_v62 = vld [vmem:[#allocation49_spill] sm:$0xff]  ;;  %v15052_v57 = vld [vmem:[#allocation50_spill] sm:$0xff] }
 0x6cd   : > { %v5164_v40 = vadd.f32 %v5163_v38, %v13636_v21 }
 0x6ce   : > { %v5309_v55 = vadd.f32 %v5308_v26, %v5260_v17 }
 0x6d0   : > { %v5344_v6 = vpack.c.bf16 %v5309_v55, %v13609_v53  ;;  %v5212_v36 = vpop.f32.mrf.mxu1 }
 0x6d1   : > { %v5213_v49 = vadd.f32 %v5212_v36, %v5164_v40 }
 0x6d2   : > { %v7178_v53 = vunpack.c.l.b16 %v5344_v6  ;;  %v7984_v39 = vunpack.c.h.b16 %v5344_v6 }
 0x6d3   : > { %v5261_v20 = vpop.f32.mrf.mxu2  ;;  %v5310_v0 = vpop.f32.mrf.mxu3 }
 0x6d4   : > { %v5262_v61 = vadd.f32 %v5261_v20, %v5213_v49  ;;  %v5166_v50 = vpop.f32.mrf.mxu0 }
 0x6d5   : > { %v5167_v10 = vadd.f32 %v5166_v50, %v13636_v21 }
 0x6d6   : > { %v5311_v22 = vadd.f32 %v5310_v0, %v5262_v61 }
 0x6d7   : > { %5489 = vmatmul.bf16.gmra.mxu0 %v15049_v13  ;;  %v5125_v13 = vadd.f32 %v13640_v56, %v13638_v24 }
 0x6d8   : > { %v5346_v41 = vpack.c.bf16 %v5311_v22, %v5115_v32  ;;  %5891 = vmatmul.bf16.gmra.mxu2 %v15050_v63  ;;  %v5215_v15 = vpop.f32.mrf.mxu1 }
 0x6d9   : > { %v5216_v33 = vadd.f32 %v5215_v15, %v5167_v10 }
 0x6da   : > { %v7179_v30 = vunpack.c.l.b16 %v5346_v41  ;;  %v7985_v2 = vunpack.c.h.b16 %v5346_v41 }
 0x6db   : > { %v5264_v34 = vpop.f32.mrf.mxu2  ;;  %v5313_v47 = vpop.f32.mrf.mxu3 }
 0x6dc   : > { %v5265_v12 = vadd.f32 %v5264_v34, %v5216_v33  ;;  %v5168_v46 = vpop.f32.mrf.mxu0  ;;  %v13703_v25 = vpack.c.b16 %v7179_v30, %v7178_v53  ;;  %v13705_v37 = vpack.c.b16 %v7985_v2, %v7984_v39 }
 0x6dd   : > { %v5169_v23 = vadd.f32 %v5168_v46, %v13636_v21 }
 0x6de   : > { %v5314_v51 = vadd.f32 %v5313_v47, %v5265_v12 }
 0x6e0   : > { %v5348_v16 = vpack.c.bf16 %v5314_v51, %v13621_v28  ;;  %v5217_v29 = vpop.f32.mrf.mxu1 }
 0x6e1   : > { %v5218_v5 = vadd.f32 %v5217_v29, %v5169_v23 }
 0x6e2   : > { %v7180_v28 = vunpack.c.l.b16 %v5348_v16  ;;  %v7986_v17 = vunpack.c.h.b16 %v5348_v16 }
 0x6e3   : > { %v5266_v48 = vpop.f32.mrf.mxu2  ;;  %v5315_v7 = vpop.f32.mrf.mxu3 }
 0x6e4   : > { %v5267_v3 = vadd.f32 %v5266_v48, %v5218_v5  ;;  %v5171_v45 = vpop.f32.mrf.mxu0 }
 0x6e5   : > { %v5172_v60 = vadd.f32 %v5171_v45, %v13636_v21 }
 0x6e6   : > { %v5316_v35 = vadd.f32 %v5315_v7, %v5267_v3 }
 0x6e7   : > { %5494 = vmatmul.bf16.gmra.mxu0 %v15051_v62 }
 0x6e8   : > { %v5350_v18 = vpack.c.bf16 %v5316_v35, %v5120_v31  ;;  %5896 = vmatmul.bf16.gmra.mxu2 %v15052_v57  ;;  %v5220_v43 = vpop.f32.mrf.mxu1 }
 0x6e9   : > { %v5221_v42 = vadd.f32 %v5220_v43, %v5172_v60 }
 0x6ea   : > { %v7181_v38 = vunpack.c.l.b16 %v5350_v18  ;;  %v7987_v26 = vunpack.c.h.b16 %v5350_v18 }
 0x6eb   : > { %v5269_v40 = vpop.f32.mrf.mxu2  ;;  %v5318_v36 = vpop.f32.mrf.mxu3 }
 0x6ec   : > { %v5270_v55 = vadd.f32 %v5269_v40, %v5221_v42  ;;  %v5173_v6 = vpop.f32.mrf.mxu0  ;;  %v13714_v49 = vpack.c.b16 %v7181_v38, %v7180_v28  ;;  %v13716_v20 = vpack.c.b16 %v7987_v26, %v7986_v17  ;;  %v10525_v42 = vld [vmem:[#allocation10 + $0x1e0] sm:$0xf]  ;;  %v11375_v28 = vld [vmem:[#allocation10 + $0x1ec] sm:$0xf0] }
 0x6ed   : > { %v5174_v52 = vadd.f32 %v5173_v6, %v13636_v21  ;;  %v10526_v17 = vor.u32 %v11375_v28, %v10525_v42 }
 0x6ee   : > { %v5319_v58 = vadd.f32 %v5318_v36, %v5270_v55 }
 0x6ef   : > { %6335 = vmatpush.bf16.msrb.mxu0 %v10526_v17 }
 0x6f0   : > { %v5352_v61 = vpack.c.bf16 %v5319_v58, %v13633_v59  ;;  %v5222_v50 = vpop.f32.mrf.mxu1 }
 0x6f1   : > { %v5223_v0 = vadd.f32 %v5222_v50, %v5174_v52 }
 0x6f2   : > { %v7182_v15 = vunpack.c.l.b16 %v5352_v61  ;;  %v7988_v33 = vunpack.c.h.b16 %v5352_v61 }
 0x6f3   : > { %v5271_v10 = vpop.f32.mrf.mxu2  ;;  %v5320_v22 = vpop.f32.mrf.mxu3 }
 0x6f4   : > { %v5272_v32 = vadd.f32 %v5271_v10, %v5223_v0  ;;  %v13749_v29 = vpop.f32.mrf.mxu0  ;;  %v10509_v0 = vld [vmem:[#allocation10 + $0x1c0] sm:$0xf]  ;;  %v11371_v10 = vld [vmem:[#allocation10 + $0x1cc] sm:$0xf0] }
 0x6f6   : > { %v5321_v41 = vadd.f32 %v5320_v22, %v5272_v32  ;;  %v10510_v32 = vor.u32 %v11371_v10, %v10509_v0 }
 0x6f8   : > { %v5354_v63 = vpack.c.bf16 %v5321_v41, %v5125_v13  ;;  %6336 = vmatpush.bf16.msrb.mxu0 %v10510_v32 }
 0x6fa   : > { %v7183_v53 = vunpack.c.l.b16 %v5354_v63  ;;  %v7989_v39 = vunpack.c.h.b16 %v5354_v63 }
 0x6fb   : > { %v5862_v30 = vpop.f32.mrf.mxu2 }
 0x6fc   : > { %5902 = vmax.xlane.f32.xlu0 %v5862_v30  ;;  %v13722_v21 = vpack.c.b16 %v7183_v53, %v7182_v15  ;;  %v13724_v2 = vpack.c.b16 %v7989_v39, %v7988_v33  ;;  %v13755_v48 = vpop.f32.mrf.mxu0 }
 0x703   : > { %v5864_v59 = vpop.f32.mrf.mxu2 }
 0x704   : > { %5904 = vmax.xlane.f32.xlu0 %v5864_v59  ;;  %v13760_v45 = vpop.f32.mrf.mxu0 }
 0x70b   : > { %v5867_v34 = vpop.f32.mrf.mxu2 }
 0x70c   : > { %5906 = vmax.xlane.f32.xlu1 %v5867_v34  ;;  %v13765_v60 = vpop.f32.mrf.mxu0 }
 0x713   : > { %v13726_v12 = vpop.f32.mrf.mxu2 }
 0x714   : > { %5908 = vmax.xlane.f32.xlu1 %v13726_v12  ;;  %v13773_v43 = vpop.f32.mrf.mxu0 }
 0x71b   : > { %v13729_v24 = vpop.f32.mrf.mxu2 }
 0x71c   : > { %5910 = vmax.xlane.f32.xlu2 %v13729_v24  ;;  %v13778_v6 = vpop.f32.mrf.mxu0 }
 0x723   : > { %v13732_v56 = vpop.f32.mrf.mxu2 }
 0x724   : > { %5912 = vmax.xlane.f32.xlu2 %v13732_v56  ;;  %v13781_v13 = vpop.f32.mrf.mxu0 }
 0x72b   : > { %v13735_v46 = vpop.f32.mrf.mxu2 }
 0x72c   : > { %5914 = vmax.xlane.f32.xlu0 %v13735_v46 }
 0x733   : > { %v13738_v47 = vpop.f32.mrf.mxu2 }
 0x734   : > { %5916 = vmax.xlane.f32.xlu1 %v13738_v47 }
 0x73b   : > { %v13741_v23 = vpop.f32.mrf.mxu2 }
 0x73c   : > { %5918 = vmax.xlane.f32.xlu2 %v13741_v23 }
 0x743   : > { %v13744_v51 = vpop.f32.mrf.mxu2 }
 0x744   : > { %5920 = vmax.xlane.f32.xlu0 %v13744_v51 }
 0x74b   : > { %v13747_v16 = vpop.f32.mrf.mxu2 }
 0x74c   : > { %5922 = vmax.xlane.f32.xlu1 %v13747_v16 }
 0x753   : > { %v13752_v5 = vpop.f32.mrf.mxu2 }
 0x754   : > { %5924 = vmax.xlane.f32.xlu2 %v13752_v5 }
 0x75b   : > { %v13757_v3 = vpop.f32.mrf.mxu2 }
 0x75c   : > { %5926 = vmax.xlane.f32.xlu0 %v13757_v3 }
 0x763   : > { %v13762_v7 = vpop.f32.mrf.mxu2 }
 0x764   : > { %5928 = vmax.xlane.f32.xlu1 %v13762_v7 }
 0x76b   : > { %v13767_v31 = vpop.f32.mrf.mxu2 }
 0x76c   : > { %5930 = vmax.xlane.f32.xlu2 %v13767_v31  ;;  %5500 = vmax.xlane.f32.xlu1 %v13749_v29 }
 0x76f   : > { %v5903_v35 = vpop.xlane.xlu0 %5902 }
 0x770   : > { %v5934_v62 = vsub.f32 %v5862_v30, %v5903_v35  ;;  %v13786_v30 = vpop.f32.mrf.mxu0  ;;  %v11367_v35 = vld [vmem:[#allocation10 + $0x1ac] sm:$0xf0] }
 0x772   : > { %v5950_v18 = vmul.f32 1.442695, %v5934_v62 }
 0x773   : > { %v13771_v57 = vpop.f32.mrf.mxu2 }
 0x774   : > { %11575 = vpow2.f32 %v5950_v18  ;;  %5932 = vmax.xlane.f32.xlu0 %v13771_v57  ;;  %5502 = vmax.xlane.f32.xlu2 %v13755_v48 }
 0x777   : > { %v5905_v38 = vpop.xlane.xlu0 %5904 }
 0x778   : > { %v5935_v26 = vsub.f32 %v5864_v59, %v5905_v38 }
 0x77a   : > { %v11576_v40 = vpop.eup %11575  ;;  %v5952_v55 = vmul.f32 1.442695, %v5935_v26 }
 0x77c   : > { %11577 = vpow2.f32 %v5952_v55  ;;  %5982 = vadd.xlane.f32.xlu0 %v11576_v40  ;;  %5504 = vmax.xlane.f32.xlu2 %v13760_v45 }
 0x77f   : > { %v5907_v36 = vpop.xlane.xlu1 %5906 }
 0x780   : > { %v5936_v52 = vsub.f32 %v5867_v34, %v5907_v36 }
 0x782   : > { %v11578_v58 = vpop.eup %11577  ;;  %v5954_v61 = vmul.f32 1.442695, %v5936_v52  ;;  %v11363_v52 = vld [vmem:[#allocation10 + $0x18c] sm:$0xf0] }
 0x783   : > { %v6014_v50 = vpack.c.bf16 %v11578_v58, %v11576_v40  ;;  %5984 = vadd.xlane.f32.xlu1 %v11578_v58 }
 0x784   : > { %11579 = vpow2.f32 %v5954_v61  ;;  %5506 = vmax.xlane.f32.xlu0 %v13765_v60 }
 0x785   : > { %6062 = vmatmul.bf16.vlgmr.msra.gmra.mxu3 %v6014_v50 }
 0x787   : > { %v5909_v22 = vpop.xlane.xlu1 %5908 }
 0x788   : > { %v5937_v41 = vsub.f32 %v13726_v12, %v5909_v22  ;;  %v10493_v12 = vld [vmem:[#allocation10 + $0x1a0] sm:$0xf] }
 0x789   : > { %v10494_v62 = vor.u32 %v11367_v35, %v10493_v12 }
 0x78a   : > { %v11580_v63 = vpop.eup %11579  ;;  %v5956_v15 = vmul.f32 1.442695, %v5937_v41 }
 0x78b   : > { %5986 = vadd.xlane.f32.xlu1 %v11580_v63  ;;  %6337 = vmatpush.bf16.msrb.mxu0 %v10494_v62 }
 0x78c   : > { %11581 = vpow2.f32 %v5956_v15  ;;  %5508 = vmax.xlane.f32.xlu0 %v13773_v43 }
 0x78f   : > { %v5911_v33 = vpop.xlane.xlu2 %5910 }
 0x790   : > { %v5938_v53 = vsub.f32 %v13729_v24, %v5911_v33  ;;  %v13791_v24 = vpop.f32.mrf.mxu0 }
 0x792   : > { %v11582_v39 = vpop.eup %11581  ;;  %v5958_v59 = vmul.f32 1.442695, %v5938_v53  ;;  %v11359_v53 = vld [vmem:[#allocation10 + $0x16c] sm:$0xf0] }
 0x793   : > { %5988 = vadd.xlane.f32.xlu2 %v11582_v39  ;;  %5510 = vmax.xlane.f32.xlu1 %v13778_v6  ;;  %v6015_v34 = vpack.c.bf16 %v11582_v39, %v11580_v63 }
 0x794   : > { %11583 = vpow2.f32 %v5958_v59 }
 0x795   : > { %6067 = vmatmul.bf16.gmra.mxu3 %v6015_v34 }
 0x797   : > { %v5913_v18 = vpop.xlane.xlu2 %5912 }
 0x798   : > { %v5939_v42 = vsub.f32 %v13732_v56, %v5913_v18  ;;  %v10477_v56 = vld [vmem:[#allocation10 + $0x180] sm:$0xf]  ;;  %v13795_v58 = vpop.f32.mrf.mxu0 }
 0x799   : > { %v10478_v61 = vor.u32 %v11363_v52, %v10477_v56 }
 0x79a   : > { %v11584_v28 = vpop.eup %11583  ;;  %v5960_v17 = vmul.f32 1.442695, %v5939_v42 }
 0x79b   : > { %5990 = vadd.xlane.f32.xlu2 %v11584_v28  ;;  %5512 = vmax.xlane.f32.xlu1 %v13781_v13 }
 0x79c   : > { %11585 = vpow2.f32 %v5960_v17  ;;  %6338 = vmatpush.bf16.msrb.mxu0 %v10478_v61 }
 0x79f   : > { %v5915_v38 = vpop.xlane.xlu0 %5914 }
 0x7a0   : > { %v5940_v26 = vsub.f32 %v13735_v46, %v5915_v38  ;;  %v13799_v22 = vpop.f32.mrf.mxu0 }
 0x7a2   : > { %v11586_v40 = vpop.eup %11585  ;;  %v5962_v55 = vmul.f32 1.442695, %v5940_v26  ;;  %v11355_v26 = vld [vmem:[#allocation10 + $0x14c] sm:$0xf0] }
 0x7a3   : > { %5992 = vadd.xlane.f32.xlu0 %v11586_v40  ;;  %5514 = vmax.xlane.f32.xlu2 %v13786_v30  ;;  %v6016_v36 = vpack.c.bf16 %v11586_v40, %v11584_v28 }
 0x7a4   : > { %11587 = vpow2.f32 %v5962_v55 }
 0x7a5   : > { %6072 = vmatmul.bf16.gmra.mxu3 %v6016_v36 }
 0x7a7   : > { %v5917_v50 = vpop.xlane.xlu1 %5916 }
 0x7a8   : > { %v5941_v0 = vsub.f32 %v13738_v47, %v5917_v50  ;;  %v10461_v47 = vld [vmem:[#allocation10 + $0x160] sm:$0xf]  ;;  %v13804_v35 = vpop.f32.mrf.mxu0 }
 0x7a9   : > { %v10462_v39 = vor.u32 %v11359_v53, %v10461_v47  ;;  %v10535_v53 = vld [vmem:[#allocation10 + $0x1f8] sm:$0xf0] }
 0x7aa   : > { %v11588_v10 = vpop.eup %11587  ;;  %v5964_v32 = vmul.f32 1.442695, %v5941_v0  ;;  %v10429_v0 = vld [vmem:[#allocation10 + $0x120] sm:$0xf] }
 0x7ab   : > { %5994 = vadd.xlane.f32.xlu0 %v11588_v10  ;;  %5516 = vmax.xlane.f32.xlu2 %v13791_v24 }
 0x7ac   : > { %11589 = vpow2.f32 %v5964_v32  ;;  %6339 = vmatpush.bf16.msrb.mxu0 %v10462_v39  ;;  %v10413_v39 = vld [vmem:[#allocation10 + $0x100] sm:$0xf] }
 0x7af   : > { %v5919_v46 = vpop.xlane.xlu2 %5918 }
 0x7b0   : > { %v5942_v41 = vsub.f32 %v13741_v23, %v5919_v46  ;;  %v13809_v38 = vpop.f32.mrf.mxu0 }
 0x7b2   : > { %v11590_v63 = vpop.eup %11589  ;;  %v5966_v15 = vmul.f32 1.442695, %v5942_v41 }
 0x7b3   : > { %5996 = vadd.xlane.f32.xlu1 %v11590_v63  ;;  %5518 = vmax.xlane.f32.xlu0 %v13795_v58  ;;  %v6017_v33 = vpack.c.bf16 %v11590_v63, %v11588_v10  ;;  %v11351_v10 = vld [vmem:[#allocation10 + $0x12c] sm:$0xf0]  ;;  %v10533_v63 = vld [vmem:[#allocation10 + $0x1e8] sm:$0xf] }
 0x7b4   : > { %11591 = vpow2.f32 %v5966_v15  ;;  %v10430_v41 = vor.u32 %v11351_v10, %v10429_v0  ;;  %v11376_v15 = vld [vmem:[#allocation10 + $0x1f4] sm:$0xf0] }
 0x7b5   : > { %6077 = vmatmul.bf16.gmra.mxu3 %v6017_v33  ;;  %v11374_v33 = vld [vmem:[#allocation10 + $0x1ec] sm:$0xf]  ;;  %v10534_v47 = vor.u32 %v11376_v15, %v10533_v63  ;;  %v11368_v10 = vld [vmem:[#allocation10 + $0x1b4] sm:$0xf0]  ;;  %v10621_v63 = vld [vmem:[#allocation10 + $0xa0] sm:$0xf] }
 0x7b6   : > { %v11335_v15 = vld [vmem:[#allocation10 + $0xac] sm:$0xf0] }
 0x7b7   : > { %v5921_v59 = vpop.xlane.xlu0 %5920  ;;  %6433 = vmatpush.bf16.msrb.mxu2 %v10534_v47 }
 0x7b8   : > { %v5943_v34 = vsub.f32 %v13744_v51, %v5921_v59  ;;  %v10445_v51 = vld [vmem:[#allocation10 + $0x140] sm:$0xf]  ;;  %v11347_v59 = vld [vmem:[#allocation10 + $0x10c] sm:$0xf0] }
 0x7b9   : > { %v10446_v40 = vor.u32 %v11355_v26, %v10445_v51  ;;  %v11372_v51 = vld [vmem:[#allocation10 + $0x1d4] sm:$0xf0]  ;;  %v11370_v26 = vld [vmem:[#allocation10 + $0x1cc] sm:$0xf] }
 0x7ba   : > { %v11592_v12 = vpop.eup %11591  ;;  %v5968_v62 = vmul.f32 1.442695, %v5943_v34  ;;  %v10414_v34 = vor.u32 %v11347_v59, %v10413_v39 }
 0x7bb   : > { %5998 = vadd.xlane.f32.xlu1 %v11592_v12  ;;  %5520 = vmax.xlane.f32.xlu0 %v13799_v22 }
 0x7bc   : > { %11593 = vpow2.f32 %v5968_v62  ;;  %6340 = vmatpush.bf16.msrb.mxu0 %v10446_v40  ;;  %v11343_v62 = vld [vmem:[#allocation10 + $0xec] sm:$0xf0] }
 0x7bf   : > { %v5923_v23 = vpop.xlane.xlu1 %5922 }
 0x7c0   : > { %v5944_v18 = vsub.f32 %v13747_v16, %v5923_v23  ;;  %v13813_v16 = vpop.f32.mrf.mxu0  ;;  %6341 = vmatpush.bf16.msrb.mxu0 %v10430_v41  ;;  %v10503_v41 = vld [vmem:[#allocation10 + $0x1b8] sm:$0xf0] }
 0x7c2   : > { %v11594_v42 = vpop.eup %11593  ;;  %v5970_v28 = vmul.f32 1.442695, %v5944_v18 }
 0x7c3   : > { %6000 = vadd.xlane.f32.xlu2 %v11594_v42  ;;  %5522 = vmax.xlane.f32.xlu1 %v13804_v35  ;;  %v6018_v17 = vpack.c.bf16 %v11594_v42, %v11592_v12  ;;  %v10653_v12 = vld [vmem:[#allocation10 + $0xe0] sm:$0xf] }
 0x7c4   : > { %11595 = vpow2.f32 %v5970_v28  ;;  %v10654_v18 = vor.u32 %v11343_v62, %v10653_v12  ;;  %6342 = vmatpush.bf16.msrb.mxu0 %v10414_v34  ;;  %v11364_v34 = vld [vmem:[#allocation10 + $0x194] sm:$0xf0]  ;;  %v11362_v12 = vld [vmem:[#allocation10 + $0x18c] sm:$0xf] }
 0x7c5   : > { %6082 = vmatmul.bf16.gmra.mxu3 %v6018_v17  ;;  %v10517_v17 = vld [vmem:[#allocation10 + $0x1c8] sm:$0xf] }
 0x7c6   : > { %v10518_v40 = vor.u32 %v11372_v51, %v10517_v17 }
 0x7c7   : > { %v5925_v55 = vpop.xlane.xlu2 %5924 }
 0x7c8   : > { %v5945_v36 = vsub.f32 %v13752_v5, %v5925_v55  ;;  %v13817_v42 = vpop.f32.mrf.mxu0  ;;  %6691 = vmatpush.bf16.msra.mxu0 %v10654_v18  ;;  %v10519_v55 = vld [vmem:[#allocation10 + $0x1d8] sm:$0xf0]  ;;  %6434 = vmatpush.bf16.msrb.mxu2 %v10518_v40  ;;  %v10605_v40 = vld [vmem:[#allocation10 + $0x80] sm:$0xf] }
 0x7ca   : > { %v11596_v56 = vpop.eup %11595  ;;  %v5972_v52 = vmul.f32 1.442695, %v5945_v36 }
 0x7cb   : > { %6002 = vadd.xlane.f32.xlu2 %v11596_v56  ;;  %5524 = vmax.xlane.f32.xlu1 %v13809_v38 }
 0x7cc   : > { %11597 = vpow2.f32 %v5972_v52  ;;  %v10522_v52 = vor.u32 %v11370_v26, %v10519_v55 }
 0x7cf   : > { %v5927_v61 = vpop.xlane.xlu0 %5926 }
 0x7d0   : > { %v5946_v50 = vsub.f32 %v13757_v3, %v5927_v61  ;;  %v10538_v3 = vor.u32 %v11374_v33, %v10535_v53  ;;  %v10637_v61 = vld [vmem:[#allocation10 + $0xc0] sm:$0xf]  ;;  %v10622_v53 = vor.u32 %v11335_v15, %v10621_v63  ;;  %v10453_v15 = vld [vmem:[#allocation10 + $0x148] sm:$0xf] }
 0x7d2   : > { %v11598_v32 = vpop.eup %11597  ;;  %v5974_v46 = vmul.f32 1.442695, %v5946_v50  ;;  %6482 = vmatpush.bf16.msrb.mxu3 %v10538_v3  ;;  %v11339_v50 = vld [vmem:[#allocation10 + $0xcc] sm:$0xf0]  ;;  %v10485_v3 = vld [vmem:[#allocation10 + $0x188] sm:$0xf] }
 0x7d3   : > { %6004 = vadd.xlane.f32.xlu0 %v11598_v32  ;;  %5526 = vmax.xlane.f32.xlu2 %v13813_v16  ;;  %v6019_v5 = vpack.c.bf16 %v11598_v32, %v11596_v56  ;;  %v10638_v0 = vor.u32 %v11339_v50, %v10637_v61  ;;  %v11366_v32 = vld [vmem:[#allocation10 + $0x1ac] sm:$0xf]  ;;  %v10486_v62 = vor.u32 %v11364_v34, %v10485_v3 }
 0x7d4   : > { %11599 = vpow2.f32 %v5974_v46  ;;  %v11358_v61 = vld [vmem:[#allocation10 + $0x16c] sm:$0xf] }
 0x7d5   : > { %6087 = vmatmul.bf16.gmra.mxu3 %v6019_v5  ;;  %6692 = vmatpush.bf16.msra.mxu0 %v10638_v0  ;;  %v10506_v5 = vor.u32 %v11366_v32, %v10503_v41  ;;  %v10471_v0 = vld [vmem:[#allocation10 + $0x178] sm:$0xf0]  ;;  %v11327_v32 = vld [vmem:[#allocation10 + $0x6c] sm:$0xf0] }
 0x7d6   : > { %6483 = vmatpush.bf16.msrb.mxu3 %v10522_v52  ;;  %v11360_v52 = vld [vmem:[#allocation10 + $0x174] sm:$0xf0] }
 0x7d7   : > { %v5929_v23 = vpop.xlane.xlu1 %5928 }
 0x7d8   : > { %v5947_v28 = vsub.f32 %v13762_v7, %v5929_v23  ;;  %v10501_v7 = vld [vmem:[#allocation10 + $0x1a8] sm:$0xf]  ;;  %v10487_v23 = vld [vmem:[#allocation10 + $0x198] sm:$0xf0] }
 0x7d9   : > { %v10502_v46 = vor.u32 %v11368_v10, %v10501_v7  ;;  %6693 = vmatpush.bf16.msra.mxu0 %v10622_v53  ;;  %v10490_v26 = vor.u32 %v11362_v12, %v10487_v23  ;;  %v10474_v7 = vor.u32 %v11358_v61, %v10471_v0  ;;  %v10589_v10 = vld [vmem:[#allocation10 + $0x60] sm:$0xf]  ;;  %v10421_v0 = vld [vmem:[#allocation10 + $0x108] sm:$0xf] }
 0x7da   : > { %v11600_v36 = vpop.eup %11599  ;;  %v5976_v56 = vmul.f32 1.442695, %v5947_v28  ;;  %6484 = vmatpush.bf16.msrb.mxu3 %v10506_v5  ;;  %v13823_v28 = vpop.f32.mrf.mxu0  ;;  %v10590_v5 = vor.u32 %v11327_v32, %v10589_v10  ;;  %v11346_v10 = vld [vmem:[#allocation10 + $0x10c] sm:$0xf] }
 0x7db   : > { %6006 = vadd.xlane.f32.xlu0 %v11600_v36  ;;  %5528 = vmax.xlane.f32.xlu2 %v13817_v42 }
 0x7dc   : > { %11601 = vpow2.f32 %v5976_v56  ;;  %6435 = vmatpush.bf16.msrb.mxu2 %v10502_v46  ;;  %v10469_v56 = vld [vmem:[#allocation10 + $0x168] sm:$0xf] }
 0x7dd   : > { %v10470_v50 = vor.u32 %v11360_v52, %v10469_v56 }
 0x7de   : > { %6485 = vmatpush.bf16.msrb.mxu3 %v10490_v26  ;;  %v11350_v26 = vld [vmem:[#allocation10 + $0x12c] sm:$0xf] }
 0x7df   : > { %v5931_v33 = vpop.xlane.xlu2 %5930  ;;  %v5501_v47 = vpop.xlane.xlu1 %5500 }
 0x7e0   : > { %v5948_v39 = vsub.f32 %v13767_v31, %v5931_v33  ;;  %v5532_v59 = vsub.f32 %v13749_v29, %v5501_v47  ;;  %v11331_v29 = vld [vmem:[#allocation10 + $0x8c] sm:$0xf0]  ;;  %6436 = vmatpush.bf16.msrb.mxu2 %v10486_v62  ;;  %v11356_v33 = vld [vmem:[#allocation10 + $0x154] sm:$0xf0]  ;;  %v11354_v47 = vld [vmem:[#allocation10 + $0x14c] sm:$0xf] }
 0x7e1   : > { %v10606_v55 = vor.u32 %v11331_v29, %v10605_v40  ;;  %v10454_v53 = vor.u32 %v11356_v33, %v10453_v15  ;;  %v10573_v62 = vld [vmem:[#allocation10 + $0x40] sm:$0xf]  ;;  %v10439_v40 = vld [vmem:[#allocation10 + $0x138] sm:$0xf0]  ;;  %v11315_v15 = vld [vmem:[#allocation10 + $0xc] sm:$0xf0] }
 0x7e2   : > { %v11602_v18 = vpop.eup %11601  ;;  %v5978_v17 = vmul.f32 1.442695, %v5948_v39  ;;  %v5548_v51 = vmul.f32 1.442695, %v5532_v59  ;;  %6486 = vmatpush.bf16.msrb.mxu3 %v10474_v7  ;;  %v10455_v39 = vld [vmem:[#allocation10 + $0x158] sm:$0xf0] }
 0x7e3   : > { %6008 = vadd.xlane.f32.xlu1 %v11602_v18  ;;  %5530 = vmax.xlane.f32.xlu0 %v13823_v28  ;;  %v6020_v31 = vpack.c.bf16 %v11602_v18, %v11600_v36  ;;  %v10458_v12 = vor.u32 %v11354_v47, %v10455_v39  ;;  %v11323_v18 = vld [vmem:[#allocation10 + $0x4c] sm:$0xf0]  ;;  %v10557_v29 = vld [vmem:[#allocation10 + $0x20] sm:$0xf]  ;;  %v11348_v7 = vld [vmem:[#allocation10 + $0x114] sm:$0xf0] }
 0x7e4   : > { %11603 = vpow2.f32 %v5978_v17  ;;  %6694 = vmatpush.bf16.msra.mxu0 %v10606_v55  ;;  %6437 = vmatpush.bf16.msrb.mxu2 %v10470_v50  ;;  %v10437_v17 = vld [vmem:[#allocation10 + $0x128] sm:$0xf]  ;;  %v11319_v55 = vld [vmem:[#allocation10 + $0x2c] sm:$0xf0]  ;;  %v10422_v32 = vor.u32 %v11348_v7, %v10421_v0 }
 0x7e5   : > { %11605 = vpow2.f32 %v5548_v51  ;;  %6092 = vmatmul.bf16.gmra.mxu3 %v6020_v31  ;;  %v10442_v31 = vor.u32 %v11350_v26, %v10439_v40  ;;  %v10558_v61 = vor.u32 %v11319_v55, %v10557_v29 }
 0x7e6   : > { %6487 = vmatpush.bf16.msrb.mxu3 %v10458_v12 }
 0x7e7   : > { %v5933_v46 = vpop.xlane.xlu0 %5932  ;;  %v5503_v41 = vpop.xlane.xlu2 %5502 }
 0x7e8   : > { %v5949_v36 = vsub.f32 %v13771_v57, %v5933_v46  ;;  %v5533_v63 = vsub.f32 %v13755_v48, %v5503_v41  ;;  %6695 = vmatpush.bf16.msra.mxu0 %v10590_v5  ;;  %v11352_v57 = vld [vmem:[#allocation10 + $0x134] sm:$0xf0]  ;;  %6438 = vmatpush.bf16.msrb.mxu2 %v10454_v53  ;;  %v10574_v48 = vor.u32 %v11323_v18, %v10573_v62  ;;  %v10423_v46 = vld [vmem:[#allocation10 + $0x118] sm:$0xf0] }
 0x7e9   : > { %v10438_v51 = vor.u32 %v11352_v57, %v10437_v17 }
 0x7ea   : > { %v11604_v59 = vpop.eup %11603  ;;  %v5980_v3 = vmul.f32 1.442695, %v5949_v36  ;;  %v5550_v34 = vmul.f32 1.442695, %v5533_v63  ;;  %6488 = vmatpush.bf16.msrb.mxu3 %v10442_v31  ;;  %v10426_v36 = vor.u32 %v11346_v10, %v10423_v46  ;;  %v10541_v63 = vld [vmem:[#allocation10] sm:$0xf] }
 0x7eb   : > { %v11606_v23 = vpop.eup %11605  ;;  %6010 = vadd.xlane.f32.xlu1 %v11604_v59  ;;  %v10542_v53 = vor.u32 %v11315_v15, %v10541_v63 }
 0x7ec   : > { %11607 = vpow2.f32 %v5980_v3  ;;  %5580 = vadd.xlane.f32.xlu0 %v11606_v23  ;;  %6696 = vmatpush.bf16.msra.mxu0 %v10574_v48 }
 0x7ed   : > { %11609 = vpow2.f32 %v5550_v34  ;;  %6439 = vmatpush.bf16.msrb.mxu2 %v10438_v51 }
 0x7ee   : > { %6489 = vmatpush.bf16.msrb.mxu3 %v10426_v36 }
 0x7ef   : > { %v5983_v56 = vpop.xlane.xlu0 %5982  ;;  %v5505_v52 = vpop.xlane.xlu2 %5504 }
 0x7f0   : > { %v5534_v50 = vsub.f32 %v13760_v45, %v5505_v52  ;;  %6697 = vmatpush.bf16.msra.mxu0 %v10558_v61 }
 0x7f1   : > { %6440 = vmatpush.bf16.msrb.mxu2 %v10422_v32 }
 0x7f2   : > { %v11608_v41 = vpop.eup %11607  ;;  %v5552_v5 = vmul.f32 1.442695, %v5534_v50 }
 0x7f3   : > { %v11610_v33 = vpop.eup %11609  ;;  %6012 = vadd.xlane.f32.xlu2 %v11608_v41  ;;  %v6021_v47 = vpack.c.bf16 %v11608_v41, %v11604_v59 }
 0x7f4   : > { %v5612_v39 = vpack.c.bf16 %v11610_v33, %v11606_v23  ;;  %11611 = vpow2.f32 %v5552_v5  ;;  %5582 = vadd.xlane.f32.xlu1 %v11610_v33  ;;  %6698 = vmatpush.bf16.msra.mxu0 %v10542_v53  ;;  %v15053_v5 = vld [vmem:[#allocation97_spill] sm:$0xff]  ;;  %v10527_v53 = vld [vmem:[#allocation10 + $0x1f0] sm:$0xf0] }
 0x7f5   : > { %6097 = vmatmul.bf16.gmra.mxu3 %v6021_v47  ;;  %v11373_v47 = vld [vmem:[#allocation10 + $0x1e4] sm:$0xf] }
 0x7f6   : > { %5676 = vmatmul.bf16.vlgmr.msra.gmra.mxu1 %v5612_v39  ;;  %v5985_v45 = vpop.xlane.xlu1 %5984  ;;  %v10530_v39 = vor.u32 %v11373_v47, %v10527_v53  ;;  %v10447_v47 = vld [vmem:[#allocation10 + $0x150] sm:$0xf0]  ;;  %v15056_v53 = vld [vmem:[#allocation83_spill] sm:$0xff] }
 0x7f7   : > { %v5507_v3 = vpop.xlane.xlu0 %5506 }
 0x7f8   : > { %v5535_v34 = vsub.f32 %v13765_v60, %v5507_v3  ;;  %6384 = vmatpush.bf16.msrb.mxu1 %v10530_v39 }
 0x7fa   : > { %v11612_v12 = vpop.eup %11611  ;;  %v5554_v62 = vmul.f32 1.442695, %v5535_v34  ;;  %v11369_v34 = vld [vmem:[#allocation10 + $0x1c4] sm:$0xf] }
 0x7fb   : > { %5584 = vadd.xlane.f32.xlu2 %v11612_v12 }
 0x7fc   : > { %11613 = vpow2.f32 %v5554_v62 }
 0x7fe   : > { %v5987_v18 = vpop.xlane.xlu1 %5986 }
 0x7ff   : > { %v5509_v17 = vpop.xlane.xlu0 %5508 }
 0x800   : > { %v5536_v59 = vsub.f32 %v13773_v43, %v5509_v17  ;;  %v15054_v17 = vld [vmem:[#allocation95_spill] sm:$0xff] }
 0x802   : > { %v11614_v23 = vpop.eup %11613  ;;  %v5556_v57 = vmul.f32 1.442695, %v5536_v59 }
 0x803   : > { %5586 = vadd.xlane.f32.xlu0 %v11614_v23  ;;  %v5613_v48 = vpack.c.bf16 %v11614_v23, %v11612_v12  ;;  %v10511_v12 = vld [vmem:[#allocation10 + $0x1d0] sm:$0xf0] }
 0x804   : > { %11615 = vpow2.f32 %v5556_v57  ;;  %v10514_v59 = vor.u32 %v11369_v34, %v10511_v12 }
 0x805   : > { %11617 = vrcp.f32 %v5983_v56 }
 0x806   : > { %5681 = vmatmul.bf16.gmra.mxu1 %v5613_v48  ;;  %v5989_v51 = vpop.xlane.xlu2 %5988  ;;  %v5511_v26 = vpop.xlane.xlu1 %5510  ;;  %11619 = vrcp.f32 %v5985_v45 }
 0x807   : > { %v5537_v40 = vsub.f32 %v13778_v6, %v5511_v26  ;;  %6385 = vmatpush.bf16.msrb.mxu1 %v10514_v59  ;;  %v11349_v59 = vld [vmem:[#allocation10 + $0x124] sm:$0xf] }
 0x808   : > { %v6063_v31 = vpop.f32.mrf.mxu3 }
 0x809   : > { %v5558_v60 = vmul.f32 1.442695, %v5537_v40 }
 0x80a   : > { %v11616_v29 = vpop.eup %11615 }
 0x80b   : > { %11621 = vpow2.f32 %v5558_v60  ;;  %5588 = vadd.xlane.f32.xlu1 %v11616_v29  ;;  %v11618_v52 = vpop.eup %11617  ;;  %v10495_v60 = vld [vmem:[#allocation10 + $0x1b0] sm:$0xf0] }
 0x80c   : > { %v11620_v50 = vpop.eup %11619  ;;  %v6119_v10 = vmul.f32 %v11618_v52, %v6063_v31  ;;  %v11365_v31 = vld [vmem:[#allocation10 + $0x1a4] sm:$0xf] }
 0x80e   : > { %v13832_v55 = vpop.xlane.xlu2 %5990  ;;  %v5513_v43 = vpop.xlane.xlu1 %5512 }
 0x80f   : > { %v5538_v61 = vsub.f32 %v13781_v13, %v5513_v43  ;;  %v10498_v43 = vor.u32 %v11365_v31, %v10495_v60 }
 0x810   : > { %v6065_v0 = vpop.f32.mrf.mxu3 }
 0x811   : > { %v11622_v7 = vpop.eup %11621  ;;  %v5560_v32 = vmul.f32 1.442695, %v5538_v61  ;;  %v6120_v46 = vmul.f32 %v11620_v50, %v6065_v0  ;;  %v11361_v61 = vld [vmem:[#allocation10 + $0x184] sm:$0xf]  ;;  %v10479_v50 = vld [vmem:[#allocation10 + $0x190] sm:$0xf0]  ;;  %6386 = vmatpush.bf16.msrb.mxu1 %v10498_v43 }
 0x812   : > { %5590 = vadd.xlane.f32.xlu2 %v11622_v7  ;;  %v5614_v6 = vpack.c.bf16 %v11622_v7, %v11616_v29  ;;  %v15055_v0 = vld [vmem:[#allocation84_spill] sm:$0xff]  ;;  %v11341_v43 = vld [vmem:[#allocation10 + $0xe4] sm:$0xf] }
 0x813   : > { %11623 = vpow2.f32 %v5560_v32  ;;  %v13835_v56 = vpack.c.bf16 %v6120_v46, %v6119_v10  ;;  %v10482_v10 = vor.u32 %v11361_v61, %v10479_v50 }
 0x814   : > { %11625 = vrcp.f32 %v5987_v18 }
 0x815   : > { %6343 = vmatmul.bf16.vlgmr.msrb.gmra.mxu0 %v13835_v56  ;;  %6441 = vmatmul.bf16.vlgmr.msrb.gmra.mxu2 %v13835_v56  ;;  %11627 = vrcp.f32 %v5989_v51 }
 0x816   : > { %5686 = vmatmul.bf16.gmra.mxu1 %v5614_v6  ;;  %6490 = vmatmul.bf16.vlgmr.msrb.gmra.mxu3 %v13835_v56  ;;  %v5993_v41 = vpop.xlane.xlu0 %5992  ;;  %v5515_v13 = vpop.xlane.xlu2 %5514 }
 0x817   : > { %6983 = vmatpush.bf16.xpose.msrb.mxu0 %v15053_v5  ;;  %v5539_v36 = vsub.f32 %v13786_v30, %v5515_v13  ;;  %v11357_v13 = vld [vmem:[#allocation10 + $0x164] sm:$0xf]  ;;  %v10463_v5 = vld [vmem:[#allocation10 + $0x170] sm:$0xf0]  ;;  %6387 = vmatpush.bf16.msrb.mxu1 %v10482_v10  ;;  %v10661_v10 = vld [vmem:[#allocation10 + $0xe8] sm:$0xf] }
 0x818   : > { %v6068_v63 = vpop.f32.mrf.mxu3 }
 0x819   : > { %v11624_v15 = vpop.eup %11623  ;;  %v5562_v33 = vmul.f32 1.442695, %v5539_v36  ;;  %v10466_v36 = vor.u32 %v11357_v13, %v10463_v5  ;;  %v10663_v13 = vld [vmem:[#allocation10 + $0xf8] sm:$0xf0]  ;;  %v10639_v5 = vld [vmem:[#allocation10 + $0xd0] sm:$0xf0] }
 0x81a   : > { %5592 = vadd.xlane.f32.xlu0 %v11624_v15  ;;  %v11626_v62 = vpop.eup %11625 }
 0x81b   : > { %11629 = vpow2.f32 %v5562_v33  ;;  %v11628_v18 = vpop.eup %11627  ;;  %v6121_v48 = vmul.f32 %v11626_v62, %v6068_v63  ;;  %v11353_v33 = vld [vmem:[#allocation10 + $0x144] sm:$0xf]  ;;  %6388 = vmatpush.bf16.msrb.mxu1 %v10466_v36 }
 0x81e   : > { %v13842_v45 = vpop.xlane.xlu0 %5994  ;;  %v5517_v3 = vpop.xlane.xlu2 %5516 }
 0x81f   : > { %6984 = vmatpush.bf16.xpose.msrb.mxu0 %v15054_v17  ;;  %v5540_v30 = vsub.f32 %v13791_v24, %v5517_v3 }
 0x820   : > { %v6070_v23 = vpop.f32.mrf.mxu3 }
 0x821   : > { %v11630_v57 = vpop.eup %11629  ;;  %v5564_v51 = vmul.f32 1.442695, %v5540_v30  ;;  %v6122_v26 = vmul.f32 %v11628_v18, %v6070_v23  ;;  %v10431_v18 = vld [vmem:[#allocation10 + $0x130] sm:$0xf0] }
 0x822   : > { %5594 = vadd.xlane.f32.xlu1 %v11630_v57  ;;  %v5615_v40 = vpack.c.bf16 %v11630_v57, %v11624_v15  ;;  %v10434_v57 = vor.u32 %v11349_v59, %v10431_v18 }
 0x823   : > { %11631 = vpow2.f32 %v5564_v51  ;;  %v13846_v29 = vpack.c.bf16 %v6122_v26, %v6121_v48  ;;  %v11345_v51 = vld [vmem:[#allocation10 + $0x104] sm:$0xf]  ;;  %v10415_v26 = vld [vmem:[#allocation10 + $0x110] sm:$0xf0] }
 0x824   : > { %11633 = vrcp.f32 %v13832_v55  ;;  %v10450_v55 = vor.u32 %v11353_v33, %v10447_v47  ;;  %v10418_v60 = vor.u32 %v11345_v51, %v10415_v26 }
 0x825   : > { %6348 = vmatmul.bf16.gmra.mxu0 %v13846_v29  ;;  %6446 = vmatmul.bf16.gmra.mxu2 %v13846_v29  ;;  %11635 = vrcp.f32 %v5993_v41 }
 0x826   : > { %5691 = vmatmul.bf16.gmra.mxu1 %v5615_v40  ;;  %6495 = vmatmul.bf16.gmra.mxu3 %v13846_v29  ;;  %v5997_v24 = vpop.xlane.xlu1 %5996  ;;  %v5519_v52 = vpop.xlane.xlu0 %5518  ;;  %v15057_v40 = vld [vmem:[#allocation91_spill] sm:$0xff] }
 0x827   : > { %6985 = vmatpush.bf16.xpose.msrb.mxu0 %v15055_v0  ;;  %v5541_v7 = vsub.f32 %v13795_v58, %v5519_v52  ;;  %6389 = vmatpush.bf16.msrb.mxu1 %v10450_v55  ;;  %v10655_v52 = vld [vmem:[#allocation10 + $0xf0] sm:$0xf0] }
 0x828   : > { %v6073_v32 = vpop.f32.mrf.mxu3  ;;  %v10658_v50 = vor.u32 %v11341_v43, %v10655_v52  ;;  %v10631_v52 = vld [vmem:[#allocation10 + $0xb8] sm:$0xf0] }
 0x829   : > { %v11632_v46 = vpop.eup %11631  ;;  %v5566_v6 = vmul.f32 1.442695, %v5541_v7 }
 0x82a   : > { %5596 = vadd.xlane.f32.xlu2 %v11632_v46  ;;  %v11634_v58 = vpop.eup %11633 }
 0x82b   : > { %11637 = vpow2.f32 %v5566_v6  ;;  %v11636_v3 = vpop.eup %11635  ;;  %v6123_v12 = vmul.f32 %v11634_v58, %v6073_v32  ;;  %6390 = vmatpush.bf16.msrb.mxu1 %v10434_v57  ;;  %v11344_v32 = vld [vmem:[#allocation10 + $0xf4] sm:$0xf0]  ;;  %v11338_v58 = vld [vmem:[#allocation10 + $0xcc] sm:$0xf] }
 0x82c   : > { %v10662_v6 = vor.u32 %v11344_v32, %v10661_v10 }
 0x82e   : > { %v13854_v63 = vpop.xlane.xlu1 %5998  ;;  %v5521_v15 = vpop.xlane.xlu0 %5520  ;;  %6789 = vmatpush.bf16.msra.mxu2 %v10662_v6  ;;  %v11332_v6 = vld [vmem:[#allocation10 + $0x94] sm:$0xf0] }
 0x82f   : > { %6986 = vmatpush.bf16.xpose.msrb.mxu0 %v15056_v53  ;;  %v5542_v39 = vsub.f32 %v13799_v22, %v5521_v15  ;;  %6391 = vmatpush.bf16.msrb.mxu1 %v10418_v60 }
 0x830   : > { %v6075_v41 = vpop.f32.mrf.mxu3 }
 0x831   : > { %v11638_v34 = vpop.eup %11637  ;;  %v5568_v62 = vmul.f32 1.442695, %v5542_v39  ;;  %v6124_v17 = vmul.f32 %v11636_v3, %v6075_v41  ;;  %v15058_v39 = vld [vmem:[#allocation89_spill] sm:$0xff] }
 0x832   : > { %5598 = vadd.xlane.f32.xlu0 %v11638_v34  ;;  %v5616_v30 = vpack.c.bf16 %v11638_v34, %v11632_v46  ;;  %v11342_v46 = vld [vmem:[#allocation10 + $0xec] sm:$0xf]  ;;  %v10647_v41 = vld [vmem:[#allocation10 + $0xd8] sm:$0xf0]  ;;  %v11333_v34 = vld [vmem:[#allocation10 + $0xa4] sm:$0xf] }
 0x833   : > { %11639 = vpow2.f32 %v5568_v62  ;;  %v13858_v23 = vpack.c.bf16 %v6124_v17, %v6123_v12  ;;  %6740 = vmatpush.bf16.msra.mxu1 %v10658_v50  ;;  %v10666_v36 = vor.u32 %v11342_v46, %v10663_v13  ;;  %v10623_v12 = vld [vmem:[#allocation10 + $0xb0] sm:$0xf0]  ;;  %v11329_v50 = vld [vmem:[#allocation10 + $0x84] sm:$0xf]  ;;  %v10613_v46 = vld [vmem:[#allocation10 + $0x88] sm:$0xf] }
 0x834   : > { %11641 = vrcp.f32 %v13842_v45  ;;  %v10645_v45 = vld [vmem:[#allocation10 + $0xc8] sm:$0xf]  ;;  %v10626_v59 = vor.u32 %v11333_v34, %v10623_v12  ;;  %v11330_v13 = vld [vmem:[#allocation10 + $0x8c] sm:$0xf]  ;;  %v10599_v34 = vld [vmem:[#allocation10 + $0x78] sm:$0xf0] }
 0x835   : > { %6353 = vmatmul.bf16.gmra.mxu0 %v13858_v23  ;;  %6451 = vmatmul.bf16.gmra.mxu2 %v13858_v23  ;;  %11643 = vrcp.f32 %v5997_v24  ;;  %v11340_v24 = vld [vmem:[#allocation10 + $0xd4] sm:$0xf0]  ;;  %v11321_v12 = vld [vmem:[#allocation10 + $0x44] sm:$0xf] }
 0x836   : > { %5696 = vmatmul.bf16.gmra.mxu1 %v5616_v30  ;;  %6500 = vmatmul.bf16.gmra.mxu3 %v13858_v23  ;;  %v13863_v22 = vpop.xlane.xlu2 %6000  ;;  %v5523_v48 = vpop.xlane.xlu1 %5522  ;;  %v10646_v3 = vor.u32 %v11340_v24, %v10645_v45  ;;  %v10650_v30 = vor.u32 %v11338_v58, %v10647_v41  ;;  %v10591_v45 = vld [vmem:[#allocation10 + $0x70] sm:$0xf0]  ;;  %v11328_v41 = vld [vmem:[#allocation10 + $0x74] sm:$0xf0] }
 0x837   : > { %6987 = vmatpush.bf16.xpose.msrb.mxu0 %v15057_v40  ;;  %v5543_v31 = vsub.f32 %v13804_v35, %v5523_v48  ;;  %v11337_v35 = vld [vmem:[#allocation10 + $0xc4] sm:$0xf]  ;;  %6838 = vmatpush.bf16.msra.mxu3 %v10666_v36  ;;  %v10629_v40 = vld [vmem:[#allocation10 + $0xa8] sm:$0xf]  ;;  %v10614_v36 = vor.u32 %v11332_v6, %v10613_v46 }
 0x838   : > { %v6078_v61 = vpop.f32.mrf.mxu3  ;;  %v10642_v15 = vor.u32 %v11337_v35, %v10639_v5  ;;  %6790 = vmatpush.bf16.msra.mxu2 %v10646_v3  ;;  %v15059_v35 = vld [vmem:[#allocation87_spill] sm:$0xff] }
 0x839   : > { %v11640_v0 = vpop.eup %11639  ;;  %v5570_v7 = vmul.f32 1.442695, %v5543_v31  ;;  %v11336_v31 = vld [vmem:[#allocation10 + $0xb4] sm:$0xf0]  ;;  %v10597_v3 = vld [vmem:[#allocation10 + $0x68] sm:$0xf] }
 0x83a   : > { %5600 = vadd.xlane.f32.xlu1 %v11640_v0  ;;  %v11642_v53 = vpop.eup %11641  ;;  %6741 = vmatpush.bf16.msra.mxu1 %v10642_v15  ;;  %v10630_v43 = vor.u32 %v11336_v31, %v10629_v40  ;;  %v10615_v15 = vld [vmem:[#allocation10 + $0x98] sm:$0xf0] }
 0x83b   : > { %11645 = vpow2.f32 %v5570_v7  ;;  %v11644_v62 = vpop.eup %11643  ;;  %v6125_v57 = vmul.f32 %v11642_v53, %v6078_v61  ;;  %6839 = vmatpush.bf16.msra.mxu3 %v10650_v30  ;;  %v10607_v7 = vld [vmem:[#allocation10 + $0x90] sm:$0xf0]  ;;  %v10618_v58 = vor.u32 %v11330_v13, %v10615_v15 }
 0x83c   : > { %v10610_v32 = vor.u32 %v11329_v50, %v10607_v7  ;;  %6791 = vmatpush.bf16.msra.mxu2 %v10630_v43  ;;  %v11317_v43 = vld [vmem:[#allocation10 + $0x24] sm:$0xf] }
 0x83e   : > { %v13868_v33 = vpop.xlane.xlu2 %6002  ;;  %v5525_v47 = vpop.xlane.xlu1 %5524  ;;  %6742 = vmatpush.bf16.msra.mxu1 %v10626_v59 }
 0x83f   : > { %6988 = vmatpush.bf16.xpose.msrb.mxu0 %v15058_v39  ;;  %v5544_v55 = vsub.f32 %v13809_v38, %v5525_v47  ;;  %v11334_v38 = vld [vmem:[#allocation10 + $0xac] sm:$0xf]  ;;  %v11325_v47 = vld [vmem:[#allocation10 + $0x64] sm:$0xf] }
 0x840   : > { %v6080_v17 = vpop.f32.mrf.mxu3  ;;  %v10634_v10 = vor.u32 %v11334_v38, %v10631_v52  ;;  %v10594_v53 = vor.u32 %v11325_v47, %v10591_v45  ;;  %6792 = vmatpush.bf16.msra.mxu2 %v10614_v36  ;;  %v10583_v38 = vld [vmem:[#allocation10 + $0x58] sm:$0xf0]  ;;  %v10559_v52 = vld [vmem:[#allocation10 + $0x30] sm:$0xf0]  ;;  %v11320_v36 = vld [vmem:[#allocation10 + $0x34] sm:$0xf0] }
 0x841   : > { %v11646_v18 = vpop.eup %11645  ;;  %v5572_v48 = vmul.f32 1.442695, %v5544_v55  ;;  %v6126_v51 = vmul.f32 %v11644_v62, %v6080_v17  ;;  %v10598_v62 = vor.u32 %v11328_v41, %v10597_v3  ;;  %v10575_v17 = vld [vmem:[#allocation10 + $0x50] sm:$0xf0]  ;;  %v10567_v45 = vld [vmem:[#allocation10 + $0x38] sm:$0xf0] }
 0x842   : > { %5602 = vadd.xlane.f32.xlu2 %v11646_v18  ;;  %v5617_v26 = vpack.c.bf16 %v11646_v18, %v11640_v0  ;;  %6840 = vmatpush.bf16.msra.mxu3 %v10634_v10  ;;  %v10578_v59 = vor.u32 %v11321_v12, %v10575_v17  ;;  %v11316_v41 = vld [vmem:[#allocation10 + $0x14] sm:$0xf0]  ;;  %v10781_v17 = vld [vmem:[#allocation10 + $0x2e0] sm:$0xf] }
 0x843   : > { %11647 = vpow2.f32 %v5572_v48  ;;  %v13872_v60 = vpack.c.bf16 %v6126_v51, %v6125_v57  ;;  %6743 = vmatpush.bf16.msra.mxu1 %v10610_v32  ;;  %v10581_v57 = vld [vmem:[#allocation10 + $0x48] sm:$0xf]  ;;  %v11324_v48 = vld [vmem:[#allocation10 + $0x54] sm:$0xf0]  ;;  %v11322_v51 = vld [vmem:[#allocation10 + $0x4c] sm:$0xf]  ;;  %v10562_v32 = vor.u32 %v11317_v43, %v10559_v52 }
 0x844   : > { %11649 = vrcp.f32 %v13854_v63  ;;  %6793 = vmatpush.bf16.msra.mxu2 %v10598_v62  ;;  %v10582_v31 = vor.u32 %v11324_v48, %v10581_v57  ;;  %v10586_v10 = vor.u32 %v11322_v51, %v10583_v38  ;;  %v10551_v62 = vld [vmem:[#allocation10 + $0x18] sm:$0xf0]  ;;  %v11405_v48 = vld [vmem:[#allocation10 + $0x2e4] sm:$0xf]  ;;  %v10783_v51 = vld [vmem:[#allocation10 + $0x2f0] sm:$0xf0] }
 0x845   : > { %6358 = vmatmul.bf16.gmra.mxu0 %v13872_v60  ;;  %6456 = vmatmul.bf16.gmra.mxu2 %v13872_v60  ;;  %11651 = vrcp.f32 %v13863_v22  ;;  %v15060_v22 = vld [vmem:[#allocation85_spill] sm:$0xff]  ;;  %v11401_v38 = vld [vmem:[#allocation10 + $0x2c4] sm:$0xf]  ;;  %v10767_v52 = vld [vmem:[#allocation10 + $0x2d0] sm:$0xf0] }
 0x846   : > { %5701 = vmatmul.bf16.gmra.mxu1 %v5617_v26  ;;  %6505 = vmatmul.bf16.gmra.mxu3 %v13872_v60  ;;  %v13877_v61 = vpop.xlane.xlu0 %6004  ;;  %v5527_v0 = vpop.xlane.xlu2 %5526 }
 0x847   : > { %6989 = vmatpush.bf16.xpose.msrb.mxu0 %v15059_v35  ;;  %v5545_v5 = vsub.f32 %v13813_v16, %v5527_v0  ;;  %v11326_v16 = vld [vmem:[#allocation10 + $0x6c] sm:$0xf]  ;;  %6841 = vmatpush.bf16.msra.mxu3 %v10618_v58  ;;  %v11313_v58 = vld [vmem:[#allocation10 + $0x4] sm:$0xf] }
 0x848   : > { %v6083_v24 = vpop.f32.mrf.mxu3  ;;  %6744 = vmatpush.bf16.msra.mxu1 %v10594_v53  ;;  %v10602_v30 = vor.u32 %v11326_v16, %v10599_v34  ;;  %6794 = vmatpush.bf16.msra.mxu2 %v10582_v31  ;;  %v10543_v53 = vld [vmem:[#allocation10 + $0x10] sm:$0xf0]  ;;  %v11314_v16 = vld [vmem:[#allocation10 + $0xc] sm:$0xf]  ;;  %v11403_v31 = vld [vmem:[#allocation10 + $0x2cc] sm:$0xf0] }
 0x849   : > { %v11648_v39 = vpop.eup %11647  ;;  %v5574_v55 = vmul.f32 1.442695, %v5545_v5  ;;  %v10565_v5 = vld [vmem:[#allocation10 + $0x28] sm:$0xf]  ;;  %v10546_v3 = vor.u32 %v11313_v58, %v10543_v53  ;;  %v11395_v58 = vld [vmem:[#allocation10 + $0x28c] sm:$0xf0] }
 0x84a   : > { %5604 = vadd.xlane.f32.xlu0 %v11648_v39  ;;  %v11650_v26 = vpop.eup %11649  ;;  %v10566_v47 = vor.u32 %v11320_v36, %v10565_v5 }
 0x84b   : > { %11653 = vpow2.f32 %v5574_v55  ;;  %v11652_v50 = vpop.eup %11651  ;;  %6842 = vmatpush.bf16.msra.mxu3 %v10602_v30  ;;  %v6127_v46 = vmul.f32 %v11650_v26, %v6083_v24  ;;  %v11407_v30 = vld [vmem:[#allocation10 + $0x2ec] sm:$0xf0] }
 0x84c   : > { %6745 = vmatpush.bf16.msra.mxu1 %v10578_v59  ;;  %6795 = vmatpush.bf16.msra.mxu2 %v10566_v47  ;;  %v10782_v57 = vor.u32 %v11407_v30, %v10781_v17  ;;  %v10719_v17 = vld [vmem:[#allocation10 + $0x270] sm:$0xf0] }
 0x84e   : > { %v13883_v18 = vpop.xlane.xlu0 %6006  ;;  %v5529_v63 = vpop.xlane.xlu2 %5528 }
 0x84f   : > { %6990 = vmatpush.bf16.xpose.msrb.mxu0 %v15060_v22  ;;  %v5546_v40 = vsub.f32 %v13817_v42, %v5529_v63  ;;  %v11318_v42 = vld [vmem:[#allocation10 + $0x2c] sm:$0xf]  ;;  %6843 = vmatpush.bf16.msra.mxu3 %v10586_v10  ;;  %v10554_v63 = vor.u32 %v11314_v16, %v10551_v62  ;;  %v10749_v10 = vld [vmem:[#allocation10 + $0x2a0] sm:$0xf]  ;;  %v11391_v16 = vld [vmem:[#allocation10 + $0x26c] sm:$0xf0] }
 0x850   : > { %v6085_v7 = vpop.f32.mrf.mxu3  ;;  %6746 = vmatpush.bf16.msra.mxu1 %v10562_v32  ;;  %v10570_v55 = vor.u32 %v11318_v42, %v10567_v45  ;;  %v11399_v32 = vld [vmem:[#allocation10 + $0x2ac] sm:$0xf0]  ;;  %v10733_v45 = vld [vmem:[#allocation10 + $0x280] sm:$0xf]  ;;  %v11389_v62 = vld [vmem:[#allocation10 + $0x264] sm:$0xf] }
 0x851   : > { %v11654_v0 = vpop.eup %11653  ;;  %v5576_v6 = vmul.f32 1.442695, %v5546_v40  ;;  %v6128_v13 = vmul.f32 %v11652_v50, %v6085_v7  ;;  %v10786_v40 = vor.u32 %v11405_v48, %v10783_v51  ;;  %v10770_v50 = vor.u32 %v11401_v38, %v10767_v52  ;;  %v11385_v48 = vld [vmem:[#allocation10 + $0x244] sm:$0xf]  ;;  %v10703_v51 = vld [vmem:[#allocation10 + $0x250] sm:$0xf0] }
 0x852   : > { %5606 = vadd.xlane.f32.xlu1 %v11654_v0  ;;  %v5618_v35 = vpack.c.bf16 %v11654_v0, %v11648_v39  ;;  %v10549_v39 = vld [vmem:[#allocation10 + $0x8] sm:$0xf]  ;;  %v10734_v53 = vor.u32 %v11395_v58, %v10733_v45  ;;  %v10722_v30 = vor.u32 %v11389_v62, %v10719_v17  ;;  %v11381_v52 = vld [vmem:[#allocation10 + $0x224] sm:$0xf] }
 0x853   : > { %11655 = vpow2.f32 %v5576_v6  ;;  %v13887_v15 = vpack.c.bf16 %v6128_v13, %v6127_v46  ;;  %v10550_v12 = vor.u32 %v11316_v41, %v10549_v39  ;;  %6844 = vmatpush.bf16.msra.mxu3 %v10570_v55  ;;  %v10750_v46 = vor.u32 %v11399_v32, %v10749_v10  ;;  %v10751_v6 = vld [vmem:[#allocation10 + $0x2b0] sm:$0xf0]  ;;  %v11393_v55 = vld [vmem:[#allocation10 + $0x284] sm:$0xf]  ;;  %v10717_v41 = vld [vmem:[#allocation10 + $0x260] sm:$0xf] }
 0x854   : > { %6747 = vmatpush.bf16.msra.mxu1 %v10546_v3  ;;  %11657 = vrcp.f32 %v13868_v33  ;;  %v10735_v3 = vld [vmem:[#allocation10 + $0x290] sm:$0xf0] }
 0x855   : > { %6363 = vmatmul.bf16.gmra.mxu0 %v13887_v15  ;;  %6461 = vmatmul.bf16.gmra.mxu2 %v13887_v15  ;;  %11659 = vrcp.f32 %v13877_v61  ;;  %v11397_v61 = vld [vmem:[#allocation10 + $0x2a4] sm:$0xf]  ;;  %v10738_v39 = vor.u32 %v11393_v55, %v10735_v3 }
 0x856   : > { %5706 = vmatmul.bf16.gmra.mxu1 %v5618_v35  ;;  %6510 = vmatmul.bf16.gmra.mxu3 %v13887_v15  ;;  %v5531_v24 = vpop.xlane.xlu0 %5530  ;;  %v10754_v47 = vor.u32 %v11397_v61, %v10751_v6  ;;  %v11377_v6 = vld [vmem:[#allocation10 + $0x204] sm:$0xf] }
 0x857   : > { %v5547_v34 = vsub.f32 %v13823_v28, %v5531_v24  ;;  %6796 = vmatpush.bf16.msra.mxu2 %v10550_v12  ;;  %v10765_v28 = vld [vmem:[#allocation10 + $0x2c0] sm:$0xf]  ;;  %6845 = vmatpush.bf16.msra.mxu3 %v10554_v63  ;;  %v6009_v24 = vpop.xlane.xlu1 %6008  ;;  %v10718_v12 = vor.u32 %v11391_v16, %v10717_v41  ;;  %v11387_v63 = vld [vmem:[#allocation10 + $0x24c] sm:$0xf0] }
 0x858   : > { %v6088_v59 = vpop.f32.mrf.mxu3  ;;  %v10766_v43 = vor.u32 %v11403_v31, %v10765_v28  ;;  %v11383_v28 = vld [vmem:[#allocation10 + $0x22c] sm:$0xf0] }
 0x859   : > { %v11656_v26 = vpop.eup %11655  ;;  %v5578_v22 = vmul.f32 1.442695, %v5547_v34 }
 0x85a   : > { %5608 = vadd.xlane.f32.xlu2 %v11656_v26  ;;  %v11658_v7 = vpop.eup %11657 }
 0x85b   : > { %11661 = vpow2.f32 %v5578_v22  ;;  %7481 = vmatpush.bf16.msrb.mxu2 %v10782_v57  ;;  %7530 = vmatpush.bf16.msrb.mxu3 %v10786_v40  ;;  %v11660_v33 = vpop.eup %11659  ;;  %v6129_v35 = vmul.f32 %v11658_v7, %v6088_v59  ;;  %v10701_v59 = vld [vmem:[#allocation10 + $0x240] sm:$0xf]  ;;  %v10706_v22 = vor.u32 %v11385_v48, %v10703_v51 }
 0x85c   : > { %11663 = vrcp.f32 %v13883_v18  ;;  %v10702_v57 = vor.u32 %v11387_v63, %v10701_v59  ;;  %v10685_v40 = vld [vmem:[#allocation10 + $0x220] sm:$0xf]  ;;  %v10687_v18 = vld [vmem:[#allocation10 + $0x230] sm:$0xf0] }
 0x85d   : > { %11665 = vrcp.f32 %v6009_v24  ;;  %v15062_v63 = vld [vmem:[#allocation96_spill] sm:$0xff] }
 0x85f   : > { %7482 = vmatpush.bf16.msrb.mxu2 %v10766_v43  ;;  %7531 = vmatpush.bf16.msrb.mxu3 %v10770_v50  ;;  %v10686_v43 = vor.u32 %v11383_v28, %v10685_v40 }
 0x860   : > { %v6090_v0 = vpop.f32.mrf.mxu3 }
 0x861   : > { %v11662_v13 = vpop.eup %11661  ;;  %v6130_v5 = vmul.f32 %v11660_v33, %v6090_v0  ;;  %v10690_v33 = vor.u32 %v11381_v52, %v10687_v18  ;;  %v10669_v0 = vld [vmem:[#allocation10 + $0x200] sm:$0xf] }
 0x862   : > { %5610 = vadd.xlane.f32.xlu0 %v11662_v13  ;;  %v5619_v36 = vpack.c.bf16 %v11662_v13, %v11656_v26  ;;  %v11664_v26 = vpop.eup %11663  ;;  %v10671_v13 = vld [vmem:[#allocation10 + $0x210] sm:$0xf0] }
 0x863   : > { %v13895_v42 = vpack.c.bf16 %v6130_v5, %v6129_v35  ;;  %7483 = vmatpush.bf16.msrb.mxu2 %v10750_v46  ;;  %7532 = vmatpush.bf16.msrb.mxu3 %v10754_v47  ;;  %v11666_v31 = vpop.eup %11665  ;;  %v11379_v46 = vld [vmem:[#allocation10 + $0x20c] sm:$0xf0]  ;;  %v6011_v35 = vpop.xlane.xlu1 %6010 }
 0x864   : > { %v10670_v61 = vor.u32 %v11379_v46, %v10669_v0  ;;  %11667 = vrcp.f32 %v6011_v35  ;;  %v15066_v0 = vld [vmem:[#allocation90_spill] sm:$0xff] }
 0x865   : > { %6368 = vmatmul.bf16.gmra.mxu0 %v13895_v42  ;;  %6466 = vmatmul.bf16.gmra.mxu2 %v13895_v42 }
 0x866   : > { %5711 = vmatmul.bf16.gmra.mxu1 %v5619_v36  ;;  %6515 = vmatmul.bf16.gmra.mxu3 %v13895_v42  ;;  %v6013_v5 = vpop.xlane.xlu2 %6012  ;;  %v10674_v36 = vor.u32 %v11377_v6, %v10671_v13 }
 0x867   : > { %7484 = vmatpush.bf16.msrb.mxu2 %v10734_v53  ;;  %7533 = vmatpush.bf16.msrb.mxu3 %v10738_v39  ;;  %11669 = vrcp.f32 %v6013_v5 }
 0x868   : > { %v6093_v34 = vpop.f32.mrf.mxu3 }
 0x869   : > { %v6131_v50 = vmul.f32 %v11664_v26, %v6093_v34 }
 0x86a   : > { %v11668_v58 = vpop.eup %11667 }
 0x86b   : > { %7485 = vmatpush.bf16.msrb.mxu2 %v10718_v12  ;;  %7534 = vmatpush.bf16.msrb.mxu3 %v10722_v30  ;;  %v5583_v39 = vpop.xlane.xlu1 %5582 }
 0x86c   : > { %11671 = vrcp.f32 %v5583_v39 }
 0x86d   : > { %v11670_v53 = vpop.eup %11669 }
 0x86f   : > { %7486 = vmatpush.bf16.msrb.mxu2 %v10702_v57  ;;  %7535 = vmatpush.bf16.msrb.mxu3 %v10706_v22 }
 0x870   : > { %v6095_v38 = vpop.f32.mrf.mxu3 }
 0x871   : > { %v6132_v7 = vmul.f32 %v11666_v31, %v6095_v38  ;;  %v15064_v31 = vld [vmem:[#allocation93_spill] sm:$0xff] }
 0x872   : > { %v11672_v41 = vpop.eup %11671 }
 0x873   : > { %v13901_v10 = vpack.c.bf16 %v6132_v7, %v6131_v50  ;;  %v5677_v32 = vpop.f32.mrf.mxu1  ;;  %7487 = vmatpush.bf16.msrb.mxu2 %v10686_v43  ;;  %7536 = vmatpush.bf16.msrb.mxu3 %v10690_v33 }
 0x875   : > { %6373 = vmatmul.bf16.gmra.mxu0 %v13901_v10  ;;  %6471 = vmatmul.bf16.gmra.mxu2 %v13901_v10 }
 0x876   : > { %6392 = vmatmul.bf16.vlgmr.msrb.gmra.mxu1 %v13835_v56  ;;  %6520 = vmatmul.bf16.gmra.mxu3 %v13901_v10 }
 0x877   : > { %7200 = vmatpush.bf16.msrb.mxu1 %v13722_v21  ;;  %7488 = vmatpush.bf16.msrb.mxu2 %v10670_v61 }
 0x878   : > { %v6098_v47 = vpop.f32.mrf.mxu3  ;;  %7537 = vmatpush.bf16.msrb.mxu3 %v10674_v36  ;;  %v15067_v36 = vld [vmem:[#allocation88_spill] sm:$0xff] }
 0x879   : > { %v6133_v55 = vmul.f32 %v11668_v58, %v6098_v47 }
 0x87b   : > { %7201 = vmatpush.bf16.msrb.mxu1 %v13714_v49  ;;  %v5679_v45 = vpop.f32.mrf.mxu1  ;;  %v5581_v49 = vpop.xlane.xlu0 %5580 }
 0x87c   : > { %11673 = vrcp.f32 %v5581_v49 }
 0x87f   : > { %7202 = vmatpush.bf16.msrb.mxu1 %v13703_v25 }
 0x880   : > { %v6100_v56 = vpop.f32.mrf.mxu3 }
 0x881   : > { %v6134_v3 = vmul.f32 %v11670_v53, %v6100_v56 }
 0x882   : > { %v11674_v16 = vpop.eup %11673 }
 0x883   : > { %v13910_v24 = vpack.c.bf16 %v6134_v3, %v6133_v55  ;;  %7203 = vmatpush.bf16.msrb.mxu1 %v13692_v27  ;;  %v5682_v21 = vpop.f32.mrf.mxu1  ;;  %v5734_v27 = vmul.f32 %v11672_v41, %v5679_v45  ;;  %v5733_v34 = vmul.f32 %v11674_v16, %v5677_v32  ;;  %v5587_v17 = vpop.xlane.xlu0 %5586  ;;  %v15070_v3 = vld [vmem:[#allocation86_spill] sm:$0xff] }
 0x884   : > { %11675 = vrcp.f32 %v5587_v17 }
 0x885   : > { %6378 = vmatmul.bf16.gmra.mxu0 %v13910_v24  ;;  %6476 = vmatmul.bf16.gmra.mxu2 %v13910_v24  ;;  %v13922_v62 = vpack.c.bf16 %v5734_v27, %v5733_v34 }
 0x886   : > { %6525 = vmatmul.bf16.gmra.mxu3 %v13910_v24  ;;  %6397 = vmatmul.bf16.gmra.mxu1 %v13846_v29 }
 0x887   : > { %7204 = vmatpush.bf16.msrb.mxu1 %v13681_v11 }
 0x88a   : > { %v11676_v30 = vpop.eup %11675 }
 0x88b   : > { %7205 = vmatpush.bf16.msrb.mxu1 %v13671_v1  ;;  %v5684_v25 = vpop.f32.mrf.mxu1  ;;  %v5585_v1 = vpop.xlane.xlu2 %5584 }
 0x88c   : > { %11677 = vrcp.f32 %v5585_v1  ;;  %v5736_v59 = vmul.f32 %v11676_v30, %v5684_v25 }
 0x88d   : > { %v5593_v18 = vpop.xlane.xlu0 %5592 }
 0x88f   : > { %7206 = vmatpush.bf16.msrb.mxu1 %v13661_v44  ;;  %v15061_v44 = vld [vmem:[#allocation98_spill] sm:$0xff] }
 0x892   : > { %v13920_v12 = vpop.f32.mrf.mxu0 }
 0x893   : > { %7207 = vmatpush.bf16.msrb.mxu1 %v13651_v4  ;;  %v5687_v29 = vpop.f32.mrf.mxu1  ;;  %v5591_v26 = vpop.xlane.xlu2 %5590 }
 0x894   : > { %11679 = vrcp.f32 %v5591_v26 }
 0x895   : > { %6699 = vmatmul.bf16.vlgmr.msra.gmra.mxu0 %v13922_v62  ;;  %6797 = vmatmul.bf16.vlgmr.msra.gmra.mxu2 %v13922_v62 }
 0x896   : > { %6402 = vmatmul.bf16.gmra.mxu1 %v13858_v23  ;;  %6846 = vmatmul.bf16.vlgmr.msra.gmra.mxu3 %v13922_v62  ;;  %v11678_v23 = vpop.eup %11677 }
 0x897   : > { %7805 = vmatpush.bf16.xpose.msra.mxu2 %v15061_v44  ;;  %8006 = vmatpush.bf16.msra.mxu3 %v13724_v2  ;;  %v5735_v57 = vmul.f32 %v11678_v23, %v5682_v21 }
 0x898   : > { %v13964_v32 = vpop.f32.mrf.mxu2 }
 0x899   : > { %v13938_v51 = vpack.c.bf16 %v5736_v59, %v5735_v57 }
 0x89a   : > { %v13931_v11 = vpop.f32.mrf.mxu0  ;;  %v11680_v40 = vpop.eup %11679 }
 0x89b   : > { %8007 = vmatpush.bf16.msra.mxu3 %v13716_v20  ;;  %v5689_v4 = vpop.f32.mrf.mxu1  ;;  %v5589_v20 = vpop.xlane.xlu1 %5588 }
 0x89c   : > { %11681 = vrcp.f32 %v5589_v20  ;;  %v5738_v28 = vmul.f32 %v11680_v40, %v5689_v4 }
 0x89d   : > { %v5597_v5 = vpop.xlane.xlu2 %5596 }
 0x89f   : > { %7806 = vmatpush.bf16.xpose.msra.mxu2 %v15062_v63  ;;  %8008 = vmatpush.bf16.msra.mxu3 %v13705_v37  ;;  %v15063_v37 = vld [vmem:[#allocation94_spill] sm:$0xff] }
 0x8a0   : > { %v13978_v47 = vpop.f32.mrf.mxu2 }
 0x8a1   : > { %15068 = vst [vmem:[#allocation24_spill] sm:$0xff] %v13978_v47 }
 0x8a2   : > { %v13936_v48 = vpop.f32.mrf.mxu0 }
 0x8a3   : > { %8009 = vmatpush.bf16.msra.mxu3 %v13694_v54  ;;  %v5692_v2 = vpop.f32.mrf.mxu1 }
 0x8a5   : > { %6704 = vmatmul.bf16.gmra.mxu0 %v13938_v51  ;;  %6802 = vmatmul.bf16.gmra.mxu2 %v13938_v51  ;;  %v5599_v35 = vpop.xlane.xlu0 %5598 }
 0x8a6   : > { %6407 = vmatmul.bf16.gmra.mxu1 %v13872_v60  ;;  %6851 = vmatmul.bf16.gmra.mxu3 %v13938_v51  ;;  %v11682_v60 = vpop.eup %11681 }
 0x8a7   : > { %7807 = vmatpush.bf16.xpose.msra.mxu2 %v15063_v37  ;;  %8010 = vmatpush.bf16.msra.mxu3 %v13683_v8  ;;  %v5737_v38 = vmul.f32 %v11682_v60, %v5687_v29  ;;  %v5595_v8 = vpop.xlane.xlu1 %5594 }
 0x8a8   : > { %11683 = vrcp.f32 %v5595_v8  ;;  %v13985_v39 = vpop.f32.mrf.mxu2 }
 0x8a9   : > { %v13954_v52 = vpack.c.bf16 %v5738_v28, %v5737_v38  ;;  %11685 = vrcp.f32 %v5593_v18 }
 0x8aa   : > { %v13947_v22 = vpop.f32.mrf.mxu0  ;;  %11687 = vrcp.f32 %v5599_v35 }
 0x8ab   : > { %8011 = vmatpush.bf16.msra.mxu3 %v13673_v9  ;;  %v5694_v54 = vpop.f32.mrf.mxu1  ;;  %11689 = vrcp.f32 %v5597_v5 }
 0x8ae   : > { %v11684_v7 = vpop.eup %11683 }
 0x8af   : > { %7808 = vmatpush.bf16.xpose.msra.mxu2 %v15064_v31  ;;  %8012 = vmatpush.bf16.msra.mxu3 %v13663_v14  ;;  %v15065_v14 = vld [vmem:[#allocation92_spill] sm:$0xff]  ;;  %v5740_v33 = vmul.f32 %v11684_v7, %v5694_v54  ;;  %v11686_v46 = vpop.eup %11685  ;;  %v5601_v34 = vpop.xlane.xlu1 %5600 }
 0x8b0   : > { %v11688_v56 = vpop.eup %11687  ;;  %v13999_v17 = vpop.f32.mrf.mxu2 }
 0x8b1   : > { %v11690_v21 = vpop.eup %11689  ;;  %15072 = vst [vmem:[#allocation82_spill] sm:$0xff] %v13999_v17 }
 0x8b2   : > { %v13952_v43 = vpop.f32.mrf.mxu0 }
 0x8b3   : > { %8013 = vmatpush.bf16.msra.mxu3 %v13653_v19  ;;  %v5697_v9 = vpop.f32.mrf.mxu1  ;;  %v13966_v19 = vpop.f32.mrf.mxu3 }
 0x8b5   : > { %6709 = vmatmul.bf16.gmra.mxu0 %v13954_v52  ;;  %6807 = vmatmul.bf16.gmra.mxu2 %v13954_v52  ;;  %v5603_v16 = vpop.xlane.xlu2 %5602 }
 0x8b6   : > { %6412 = vmatmul.bf16.gmra.mxu1 %v13887_v15  ;;  %6856 = vmatmul.bf16.gmra.mxu3 %v13954_v52  ;;  %v5739_v15 = vmul.f32 %v11686_v46, %v5692_v2  ;;  %11691 = vrcp.f32 %v5603_v16 }
 0x8b7   : > { %7809 = vmatpush.bf16.xpose.msra.mxu2 %v15065_v14  ;;  %11693 = vrcp.f32 %v5601_v34 }
 0x8b8   : > { %v13971_v13 = vpack.c.bf16 %v5740_v33, %v5739_v15  ;;  %v14009_v2 = vpop.f32.mrf.mxu2 }
 0x8ba   : > { %v13962_v50 = vpop.f32.mrf.mxu0 }
 0x8bb   : > { %v5699_v61 = vpop.f32.mrf.mxu1  ;;  %v13980_v45 = vpop.f32.mrf.mxu3 }
 0x8bc   : > { %15069 = vst [vmem:[#allocation25_spill] sm:$0xff] %v13980_v45  ;;  %v5742_v55 = vmul.f32 %v11688_v56, %v5699_v61  ;;  %v11692_v44 = vpop.eup %11691 }
 0x8bd   : > { %v11694_v59 = vpop.eup %11693  ;;  %v5605_v20 = vpop.xlane.xlu0 %5604 }
 0x8bf   : > { %7810 = vmatpush.bf16.xpose.msra.mxu2 %v15066_v0 }
 0x8c0   : > { %v14017_v60 = vpop.f32.mrf.mxu2 }
 0x8c1   : > { %15076 = vst [vmem:[#allocation78_spill] sm:$0xff] %v14017_v60 }
 0x8c2   : > { %v13969_v6 = vpop.f32.mrf.mxu0 }
 0x8c3   : > { %v5702_v58 = vpop.f32.mrf.mxu1  ;;  %v13989_v25 = vpop.f32.mrf.mxu3 }
 0x8c4   : > { %v5743_v63 = vmul.f32 %v11694_v59, %v5702_v58 }
 0x8c5   : > { %6714 = vmatmul.bf16.gmra.mxu0 %v13971_v13  ;;  %6812 = vmatmul.bf16.gmra.mxu2 %v13971_v13 }
 0x8c6   : > { %6417 = vmatmul.bf16.gmra.mxu1 %v13895_v42  ;;  %6861 = vmatmul.bf16.gmra.mxu3 %v13971_v13  ;;  %v5741_v42 = vmul.f32 %v11690_v21, %v5697_v9 }
 0x8c7   : > { %7811 = vmatpush.bf16.xpose.msra.mxu2 %v15067_v36 }
 0x8c8   : > { %v13991_v41 = vpack.c.bf16 %v5742_v55, %v5741_v42  ;;  %v14026_v0 = vpop.f32.mrf.mxu2  ;;  %v15084_v42 = vld [vmem:[#allocation53_spill] sm:$0xff] }
 0x8ca   : > { %v13982_v53 = vpop.f32.mrf.mxu0 }
 0x8cb   : > { %v5704_v27 = vpop.f32.mrf.mxu1  ;;  %v14001_v1 = vpop.f32.mrf.mxu3 }
 0x8cc   : > { %15073 = vst [vmem:[#allocation79_spill] sm:$0xff] %v14001_v1  ;;  %v5744_v30 = vmul.f32 %v11692_v44, %v5704_v27  ;;  %v15085_v44 = vld [vmem:[#allocation55_spill] sm:$0xff] }
 0x8cd   : > { %v5609_v7 = vpop.xlane.xlu2 %5608 }
 0x8ce   : > { %v14005_v57 = vpack.c.bf16 %v5744_v30, %v5743_v63  ;;  %v15087_v63 = vld [vmem:[#allocation57_spill] sm:$0xff] }
 0x8cf   : > { %7812 = vmatpush.bf16.xpose.msra.mxu2 %v15070_v3 }
 0x8d0   : > { %v14032_v55 = vpop.f32.mrf.mxu2 }
 0x8d1   : > { %15081 = vst [vmem:[#allocation73_spill] sm:$0xff] %v14032_v55 }
 0x8d2   : > { %v13987_v49 = vpop.f32.mrf.mxu0 }
 0x8d3   : > { %v5707_v4 = vpop.f32.mrf.mxu1  ;;  %v14013_v26 = vpop.f32.mrf.mxu3 }
 0x8d5   : > { %6817 = vmatmul.bf16.gmra.mxu2 %v13991_v41  ;;  %6719 = vmatmul.bf16.gmra.mxu0 %v13991_v41  ;;  %v5611_v14 = vpop.xlane.xlu0 %5610 }
 0x8d6   : > { %6422 = vmatmul.bf16.gmra.mxu1 %v13901_v10  ;;  %6866 = vmatmul.bf16.gmra.mxu3 %v13991_v41  ;;  %v5607_v10 = vpop.xlane.xlu1 %5606 }
 0x8d7   : > { %11695 = vrcp.f32 %v5607_v10 }
 0x8d8   : > { %11697 = vrcp.f32 %v5605_v20 }
 0x8d9   : > { %11699 = vrcp.f32 %v5611_v14 }
 0x8da   : > { %v13997_v29 = vpop.f32.mrf.mxu0  ;;  %11701 = vrcp.f32 %v5609_v7  ;;  %v15094_v7 = vld [vmem:[#allocation52_spill] sm:$0xff] }
 0x8db   : > { %15071 = vst [vmem:[#allocation81_spill] sm:$0xff] %v13997_v29  ;;  %v5709_v37 = vpop.f32.mrf.mxu1  ;;  %v14019_v38 = vpop.f32.mrf.mxu3 }
 0x8dc   : > { %15077 = vst [vmem:[#allocation67_spill] sm:$0xff] %v14019_v38 }
 0x8dd   : > { %v11696_v40 = vpop.eup %11695 }
 0x8de   : > { %v5746_v28 = vmul.f32 %v11696_v40, %v5709_v37  ;;  %v11698_v31 = vpop.eup %11697  ;;  %v15089_v37 = vld [vmem:[#allocation59_spill] sm:$0xff] }
 0x8df   : > { %v5745_v8 = vmul.f32 %v11698_v31, %v5707_v4  ;;  %v11700_v15 = vpop.eup %11699 }
 0x8e0   : > { %v11702_v5 = vpop.eup %11701 }
 0x8e1   : > { %v5755_v18 = vpack.c.bf16 %v5746_v28, %v5745_v8  ;;  %v15091_v8 = vld [vmem:[#allocation51_spill] sm:$0xff] }
 0x8e2   : > { %v14003_v23 = vpop.f32.mrf.mxu0 }
 0x8e3   : > { %15074 = vst [vmem:[#allocation80_spill] sm:$0xff] %v14003_v23  ;;  %v5712_v9 = vpop.f32.mrf.mxu1  ;;  %v14028_v46 = vpop.f32.mrf.mxu3 }
 0x8e4   : > { %v5747_v36 = vmul.f32 %v11702_v5, %v5712_v9 }
 0x8e5   : > { %6724 = vmatmul.bf16.gmra.mxu0 %v14005_v57  ;;  %6822 = vmatmul.bf16.gmra.mxu2 %v14005_v57 }
 0x8e6   : > { %6427 = vmatmul.bf16.gmra.mxu1 %v13910_v24  ;;  %6871 = vmatmul.bf16.gmra.mxu3 %v14005_v57 }
 0x8ea   : > { %v14015_v54 = vpop.f32.mrf.mxu0 }
 0x8eb   : > { %15075 = vst [vmem:[#allocation68_spill] sm:$0xff] %v14015_v54  ;;  %v5714_v61 = vpop.f32.mrf.mxu1 }
 0x8ec   : > { %v5748_v35 = vmul.f32 %v11700_v15, %v5714_v61 }
 0x8ee   : > { %v5756_v56 = vpack.c.bf16 %v5748_v35, %v5747_v36  ;;  %v15098_v35 = vld [vmem:[#allocation63_spill] sm:$0xff]  ;;  %v15101_v36 = vld [vmem:[#allocation65_spill] sm:$0xff] }
 0x8f2   : > { %v14021_v24 = vpop.f32.mrf.mxu0 }
 0x8f3   : > { %15078 = vst [vmem:[#allocation77_spill] sm:$0xff] %v14021_v24  ;;  %v14045_v16 = vpop.f32.mrf.mxu1 }
 0x8f5   : > { %6729 = vmatmul.bf16.gmra.mxu0 %v5755_v18  ;;  %6827 = vmatmul.bf16.gmra.mxu2 %v5755_v18 }
 0x8f6   : > { %6748 = vmatmul.bf16.vlgmr.msra.gmra.mxu1 %v13922_v62  ;;  %6876 = vmatmul.bf16.gmra.mxu3 %v5755_v18  ;;  %v14034_v62 = vpop.f32.mrf.mxu3 }
 0x8f7   : > { %15082 = vst [vmem:[#allocation74_spill] sm:$0xff] %v14034_v62 }
 0x8fa   : > { %v14024_v33 = vpop.f32.mrf.mxu0 }
 0x8fb   : > { %15079 = vst [vmem:[#allocation75_spill] sm:$0xff] %v14024_v33 }
 0x902   : > { %v14030_v58 = vpop.f32.mrf.mxu0 }
 0x903   : > { %15080 = vst [vmem:[#allocation76_spill] sm:$0xff] %v14030_v58 }
 0x905   : > { %6734 = vmatmul.bf16.gmra.mxu0 %v5756_v56  ;;  %6832 = vmatmul.bf16.gmra.mxu2 %v5756_v56 }
 0x906   : > { %6753 = vmatmul.bf16.gmra.mxu1 %v13938_v51  ;;  %6881 = vmatmul.bf16.gmra.mxu3 %v5756_v56  ;;  %v14051_v51 = vpop.f32.mrf.mxu1 }
 0x907   : > { %15086 = vst [vmem:[#allocation72_spill] sm:$0xff] %v14051_v51 }
 0x90a   : > { %v14037_v3 = vpop.f32.mrf.mxu0 }
 0x90b   : > { %15083 = vst [vmem:[#allocation71_spill] sm:$0xff] %v14037_v3 }
 0x90e   : > { %v14057_v59 = vpop.f32.mrf.mxu1 }
 0x912   : > { %v14039_v21 = vpop.f32.mrf.mxu0 }
 0x915   : > { %6991 = vmatmul.bf16.vlgmr.msrb.gmra.mxu0 %v15084_v42 }
 0x916   : > { %6758 = vmatmul.bf16.gmra.mxu1 %v13954_v52  ;;  %v14063_v10 = vpop.f32.mrf.mxu1 }
 0x917   : > { %15088 = vst [vmem:[#allocation69_spill] sm:$0xff] %v14063_v10 }
 0x91a   : > { %v14043_v27 = vpop.f32.mrf.mxu0 }
 0x922   : > { %v14047_v34 = vpop.f32.mrf.mxu0 }
 0x925   : > { %6996 = vmatmul.bf16.gmra.mxu0 %v15085_v44 }
 0x926   : > { %6763 = vmatmul.bf16.gmra.mxu1 %v13971_v13  ;;  %v14069_v13 = vpop.f32.mrf.mxu1 }
 0x92a   : > { %v14053_v4 = vpop.f32.mrf.mxu0 }
 0x92e   : > { %v14073_v28 = vpop.f32.mrf.mxu1 }
 0x92f   : > { %15090 = vst [vmem:[#allocation70_spill] sm:$0xff] %v14073_v28 }
 0x932   : > { %v14055_v30 = vpop.f32.mrf.mxu0 }
 0x935   : > { %7001 = vmatmul.bf16.gmra.mxu0 %v15087_v63 }
 0x936   : > { %6768 = vmatmul.bf16.gmra.mxu1 %v13991_v41  ;;  %v14080_v9 = vpop.f32.mrf.mxu1 }
 0x93a   : > { %v14061_v52 = vpop.f32.mrf.mxu0 }
 0x942   : > { %v14065_v20 = vpop.f32.mrf.mxu0 }
 0x945   : > { %7006 = vmatmul.bf16.gmra.mxu0 %v15089_v37 }
 0x946   : > { %6773 = vmatmul.bf16.gmra.mxu1 %v14005_v57  ;;  %v14085_v57 = vpop.f32.mrf.mxu1 }
 0x947   : > { %15095 = vst [vmem:[#allocation28_spill] sm:$0xff] %v14085_v57 }
 0x94a   : > { %v14071_v40 = vpop.f32.mrf.mxu0 }
 0x952   : > { %v14075_v31 = vpop.f32.mrf.mxu0 }
 0x955   : > { %7011 = vmatmul.bf16.gmra.mxu0 %v15091_v8  ;;  %v14099_v8 = vpop.f32.mrf.mxu1 }
 0x956   : > { %6778 = vmatmul.bf16.gmra.mxu1 %v5755_v18 }
 0x95a   : > { %v14078_v41 = vpop.f32.mrf.mxu0 }
 0x95b   : > { %15092 = vst [vmem:[#allocation26_spill] sm:$0xff] %v14078_v41 }
 0x962   : > { %v14082_v14 = vpop.f32.mrf.mxu0 }
 0x963   : > { %15093 = vst [vmem:[#allocation27_spill] sm:$0xff] %v14082_v14 }
 0x965   : > { %7016 = vmatmul.bf16.gmra.mxu0 %v15094_v7 }
 0x966   : > { %6783 = vmatmul.bf16.gmra.mxu1 %v5756_v56 }
 0x96a   : > { %v14087_v61 = vpop.f32.mrf.mxu0 }
 0x96b   : > { %15096 = vst [vmem:[#allocation29_spill] sm:$0xff] %v14087_v61 }
 0x972   : > { %v14089_v15 = vpop.f32.mrf.mxu0 }
 0x973   : > { %15097 = vst [vmem:[#allocation30_spill] sm:$0xff] %v14089_v15 }
 0x975   : > { %7021 = vmatmul.bf16.gmra.mxu0 %v15098_v35  ;;  %v14104_v35 = vpop.f32.mrf.mxu1 }
 0x976   : > { %15103 = vst [vmem:[#allocation34_spill] sm:$0xff] %v14104_v35 }
 0x97a   : > { %v14092_v5 = vpop.f32.mrf.mxu0 }
 0x97b   : > { %15099 = vst [vmem:[#allocation31_spill] sm:$0xff] %v14092_v5 }
 0x982   : > { %v14094_v18 = vpop.f32.mrf.mxu0 }
 0x983   : > { %15100 = vst [vmem:[#allocation32_spill] sm:$0xff] %v14094_v18 }
 0x985   : > { %7026 = vmatmul.bf16.gmra.mxu0 %v15101_v36  ;;  %v14109_v36 = vpop.f32.mrf.mxu1 }
 0x986   : > { %15104 = vst [vmem:[#allocation37_spill] sm:$0xff] %v14109_v36 }
 0x98a   : > { %v14097_v42 = vpop.f32.mrf.mxu0 }
 0x98b   : > { %15102 = vst [vmem:[#allocation33_spill] sm:$0xff] %v14097_v42 }
 0x98d   : > { %v14114_v5 = vpop.f32.mrf.mxu1 }
 0x98e   : > { %15105 = vst [vmem:[#allocation38_spill] sm:$0xff] %v14114_v5 }
 0x992   : > { %v6992_v44 = vpop.f32.mrf.mxu0 }
 0x993   : > { %7032 = vmax.xlane.f32.xlu1 %v6992_v44 }
 0x995   : > { %v14121_v54 = vpop.f32.mrf.mxu1 }
 0x996   : > { %15106 = vst [vmem:[#allocation39_spill] sm:$0xff] %v14121_v54 }
 0x99a   : > { %v6994_v63 = vpop.f32.mrf.mxu0 }
 0x99b   : > { %7034 = vmax.xlane.f32.xlu2 %v6994_v63 }
 0x99d   : > { %v14127_v41 = vpop.f32.mrf.mxu1 }
 0x99e   : > { %15107 = vst [vmem:[#allocation40_spill] sm:$0xff] %v14127_v41 }
 0x9a2   : > { %v6997_v37 = vpop.f32.mrf.mxu0 }
 0x9a3   : > { %7036 = vmax.xlane.f32.xlu0 %v6997_v37 }
 0x9a5   : > { %v14132_v5 = vpop.f32.mrf.mxu1 }
 0x9a6   : > { %15108 = vst [vmem:[#allocation41_spill] sm:$0xff] %v14132_v5 }
 0x9aa   : > { %v6999_v56 = vpop.f32.mrf.mxu0 }
 0x9ab   : > { %7038 = vmax.xlane.f32.xlu1 %v6999_v56 }
 0x9ad   : > { %v14137_v55 = vpop.f32.mrf.mxu1 }
 0x9ae   : > { %15109 = vst [vmem:[#allocation42_spill] sm:$0xff] %v14137_v55 }
 0x9b2   : > { %v14101_v7 = vpop.f32.mrf.mxu0 }
 0x9b3   : > { %7040 = vmax.xlane.f32.xlu2 %v14101_v7 }
 0x9b5   : > { %v14144_v60 = vpop.f32.mrf.mxu1 }
 0x9ba   : > { %v14106_v3 = vpop.f32.mrf.mxu0 }
 0x9bb   : > { %7042 = vmax.xlane.f32.xlu0 %v14106_v3 }
 0x9bd   : > { %v14150_v28 = vpop.f32.mrf.mxu1 }
 0x9be   : > { %15110 = vst [vmem:[#allocation43_spill] sm:$0xff] %v14150_v28 }
 0x9c2   : > { %v14111_v42 = vpop.f32.mrf.mxu0 }
 0x9c3   : > { %7044 = vmax.xlane.f32.xlu1 %v14111_v42 }
 0x9c5   : > { %v14155_v47 = vpop.f32.mrf.mxu1 }
 0x9ca   : > { %v14116_v33 = vpop.f32.mrf.mxu0 }
 0x9cb   : > { %7046 = vmax.xlane.f32.xlu2 %v14116_v33 }
 0x9cd   : > { %v14157_v28 = vpop.f32.mrf.mxu1 }
 0x9ce   : > { %15111 = vst [vmem:[#allocation44_spill] sm:$0xff] %v14157_v28 }
 0x9d2   : > { %v14119_v61 = vpop.f32.mrf.mxu0 }
 0x9d3   : > { %7048 = vmax.xlane.f32.xlu0 %v14119_v61 }
 0x9da   : > { %v14124_v35 = vpop.f32.mrf.mxu0 }
 0x9db   : > { %7050 = vmax.xlane.f32.xlu1 %v14124_v35 }
 0x9e2   : > { %v14129_v29 = vpop.f32.mrf.mxu0 }
 0x9e3   : > { %7052 = vmax.xlane.f32.xlu2 %v14129_v29 }
 0x9ea   : > { %v14134_v62 = vpop.f32.mrf.mxu0 }
 0x9eb   : > { %7054 = vmax.xlane.f32.xlu0 %v14134_v62 }
 0x9f2   : > { %v14139_v57 = vpop.f32.mrf.mxu0 }
 0x9f3   : > { %7056 = vmax.xlane.f32.xlu1 %v14139_v57 }
 0x9fa   : > { %v14142_v38 = vpop.f32.mrf.mxu0 }
 0x9fb   : > { %7058 = vmax.xlane.f32.xlu2 %v14142_v38 }
 0xa02   : > { %v14147_v41 = vpop.f32.mrf.mxu0 }
 0xa03   : > { %7060 = vmax.xlane.f32.xlu0 %v14147_v41 }
 0xa06   : > { %v7033_v1 = vpop.xlane.xlu1 %7032 }
 0xa07   : > { %v7064_v17 = vsub.f32 %v6992_v44, %v7033_v1 }
 0xa09   : > { %v7080_v10 = vmul.f32 1.442695, %v7064_v17 }
 0xa0a   : > { %v14152_v55 = vpop.f32.mrf.mxu0 }
 0xa0b   : > { %11703 = vpow2.f32 %v7080_v10  ;;  %7062 = vmax.xlane.f32.xlu1 %v14152_v55 }
 0xa0e   : > { %v7035_v45 = vpop.xlane.xlu2 %7034 }
 0xa0f   : > { %v7065_v51 = vsub.f32 %v6994_v63, %v7035_v45  ;;  %v14159_v45 = vpop.f32.mrf.mxu1 }
 0xa11   : > { %v11704_v5 = vpop.eup %11703  ;;  %v7082_v18 = vmul.f32 1.442695, %v7065_v51 }
 0xa12   : > { %7112 = vadd.xlane.f32.xlu2 %v11704_v5 }
 0xa13   : > { %11705 = vpow2.f32 %v7082_v18 }
 0xa16   : > { %v7037_v58 = vpop.xlane.xlu0 %7036 }
 0xa17   : > { %v7066_v54 = vsub.f32 %v6997_v37, %v7037_v58 }
 0xa19   : > { %v11706_v15 = vpop.eup %11705  ;;  %v7084_v1 = vmul.f32 1.442695, %v7066_v54  ;;  %v14162_v54 = vpop.f32.mrf.mxu1 }
 0xa1a   : > { %v7144_v17 = vpack.c.bf16 %v11706_v15, %v11704_v5  ;;  %7114 = vadd.xlane.f32.xlu0 %v11706_v15  ;;  %15112 = vst [vmem:[#allocation35_spill] sm:$0xff] %v14162_v54 }
 0xa1b   : > { %11707 = vpow2.f32 %v7084_v1 }
 0xa1c   : > { %7208 = vmatmul.bf16.vlgmr.msrb.gmra.mxu1 %v7144_v17 }
 0xa1e   : > { %v7039_v10 = vpop.xlane.xlu1 %7038 }
 0xa1f   : > { %v7067_v44 = vsub.f32 %v6999_v56, %v7039_v10 }
 0xa21   : > { %v11708_v24 = vpop.eup %11707  ;;  %v7086_v36 = vmul.f32 1.442695, %v7067_v44 }
 0xa22   : > { %7116 = vadd.xlane.f32.xlu1 %v11708_v24 }
 0xa23   : > { %11709 = vpow2.f32 %v7086_v36  ;;  %v14165_v36 = vpop.f32.mrf.mxu1 }
 0xa26   : > { %v7041_v51 = vpop.xlane.xlu2 %7040 }
 0xa27   : > { %v7068_v18 = vsub.f32 %v14101_v7, %v7041_v51  ;;  %v14168_v51 = vpop.f32.mrf.mxu2 }
 0xa29   : > { %v11710_v58 = vpop.eup %11709  ;;  %v7088_v63 = vmul.f32 1.442695, %v7068_v18  ;;  %v14170_v18 = vpop.f32.mrf.mxu3 }
 0xa2a   : > { %7118 = vadd.xlane.f32.xlu2 %v11710_v58  ;;  %v7145_v37 = vpack.c.bf16 %v11710_v58, %v11708_v24 }
 0xa2b   : > { %11711 = vpow2.f32 %v7088_v63 }
 0xa2c   : > { %7213 = vmatmul.bf16.gmra.mxu1 %v7145_v37  ;;  %v14173_v37 = vpop.f32.mrf.mxu1 }
 0xa2d   : > { %15113 = vst [vmem:[#allocation45_spill] sm:$0xff] %v14173_v37 }
 0xa2e   : > { %v7043_v15 = vpop.xlane.xlu0 %7042 }
 0xa2f   : > { %v7069_v5 = vsub.f32 %v14106_v3, %v7043_v15 }
 0xa31   : > { %v11712_v56 = vpop.eup %11711  ;;  %v7090_v1 = vmul.f32 1.442695, %v7069_v5  ;;  %v14177_v5 = vpop.f32.mrf.mxu3 }
 0xa32   : > { %7120 = vadd.xlane.f32.xlu0 %v11712_v56  ;;  %15115 = vst [vmem:[#allocation46_spill] sm:$0xff] %v14177_v5 }
 0xa33   : > { %11713 = vpow2.f32 %v7090_v1 }
 0xa36   : > { %v7045_v17 = vpop.xlane.xlu1 %7044 }
 0xa37   : > { %v7070_v7 = vsub.f32 %v14111_v42, %v7045_v17  ;;  %v14175_v42 = vpop.f32.mrf.mxu2 }
 0xa38   : > { %15114 = vst [vmem:[#allocation36_spill] sm:$0xff] %v14175_v42 }
 0xa39   : > { %v11714_v10 = vpop.eup %11713  ;;  %v7092_v44 = vmul.f32 1.442695, %v7070_v7 }
 0xa3a   : > { %7122 = vadd.xlane.f32.xlu1 %v11714_v10  ;;  %v7146_v24 = vpack.c.bf16 %v11714_v10, %v11712_v56 }
 0xa3b   : > { %11715 = vpow2.f32 %v7092_v44  ;;  %v14180_v44 = vpop.f32.mrf.mxu1 }
 0xa3c   : > { %7218 = vmatmul.bf16.gmra.mxu1 %v7146_v24 }
 0xa3e   : > { %v7047_v3 = vpop.xlane.xlu2 %7046 }
 0xa3f   : > { %v7071_v58 = vsub.f32 %v14116_v33, %v7047_v3  ;;  %v14182_v33 = vpop.f32.mrf.mxu2  ;;  %v14184_v3 = vpop.f32.mrf.mxu3 }
 0xa40   : > { %15116 = vst [vmem:[#allocation47_spill] sm:$0xff] %v14182_v33 }
 0xa41   : > { %v11716_v63 = vpop.eup %11715  ;;  %v7094_v15 = vmul.f32 1.442695, %v7071_v58  ;;  %15117 = vst [vmem:[#allocation48_spill] sm:$0xff] %v14184_v3 }
 0xa42   : > { %7124 = vadd.xlane.f32.xlu2 %v11716_v63 }
 0xa43   : > { %11717 = vpow2.f32 %v7094_v15 }
 0xa46   : > { %v7049_v1 = vpop.xlane.xlu0 %7048 }
 0xa47   : > { %v7072_v56 = vsub.f32 %v14119_v61, %v7049_v1  ;;  %v14187_v61 = vpop.f32.mrf.mxu1 }
 0xa48   : > { %15118 = vst [vmem:[#allocation49_spill] sm:$0xff] %v14187_v61 }
 0xa49   : > { %v11718_v17 = vpop.eup %11717  ;;  %v7096_v7 = vmul.f32 1.442695, %v7072_v56  ;;  %v14190_v56 = vpop.f32.mrf.mxu2 }
 0xa4a   : > { %7126 = vadd.xlane.f32.xlu0 %v11718_v17  ;;  %v7147_v10 = vpack.c.bf16 %v11718_v17, %v11716_v63  ;;  %15119 = vst [vmem:[#allocation50_spill] sm:$0xff] %v14190_v56  ;;  %v11406_v56 = vld [vmem:[#allocation10 + $0x2ec] sm:$0xf] }
 0xa4b   : > { %11719 = vpow2.f32 %v7096_v7  ;;  %v14192_v7 = vpop.f32.mrf.mxu3 }
 0xa4c   : > { %7223 = vmatmul.bf16.gmra.mxu1 %v7147_v10  ;;  %15120 = vst [vmem:[#allocation97_spill] sm:$0xff] %v14192_v7  ;;  %v10789_v7 = vld [vmem:[#allocation10 + $0x2e8] sm:$0xf] }
 0xa4e   : > { %v7051_v24 = vpop.xlane.xlu1 %7050 }
 0xa4f   : > { %v7073_v58 = vsub.f32 %v14124_v35, %v7051_v24  ;;  %v14194_v24 = vpop.f32.mrf.mxu1 }
 0xa50   : > { %15121 = vst [vmem:[#allocation95_spill] sm:$0xff] %v14194_v24  ;;  %v10775_v24 = vld [vmem:[#allocation10 + $0x2d8] sm:$0xf0] }
 0xa51   : > { %v11720_v15 = vpop.eup %11719  ;;  %v7098_v5 = vmul.f32 1.442695, %v7073_v58  ;;  %v14197_v37 = vpop.f32.mrf.mxu2 }
 0xa52   : > { %7128 = vadd.xlane.f32.xlu1 %v11720_v15  ;;  %15122 = vst [vmem:[#allocation84_spill] sm:$0xff] %v14197_v37 }
 0xa53   : > { %11721 = vpow2.f32 %v7098_v5 }
 0xa56   : > { %v7053_v1 = vpop.xlane.xlu2 %7052 }
 0xa57   : > { %v7074_v63 = vsub.f32 %v14129_v29, %v7053_v1  ;;  %v14199_v29 = vpop.f32.mrf.mxu3  ;;  %v14202_v28 = vpop.f32.mrf.mxu1 }
 0xa58   : > { %15123 = vst [vmem:[#allocation83_spill] sm:$0xff] %v14199_v29  ;;  %v11404_v29 = vld [vmem:[#allocation10 + $0x2d4] sm:$0xf0] }
 0xa59   : > { %v11722_v17 = vpop.eup %11721  ;;  %v7100_v10 = vmul.f32 1.442695, %v7074_v63  ;;  %v11408_v63 = vld [vmem:[#allocation10 + $0x2f4] sm:$0xf0]  ;;  %15124 = vst [vmem:[#allocation91_spill] sm:$0xff] %v14202_v28  ;;  %v14204_v14 = vpop.f32.mrf.mxu2 }
 0xa5a   : > { %7130 = vadd.xlane.f32.xlu2 %v11722_v17  ;;  %v7148_v42 = vpack.c.bf16 %v11722_v17, %v11720_v15  ;;  %v10791_v17 = vld [vmem:[#allocation10 + $0x2f8] sm:$0xf0]  ;;  %15125 = vst [vmem:[#allocation89_spill] sm:$0xff] %v14204_v14 }
 0xa5b   : > { %11723 = vpow2.f32 %v7100_v10  ;;  %v10794_v10 = vor.u32 %v11406_v56, %v10791_v17  ;;  %v10741_v17 = vld [vmem:[#allocation10 + $0x288] sm:$0xf] }
 0xa5c   : > { %7228 = vmatmul.bf16.gmra.mxu1 %v7148_v42  ;;  %v10790_v42 = vor.u32 %v11408_v63, %v10789_v7  ;;  %v11400_v63 = vld [vmem:[#allocation10 + $0x2b4] sm:$0xf0] }
 0xa5d   : > { %7628 = vmatpush.bf16.msra.mxu1 %v10794_v10  ;;  %v11396_v10 = vld [vmem:[#allocation10 + $0x294] sm:$0xf0] }
 0xa5e   : > { %v7055_v35 = vpop.xlane.xlu0 %7054  ;;  %7579 = vmatpush.bf16.msra.mxu0 %v10790_v42  ;;  %v10759_v42 = vld [vmem:[#allocation10 + $0x2b8] sm:$0xf0] }
 0xa5f   : > { %v7075_v5 = vsub.f32 %v14134_v62, %v7055_v35  ;;  %v14206_v7 = vpop.f32.mrf.mxu3 }
 0xa60   : > { %15126 = vst [vmem:[#allocation87_spill] sm:$0xff] %v14206_v7  ;;  %v10711_v7 = vld [vmem:[#allocation10 + $0x258] sm:$0xf0] }
 0xa61   : > { %v11724_v58 = vpop.eup %11723  ;;  %v7102_v61 = vmul.f32 1.442695, %v7075_v5  ;;  %v10773_v5 = vld [vmem:[#allocation10 + $0x2c8] sm:$0xf] }
 0xa62   : > { %7132 = vadd.xlane.f32.xlu0 %v11724_v58  ;;  %v10774_v37 = vor.u32 %v11404_v29, %v10773_v5  ;;  %v10743_v5 = vld [vmem:[#allocation10 + $0x298] sm:$0xf0] }
 0xa63   : > { %11725 = vpow2.f32 %v7102_v61  ;;  %v11402_v61 = vld [vmem:[#allocation10 + $0x2cc] sm:$0xf] }
 0xa64   : > { %7580 = vmatpush.bf16.msra.mxu0 %v10774_v37 }
 0xa66   : > { %v7057_v1 = vpop.xlane.xlu1 %7056 }
 0xa67   : > { %v7076_v15 = vsub.f32 %v14139_v57, %v7057_v1  ;;  %v10778_v57 = vor.u32 %v11402_v61, %v10775_v24  ;;  %v10757_v1 = vld [vmem:[#allocation10 + $0x2a8] sm:$0xf]  ;;  %v10742_v24 = vor.u32 %v11396_v10, %v10741_v17  ;;  %v14209_v61 = vpop.f32.mrf.mxu1 }
 0xa68   : > { %15127 = vst [vmem:[#allocation85_spill] sm:$0xff] %v14209_v61 }
 0xa69   : > { %v11726_v54 = vpop.eup %11725  ;;  %v7104_v62 = vmul.f32 1.442695, %v7076_v15  ;;  %7629 = vmatpush.bf16.msra.mxu1 %v10778_v57  ;;  %v11398_v15 = vld [vmem:[#allocation10 + $0x2ac] sm:$0xf]  ;;  %v14211_v57 = vpop.f32.mrf.mxu2 }
 0xa6a   : > { %7134 = vadd.xlane.f32.xlu1 %v11726_v54  ;;  %v7149_v35 = vpack.c.bf16 %v11726_v54, %v11724_v58  ;;  %v10758_v58 = vor.u32 %v11400_v63, %v10757_v1  ;;  %v10762_v29 = vor.u32 %v11398_v15, %v10759_v42  ;;  %15128 = vst [vmem:[#allocation98_spill] sm:$0xff] %v14211_v57  ;;  %v11392_v1 = vld [vmem:[#allocation10 + $0x274] sm:$0xf0]  ;;  %v11390_v63 = vld [vmem:[#allocation10 + $0x26c] sm:$0xf]  ;;  %v14213_v15 = vpop.f32.mrf.mxu3 }
 0xa6b   : > { %11727 = vpow2.f32 %v7104_v62  ;;  %v11394_v62 = vld [vmem:[#allocation10 + $0x28c] sm:$0xf]  ;;  %15129 = vst [vmem:[#allocation96_spill] sm:$0xff] %v14213_v15  ;;  %v10727_v42 = vld [vmem:[#allocation10 + $0x278] sm:$0xf0] }
 0xa6c   : > { %7233 = vmatmul.bf16.gmra.mxu1 %v7149_v35  ;;  %7581 = vmatpush.bf16.msra.mxu0 %v10758_v58  ;;  %v10746_v37 = vor.u32 %v11394_v62, %v10743_v5  ;;  %v10730_v17 = vor.u32 %v11390_v63, %v10727_v42  ;;  %v10709_v5 = vld [vmem:[#allocation10 + $0x248] sm:$0xf] }
 0xa6d   : > { %7630 = vmatpush.bf16.msra.mxu1 %v10762_v29 }
 0xa6e   : > { %v7059_v56 = vpop.xlane.xlu2 %7058 }
 0xa6f   : > { %v7077_v54 = vsub.f32 %v14142_v38, %v7059_v56  ;;  %v10725_v56 = vld [vmem:[#allocation10 + $0x268] sm:$0xf]  ;;  %v14216_v15 = vpop.f32.mrf.mxu1 }
 0xa70   : > { %7582 = vmatpush.bf16.msra.mxu0 %v10742_v24  ;;  %v10726_v58 = vor.u32 %v11392_v1, %v10725_v56  ;;  %v11386_v24 = vld [vmem:[#allocation10 + $0x24c] sm:$0xf]  ;;  %15130 = vst [vmem:[#allocation94_spill] sm:$0xff] %v14216_v15  ;;  %v11384_v56 = vld [vmem:[#allocation10 + $0x234] sm:$0xf0] }
 0xa71   : > { %v11728_v14 = vpop.eup %11727  ;;  %v7106_v35 = vmul.f32 1.442695, %v7077_v54  ;;  %7631 = vmatpush.bf16.msra.mxu1 %v10746_v37  ;;  %v10714_v28 = vor.u32 %v11386_v24, %v10711_v7  ;;  %v11382_v1 = vld [vmem:[#allocation10 + $0x22c] sm:$0xf]  ;;  %v10677_v7 = vld [vmem:[#allocation10 + $0x208] sm:$0xf] }
 0xa72   : > { %7136 = vadd.xlane.f32.xlu2 %v11728_v14 }
 0xa73   : > { %11729 = vpow2.f32 %v7106_v35  ;;  %v11388_v35 = vld [vmem:[#allocation10 + $0x254] sm:$0xf0] }
 0xa74   : > { %7583 = vmatpush.bf16.msra.mxu0 %v10726_v58  ;;  %v10710_v37 = vor.u32 %v11388_v35, %v10709_v5  ;;  %v14219_v58 = vpop.f32.mrf.mxu2  ;;  %v10679_v35 = vld [vmem:[#allocation10 + $0x218] sm:$0xf0] }
 0xa75   : > { %7632 = vmatpush.bf16.msra.mxu1 %v10730_v17  ;;  %15131 = vst [vmem:[#allocation93_spill] sm:$0xff] %v14219_v58 }
 0xa76   : > { %v7061_v38 = vpop.xlane.xlu0 %7060 }
 0xa77   : > { %v7078_v54 = vsub.f32 %v14147_v41, %v7061_v38  ;;  %v10693_v38 = vld [vmem:[#allocation10 + $0x228] sm:$0xf] }
 0xa78   : > { %7584 = vmatpush.bf16.msra.mxu0 %v10710_v37 }
 0xa79   : > { %v11730_v10 = vpop.eup %11729  ;;  %v7108_v29 = vmul.f32 1.442695, %v7078_v54  ;;  %7633 = vmatpush.bf16.msra.mxu1 %v10714_v28  ;;  %v10695_v54 = vld [vmem:[#allocation10 + $0x238] sm:$0xf0]  ;;  %v11378_v28 = vld [vmem:[#allocation10 + $0x20c] sm:$0xf] }
 0xa7a   : > { %7138 = vadd.xlane.f32.xlu0 %v11730_v10  ;;  %v7150_v62 = vpack.c.bf16 %v11730_v10, %v11728_v14  ;;  %v10694_v14 = vor.u32 %v11384_v56, %v10693_v38  ;;  %v10698_v42 = vor.u32 %v11382_v1, %v10695_v54  ;;  %v14221_v10 = vpop.f32.mrf.mxu3  ;;  %v10682_v24 = vor.u32 %v11378_v28, %v10679_v35 }
 0xa7b   : > { %11731 = vpow2.f32 %v7108_v29  ;;  %15132 = vst [vmem:[#allocation92_spill] sm:$0xff] %v14221_v10 }
 0xa7c   : > { %7238 = vmatmul.bf16.gmra.mxu1 %v7150_v62  ;;  %7585 = vmatpush.bf16.msra.mxu0 %v10694_v14  ;;  %v11380_v62 = vld [vmem:[#allocation10 + $0x214] sm:$0xf0] }
 0xa7d   : > { %7634 = vmatpush.bf16.msra.mxu1 %v10698_v42  ;;  %v10678_v5 = vor.u32 %v11380_v62, %v10677_v7 }
 0xa7e   : > { %v7063_v41 = vpop.xlane.xlu1 %7062 }
 0xa7f   : > { %v7079_v63 = vsub.f32 %v14152_v55, %v7063_v41  ;;  %v14223_v55 = vpop.f32.mrf.mxu1  ;;  %v14225_v41 = vpop.f32.mrf.mxu2 }
 0xa80   : > { %7586 = vmatpush.bf16.msra.mxu0 %v10678_v5  ;;  %15133 = vst [vmem:[#allocation90_spill] sm:$0xff] %v14223_v55 }
 0xa81   : > { %v11732_v17 = vpop.eup %11731  ;;  %v7110_v29 = vmul.f32 1.442695, %v7079_v63  ;;  %7635 = vmatpush.bf16.msra.mxu1 %v10682_v24 }
 0xa82   : > { %7140 = vadd.xlane.f32.xlu1 %v11732_v17  ;;  %v14227_v56 = vpop.f32.mrf.mxu3 }
 0xa83   : > { %11733 = vpow2.f32 %v7110_v29 }
 0xa85   : > { %v7113_v54 = vpop.xlane.xlu2 %7112 }
 0xa86   : > { %11735 = vrcp.f32 %v7113_v54 }
 0xa87   : > { %v14229_v1 = vpop.f32.mrf.mxu1  ;;  %v14231_v63 = vpop.f32.mrf.mxu2 }
 0xa88   : > { %15134 = vst [vmem:[#allocation88_spill] sm:$0xff] %v14229_v1 }
 0xa89   : > { %v11734_v37 = vpop.eup %11733  ;;  %15135 = vst [vmem:[#allocation86_spill] sm:$0xff] %v14231_v63 }
 0xa8a   : > { %7142 = vadd.xlane.f32.xlu2 %v11734_v37  ;;  %v7151_v38 = vpack.c.bf16 %v11734_v37, %v11732_v17  ;;  %v14233_v14 = vpop.f32.mrf.mxu3 }
 0xa8b   : > { %15136 = vst [vmem:[#allocation53_spill] sm:$0xff] %v14233_v14 }
 0xa8c   : > { %7243 = vmatmul.bf16.gmra.mxu1 %v7151_v38  ;;  %v11736_v28 = vpop.eup %11735 }
 0xa8d   : > { %v7115_v42 = vpop.xlane.xlu0 %7114 }
 0xa8e   : > { %11737 = vrcp.f32 %v7115_v42 }
 0xa8f   : > { %v14235_v7 = vpop.f32.mrf.mxu2 }
 0xa92   : > { %v14237_v62 = vpop.f32.mrf.mxu3 }
 0xa94   : > { %v11738_v17 = vpop.eup %11737 }
 0xa95   : > { %v7117_v38 = vpop.xlane.xlu1 %7116 }
 0xa96   : > { %11739 = vrcp.f32 %v7117_v38 }
 0xa97   : > { %v14239_v10 = vpop.f32.mrf.mxu2 }
 0xa98   : > { %15137 = vst [vmem:[#allocation55_spill] sm:$0xff] %v14239_v10 }
 0xa99   : > { %v7209_v29 = vpop.f32.mrf.mxu1 }
 0xa9a   : > { %v7265_v35 = vmul.f32 %v11736_v28, %v7209_v29  ;;  %v14241_v54 = vpop.f32.mrf.mxu3 }
 0xa9b   : > { %15138 = vst [vmem:[#allocation57_spill] sm:$0xff] %v14241_v54 }
 0xa9c   : > { %v11740_v1 = vpop.eup %11739 }
 0xa9d   : > { %v7119_v58 = vpop.xlane.xlu2 %7118 }
 0xa9e   : > { %11741 = vrcp.f32 %v7119_v58 }
 0xa9f   : > { %v14243_v63 = vpop.f32.mrf.mxu2 }
 0xaa1   : > { %v7211_v5 = vpop.f32.mrf.mxu1 }
 0xaa2   : > { %v7266_v24 = vmul.f32 %v11738_v17, %v7211_v5  ;;  %v14245_v17 = vpop.f32.mrf.mxu3 }
 0xaa4   : > { %v7281_v37 = vpack.c.bf16 %v7266_v24, %v7265_v35  ;;  %v11742_v15 = vpop.eup %11741 }
 0xaa5   : > { %v7121_v35 = vpop.xlane.xlu0 %7120 }
 0xaa6   : > { %7489 = vmatmul.bf16.vlgmr.msrb.gmra.mxu2 %v7281_v37  ;;  %7538 = vmatmul.bf16.vlgmr.msrb.gmra.mxu3 %v7281_v37  ;;  %11743 = vrcp.f32 %v7121_v35 }
 0xaa7   : > { %7587 = vmatmul.bf16.vlgmr.msra.gmra.mxu0 %v7281_v37  ;;  %7636 = vmatmul.bf16.vlgmr.msra.gmra.mxu1 %v7281_v37  ;;  %v14247_v58 = vpop.f32.mrf.mxu2 }
 0xaa8   : > { %15139 = vst [vmem:[#allocation59_spill] sm:$0xff] %v14247_v58 }
 0xaa9   : > { %v7214_v42 = vpop.f32.mrf.mxu1 }
 0xaaa   : > { %v7267_v29 = vmul.f32 %v11740_v1, %v7214_v42  ;;  %v14249_v38 = vpop.f32.mrf.mxu3 }
 0xaab   : > { %15140 = vst [vmem:[#allocation51_spill] sm:$0xff] %v14249_v38 }
 0xaac   : > { %v11744_v54 = vpop.eup %11743 }
 0xaad   : > { %v7123_v24 = vpop.xlane.xlu1 %7122 }
 0xaae   : > { %11745 = vrcp.f32 %v7123_v24 }
 0xab1   : > { %v7216_v14 = vpop.f32.mrf.mxu1 }
 0xab2   : > { %v7268_v28 = vmul.f32 %v11742_v15, %v7216_v14 }
 0xab4   : > { %v7282_v5 = vpack.c.bf16 %v7268_v28, %v7267_v29  ;;  %v11746_v10 = vpop.eup %11745  ;;  %v14251_v29 = vpop.f32.mrf.mxu2 }
 0xab5   : > { %v14253_v28 = vpop.f32.mrf.mxu3 }
 0xab6   : > { %7494 = vmatmul.bf16.gmra.mxu2 %v7282_v5  ;;  %7543 = vmatmul.bf16.gmra.mxu3 %v7282_v5 }
 0xab7   : > { %7592 = vmatmul.bf16.gmra.mxu0 %v7282_v5  ;;  %7641 = vmatmul.bf16.gmra.mxu1 %v7282_v5  ;;  %v7125_v5 = vpop.xlane.xlu2 %7124 }
 0xab8   : > { %11747 = vrcp.f32 %v7125_v5 }
 0xab9   : > { %v7219_v37 = vpop.f32.mrf.mxu1 }
 0xaba   : > { %v7269_v15 = vmul.f32 %v11744_v54, %v7219_v37 }
 0xabc   : > { %v14255_v58 = vpop.f32.mrf.mxu2 }
 0xabd   : > { %v7127_v35 = vpop.xlane.xlu0 %7126  ;;  %15141 = vst [vmem:[#allocation52_spill] sm:$0xff] %v14255_v58  ;;  %v14257_v54 = vpop.f32.mrf.mxu3 }
 0xabe   : > { %11749 = vrcp.f32 %v7127_v35  ;;  %v11748_v38 = vpop.eup %11747  ;;  %15142 = vst [vmem:[#allocation63_spill] sm:$0xff] %v14257_v54 }
 0xac1   : > { %v7221_v1 = vpop.f32.mrf.mxu1 }
 0xac2   : > { %v7270_v14 = vmul.f32 %v11746_v10, %v7221_v1 }
 0xac4   : > { %v7283_v42 = vpack.c.bf16 %v7270_v14, %v7269_v15  ;;  %v11750_v55 = vpop.eup %11749  ;;  %v14259_v61 = vpop.f32.mrf.mxu2 }
 0xac5   : > { %v7129_v14 = vpop.xlane.xlu1 %7128  ;;  %v14261_v5 = vpop.f32.mrf.mxu3 }
 0xac6   : > { %7499 = vmatmul.bf16.gmra.mxu2 %v7283_v42  ;;  %7548 = vmatmul.bf16.gmra.mxu3 %v7283_v42  ;;  %11751 = vrcp.f32 %v7129_v14 }
 0xac7   : > { %7597 = vmatmul.bf16.gmra.mxu0 %v7283_v42  ;;  %7646 = vmatmul.bf16.gmra.mxu1 %v7283_v42 }
 0xac9   : > { %v7224_v24 = vpop.f32.mrf.mxu1 }
 0xaca   : > { %v7271_v37 = vmul.f32 %v11748_v38, %v7224_v24 }
 0xacc   : > { %v11752_v35 = vpop.eup %11751 }
 0xacd   : > { %v7131_v42 = vpop.xlane.xlu2 %7130 }
 0xace   : > { %11753 = vrcp.f32 %v7131_v42 }
 0xad1   : > { %v7226_v10 = vpop.f32.mrf.mxu1 }
 0xad2   : > { %v7272_v1 = vmul.f32 %v11750_v55, %v7226_v10  ;;  %v14263_v55 = vpop.f32.mrf.mxu2  ;;  %v14265_v10 = vpop.f32.mrf.mxu3 }
 0xad3   : > { %15143 = vst [vmem:[#allocation65_spill] sm:$0xff] %v14263_v55 }
 0xad4   : > { %v7284_v15 = vpack.c.bf16 %v7272_v1, %v7271_v37  ;;  %v11754_v58 = vpop.eup %11753  ;;  %15144 = vst [vmem:[#allocation99_spill] sm:$0xff] %v14265_v10 }
 0xad5   : > { %v7133_v37 = vpop.xlane.xlu0 %7132 }
 0xad6   : > { %7504 = vmatmul.bf16.gmra.mxu2 %v7284_v15  ;;  %7553 = vmatmul.bf16.gmra.mxu3 %v7284_v15  ;;  %11755 = vrcp.f32 %v7133_v37 }
 0xad7   : > { %7602 = vmatmul.bf16.gmra.mxu0 %v7284_v15  ;;  %7651 = vmatmul.bf16.gmra.mxu1 %v7284_v15 }
 0xad9   : > { %v7229_v57 = vpop.f32.mrf.mxu1 }
 0xada   : > { %v7273_v23 = vmul.f32 %v11752_v35, %v7229_v57  ;;  %v14267_v14 = vpop.f32.mrf.mxu2  ;;  %v14269_v42 = vpop.f32.mrf.mxu3 }
 0xadb   : > { %15145 = vst [vmem:[#allocation100_spill] sm:$0xff] %v14267_v14 }
 0xadc   : > { %15146 = vst [vmem:[#allocation101_spill] sm:$0xff] %v14269_v42  ;;  %v11756_v57 = vpop.eup %11755 }
 0xadd   : > { %v7135_v1 = vpop.xlane.xlu1 %7134 }
 0xade   : > { %11757 = vrcp.f32 %v7135_v1 }
 0xae1   : > { %v7231_v54 = vpop.f32.mrf.mxu1 }
 0xae2   : > { %v7274_v38 = vmul.f32 %v11754_v58, %v7231_v54  ;;  %v14273_v37 = vpop.f32.mrf.mxu3 }
 0xae3   : > { %15148 = vst [vmem:[#allocation103_spill] sm:$0xff] %v14273_v37 }
 0xae4   : > { %v7285_v24 = vpack.c.bf16 %v7274_v38, %v7273_v23  ;;  %v11758_v58 = vpop.eup %11757 }
 0xae5   : > { %v7137_v10 = vpop.xlane.xlu2 %7136 }
 0xae6   : > { %7509 = vmatmul.bf16.gmra.mxu2 %v7285_v24  ;;  %7558 = vmatmul.bf16.gmra.mxu3 %v7285_v24  ;;  %11759 = vrcp.f32 %v7137_v10 }
 0xae7   : > { %7607 = vmatmul.bf16.gmra.mxu0 %v7285_v24  ;;  %7656 = vmatmul.bf16.gmra.mxu1 %v7285_v24  ;;  %v14271_v24 = vpop.f32.mrf.mxu2 }
 0xae8   : > { %15147 = vst [vmem:[#allocation102_spill] sm:$0xff] %v14271_v24 }
 0xae9   : > { %v7234_v15 = vpop.f32.mrf.mxu1 }
 0xaea   : > { %v7275_v35 = vmul.f32 %v11756_v57, %v7234_v15 }
 0xaec   : > { %v11760_v42 = vpop.eup %11759 }
 0xaed   : > { %v7139_v55 = vpop.xlane.xlu0 %7138 }
 0xaee   : > { %11761 = vrcp.f32 %v7139_v55 }
 0xaef   : > { %v14275_v57 = vpop.f32.mrf.mxu2 }
 0xaf1   : > { %v7236_v54 = vpop.f32.mrf.mxu1 }
 0xaf2   : > { %v7276_v23 = vmul.f32 %v11758_v58, %v7236_v54  ;;  %v14277_v58 = vpop.f32.mrf.mxu3 }
 0xaf4   : > { %v7286_v38 = vpack.c.bf16 %v7276_v23, %v7275_v35  ;;  %v11762_v3 = vpop.eup %11761 }
 0xaf5   : > { %v7141_v35 = vpop.xlane.xlu1 %7140 }
 0xaf6   : > { %7514 = vmatmul.bf16.gmra.mxu2 %v7286_v38  ;;  %7563 = vmatmul.bf16.gmra.mxu3 %v7286_v38  ;;  %11763 = vrcp.f32 %v7141_v35 }
 0xaf7   : > { %7612 = vmatmul.bf16.gmra.mxu0 %v7286_v38  ;;  %7661 = vmatmul.bf16.gmra.mxu1 %v7286_v38  ;;  %v14279_v55 = vpop.f32.mrf.mxu2 }
 0xaf8   : > { %15149 = vst [vmem:[#allocation104_spill] sm:$0xff] %v14279_v55 }
 0xaf9   : > { %v7239_v1 = vpop.f32.mrf.mxu1 }
 0xafa   : > { %v7277_v33 = vmul.f32 %v11760_v42, %v7239_v1  ;;  %v14281_v10 = vpop.f32.mrf.mxu3 }
 0xafb   : > { %15150 = vst [vmem:[#allocation105_spill] sm:$0xff] %v14281_v10 }
 0xafc   : > { %v11764_v42 = vpop.eup %11763 }
 0xafd   : > { %v7143_v23 = vpop.xlane.xlu2 %7142 }
 0xafe   : > { %11765 = vrcp.f32 %v7143_v23  ;;  %v6799_v23 = vadd.f32 %v14225_v41, %v13964_v32 }
 0xb01   : > { %v7241_v14 = vpop.f32.mrf.mxu1 }
 0xb02   : > { %v7278_v15 = vmul.f32 %v11762_v3, %v7241_v14 }
 0xb04   : > { %v7287_v54 = vpack.c.bf16 %v7278_v15, %v7277_v33  ;;  %v11766_v3 = vpop.eup %11765  ;;  %v14283_v33 = vpop.f32.mrf.mxu2 }
 0xb05   : > { %v14285_v15 = vpop.f32.mrf.mxu3 }
 0xb06   : > { %7519 = vmatmul.bf16.gmra.mxu2 %v7287_v54  ;;  %7568 = vmatmul.bf16.gmra.mxu3 %v7287_v54 }
 0xb07   : > { %7617 = vmatmul.bf16.gmra.mxu0 %v7287_v54  ;;  %7666 = vmatmul.bf16.gmra.mxu1 %v7287_v54 }
 0xb09   : > { %v7244_v38 = vpop.f32.mrf.mxu1 }
 0xb0a   : > { %v7279_v1 = vmul.f32 %v11764_v42, %v7244_v38  ;;  %v6848_v38 = vadd.f32 %v14227_v56, %v13966_v19 }
 0xb0c   : > { %v14287_v54 = vpop.f32.mrf.mxu2 }
 0xb0d   : > { %15151 = vst [vmem:[#allocation106_spill] sm:$0xff] %v14287_v54  ;;  %v14289_v35 = vpop.f32.mrf.mxu3 }
 0xb0e   : > { %15152 = vst [vmem:[#allocation107_spill] sm:$0xff] %v14289_v35  ;;  %v6750_v35 = vadd.f32 %v14144_v60, %v14045_v16  ;;  %v6804_v60 = vadd.f32 %v14235_v7, %v13985_v39 }
 0xb11   : > { %v7246_v14 = vpop.f32.mrf.mxu1 }
 0xb12   : > { %v7280_v37 = vmul.f32 %v11766_v3, %v7246_v14 }
 0xb14   : > { %v7288_v24 = vpack.c.bf16 %v7280_v37, %v7279_v1  ;;  %v15153_v1 = vld [vmem:[#allocation54_spill] sm:$0xff] }
 0xb16   : > { %7524 = vmatmul.bf16.gmra.mxu2 %v7288_v24  ;;  %7573 = vmatmul.bf16.gmra.mxu3 %v7288_v24 }
 0xb17   : > { %7622 = vmatmul.bf16.gmra.mxu0 %v7288_v24  ;;  %7671 = vmatmul.bf16.gmra.mxu1 %v7288_v24  ;;  %v6701_v24 = vadd.f32 %v14039_v21, %v13920_v12  ;;  %v6853_v21 = vadd.f32 %v14237_v62, %v13989_v25 }
 0xb24   : > { %v7588_v42 = vpop.f32.mrf.mxu0  ;;  %v7637_v37 = vpop.f32.mrf.mxu1 }
 0xb25   : > { %v14295_v3 = vadd.f32 %v7588_v42, %v6799_v23  ;;  %v14297_v14 = vadd.f32 %v7637_v37, %v6848_v38  ;;  %v6703_v23 = vadd.f32 %v14043_v27, %v13931_v11  ;;  %v15154_v37 = vld [vmem:[#allocation56_spill] sm:$0xff]  ;;  %v6706_v11 = vadd.f32 %v14047_v34, %v13936_v48 }
 0xb26   : > { %7813 = vmatmul.bf16.vlgmr.msra.gmra.mxu2 %v15153_v1  ;;  %v6755_v27 = vadd.f32 %v14155_v47, %v14057_v59  ;;  %v6809_v47 = vadd.f32 %v14243_v63, %v14009_v2  ;;  %v6858_v34 = vadd.f32 %v14245_v17, %v14013_v26 }
 0xb29   : > { %v7490_v54 = vpop.f32.mrf.mxu2  ;;  %v7539_v10 = vpop.f32.mrf.mxu3 }
 0xb2a   : > { %v14304_v32 = vadd.f32 %v7490_v54, %v6701_v24  ;;  %v14306_v41 = vadd.f32 %v7539_v10, %v6750_v35 }
 0xb2c   : > { %v14308_v19 = vpop.f32.mrf.mxu0  ;;  %v14310_v56 = vpop.f32.mrf.mxu1 }
 0xb31   : > { %v7492_v38 = vpop.f32.mrf.mxu2  ;;  %v14314_v42 = vpop.f32.mrf.mxu3 }
 0xb32   : > { %v14316_v12 = vadd.f32 %v7492_v38, %v6703_v23  ;;  %v6708_v23 = vadd.f32 %v14053_v4, %v13947_v22  ;;  %v6711_v22 = vadd.f32 %v14055_v30, %v13952_v43  ;;  %v6760_v4 = vadd.f32 %v14159_v45, %v14069_v13 }
 0xb33   : > { %v6814_v30 = vadd.f32 %v14251_v29, %v14026_v0  ;;  %v6863_v13 = vadd.f32 %v14253_v28, %v14028_v46 }
 0xb34   : > { %v7593_v16 = vpop.f32.mrf.mxu0  ;;  %v7642_v10 = vpop.f32.mrf.mxu1 }
 0xb35   : > { %v14322_v54 = vadd.f32 %v7593_v16, %v6804_v60  ;;  %v14324_v35 = vadd.f32 %v7642_v10, %v6853_v21 }
 0xb36   : > { %7818 = vmatmul.bf16.gmra.mxu2 %v15154_v37  ;;  %v15155_v37 = vld [vmem:[#allocation58_spill] sm:$0xff] }
 0xb39   : > { %v7495_v1 = vpop.f32.mrf.mxu2  ;;  %v7544_v24 = vpop.f32.mrf.mxu3 }
 0xb3a   : > { %v14331_v39 = vadd.f32 %v7495_v1, %v6706_v11  ;;  %v14333_v7 = vadd.f32 %v7544_v24, %v6755_v27  ;;  %v6713_v1 = vadd.f32 %v14061_v52, %v13962_v50  ;;  %v6716_v50 = vadd.f32 %v14065_v20, %v13969_v6 }
 0xb3b   : > { %v6765_v52 = vadd.f32 %v14165_v36, %v14080_v9  ;;  %v6819_v20 = vadd.f32 %v14259_v61, %v14168_v51  ;;  %v6868_v9 = vadd.f32 %v14261_v5, %v14170_v18 }
 0xb3c   : > { %v14335_v25 = vpop.f32.mrf.mxu0  ;;  %v14337_v62 = vpop.f32.mrf.mxu1 }
 0xb41   : > { %v7497_v38 = vpop.f32.mrf.mxu2  ;;  %v14341_v60 = vpop.f32.mrf.mxu3 }
 0xb42   : > { %v14343_v48 = vadd.f32 %v7497_v38, %v6708_v23 }
 0xb44   : > { %v7598_v59 = vpop.f32.mrf.mxu0  ;;  %v7647_v21 = vpop.f32.mrf.mxu1 }
 0xb45   : > { %v14349_v16 = vadd.f32 %v7598_v59, %v6809_v47  ;;  %v14351_v10 = vadd.f32 %v7647_v21, %v6858_v34  ;;  %v15156_v59 = vld [vmem:[#allocation60_spill] sm:$0xff] }
 0xb46   : > { %7823 = vmatmul.bf16.gmra.mxu2 %v15155_v37 }
 0xb49   : > { %v7500_v11 = vpop.f32.mrf.mxu2  ;;  %v7549_v27 = vpop.f32.mrf.mxu3 }
 0xb4a   : > { %v14358_v2 = vadd.f32 %v7500_v11, %v6711_v22  ;;  %v14360_v63 = vadd.f32 %v7549_v27, %v6760_v4  ;;  %v6718_v22 = vadd.f32 %v14071_v40, %v13982_v53  ;;  %v6721_v53 = vadd.f32 %v14075_v31, %v13987_v49  ;;  %v15169_v31 = vld [vmem:[#allocation48_spill] sm:$0xff] }
 0xb4b   : > { %v6770_v40 = vadd.f32 %v14180_v44, %v14099_v8 }
 0xb4c   : > { %v14362_v26 = vpop.f32.mrf.mxu0  ;;  %v14364_v17 = vpop.f32.mrf.mxu1 }
 0xb51   : > { %v7502_v24 = vpop.f32.mrf.mxu2  ;;  %v14368_v23 = vpop.f32.mrf.mxu3 }
 0xb52   : > { %v14370_v43 = vadd.f32 %v7502_v24, %v6713_v1 }
 0xb54   : > { %v7603_v45 = vpop.f32.mrf.mxu0  ;;  %v7652_v38 = vpop.f32.mrf.mxu1 }
 0xb55   : > { %v14376_v47 = vadd.f32 %v7603_v45, %v6814_v30  ;;  %v14378_v34 = vadd.f32 %v7652_v38, %v6863_v13  ;;  %v15160_v30 = vld [vmem:[#allocation61_spill] sm:$0xff] }
 0xb56   : > { %7828 = vmatmul.bf16.gmra.mxu2 %v15156_v59 }
 0xb59   : > { %v7505_v21 = vpop.f32.mrf.mxu2  ;;  %v7554_v37 = vpop.f32.mrf.mxu3 }
 0xb5a   : > { %v14385_v0 = vadd.f32 %v7505_v21, %v6716_v50  ;;  %v14387_v29 = vadd.f32 %v7554_v37, %v6765_v52  ;;  %v15167_v50 = vld [vmem:[#allocation47_spill] sm:$0xff]  ;;  %v15168_v52 = vld [vmem:[#allocation100_spill] sm:$0xff]  ;;  %v15170_v21 = vld [vmem:[#allocation101_spill] sm:$0xff] }
 0xb5b   : > { %v6824_v49 = vadd.f32 %v15168_v52, %v15167_v50  ;;  %v6873_v8 = vadd.f32 %v15170_v21, %v15169_v31 }
 0xb5c   : > { %v14389_v46 = vpop.f32.mrf.mxu0  ;;  %v14391_v28 = vpop.f32.mrf.mxu1 }
 0xb5d   : > { %15157 = vst [vmem:[#allocation54_spill] sm:$0xff] %v14391_v28 }
 0xb61   : > { %v7507_v4 = vpop.f32.mrf.mxu2  ;;  %v14395_v11 = vpop.f32.mrf.mxu3 }
 0xb62   : > { %v14397_v6 = vadd.f32 %v7507_v4, %v6718_v22 }
 0xb64   : > { %v7608_v36 = vpop.f32.mrf.mxu0  ;;  %v7657_v27 = vpop.f32.mrf.mxu1 }
 0xb65   : > { %v14403_v1 = vadd.f32 %v7608_v36, %v6819_v20  ;;  %v14405_v24 = vadd.f32 %v7657_v27, %v6868_v9  ;;  %v15173_v20 = vld [vmem:[#allocation62_spill] sm:$0xff]  ;;  %v15174_v9 = vld [vmem:[#allocation80_spill] sm:$0xff]  ;;  %v15175_v36 = vld [vmem:[#allocation27_spill] sm:$0xff] }
 0xb66   : > { %7833 = vmatmul.bf16.gmra.mxu2 %v15160_v30  ;;  %v6726_v27 = vadd.f32 %v15175_v36, %v15174_v9  ;;  %v15176_v30 = vld [vmem:[#allocation37_spill] sm:$0xff] }
 0xb67   : > { %15158 = vst [vmem:[#allocation56_spill] sm:$0xff] %v14403_v1 }
 0xb68   : > { %15159 = vst [vmem:[#allocation58_spill] sm:$0xff] %v14405_v24 }
 0xb69   : > { %v7510_v13 = vpop.f32.mrf.mxu2  ;;  %v7559_v45 = vpop.f32.mrf.mxu3 }
 0xb6a   : > { %v14412_v51 = vadd.f32 %v7510_v13, %v6721_v53  ;;  %v14414_v61 = vadd.f32 %v7559_v45, %v6770_v40  ;;  %v15177_v53 = vld [vmem:[#allocation95_spill] sm:$0xff] }
 0xb6b   : > { %v6775_v40 = vadd.f32 %v15177_v53, %v15176_v30 }
 0xb6c   : > { %15161 = vst [vmem:[#allocation60_spill] sm:$0xff] %v14412_v51  ;;  %v14416_v18 = vpop.f32.mrf.mxu0  ;;  %v14418_v5 = vpop.f32.mrf.mxu1 }
 0xb6d   : > { %15162 = vst [vmem:[#allocation61_spill] sm:$0xff] %v14414_v61 }
 0xb6e   : > { %15163 = vst [vmem:[#allocation108_spill] sm:$0xff] %v14416_v18 }
 0xb6f   : > { %15164 = vst [vmem:[#allocation109_spill] sm:$0xff] %v14418_v5 }
 0xb71   : > { %v14420_v38 = vpop.f32.mrf.mxu2  ;;  %v14422_v59 = vpop.f32.mrf.mxu3 }
 0xb72   : > { %15165 = vst [vmem:[#allocation110_spill] sm:$0xff] %v14420_v38  ;;  %v10911_v38 = vld [vmem:[#allocation10 + $0x3f0] sm:$0xf0] }
 0xb73   : > { %15166 = vst [vmem:[#allocation111_spill] sm:$0xff] %v14422_v59 }
 0xb74   : > { %v7613_v44 = vpop.f32.mrf.mxu0  ;;  %v7662_v37 = vpop.f32.mrf.mxu1 }
 0xb75   : > { %v14428_v22 = vadd.f32 %v7613_v44, %v6824_v49  ;;  %v14430_v4 = vadd.f32 %v7662_v37, %v6873_v8  ;;  %v15184_v44 = vld [vmem:[#allocation84_spill] sm:$0xff] }
 0xb76   : > { %7838 = vmatmul.bf16.gmra.mxu2 %v15173_v20  ;;  %v6829_v37 = vadd.f32 %v14275_v57, %v15184_v44  ;;  %v15185_v20 = vld [vmem:[#allocation83_spill] sm:$0xff] }
 0xb77   : > { %15171 = vst [vmem:[#allocation47_spill] sm:$0xff] %v14428_v22  ;;  %v6878_v9 = vadd.f32 %v14277_v58, %v15185_v20 }
 0xb78   : > { %15172 = vst [vmem:[#allocation100_spill] sm:$0xff] %v14430_v4 }
 0xb79   : > { %v7515_v13 = vpop.f32.mrf.mxu2  ;;  %v7564_v45 = vpop.f32.mrf.mxu3 }
 0xb7a   : > { %v14437_v50 = vadd.f32 %v7515_v13, %v6726_v27  ;;  %v14439_v52 = vadd.f32 %v7564_v45, %v6775_v40  ;;  %v15188_v40 = vld [vmem:[#allocation64_spill] sm:$0xff]  ;;  %v15189_v13 = vld [vmem:[#allocation77_spill] sm:$0xff]  ;;  %v15190_v45 = vld [vmem:[#allocation30_spill] sm:$0xff] }
 0xb7b   : > { %v6731_v55 = vadd.f32 %v15190_v45, %v15189_v13  ;;  %v15205_v45 = vld [vmem:[#allocation32_spill] sm:$0xff] }
 0xb7c   : > { %15178 = vst [vmem:[#allocation48_spill] sm:$0xff] %v14437_v50  ;;  %v14441_v31 = vpop.f32.mrf.mxu0  ;;  %v14443_v49 = vpop.f32.mrf.mxu1  ;;  %v10919_v50 = vld [vmem:[#allocation10 + $0x3f8] sm:$0xf0] }
 0xb7d   : > { %15179 = vst [vmem:[#allocation101_spill] sm:$0xff] %v14439_v52 }
 0xb7e   : > { %15180 = vst [vmem:[#allocation62_spill] sm:$0xff] %v14441_v31  ;;  %v15192_v31 = vld [vmem:[#allocation85_spill] sm:$0xff] }
 0xb7f   : > { %15181 = vst [vmem:[#allocation80_spill] sm:$0xff] %v14443_v49  ;;  %v15191_v49 = vld [vmem:[#allocation39_spill] sm:$0xff] }
 0xb80   : > { %v6780_v4 = vadd.f32 %v15192_v31, %v15191_v49 }
 0xb81   : > { %v14445_v21 = vpop.f32.mrf.mxu2  ;;  %v14447_v8 = vpop.f32.mrf.mxu3 }
 0xb82   : > { %15182 = vst [vmem:[#allocation27_spill] sm:$0xff] %v14445_v21  ;;  %v11438_v21 = vld [vmem:[#allocation10 + $0x3ec] sm:$0xf] }
 0xb83   : > { %15183 = vst [vmem:[#allocation37_spill] sm:$0xff] %v14447_v8  ;;  %v10922_v18 = vor.u32 %v11438_v21, %v10919_v50 }
 0xb84   : > { %v7618_v36 = vpop.f32.mrf.mxu0  ;;  %v7667_v30 = vpop.f32.mrf.mxu1 }
 0xb85   : > { %v14453_v27 = vadd.f32 %v7618_v36, %v6829_v37  ;;  %v14455_v53 = vadd.f32 %v7667_v30, %v6878_v9  ;;  %v15199_v36 = vld [vmem:[#allocation98_spill] sm:$0xff]  ;;  %8434 = vmatpush.bf16.msrb.mxu3 %v10922_v18  ;;  %v10901_v18 = vld [vmem:[#allocation10 + $0x3c8] sm:$0xf] }
 0xb86   : > { %7843 = vmatmul.bf16.gmra.mxu2 %v15188_v40  ;;  %v6834_v30 = vadd.f32 %v14283_v33, %v15199_v36  ;;  %v15200_v40 = vld [vmem:[#allocation96_spill] sm:$0xff] }
 0xb87   : > { %15186 = vst [vmem:[#allocation95_spill] sm:$0xff] %v14453_v27  ;;  %v6883_v31 = vadd.f32 %v14285_v15, %v15200_v40 }
 0xb88   : > { %15187 = vst [vmem:[#allocation84_spill] sm:$0xff] %v14455_v53  ;;  %v15207_v53 = vld [vmem:[#allocation90_spill] sm:$0xff] }
 0xb89   : > { %v7520_v22 = vpop.f32.mrf.mxu2  ;;  %v7569_v8 = vpop.f32.mrf.mxu3 }
 0xb8a   : > { %v14462_v57 = vadd.f32 %v7520_v22, %v6731_v55  ;;  %v14464_v44 = vadd.f32 %v7569_v8, %v6780_v4  ;;  %v15203_v4 = vld [vmem:[#allocation66_spill] sm:$0xff]  ;;  %v15204_v8 = vld [vmem:[#allocation76_spill] sm:$0xff] }
 0xb8c   : > { %15193 = vst [vmem:[#allocation83_spill] sm:$0xff] %v14462_v57  ;;  %v14466_v58 = vpop.f32.mrf.mxu0  ;;  %v14468_v37 = vpop.f32.mrf.mxu1  ;;  %v11440_v57 = vld [vmem:[#allocation10 + $0x3f4] sm:$0xf0] }
 0xb8d   : > { %15194 = vst [vmem:[#allocation64_spill] sm:$0xff] %v14464_v44  ;;  %v10917_v44 = vld [vmem:[#allocation10 + $0x3e8] sm:$0xf] }
 0xb8e   : > { %15195 = vst [vmem:[#allocation77_spill] sm:$0xff] %v14466_v58  ;;  %v15206_v58 = vld [vmem:[#allocation41_spill] sm:$0xff]  ;;  %v10918_v52 = vor.u32 %v11440_v57, %v10917_v44 }
 0xb8f   : > { %15196 = vst [vmem:[#allocation30_spill] sm:$0xff] %v14468_v37  ;;  %v6736_v37 = vadd.f32 %v15205_v45, %v15204_v8  ;;  %v6785_v27 = vadd.f32 %v15207_v53, %v15206_v58 }
 0xb90   : > { %8385 = vmatpush.bf16.msrb.mxu2 %v10918_v52  ;;  %v10903_v52 = vld [vmem:[#allocation10 + $0x3d8] sm:$0xf0] }
 0xb91   : > { %v14470_v20 = vpop.f32.mrf.mxu2  ;;  %v14472_v9 = vpop.f32.mrf.mxu3 }
 0xb92   : > { %15197 = vst [vmem:[#allocation39_spill] sm:$0xff] %v14470_v20 }
 0xb93   : > { %15198 = vst [vmem:[#allocation85_spill] sm:$0xff] %v14472_v9 }
 0xb94   : > { %v7623_v49 = vpop.f32.mrf.mxu0  ;;  %v7672_v13 = vpop.f32.mrf.mxu1 }
 0xb95   : > { %v14478_v55 = vadd.f32 %v7623_v49, %v6834_v30  ;;  %v14480_v22 = vadd.f32 %v7672_v13, %v6883_v31 }
 0xb96   : > { %7848 = vmatmul.bf16.gmra.mxu2 %v15203_v4 }
 0xb97   : > { %15201 = vst [vmem:[#allocation98_spill] sm:$0xff] %v14478_v55 }
 0xb98   : > { %15202 = vst [vmem:[#allocation96_spill] sm:$0xff] %v14480_v22 }
 0xb99   : > { %v7525_v9 = vpop.f32.mrf.mxu2  ;;  %v7574_v20 = vpop.f32.mrf.mxu3 }
 0xb9a   : > { %v14487_v33 = vadd.f32 %v7525_v9, %v6736_v37  ;;  %v14489_v36 = vadd.f32 %v7574_v20, %v6785_v27 }
 0xb9c   : > { %15208 = vst [vmem:[#allocation66_spill] sm:$0xff] %v14487_v33 }
 0xb9d   : > { %15209 = vst [vmem:[#allocation76_spill] sm:$0xff] %v14489_v36 }
 0xba1   : > { %v14491_v15 = vpop.f32.mrf.mxu2 }
 0xba2   : > { %15210 = vst [vmem:[#allocation32_spill] sm:$0xff] %v14491_v15 }
 0xba9   : > { %v7814_v30 = vpop.f32.mrf.mxu2 }
 0xbaa   : > { %7854 = vmax.xlane.f32.xlu0 %v7814_v30 }
 0xbb1   : > { %v7816_v40 = vpop.f32.mrf.mxu2 }
 0xbb2   : > { %7856 = vmax.xlane.f32.xlu1 %v7816_v40 }
 0xbb9   : > { %v7819_v31 = vpop.f32.mrf.mxu2 }
 0xbba   : > { %7858 = vmax.xlane.f32.xlu2 %v7819_v31 }
 0xbc1   : > { %v14493_v49 = vpop.f32.mrf.mxu2 }
 0xbc2   : > { %7860 = vmax.xlane.f32.xlu0 %v14493_v49 }
 0xbc9   : > { %v14496_v13 = vpop.f32.mrf.mxu2 }
 0xbca   : > { %7862 = vmax.xlane.f32.xlu1 %v14496_v13 }
 0xbd1   : > { %v14499_v53 = vpop.f32.mrf.mxu2 }
 0xbd2   : > { %7864 = vmax.xlane.f32.xlu2 %v14499_v53 }
 0xbd9   : > { %v14502_v27 = vpop.f32.mrf.mxu2 }
 0xbda   : > { %7866 = vmax.xlane.f32.xlu0 %v14502_v27 }
 0xbe1   : > { %v14505_v58 = vpop.f32.mrf.mxu2 }
 0xbe2   : > { %7868 = vmax.xlane.f32.xlu1 %v14505_v58 }
 0xbe9   : > { %v14508_v37 = vpop.f32.mrf.mxu2 }
 0xbea   : > { %7870 = vmax.xlane.f32.xlu2 %v14508_v37 }
 0xbf1   : > { %v14511_v20 = vpop.f32.mrf.mxu2 }
 0xbf2   : > { %7872 = vmax.xlane.f32.xlu0 %v14511_v20 }
 0xbf9   : > { %v14514_v9 = vpop.f32.mrf.mxu2 }
 0xbfa   : > { %7874 = vmax.xlane.f32.xlu1 %v14514_v9 }
 0xc01   : > { %v14517_v4 = vpop.f32.mrf.mxu2 }
 0xc02   : > { %7876 = vmax.xlane.f32.xlu2 %v14517_v4 }
 0xc09   : > { %v14520_v8 = vpop.f32.mrf.mxu2 }
 0xc0a   : > { %7878 = vmax.xlane.f32.xlu0 %v14520_v8 }
 0xc11   : > { %v14523_v45 = vpop.f32.mrf.mxu2 }
 0xc12   : > { %7880 = vmax.xlane.f32.xlu1 %v14523_v45 }
 0xc19   : > { %v14526_v22 = vpop.f32.mrf.mxu2 }
 0xc1a   : > { %7882 = vmax.xlane.f32.xlu2 %v14526_v22 }
 0xc1d   : > { %v7855_v55 = vpop.xlane.xlu0 %7854 }
 0xc1e   : > { %v7886_v15 = vsub.f32 %v7814_v30, %v7855_v55  ;;  %v10909_v55 = vld [vmem:[#allocation10 + $0x3e0] sm:$0xf]  ;;  %v11437_v30 = vld [vmem:[#allocation10 + $0x3e4] sm:$0xf] }
 0xc1f   : > { %v10914_v61 = vor.u32 %v11437_v30, %v10911_v38 }
 0xc20   : > { %v7902_v36 = vmul.f32 1.442695, %v7886_v15  ;;  %v11439_v15 = vld [vmem:[#allocation10 + $0x3ec] sm:$0xf0] }
 0xc21   : > { %v14529_v33 = vpop.f32.mrf.mxu2  ;;  %8336 = vmatpush.bf16.msrb.mxu1 %v10914_v61  ;;  %v11433_v61 = vld [vmem:[#allocation10 + $0x3c4] sm:$0xf] }
 0xc22   : > { %11767 = vpow2.f32 %v7902_v36  ;;  %7884 = vmax.xlane.f32.xlu0 %v14529_v33  ;;  %v10910_v36 = vor.u32 %v11439_v15, %v10909_v55  ;;  %v10895_v15 = vld [vmem:[#allocation10 + $0x3d0] sm:$0xf0] }
 0xc23   : > { %v10898_v30 = vor.u32 %v11433_v61, %v10895_v15 }
 0xc24   : > { %8287 = vmatpush.bf16.msrb.mxu0 %v10910_v36 }
 0xc25   : > { %v7857_v5 = vpop.xlane.xlu1 %7856  ;;  %8337 = vmatpush.bf16.msrb.mxu1 %v10898_v30 }
 0xc26   : > { %v7887_v24 = vsub.f32 %v7816_v40, %v7857_v5  ;;  %v11434_v5 = vld [vmem:[#allocation10 + $0x3cc] sm:$0xf] }
 0xc27   : > { %v10906_v40 = vor.u32 %v11434_v5, %v10903_v52  ;;  %v11430_v5 = vld [vmem:[#allocation10 + $0x3ac] sm:$0xf]  ;;  %v10887_v52 = vld [vmem:[#allocation10 + $0x3b8] sm:$0xf0] }
 0xc28   : > { %v11768_v1 = vpop.eup %11767  ;;  %v7904_v59 = vmul.f32 1.442695, %v7887_v24  ;;  %v11436_v24 = vld [vmem:[#allocation10 + $0x3d4] sm:$0xf0] }
 0xc29   : > { %7934 = vadd.xlane.f32.xlu1 %v11768_v1  ;;  %8435 = vmatpush.bf16.msrb.mxu3 %v10906_v40  ;;  %v10890_v40 = vor.u32 %v11430_v5, %v10887_v52  ;;  %v10871_v5 = vld [vmem:[#allocation10 + $0x398] sm:$0xf0] }
 0xc2a   : > { %11769 = vpow2.f32 %v7904_v59  ;;  %v10902_v59 = vor.u32 %v11436_v24, %v10901_v18  ;;  %v10885_v18 = vld [vmem:[#allocation10 + $0x3a8] sm:$0xf]  ;;  %v11432_v24 = vld [vmem:[#allocation10 + $0x3b4] sm:$0xf0] }
 0xc2c   : > { %8386 = vmatpush.bf16.msrb.mxu2 %v10902_v59  ;;  %v10886_v59 = vor.u32 %v11432_v24, %v10885_v18  ;;  %v11426_v18 = vld [vmem:[#allocation10 + $0x38c] sm:$0xf] }
 0xc2d   : > { %v7859_v51 = vpop.xlane.xlu2 %7858  ;;  %8436 = vmatpush.bf16.msrb.mxu3 %v10890_v40  ;;  %v10874_v52 = vor.u32 %v11426_v18, %v10871_v5 }
 0xc2e   : > { %v7888_v28 = vsub.f32 %v7819_v31, %v7859_v51 }
 0xc30   : > { %v11770_v57 = vpop.eup %11769  ;;  %v7906_v44 = vmul.f32 1.442695, %v7888_v28  ;;  %v10893_v28 = vld [vmem:[#allocation10 + $0x3c0] sm:$0xf]  ;;  %8387 = vmatpush.bf16.msrb.mxu2 %v10886_v59 }
 0xc31   : > { %v7966_v50 = vpack.c.bf16 %v11770_v57, %v11768_v1  ;;  %7936 = vadd.xlane.f32.xlu2 %v11770_v57  ;;  %v11435_v1 = vld [vmem:[#allocation10 + $0x3cc] sm:$0xf0]  ;;  %8437 = vmatpush.bf16.msrb.mxu3 %v10874_v52 }
 0xc32   : > { %11771 = vpow2.f32 %v7906_v44  ;;  %v10894_v31 = vor.u32 %v11435_v1, %v10893_v28  ;;  %v10877_v28 = vld [vmem:[#allocation10 + $0x3a0] sm:$0xf]  ;;  %v11431_v1 = vld [vmem:[#allocation10 + $0x3ac] sm:$0xf0] }
 0xc33   : > { %8014 = vmatmul.bf16.vlgmr.msra.gmra.mxu3 %v7966_v50  ;;  %v10878_v61 = vor.u32 %v11431_v1, %v10877_v28  ;;  %v10863_v1 = vld [vmem:[#allocation10 + $0x390] sm:$0xf0]  ;;  %v11423_v52 = vld [vmem:[#allocation10 + $0x36c] sm:$0xf0] }
 0xc34   : > { %8288 = vmatpush.bf16.msrb.mxu0 %v10894_v31  ;;  %v10879_v31 = vld [vmem:[#allocation10 + $0x3b0] sm:$0xf0] }
 0xc35   : > { %v7861_v21 = vpop.xlane.xlu0 %7860 }
 0xc36   : > { %v7889_v55 = vsub.f32 %v14493_v49, %v7861_v21 }
 0xc38   : > { %v11772_v38 = vpop.eup %11771  ;;  %v7908_v51 = vmul.f32 1.442695, %v7889_v55  ;;  %8289 = vmatpush.bf16.msrb.mxu0 %v10878_v61 }
 0xc39   : > { %7938 = vadd.xlane.f32.xlu0 %v11772_v38 }
 0xc3a   : > { %11773 = vpow2.f32 %v7908_v51 }
 0xc3d   : > { %v7863_v36 = vpop.xlane.xlu1 %7862 }
 0xc3e   : > { %v7890_v57 = vsub.f32 %v14496_v13, %v7863_v36 }
 0xc40   : > { %v11774_v44 = vpop.eup %11773  ;;  %v7910_v50 = vmul.f32 1.442695, %v7890_v57 }
 0xc41   : > { %7940 = vadd.xlane.f32.xlu1 %v11774_v44  ;;  %v7967_v49 = vpack.c.bf16 %v11774_v44, %v11772_v38  ;;  %v11429_v38 = vld [vmem:[#allocation10 + $0x3a4] sm:$0xf] }
 0xc42   : > { %11775 = vpow2.f32 %v7910_v50  ;;  %v10882_v15 = vor.u32 %v11429_v38, %v10879_v31  ;;  %v10869_v50 = vld [vmem:[#allocation10 + $0x388] sm:$0xf] }
 0xc43   : > { %8019 = vmatmul.bf16.gmra.mxu3 %v7967_v49  ;;  %v11428_v49 = vld [vmem:[#allocation10 + $0x394] sm:$0xf0] }
 0xc44   : > { %8338 = vmatpush.bf16.msrb.mxu1 %v10882_v15  ;;  %v10870_v24 = vor.u32 %v11428_v49, %v10869_v50  ;;  %v10855_v50 = vld [vmem:[#allocation10 + $0x378] sm:$0xf0] }
 0xc45   : > { %v7865_v21 = vpop.xlane.xlu2 %7864 }
 0xc46   : > { %v7891_v55 = vsub.f32 %v14499_v53, %v7865_v21  ;;  %8388 = vmatpush.bf16.msrb.mxu2 %v10870_v24 }
 0xc48   : > { %v11776_v51 = vpop.eup %11775  ;;  %v7912_v13 = vmul.f32 1.442695, %v7891_v55  ;;  %v10861_v55 = vld [vmem:[#allocation10 + $0x380] sm:$0xf] }
 0xc49   : > { %7942 = vadd.xlane.f32.xlu2 %v11776_v51 }
 0xc4a   : > { %11777 = vpow2.f32 %v7912_v13  ;;  %v11427_v13 = vld [vmem:[#allocation10 + $0x38c] sm:$0xf0] }
 0xc4b   : > { %v10862_v28 = vor.u32 %v11427_v13, %v10861_v55 }
 0xc4d   : > { %v7867_v30 = vpop.xlane.xlu0 %7866  ;;  %8290 = vmatpush.bf16.msrb.mxu0 %v10862_v28 }
 0xc4e   : > { %v7892_v36 = vsub.f32 %v14502_v27, %v7867_v30 }
 0xc50   : > { %v11778_v57 = vpop.eup %11777  ;;  %v7914_v44 = vmul.f32 1.442695, %v7892_v36  ;;  %v10853_v36 = vld [vmem:[#allocation10 + $0x368] sm:$0xf] }
 0xc51   : > { %7944 = vadd.xlane.f32.xlu0 %v11778_v57  ;;  %v7968_v53 = vpack.c.bf16 %v11778_v57, %v11776_v51  ;;  %v11425_v51 = vld [vmem:[#allocation10 + $0x384] sm:$0xf]  ;;  %v11424_v57 = vld [vmem:[#allocation10 + $0x374] sm:$0xf0] }
 0xc52   : > { %11779 = vpow2.f32 %v7914_v44  ;;  %v10866_v38 = vor.u32 %v11425_v51, %v10863_v1  ;;  %v11422_v44 = vld [vmem:[#allocation10 + $0x36c] sm:$0xf] }
 0xc53   : > { %8024 = vmatmul.bf16.gmra.mxu3 %v7968_v53  ;;  %v10854_v53 = vor.u32 %v11424_v57, %v10853_v36  ;;  %v10858_v18 = vor.u32 %v11422_v44, %v10855_v50  ;;  %v11419_v50 = vld [vmem:[#allocation10 + $0x34c] sm:$0xf0] }
 0xc54   : > { %8339 = vmatpush.bf16.msrb.mxu1 %v10866_v38  ;;  %v10837_v38 = vld [vmem:[#allocation10 + $0x348] sm:$0xf] }
 0xc55   : > { %v7869_v59 = vpop.xlane.xlu1 %7868  ;;  %8389 = vmatpush.bf16.msrb.mxu2 %v10854_v53  ;;  %8438 = vmatpush.bf16.msrb.mxu3 %v10858_v18  ;;  %v10829_v53 = vld [vmem:[#allocation10 + $0x340] sm:$0xf] }
 0xc56   : > { %v7893_v21 = vsub.f32 %v14505_v58, %v7869_v59  ;;  %v10845_v59 = vld [vmem:[#allocation10 + $0x360] sm:$0xf]  ;;  %v10830_v18 = vor.u32 %v11419_v50, %v10829_v53  ;;  %v11410_v53 = vld [vmem:[#allocation10 + $0x30c] sm:$0xf] }
 0xc58   : > { %v11780_v40 = vpop.eup %11779  ;;  %v7916_v27 = vmul.f32 1.442695, %v7893_v21  ;;  %v11421_v21 = vld [vmem:[#allocation10 + $0x364] sm:$0xf] }
 0xc59   : > { %7946 = vadd.xlane.f32.xlu1 %v11780_v40 }
 0xc5a   : > { %11781 = vpow2.f32 %v7916_v27  ;;  %v10847_v27 = vld [vmem:[#allocation10 + $0x370] sm:$0xf0] }
 0xc5b   : > { %v10850_v55 = vor.u32 %v11421_v21, %v10847_v27  ;;  %v11416_v27 = vld [vmem:[#allocation10 + $0x334] sm:$0xf0] }
 0xc5d   : > { %v7871_v61 = vpop.xlane.xlu2 %7870  ;;  %8340 = vmatpush.bf16.msrb.mxu1 %v10850_v55  ;;  %v11414_v55 = vld [vmem:[#allocation10 + $0x32c] sm:$0xf] }
 0xc5e   : > { %v7894_v31 = vsub.f32 %v14508_v37, %v7871_v61  ;;  %v11420_v61 = vld [vmem:[#allocation10 + $0x354] sm:$0xf0] }
 0xc60   : > { %v11782_v15 = vpop.eup %11781  ;;  %v7918_v30 = vmul.f32 1.442695, %v7894_v31  ;;  %v11418_v31 = vld [vmem:[#allocation10 + $0x34c] sm:$0xf] }
 0xc61   : > { %7948 = vadd.xlane.f32.xlu2 %v11782_v15  ;;  %v7969_v58 = vpack.c.bf16 %v11782_v15, %v11780_v40  ;;  %v10846_v40 = vor.u32 %v11423_v52, %v10845_v59  ;;  %v10838_v15 = vor.u32 %v11420_v61, %v10837_v38  ;;  %v11415_v38 = vld [vmem:[#allocation10 + $0x32c] sm:$0xf0]  ;;  %v11413_v61 = vld [vmem:[#allocation10 + $0x324] sm:$0xf] }
 0xc62   : > { %11783 = vpow2.f32 %v7918_v30  ;;  %v10839_v30 = vld [vmem:[#allocation10 + $0x358] sm:$0xf0] }
 0xc63   : > { %8029 = vmatmul.bf16.gmra.mxu3 %v7969_v58  ;;  %8291 = vmatpush.bf16.msrb.mxu0 %v10846_v40  ;;  %v10842_v36 = vor.u32 %v11418_v31, %v10839_v30  ;;  %v10821_v40 = vld [vmem:[#allocation10 + $0x328] sm:$0xf] }
 0xc64   : > { %8390 = vmatpush.bf16.msrb.mxu2 %v10838_v15  ;;  %v10815_v15 = vld [vmem:[#allocation10 + $0x330] sm:$0xf0] }
 0xc65   : > { %v7873_v49 = vpop.xlane.xlu0 %7872  ;;  %8439 = vmatpush.bf16.msrb.mxu3 %v10842_v36  ;;  %v10818_v30 = vor.u32 %v11413_v61, %v10815_v15 }
 0xc66   : > { %v7895_v24 = vsub.f32 %v14511_v20, %v7873_v49  ;;  %v11417_v49 = vld [vmem:[#allocation10 + $0x344] sm:$0xf] }
 0xc67   : > { %8292 = vmatpush.bf16.msrb.mxu0 %v10830_v18  ;;  %v10807_v18 = vld [vmem:[#allocation10 + $0x318] sm:$0xf0] }
 0xc68   : > { %v11784_v5 = vpop.eup %11783  ;;  %v7920_v37 = vmul.f32 1.442695, %v7895_v24  ;;  %v10831_v24 = vld [vmem:[#allocation10 + $0x350] sm:$0xf0] }
 0xc69   : > { %7950 = vadd.xlane.f32.xlu0 %v11784_v5 }
 0xc6a   : > { %11785 = vpow2.f32 %v7920_v37 }
 0xc6d   : > { %v7875_v13 = vpop.xlane.xlu1 %7874 }
 0xc6e   : > { %v7896_v51 = vsub.f32 %v14514_v9, %v7875_v13  ;;  %v10822_v13 = vor.u32 %v11416_v27, %v10821_v40  ;;  %v11409_v40 = vld [vmem:[#allocation10 + $0x304] sm:$0xf] }
 0xc70   : > { %v11786_v28 = vpop.eup %11785  ;;  %v7922_v1 = vmul.f32 1.442695, %v7896_v51  ;;  %v10823_v51 = vld [vmem:[#allocation10 + $0x338] sm:$0xf0]  ;;  %8391 = vmatpush.bf16.msrb.mxu2 %v10822_v13  ;;  %v10799_v13 = vld [vmem:[#allocation10 + $0x310] sm:$0xf0] }
 0xc71   : > { %7952 = vadd.xlane.f32.xlu1 %v11786_v28  ;;  %v7970_v20 = vpack.c.bf16 %v11786_v28, %v11784_v5  ;;  %v10834_v5 = vor.u32 %v11417_v49, %v10831_v24 }
 0xc72   : > { %11787 = vpow2.f32 %v7922_v1  ;;  %v10826_v1 = vor.u32 %v11414_v55, %v10823_v51  ;;  %v10802_v51 = vor.u32 %v11409_v40, %v10799_v13 }
 0xc73   : > { %8034 = vmatmul.bf16.gmra.mxu3 %v7970_v20  ;;  %8341 = vmatpush.bf16.msrb.mxu1 %v10834_v5  ;;  %v10813_v20 = vld [vmem:[#allocation10 + $0x320] sm:$0xf] }
 0xc74   : > { %8440 = vmatpush.bf16.msrb.mxu3 %v10826_v1 }
 0xc75   : > { %v7877_v58 = vpop.xlane.xlu2 %7876 }
 0xc76   : > { %v7897_v57 = vsub.f32 %v14517_v4, %v7877_v58 }
 0xc77   : > { %8342 = vmatpush.bf16.msrb.mxu1 %v10818_v30 }
 0xc78   : > { %v11788_v44 = vpop.eup %11787  ;;  %v7924_v9 = vmul.f32 1.442695, %v7897_v57 }
 0xc79   : > { %7954 = vadd.xlane.f32.xlu2 %v11788_v44 }
 0xc7a   : > { %11789 = vpow2.f32 %v7924_v9  ;;  %v11412_v9 = vld [vmem:[#allocation10 + $0x314] sm:$0xf0] }
 0xc7b   : > { %8343 = vmatpush.bf16.msrb.mxu1 %v10802_v51 }
 0xc7d   : > { %v7879_v37 = vpop.xlane.xlu0 %7878 }
 0xc7e   : > { %v7898_v59 = vsub.f32 %v14520_v8, %v7879_v37  ;;  %v10814_v8 = vor.u32 %v11415_v38, %v10813_v20  ;;  %v14545_v20 = vpop.f32.mrf.mxu3 }
 0xc80   : > { %v11790_v52 = vpop.eup %11789  ;;  %v7926_v21 = vmul.f32 1.442695, %v7898_v59  ;;  %8293 = vmatpush.bf16.msrb.mxu0 %v10814_v8 }
 0xc81   : > { %7956 = vadd.xlane.f32.xlu0 %v11790_v52  ;;  %v7971_v4 = vpack.c.bf16 %v11790_v52, %v11788_v44  ;;  %v10805_v44 = vld [vmem:[#allocation10 + $0x308] sm:$0xf] }
 0xc82   : > { %11791 = vpow2.f32 %v7926_v21  ;;  %v10806_v49 = vor.u32 %v11412_v9, %v10805_v44  ;;  %v10797_v21 = vld [vmem:[#allocation10 + $0x300] sm:$0xf] }
 0xc83   : > { %8039 = vmatmul.bf16.gmra.mxu3 %v7971_v4  ;;  %v11411_v4 = vld [vmem:[#allocation10 + $0x30c] sm:$0xf0] }
 0xc84   : > { %8392 = vmatpush.bf16.msrb.mxu2 %v10806_v49 }
 0xc85   : > { %v7881_v28 = vpop.xlane.xlu1 %7880 }
 0xc86   : > { %v7899_v31 = vsub.f32 %v14523_v45, %v7881_v28  ;;  %v10810_v45 = vor.u32 %v11410_v53, %v10807_v18 }
 0xc88   : > { %v11792_v58 = vpop.eup %11791  ;;  %v7928_v36 = vmul.f32 1.442695, %v7899_v31  ;;  %8441 = vmatpush.bf16.msrb.mxu3 %v10810_v45 }
 0xc89   : > { %7958 = vadd.xlane.f32.xlu1 %v11792_v58 }
 0xc8a   : > { %11793 = vpow2.f32 %v7928_v36 }
 0xc8d   : > { %v7883_v57 = vpop.xlane.xlu2 %7882 }
 0xc8e   : > { %v7900_v50 = vsub.f32 %v14526_v22, %v7883_v57  ;;  %v10798_v22 = vor.u32 %v11411_v4, %v10797_v21 }
 0xc90   : > { %v11794_v24 = vpop.eup %11793  ;;  %v7930_v5 = vmul.f32 1.442695, %v7900_v50  ;;  %8294 = vmatpush.bf16.msrb.mxu0 %v10798_v22 }
 0xc91   : > { %7960 = vadd.xlane.f32.xlu2 %v11794_v24  ;;  %v7972_v37 = vpack.c.bf16 %v11794_v24, %v11792_v58 }
 0xc92   : > { %11795 = vpow2.f32 %v7930_v5 }
 0xc93   : > { %8044 = vmatmul.bf16.gmra.mxu3 %v7972_v37 }
 0xc95   : > { %v7885_v59 = vpop.xlane.xlu0 %7884 }
 0xc96   : > { %v7901_v52 = vsub.f32 %v14529_v33, %v7885_v59 }
 0xc98   : > { %v11796_v27 = vpop.eup %11795  ;;  %v7932_v55 = vmul.f32 1.442695, %v7901_v52 }
 0xc99   : > { %7962 = vadd.xlane.f32.xlu0 %v11796_v27 }
 0xc9a   : > { %11797 = vpow2.f32 %v7932_v55 }
 0xc9c   : > { %v7935_v38 = vpop.xlane.xlu1 %7934 }
 0xc9d   : > { %11799 = vrcp.f32 %v7935_v38 }
 0xca0   : > { %v11798_v28 = vpop.eup %11797 }
 0xca1   : > { %7964 = vadd.xlane.f32.xlu1 %v11798_v28  ;;  %v7973_v1 = vpack.c.bf16 %v11798_v28, %v11796_v27 }
 0xca3   : > { %8049 = vmatmul.bf16.gmra.mxu3 %v7973_v1  ;;  %v11800_v31 = vpop.eup %11799 }
 0xca4   : > { %v7937_v33 = vpop.xlane.xlu2 %7936 }
 0xca5   : > { %11801 = vrcp.f32 %v7937_v33 }
 0xcab   : > { %v11802_v8 = vpop.eup %11801 }
 0xcac   : > { %v7939_v57 = vpop.xlane.xlu0 %7938 }
 0xcad   : > { %11803 = vrcp.f32 %v7939_v57 }
 0xcb3   : > { %v11804_v53 = vpop.eup %11803 }
 0xcb4   : > { %v7941_v44 = vpop.xlane.xlu1 %7940 }
 0xcb5   : > { %11805 = vrcp.f32 %v7941_v44 }
 0xcb6   : > { %v8015_v61 = vpop.f32.mrf.mxu3 }
 0xcb7   : > { %v8071_v30 = vmul.f32 %v11800_v31, %v8015_v61 }
 0xcbb   : > { %v11806_v50 = vpop.eup %11805 }
 0xcbc   : > { %v7943_v5 = vpop.xlane.xlu2 %7942 }
 0xcbd   : > { %11807 = vrcp.f32 %v7943_v5 }
 0xcbe   : > { %v8017_v15 = vpop.f32.mrf.mxu3 }
 0xcbf   : > { %v8072_v58 = vmul.f32 %v11802_v8, %v8017_v15 }
 0xcc1   : > { %v8087_v36 = vpack.c.bf16 %v8072_v58, %v8071_v30 }
 0xcc3   : > { %8295 = vmatmul.bf16.vlgmr.msrb.gmra.mxu0 %v8087_v36  ;;  %8344 = vmatmul.bf16.vlgmr.msrb.gmra.mxu1 %v8087_v36  ;;  %v11808_v52 = vpop.eup %11807 }
 0xcc4   : > { %8393 = vmatmul.bf16.vlgmr.msrb.gmra.mxu2 %v8087_v36  ;;  %8442 = vmatmul.bf16.vlgmr.msrb.gmra.mxu3 %v8087_v36  ;;  %v7945_v37 = vpop.xlane.xlu0 %7944 }
 0xcc5   : > { %11809 = vrcp.f32 %v7945_v37 }
 0xcc6   : > { %v8020_v9 = vpop.f32.mrf.mxu3 }
 0xcc7   : > { %v8073_v18 = vmul.f32 %v11804_v53, %v8020_v9 }
 0xccb   : > { %v11810_v21 = vpop.eup %11809 }
 0xccc   : > { %v7947_v22 = vpop.xlane.xlu1 %7946 }
 0xccd   : > { %11811 = vrcp.f32 %v7947_v22 }
 0xcce   : > { %v8022_v49 = vpop.f32.mrf.mxu3 }
 0xccf   : > { %v8074_v45 = vmul.f32 %v11806_v50, %v8022_v49 }
 0xcd1   : > { %v8088_v24 = vpack.c.bf16 %v8074_v45, %v8073_v18 }
 0xcd3   : > { %8300 = vmatmul.bf16.gmra.mxu0 %v8088_v24  ;;  %8349 = vmatmul.bf16.gmra.mxu1 %v8088_v24  ;;  %v11812_v28 = vpop.eup %11811 }
 0xcd4   : > { %8398 = vmatmul.bf16.gmra.mxu2 %v8088_v24  ;;  %8447 = vmatmul.bf16.gmra.mxu3 %v8088_v24  ;;  %v7949_v13 = vpop.xlane.xlu2 %7948 }
 0xcd5   : > { %11813 = vrcp.f32 %v7949_v13 }
 0xcd6   : > { %v8025_v59 = vpop.f32.mrf.mxu3 }
 0xcd7   : > { %v8075_v40 = vmul.f32 %v11808_v52, %v8025_v59 }
 0xcdb   : > { %v11814_v1 = vpop.eup %11813 }
 0xcdc   : > { %v7951_v8 = vpop.xlane.xlu0 %7950 }
 0xcdd   : > { %11815 = vrcp.f32 %v7951_v8 }
 0xcde   : > { %v8027_v4 = vpop.f32.mrf.mxu3 }
 0xcdf   : > { %v8076_v27 = vmul.f32 %v11810_v21, %v8027_v4 }
 0xce1   : > { %v8089_v55 = vpack.c.bf16 %v8076_v27, %v8075_v40 }
 0xce3   : > { %8305 = vmatmul.bf16.gmra.mxu0 %v8089_v55  ;;  %8354 = vmatmul.bf16.gmra.mxu1 %v8089_v55  ;;  %v11816_v58 = vpop.eup %11815 }
 0xce4   : > { %8403 = vmatmul.bf16.gmra.mxu2 %v8089_v55  ;;  %8452 = vmatmul.bf16.gmra.mxu3 %v8089_v55  ;;  %v7953_v15 = vpop.xlane.xlu1 %7952 }
 0xce5   : > { %11817 = vrcp.f32 %v7953_v15 }
 0xce6   : > { %v8030_v51 = vpop.f32.mrf.mxu3 }
 0xce7   : > { %v8077_v33 = vmul.f32 %v11812_v28, %v8030_v51 }
 0xceb   : > { %v11818_v36 = vpop.eup %11817 }
 0xcec   : > { %v7955_v50 = vpop.xlane.xlu2 %7954 }
 0xced   : > { %11819 = vrcp.f32 %v7955_v50 }
 0xcee   : > { %v8032_v38 = vpop.f32.mrf.mxu3 }
 0xcef   : > { %v8078_v61 = vmul.f32 %v11814_v1, %v8032_v38 }
 0xcf1   : > { %v8090_v31 = vpack.c.bf16 %v8078_v61, %v8077_v33 }
 0xcf3   : > { %8310 = vmatmul.bf16.gmra.mxu0 %v8090_v31  ;;  %8359 = vmatmul.bf16.gmra.mxu1 %v8090_v31  ;;  %v11820_v45 = vpop.eup %11819 }
 0xcf4   : > { %8408 = vmatmul.bf16.gmra.mxu2 %v8090_v31  ;;  %8457 = vmatmul.bf16.gmra.mxu3 %v8090_v31  ;;  %v7957_v49 = vpop.xlane.xlu0 %7956 }
 0xcf5   : > { %11821 = vrcp.f32 %v7957_v49 }
 0xcf6   : > { %v8035_v30 = vpop.f32.mrf.mxu3 }
 0xcf7   : > { %v8079_v44 = vmul.f32 %v11816_v58, %v8035_v30 }
 0xcfb   : > { %v11822_v24 = vpop.eup %11821 }
 0xcfc   : > { %v7959_v21 = vpop.xlane.xlu1 %7958 }
 0xcfd   : > { %11823 = vrcp.f32 %v7959_v21 }
 0xcfe   : > { %v8037_v57 = vpop.f32.mrf.mxu3 }
 0xcff   : > { %v8080_v9 = vmul.f32 %v11818_v36, %v8037_v57  ;;  %v14547_v36 = vpop.f32.mrf.mxu0  ;;  %v14549_v57 = vpop.f32.mrf.mxu1 }
 0xd01   : > { %v8091_v53 = vpack.c.bf16 %v8080_v9, %v8079_v44  ;;  %v8547_v44 = vld [vmem:[#allocation16] sm:$0xf] }
 0xd02   : > { %v14551_v9 = vperm.slane %v8547_v44, 0  ;;  %v14567_v21 = vperm.slane %v8547_v44, 2 }
 0xd03   : > { %8315 = vmatmul.bf16.gmra.mxu0 %v8091_v53  ;;  %8364 = vmatmul.bf16.gmra.mxu1 %v8091_v53  ;;  %v11824_v27 = vpop.eup %11823 }
 0xd04   : > { %8413 = vmatmul.bf16.gmra.mxu2 %v8091_v53  ;;  %8462 = vmatmul.bf16.gmra.mxu3 %v8091_v53  ;;  %v7961_v4 = vpop.xlane.xlu2 %7960  ;;  %v14553_v53 = vperm.slane %v8547_v44, 1 }
 0xd05   : > { %11825 = vrcp.f32 %v7961_v4  ;;  %v14569_v4 = vperm.slane %v8547_v44, 3 }
 0xd06   : > { %v8040_v18 = vpop.f32.mrf.mxu3 }
 0xd07   : > { %v8081_v37 = vmul.f32 %v11820_v45, %v8040_v18 }
 0xd0b   : > { %v11826_v55 = vpop.eup %11825 }
 0xd0c   : > { %v7963_v1 = vpop.xlane.xlu0 %7962 }
 0xd0d   : > { %11827 = vrcp.f32 %v7963_v1 }
 0xd0e   : > { %v8042_v5 = vpop.f32.mrf.mxu3 }
 0xd0f   : > { %v8082_v59 = vmul.f32 %v11822_v24, %v8042_v5 }
 0xd11   : > { %v8092_v52 = vpack.c.bf16 %v8082_v59, %v8081_v37  ;;  %v15211_v37 = vld [vmem:[#allocation72_spill] sm:$0xff]  ;;  %v15212_v59 = vld [vmem:[#allocation43_spill] sm:$0xff] }
 0xd13   : > { %8320 = vmatmul.bf16.gmra.mxu0 %v8092_v52  ;;  %8369 = vmatmul.bf16.gmra.mxu1 %v8092_v52  ;;  %v11828_v61 = vpop.eup %11827 }
 0xd14   : > { %8418 = vmatmul.bf16.gmra.mxu2 %v8092_v52  ;;  %8467 = vmatmul.bf16.gmra.mxu3 %v8092_v52  ;;  %v7965_v38 = vpop.xlane.xlu1 %7964  ;;  %v6752_v52 = vadd.f32 %v15212_v59, %v15211_v37 }
 0xd15   : > { %11829 = vrcp.f32 %v7965_v38 }
 0xd16   : > { %v8045_v40 = vpop.f32.mrf.mxu3 }
 0xd17   : > { %v8083_v13 = vmul.f32 %v11824_v27, %v8045_v40 }
 0xd1b   : > { %v11830_v31 = vpop.eup %11829 }
 0xd1e   : > { %v8047_v22 = vpop.f32.mrf.mxu3 }
 0xd1f   : > { %v8084_v51 = vmul.f32 %v11826_v55, %v8047_v22 }
 0xd21   : > { %v8093_v28 = vpack.c.bf16 %v8084_v51, %v8083_v13 }
 0xd23   : > { %8325 = vmatmul.bf16.gmra.mxu0 %v8093_v28  ;;  %8374 = vmatmul.bf16.gmra.mxu1 %v8093_v28 }
 0xd24   : > { %8423 = vmatmul.bf16.gmra.mxu2 %v8093_v28  ;;  %8472 = vmatmul.bf16.gmra.mxu3 %v8093_v28 }
 0xd26   : > { %v8050_v33 = vpop.f32.mrf.mxu3 }
 0xd27   : > { %v8085_v15 = vmul.f32 %v11828_v61, %v8050_v33  ;;  %v15213_v61 = vld [vmem:[#allocation24_spill] sm:$0xff] }
 0xd2e   : > { %v8052_v8 = vpop.f32.mrf.mxu3 }
 0xd2f   : > { %v8086_v30 = vmul.f32 %v11830_v31, %v8052_v8  ;;  %v15214_v31 = vld [vmem:[#allocation86_spill] sm:$0xff]  ;;  %v15215_v8 = vld [vmem:[#allocation25_spill] sm:$0xff] }
 0xd31   : > { %v8094_v58 = vpack.c.bf16 %v8086_v30, %v8085_v15  ;;  %v15216_v15 = vld [vmem:[#allocation53_spill] sm:$0xff] }
 0xd33   : > { %8330 = vmatmul.bf16.gmra.mxu0 %v8094_v58  ;;  %8379 = vmatmul.bf16.gmra.mxu1 %v8094_v58 }
 0xd34   : > { %8428 = vmatmul.bf16.gmra.mxu2 %v8094_v58  ;;  %8477 = vmatmul.bf16.gmra.mxu3 %v8094_v58 }
 0xd40   : > { %v8296_v50 = vpop.f32.mrf.mxu0  ;;  %v8345_v49 = vpop.f32.mrf.mxu1 }
 0xd41   : > { %v8483_v18 = vadd.f32 %v8296_v50, %v14304_v32  ;;  %v8484_v45 = vadd.f32 %v8345_v49, %v14306_v41  ;;  %v7682_v32 = vadd.f32 %v14314_v42, %v6752_v52  ;;  %v15217_v52 = vld [vmem:[#allocation69_spill] sm:$0xff] }
 0xd43   : > { %v8557_v24 = vadd.f32 %v14551_v9, %v8483_v18  ;;  %v8558_v5 = vadd.f32 %v14553_v53, %v8484_v45 }
 0xd45   : > { %8621 = vst [vmem:[%s14563_s2] sm:$0xff] %v8557_v24 }
 0xd46   : > { %8622 = vst [vmem:[%s14563_s2 + $0x8] sm:$0xff] %v8558_v5 }
 0xd47   : > { %v8394_v41 = vpop.f32.mrf.mxu2  ;;  %v8443_v40 = vpop.f32.mrf.mxu3 }
 0xd48   : > { %v8485_v27 = vadd.f32 %v8394_v41, %v14295_v3  ;;  %v8486_v55 = vadd.f32 %v8443_v40, %v14297_v14  ;;  %v8298_v22 = vpop.f32.mrf.mxu0  ;;  %v8347_v13 = vpop.f32.mrf.mxu1  ;;  %v6801_v3 = vadd.f32 %v15214_v31, %v15213_v61  ;;  %v6850_v14 = vadd.f32 %v15216_v15, %v15215_v8  ;;  %v15220_v61 = vld [vmem:[#allocation55_spill] sm:$0xff] }
 0xd49   : > { %v8487_v51 = vadd.f32 %v8298_v22, %v14316_v12  ;;  %v8488_v28 = vadd.f32 %v8347_v13, %v7682_v32  ;;  %v15218_v32 = vld [vmem:[#allocation44_spill] sm:$0xff]  ;;  %v15221_v31 = vld [vmem:[#allocation79_spill] sm:$0xff] }
 0xd4a   : > { %v8559_v1 = vadd.f32 %v14567_v21, %v8485_v27  ;;  %v8560_v38 = vadd.f32 %v14569_v4, %v8486_v55  ;;  %v7683_v30 = vadd.f32 %v14308_v19, %v6801_v3  ;;  %v7684_v12 = vadd.f32 %v14310_v56, %v6850_v14  ;;  %v15222_v3 = vld [vmem:[#allocation57_spill] sm:$0xff] }
 0xd4b   : > { %v8561_v42 = vadd.f32 %v14551_v9, %v8487_v51  ;;  %v8562_v33 = vadd.f32 %v14553_v53, %v8488_v28  ;;  %v6757_v41 = vadd.f32 %v15218_v32, %v15217_v52 }
 0xd4c   : > { %8623 = vst [vmem:[%s14563_s2 + $0x10] sm:$0xff] %v8559_v1 }
 0xd4d   : > { %8624 = vst [vmem:[%s14563_s2 + $0x18] sm:$0xff] %v8560_v38  ;;  %v7690_v40 = vadd.f32 %v14341_v60, %v6757_v41 }
 0xd4e   : > { %8625 = vst [vmem:[%s14563_s2 + $0x20] sm:$0xff] %v8561_v42 }
 0xd4f   : > { %8626 = vst [vmem:[%s14563_s2 + $0x28] sm:$0xff] %v8562_v33  ;;  %v8396_v58 = vpop.f32.mrf.mxu2  ;;  %v8445_v44 = vpop.f32.mrf.mxu3  ;;  %v15219_v33 = vld [vmem:[#allocation82_spill] sm:$0xff] }
 0xd50   : > { %v8489_v50 = vadd.f32 %v8396_v58, %v7683_v30  ;;  %v8490_v49 = vadd.f32 %v8445_v44, %v7684_v12  ;;  %v8301_v18 = vpop.f32.mrf.mxu0  ;;  %v8350_v45 = vpop.f32.mrf.mxu1 }
 0xd51   : > { %v8491_v24 = vadd.f32 %v8301_v18, %v14331_v39  ;;  %v8492_v5 = vadd.f32 %v8350_v45, %v14333_v7 }
 0xd52   : > { %v8563_v19 = vadd.f32 %v14567_v21, %v8489_v50  ;;  %v8564_v37 = vadd.f32 %v14569_v4, %v8490_v49 }
 0xd53   : > { %v8565_v56 = vadd.f32 %v14551_v9, %v8491_v24  ;;  %v8566_v59 = vadd.f32 %v14553_v53, %v8492_v5  ;;  %v15223_v24 = vld [vmem:[#allocation70_spill] sm:$0xff]  ;;  %v15224_v5 = vld [vmem:[#allocation35_spill] sm:$0xff] }
 0xd54   : > { %8627 = vst [vmem:[%s14563_s2 + $0x30] sm:$0xff] %v8563_v19  ;;  %v6762_v19 = vadd.f32 %v15224_v5, %v15223_v24  ;;  %v15232_v24 = vld [vmem:[#allocation52_spill] sm:$0xff]  ;;  %v15233_v5 = vld [vmem:[#allocation74_spill] sm:$0xff] }
 0xd55   : > { %8628 = vst [vmem:[%s14563_s2 + $0x38] sm:$0xff] %v8564_v37 }
 0xd56   : > { %8629 = vst [vmem:[%s14563_s2 + $0x40] sm:$0xff] %v8565_v56  ;;  %v7698_v37 = vadd.f32 %v14368_v23, %v6762_v19  ;;  %v15234_v19 = vld [vmem:[#allocation63_spill] sm:$0xff] }
 0xd57   : > { %8630 = vst [vmem:[%s14563_s2 + $0x48] sm:$0xff] %v8566_v59  ;;  %v8399_v39 = vpop.f32.mrf.mxu2  ;;  %v8448_v7 = vpop.f32.mrf.mxu3 }
 0xd58   : > { %v8493_v27 = vadd.f32 %v8399_v39, %v14322_v54  ;;  %v8494_v55 = vadd.f32 %v8448_v7, %v14324_v35  ;;  %v8303_v22 = vpop.f32.mrf.mxu0  ;;  %v8352_v13 = vpop.f32.mrf.mxu1  ;;  %v6806_v54 = vadd.f32 %v15220_v61, %v15219_v33  ;;  %v6855_v35 = vadd.f32 %v15222_v3, %v15221_v31 }
 0xd59   : > { %v8495_v51 = vadd.f32 %v8303_v22, %v14343_v48  ;;  %v8496_v28 = vadd.f32 %v8352_v13, %v7690_v40  ;;  %v15226_v22 = vld [vmem:[#allocation59_spill] sm:$0xff] }
 0xd5a   : > { %v8567_v1 = vadd.f32 %v14567_v21, %v8493_v27  ;;  %v8568_v60 = vadd.f32 %v14569_v4, %v8494_v55  ;;  %v7691_v8 = vadd.f32 %v14335_v25, %v6806_v54  ;;  %v7692_v48 = vadd.f32 %v14337_v62, %v6855_v35  ;;  %v15225_v55 = vld [vmem:[#allocation78_spill] sm:$0xff]  ;;  %v15227_v13 = vld [vmem:[#allocation67_spill] sm:$0xff] }
 0xd5b   : > { %v8569_v38 = vadd.f32 %v14551_v9, %v8495_v51  ;;  %v8570_v42 = vadd.f32 %v14553_v53, %v8496_v28  ;;  %v15228_v51 = vld [vmem:[#allocation51_spill] sm:$0xff] }
 0xd5c   : > { %8631 = vst [vmem:[%s14563_s2 + $0x50] sm:$0xff] %v8567_v1 }
 0xd5d   : > { %8632 = vst [vmem:[%s14563_s2 + $0x58] sm:$0xff] %v8568_v60 }
 0xd5e   : > { %8633 = vst [vmem:[%s14563_s2 + $0x60] sm:$0xff] %v8569_v38 }
 0xd5f   : > { %8634 = vst [vmem:[%s14563_s2 + $0x68] sm:$0xff] %v8570_v42  ;;  %v8401_v15 = vpop.f32.mrf.mxu2  ;;  %v8450_v14 = vpop.f32.mrf.mxu3 }
 0xd60   : > { %v8497_v30 = vadd.f32 %v8401_v15, %v7691_v8  ;;  %v8498_v12 = vadd.f32 %v8450_v14, %v7692_v48  ;;  %v8306_v58 = vpop.f32.mrf.mxu0  ;;  %v8355_v44 = vpop.f32.mrf.mxu1  ;;  %v15229_v8 = vld [vmem:[#allocation28_spill] sm:$0xff]  ;;  %v15230_v48 = vld [vmem:[#allocation45_spill] sm:$0xff] }
 0xd61   : > { %v8499_v50 = vadd.f32 %v8306_v58, %v14358_v2  ;;  %v8500_v49 = vadd.f32 %v8355_v44, %v14360_v63  ;;  %v6767_v15 = vadd.f32 %v15230_v48, %v15229_v8 }
 0xd62   : > { %v8571_v25 = vadd.f32 %v14567_v21, %v8497_v30  ;;  %v8572_v18 = vadd.f32 %v14569_v4, %v8498_v12 }
 0xd63   : > { %v8573_v62 = vadd.f32 %v14551_v9, %v8499_v50  ;;  %v8574_v45 = vadd.f32 %v14553_v53, %v8500_v49  ;;  %v7706_v14 = vadd.f32 %v14395_v11, %v6767_v15 }
 0xd64   : > { %8635 = vst [vmem:[%s14563_s2 + $0x70] sm:$0xff] %v8571_v25 }
 0xd65   : > { %8636 = vst [vmem:[%s14563_s2 + $0x78] sm:$0xff] %v8572_v18 }
 0xd66   : > { %8637 = vst [vmem:[%s14563_s2 + $0x80] sm:$0xff] %v8573_v62 }
 0xd67   : > { %8638 = vst [vmem:[%s14563_s2 + $0x88] sm:$0xff] %v8574_v45  ;;  %v8404_v2 = vpop.f32.mrf.mxu2  ;;  %v8453_v63 = vpop.f32.mrf.mxu3  ;;  %v15231_v45 = vld [vmem:[#allocation73_spill] sm:$0xff] }
 0xd68   : > { %v8501_v56 = vadd.f32 %v8404_v2, %v14349_v16  ;;  %v8502_v59 = vadd.f32 %v8453_v63, %v14351_v10  ;;  %v8308_v52 = vpop.f32.mrf.mxu0  ;;  %v8357_v32 = vpop.f32.mrf.mxu1  ;;  %v6811_v16 = vadd.f32 %v15226_v22, %v15225_v55  ;;  %v6860_v10 = vadd.f32 %v15228_v51, %v15227_v13  ;;  %v15239_v13 = vld [vmem:[#allocation26_spill] sm:$0xff] }
 0xd69   : > { %v8503_v41 = vadd.f32 %v8308_v52, %v14370_v43  ;;  %v8504_v40 = vadd.f32 %v8357_v32, %v7698_v37 }
 0xd6a   : > { %v8575_v39 = vadd.f32 %v14567_v21, %v8501_v56  ;;  %v8576_v23 = vadd.f32 %v14569_v4, %v8502_v59  ;;  %v7699_v28 = vadd.f32 %v14362_v26, %v6811_v16  ;;  %v7700_v43 = vadd.f32 %v14364_v17, %v6860_v10  ;;  %v15238_v16 = vld [vmem:[#allocation81_spill] sm:$0xff]  ;;  %v15240_v10 = vld [vmem:[#allocation34_spill] sm:$0xff] }
 0xd6b   : > { %v8577_v7 = vadd.f32 %v14551_v9, %v8503_v41  ;;  %v8578_v27 = vadd.f32 %v14553_v53, %v8504_v40  ;;  %v15236_v40 = vld [vmem:[#allocation60_spill] sm:$0xff]  ;;  %v6723_v51 = vadd.f32 %v15239_v13, %v15238_v16 }
 0xd6c   : > { %8639 = vst [vmem:[%s14563_s2 + $0x90] sm:$0xff] %v8575_v39 }
 0xd6d   : > { %8640 = vst [vmem:[%s14563_s2 + $0x98] sm:$0xff] %v8576_v23  ;;  %v15237_v23 = vld [vmem:[#allocation61_spill] sm:$0xff] }
 0xd6e   : > { %8641 = vst [vmem:[%s14563_s2 + $0xa0] sm:$0xff] %v8577_v7 }
 0xd6f   : > { %8642 = vst [vmem:[%s14563_s2 + $0xa8] sm:$0xff] %v8578_v27  ;;  %v8406_v1 = vpop.f32.mrf.mxu2  ;;  %v8455_v60 = vpop.f32.mrf.mxu3 }
 0xd70   : > { %v8505_v38 = vadd.f32 %v8406_v1, %v7699_v28  ;;  %v8506_v42 = vadd.f32 %v8455_v60, %v7700_v43  ;;  %v8311_v33 = vpop.f32.mrf.mxu0  ;;  %v8360_v61 = vpop.f32.mrf.mxu1  ;;  %v15241_v28 = vld [vmem:[#allocation49_spill] sm:$0xff]  ;;  %v15242_v1 = vld [vmem:[#allocation110_spill] sm:$0xff] }
 0xd71   : > { %v8507_v54 = vadd.f32 %v8311_v33, %v14385_v0  ;;  %v8508_v31 = vadd.f32 %v8360_v61, %v14387_v29  ;;  %v6772_v43 = vadd.f32 %v15241_v28, %v15240_v10  ;;  %v7713_v60 = vadd.f32 %v15242_v1, %v6723_v51  ;;  %v15260_v10 = vld [vmem:[#allocation47_spill] sm:$0xff] }
 0xd72   : > { %v8579_v26 = vadd.f32 %v14567_v21, %v8505_v38  ;;  %v8580_v3 = vadd.f32 %v14569_v4, %v8506_v42  ;;  %v15243_v38 = vld [vmem:[#allocation111_spill] sm:$0xff] }
 0xd73   : > { %v8581_v17 = vadd.f32 %v14551_v9, %v8507_v54  ;;  %v8582_v35 = vadd.f32 %v14553_v53, %v8508_v31  ;;  %v7714_v42 = vadd.f32 %v15243_v38, %v6772_v43  ;;  %v15244_v54 = vld [vmem:[#allocation56_spill] sm:$0xff] }
 0xd74   : > { %8643 = vst [vmem:[%s14563_s2 + $0xb0] sm:$0xff] %v8579_v26  ;;  %v15245_v26 = vld [vmem:[#allocation58_spill] sm:$0xff]  ;;  %v15261_v43 = vld [vmem:[#allocation100_spill] sm:$0xff] }
 0xd75   : > { %8644 = vst [vmem:[%s14563_s2 + $0xb8] sm:$0xff] %v8580_v3 }
 0xd76   : > { %8645 = vst [vmem:[%s14563_s2 + $0xc0] sm:$0xff] %v8581_v17 }
 0xd77   : > { %8646 = vst [vmem:[%s14563_s2 + $0xc8] sm:$0xff] %v8582_v35  ;;  %v8409_v0 = vpop.f32.mrf.mxu2  ;;  %v8458_v29 = vpop.f32.mrf.mxu3 }
 0xd78   : > { %v8509_v30 = vadd.f32 %v8409_v0, %v14376_v47  ;;  %v8510_v12 = vadd.f32 %v8458_v29, %v14378_v34  ;;  %v8313_v58 = vpop.f32.mrf.mxu0  ;;  %v8362_v44 = vpop.f32.mrf.mxu1  ;;  %v6816_v47 = vadd.f32 %v15232_v24, %v15231_v45  ;;  %v6865_v34 = vadd.f32 %v15234_v19, %v15233_v5 }
 0xd79   : > { %v8511_v50 = vadd.f32 %v8313_v58, %v14397_v6  ;;  %v8512_v49 = vadd.f32 %v8362_v44, %v7706_v14  ;;  %v15235_v6 = vld [vmem:[#allocation54_spill] sm:$0xff] }
 0xd7a   : > { %v8583_v25 = vadd.f32 %v14567_v21, %v8509_v30  ;;  %v8584_v11 = vadd.f32 %v14569_v4, %v8510_v12  ;;  %v7707_v37 = vadd.f32 %v14389_v46, %v6816_v47  ;;  %v7708_v2 = vadd.f32 %v15235_v6, %v6865_v34  ;;  %v15246_v30 = vld [vmem:[#allocation36_spill] sm:$0xff]  ;;  %v15247_v12 = vld [vmem:[#allocation65_spill] sm:$0xff]  ;;  %v15248_v44 = vld [vmem:[#allocation46_spill] sm:$0xff] }
 0xd7b   : > { %v8585_v18 = vadd.f32 %v14551_v9, %v8511_v50  ;;  %v8586_v62 = vadd.f32 %v14553_v53, %v8512_v49  ;;  %v6821_v58 = vadd.f32 %v15247_v12, %v15246_v30  ;;  %v15249_v50 = vld [vmem:[#allocation99_spill] sm:$0xff] }
 0xd7c   : > { %8647 = vst [vmem:[%s14563_s2 + $0xd0] sm:$0xff] %v8583_v25  ;;  %v6870_v49 = vadd.f32 %v15249_v50, %v15248_v44  ;;  %v15250_v25 = vld [vmem:[#allocation108_spill] sm:$0xff] }
 0xd7d   : > { %8648 = vst [vmem:[%s14563_s2 + $0xd8] sm:$0xff] %v8584_v11  ;;  %v7715_v11 = vadd.f32 %v15250_v25, %v6821_v58 }
 0xd7e   : > { %8649 = vst [vmem:[%s14563_s2 + $0xe0] sm:$0xff] %v8585_v18  ;;  %v15251_v18 = vld [vmem:[#allocation109_spill] sm:$0xff] }
 0xd7f   : > { %8650 = vst [vmem:[%s14563_s2 + $0xe8] sm:$0xff] %v8586_v62  ;;  %v8411_v63 = vpop.f32.mrf.mxu2  ;;  %v8460_v56 = vpop.f32.mrf.mxu3  ;;  %v7716_v62 = vadd.f32 %v15251_v18, %v6870_v49 }
 0xd80   : > { %v8513_v59 = vadd.f32 %v8411_v63, %v7707_v37  ;;  %v8514_v52 = vadd.f32 %v8460_v56, %v7708_v2  ;;  %v8316_v32 = vpop.f32.mrf.mxu0  ;;  %v8365_v41 = vpop.f32.mrf.mxu1  ;;  %v15252_v37 = vld [vmem:[#allocation48_spill] sm:$0xff]  ;;  %v15253_v2 = vld [vmem:[#allocation101_spill] sm:$0xff] }
 0xd81   : > { %v8515_v39 = vadd.f32 %v8316_v32, %v15236_v40  ;;  %v8516_v7 = vadd.f32 %v8365_v41, %v15237_v23  ;;  %v15254_v41 = vld [vmem:[#allocation68_spill] sm:$0xff]  ;;  %v15255_v40 = vld [vmem:[#allocation29_spill] sm:$0xff]  ;;  %v15256_v23 = vld [vmem:[#allocation38_spill] sm:$0xff] }
 0xd82   : > { %v8587_v46 = vadd.f32 %v14567_v21, %v8513_v59  ;;  %v8588_v27 = vadd.f32 %v14569_v4, %v8514_v52 }
 0xd83   : > { %v8589_v55 = vadd.f32 %v14551_v9, %v8515_v39  ;;  %v8590_v22 = vadd.f32 %v14553_v53, %v8516_v7  ;;  %v6728_v39 = vadd.f32 %v15255_v40, %v15254_v41  ;;  %v15257_v7 = vld [vmem:[#allocation91_spill] sm:$0xff] }
 0xd84   : > { %8651 = vst [vmem:[%s14563_s2 + $0xf0] sm:$0xff] %v8587_v46  ;;  %v6777_v46 = vadd.f32 %v15257_v7, %v15256_v23  ;;  %v15276_v23 = vld [vmem:[#allocation95_spill] sm:$0xff] }
 0xd85   : > { %8652 = vst [vmem:[%s14563_s2 + $0xf8] sm:$0xff] %v8588_v27  ;;  %v15258_v27 = vld [vmem:[#allocation27_spill] sm:$0xff] }
 0xd86   : > { %8653 = vst [vmem:[%s14563_s2 + $0x100] sm:$0xff] %v8589_v55  ;;  %v7721_v55 = vadd.f32 %v15258_v27, %v6728_v39 }
 0xd87   : > { %8654 = vst [vmem:[%s14563_s2 + $0x108] sm:$0xff] %v8590_v22  ;;  %v8414_v33 = vpop.f32.mrf.mxu2  ;;  %v8463_v61 = vpop.f32.mrf.mxu3  ;;  %v15259_v22 = vld [vmem:[#allocation37_spill] sm:$0xff] }
 0xd88   : > { %v8517_v31 = vadd.f32 %v8414_v33, %v15244_v54  ;;  %v8518_v3 = vadd.f32 %v8463_v61, %v15245_v26  ;;  %v8318_v17 = vpop.f32.mrf.mxu0  ;;  %v8367_v35 = vpop.f32.mrf.mxu1  ;;  %v7722_v16 = vadd.f32 %v15259_v22, %v6777_v46  ;;  %v15277_v46 = vld [vmem:[#allocation84_spill] sm:$0xff] }
 0xd89   : > { %v8519_v8 = vadd.f32 %v8318_v17, %v7713_v60  ;;  %v8520_v48 = vadd.f32 %v8367_v35, %v7714_v42  ;;  %v15263_v17 = vld [vmem:[#allocation102_spill] sm:$0xff] }
 0xd8a   : > { %v8591_v15 = vadd.f32 %v14567_v21, %v8517_v31  ;;  %v8592_v14 = vadd.f32 %v14569_v4, %v8518_v3  ;;  %v15262_v3 = vld [vmem:[#allocation50_spill] sm:$0xff] }
 0xd8b   : > { %v8593_v0 = vadd.f32 %v14551_v9, %v8519_v8  ;;  %v8594_v29 = vadd.f32 %v14553_v53, %v8520_v48  ;;  %v6826_v35 = vadd.f32 %v15263_v17, %v15262_v3  ;;  %v15264_v8 = vld [vmem:[#allocation97_spill] sm:$0xff]  ;;  %v15265_v48 = vld [vmem:[#allocation103_spill] sm:$0xff] }
 0xd8c   : > { %8655 = vst [vmem:[%s14563_s2 + $0x110] sm:$0xff] %v8591_v15  ;;  %v6875_v15 = vadd.f32 %v15265_v48, %v15264_v8 }
 0xd8d   : > { %8656 = vst [vmem:[%s14563_s2 + $0x118] sm:$0xff] %v8592_v14  ;;  %v15266_v14 = vld [vmem:[#allocation62_spill] sm:$0xff] }
 0xd8e   : > { %8657 = vst [vmem:[%s14563_s2 + $0x120] sm:$0xff] %v8593_v0  ;;  %v7723_v0 = vadd.f32 %v15266_v14, %v6826_v35 }
 0xd8f   : > { %8658 = vst [vmem:[%s14563_s2 + $0x128] sm:$0xff] %v8594_v29  ;;  %v8416_v45 = vpop.f32.mrf.mxu2  ;;  %v8465_v24 = vpop.f32.mrf.mxu3  ;;  %v15267_v29 = vld [vmem:[#allocation80_spill] sm:$0xff] }
 0xd90   : > { %v8521_v47 = vadd.f32 %v8416_v45, %v7715_v11  ;;  %v8522_v5 = vadd.f32 %v8465_v24, %v7716_v62  ;;  %v8321_v19 = vpop.f32.mrf.mxu0  ;;  %v8370_v34 = vpop.f32.mrf.mxu1  ;;  %v7724_v30 = vadd.f32 %v15267_v29, %v6875_v15  ;;  %v15268_v11 = vld [vmem:[#allocation83_spill] sm:$0xff]  ;;  %v15269_v62 = vld [vmem:[#allocation64_spill] sm:$0xff] }
 0xd91   : > { %v8523_v6 = vadd.f32 %v8321_v19, %v15252_v37  ;;  %v8524_v63 = vadd.f32 %v8370_v34, %v15253_v2  ;;  %v15270_v34 = vld [vmem:[#allocation75_spill] sm:$0xff]  ;;  %v15272_v2 = vld [vmem:[#allocation40_spill] sm:$0xff] }
 0xd92   : > { %v8595_v56 = vadd.f32 %v14567_v21, %v8521_v47  ;;  %v8596_v59 = vadd.f32 %v14569_v4, %v8522_v5  ;;  %v15271_v37 = vld [vmem:[#allocation31_spill] sm:$0xff] }
 0xd93   : > { %v8597_v52 = vadd.f32 %v14551_v9, %v8523_v6  ;;  %v8598_v32 = vadd.f32 %v14553_v53, %v8524_v63  ;;  %v6733_v6 = vadd.f32 %v15271_v37, %v15270_v34  ;;  %v15273_v63 = vld [vmem:[#allocation94_spill] sm:$0xff] }
 0xd94   : > { %8659 = vst [vmem:[%s14563_s2 + $0x130] sm:$0xff] %v8595_v56  ;;  %v6782_v56 = vadd.f32 %v15273_v63, %v15272_v2  ;;  %v15292_v63 = vld [vmem:[#allocation96_spill] sm:$0xff] }
 0xd95   : > { %8660 = vst [vmem:[%s14563_s2 + $0x138] sm:$0xff] %v8596_v59  ;;  %v15274_v59 = vld [vmem:[#allocation39_spill] sm:$0xff] }
 0xd96   : > { %8661 = vst [vmem:[%s14563_s2 + $0x140] sm:$0xff] %v8597_v52  ;;  %v7729_v52 = vadd.f32 %v15274_v59, %v6733_v6  ;;  %v15291_v6 = vld [vmem:[#allocation98_spill] sm:$0xff] }
 0xd97   : > { %8662 = vst [vmem:[%s14563_s2 + $0x148] sm:$0xff] %v8598_v32  ;;  %v8419_v13 = vpop.f32.mrf.mxu2  ;;  %v8468_v51 = vpop.f32.mrf.mxu3  ;;  %v15275_v32 = vld [vmem:[#allocation85_spill] sm:$0xff] }
 0xd98   : > { %v8525_v28 = vadd.f32 %v8419_v13, %v15260_v10  ;;  %v8526_v1 = vadd.f32 %v8468_v51, %v15261_v43  ;;  %v8323_v60 = vpop.f32.mrf.mxu0  ;;  %v8372_v38 = vpop.f32.mrf.mxu1  ;;  %v7730_v41 = vadd.f32 %v15275_v32, %v6782_v56 }
 0xd99   : > { %v8527_v42 = vadd.f32 %v8323_v60, %v7721_v55  ;;  %v8528_v33 = vadd.f32 %v8372_v38, %v7722_v16  ;;  %v15279_v60 = vld [vmem:[#allocation104_spill] sm:$0xff] }
 0xd9a   : > { %v8599_v61 = vadd.f32 %v14567_v21, %v8525_v28  ;;  %v8600_v54 = vadd.f32 %v14569_v4, %v8526_v1  ;;  %v15278_v1 = vld [vmem:[#allocation89_spill] sm:$0xff] }
 0xd9b   : > { %v8601_v31 = vadd.f32 %v14551_v9, %v8527_v42  ;;  %v8602_v26 = vadd.f32 %v14553_v53, %v8528_v33  ;;  %v6831_v38 = vadd.f32 %v15279_v60, %v15278_v1  ;;  %v15280_v42 = vld [vmem:[#allocation87_spill] sm:$0xff]  ;;  %v15281_v33 = vld [vmem:[#allocation105_spill] sm:$0xff] }
 0xd9c   : > { %8663 = vst [vmem:[%s14563_s2 + $0x150] sm:$0xff] %v8599_v61  ;;  %v6880_v61 = vadd.f32 %v15281_v33, %v15280_v42 }
 0xd9d   : > { %8664 = vst [vmem:[%s14563_s2 + $0x158] sm:$0xff] %v8600_v54  ;;  %v15282_v54 = vld [vmem:[#allocation77_spill] sm:$0xff] }
 0xd9e   : > { %8665 = vst [vmem:[%s14563_s2 + $0x160] sm:$0xff] %v8601_v31  ;;  %v7731_v31 = vadd.f32 %v15282_v54, %v6831_v38 }
 0xd9f   : > { %8666 = vst [vmem:[%s14563_s2 + $0x168] sm:$0xff] %v8602_v26  ;;  %v8421_v12 = vpop.f32.mrf.mxu2  ;;  %v8470_v58 = vpop.f32.mrf.mxu3  ;;  %v15283_v26 = vld [vmem:[#allocation30_spill] sm:$0xff] }
 0xda0   : > { %v8529_v44 = vadd.f32 %v8421_v12, %v7723_v0  ;;  %v8530_v50 = vadd.f32 %v8470_v58, %v7724_v30  ;;  %v8326_v49 = vpop.f32.mrf.mxu0  ;;  %v8375_v25 = vpop.f32.mrf.mxu1  ;;  %v7732_v3 = vadd.f32 %v15283_v26, %v6880_v61  ;;  %v15284_v0 = vld [vmem:[#allocation66_spill] sm:$0xff]  ;;  %v15285_v30 = vld [vmem:[#allocation76_spill] sm:$0xff] }
 0xda1   : > { %v8531_v18 = vadd.f32 %v8326_v49, %v15268_v11  ;;  %v8532_v45 = vadd.f32 %v8375_v25, %v15269_v62  ;;  %v15286_v25 = vld [vmem:[#allocation71_spill] sm:$0xff]  ;;  %v15287_v11 = vld [vmem:[#allocation33_spill] sm:$0xff]  ;;  %v15288_v62 = vld [vmem:[#allocation42_spill] sm:$0xff] }
 0xda2   : > { %v8603_v24 = vadd.f32 %v14567_v21, %v8529_v44  ;;  %v8604_v47 = vadd.f32 %v14569_v4, %v8530_v50 }
 0xda3   : > { %v8605_v5 = vadd.f32 %v14551_v9, %v8531_v18  ;;  %v8606_v19 = vadd.f32 %v14553_v53, %v8532_v45  ;;  %v6738_v18 = vadd.f32 %v15287_v11, %v15286_v25  ;;  %v15289_v45 = vld [vmem:[#allocation88_spill] sm:$0xff] }
 0xda4   : > { %8667 = vst [vmem:[%s14563_s2 + $0x170] sm:$0xff] %v8603_v24  ;;  %v6787_v24 = vadd.f32 %v15289_v45, %v15288_v62 }
 0xda5   : > { %8668 = vst [vmem:[%s14563_s2 + $0x178] sm:$0xff] %v8604_v47  ;;  %v15290_v47 = vld [vmem:[#allocation32_spill] sm:$0xff] }
 0xda6   : > { %8669 = vst [vmem:[%s14563_s2 + $0x180] sm:$0xff] %v8605_v5  ;;  %v7737_v5 = vadd.f32 %v15290_v47, %v6738_v18 }
 0xda7   : > { %8670 = vst [vmem:[%s14563_s2 + $0x188] sm:$0xff] %v8606_v19  ;;  %v8424_v40 = vpop.f32.mrf.mxu2  ;;  %v8473_v39 = vpop.f32.mrf.mxu3  ;;  %v7738_v19 = vadd.f32 %v14545_v20, %v6787_v24 }
 0xda8   : > { %v8533_v7 = vadd.f32 %v8424_v40, %v15276_v23  ;;  %v8534_v27 = vadd.f32 %v8473_v39, %v15277_v46  ;;  %v8328_v55 = vpop.f32.mrf.mxu0  ;;  %v8377_v22 = vpop.f32.mrf.mxu1  ;;  %v15294_v46 = vld [vmem:[#allocation106_spill] sm:$0xff] }
 0xda9   : > { %v8535_v16 = vadd.f32 %v8328_v55, %v7729_v52  ;;  %v8536_v13 = vadd.f32 %v8377_v22, %v7730_v41  ;;  %v15295_v55 = vld [vmem:[#allocation92_spill] sm:$0xff]  ;;  %v15296_v22 = vld [vmem:[#allocation107_spill] sm:$0xff] }
 0xdaa   : > { %v8607_v51 = vadd.f32 %v14567_v21, %v8533_v7  ;;  %v8608_v10 = vadd.f32 %v14569_v4, %v8534_v27  ;;  %v15293_v7 = vld [vmem:[#allocation93_spill] sm:$0xff] }
 0xdab   : > { %v8609_v28 = vadd.f32 %v14551_v9, %v8535_v16  ;;  %v8610_v43 = vadd.f32 %v14553_v53, %v8536_v13  ;;  %v6836_v27 = vadd.f32 %v15294_v46, %v15293_v7  ;;  %v6885_v16 = vadd.f32 %v15296_v22, %v15295_v55 }
 0xdac   : > { %8671 = vst [vmem:[%s14563_s2 + $0x190] sm:$0xff] %v8607_v51 }
 0xdad   : > { %8672 = vst [vmem:[%s14563_s2 + $0x198] sm:$0xff] %v8608_v10  ;;  %v7739_v13 = vadd.f32 %v14547_v36, %v6836_v27 }
 0xdae   : > { %8673 = vst [vmem:[%s14563_s2 + $0x1a0] sm:$0xff] %v8609_v28 }
 0xdaf   : > { %8674 = vst [vmem:[%s14563_s2 + $0x1a8] sm:$0xff] %v8610_v43  ;;  %v8426_v17 = vpop.f32.mrf.mxu2  ;;  %v8475_v35 = vpop.f32.mrf.mxu3 }
 0xdb0   : > { %v8537_v8 = vadd.f32 %v8426_v17, %v7731_v31  ;;  %v8538_v48 = vadd.f32 %v8475_v35, %v7732_v3  ;;  %v8331_v15 = vpop.f32.mrf.mxu0  ;;  %v8380_v14 = vpop.f32.mrf.mxu1 }
 0xdb1   : > { %v8539_v29 = vadd.f32 %v8331_v15, %v15284_v0  ;;  %v8540_v12 = vadd.f32 %v8380_v14, %v15285_v30 }
 0xdb2   : > { %v8611_v58 = vadd.f32 %v14567_v21, %v8537_v8  ;;  %v8612_v44 = vadd.f32 %v14569_v4, %v8538_v48 }
 0xdb3   : > { %v8613_v50 = vadd.f32 %v14551_v9, %v8539_v29  ;;  %v8614_v49 = vadd.f32 %v14553_v53, %v8540_v12 }
 0xdb4   : > { %8675 = vst [vmem:[%s14563_s2 + $0x1b0] sm:$0xff] %v8611_v58 }
 0xdb5   : > { %8676 = vst [vmem:[%s14563_s2 + $0x1b8] sm:$0xff] %v8612_v44 }
 0xdb6   : > { %8677 = vst [vmem:[%s14563_s2 + $0x1c0] sm:$0xff] %v8613_v50 }
 0xdb7   : > { %8678 = vst [vmem:[%s14563_s2 + $0x1c8] sm:$0xff] %v8614_v49  ;;  %v8429_v34 = vpop.f32.mrf.mxu2  ;;  %v8478_v37 = vpop.f32.mrf.mxu3 }
 0xdb8   : > { %v8541_v2 = vadd.f32 %v8429_v34, %v15291_v6  ;;  %v8542_v56 = vadd.f32 %v8478_v37, %v15292_v63  ;;  %v8333_v59 = vpop.f32.mrf.mxu0  ;;  %v8382_v52 = vpop.f32.mrf.mxu1 }
 0xdb9   : > { %v8543_v32 = vadd.f32 %v8333_v59, %v7737_v5  ;;  %v8544_v41 = vadd.f32 %v8382_v52, %v7738_v19 }
 0xdba   : > { %v8615_v40 = vadd.f32 %v14567_v21, %v8541_v2  ;;  %v8616_v20 = vadd.f32 %v14569_v4, %v8542_v56 }
 0xdbb   : > { %v8617_v39 = vadd.f32 %v14551_v9, %v8543_v32  ;;  %v8618_v23 = vadd.f32 %v14553_v53, %v8544_v41  ;;  %v7740_v9 = vadd.f32 %v14549_v57, %v6885_v16 }
 0xdbc   : > { %8679 = vst [vmem:[%s14563_s2 + $0x1d0] sm:$0xff] %v8615_v40 }
 0xdbd   : > { %8680 = vst [vmem:[%s14563_s2 + $0x1d8] sm:$0xff] %v8616_v20 }
 0xdbe   : > { %8681 = vst [vmem:[%s14563_s2 + $0x1e0] sm:$0xff] %v8617_v39 }
 0xdbf   : > { %8682 = vst [vmem:[%s14563_s2 + $0x1e8] sm:$0xff] %v8618_v23  ;;  %v8431_v53 = vpop.f32.mrf.mxu2  ;;  %v8480_v51 = vpop.f32.mrf.mxu3 }
 0xdc0   : > { %v8545_v10 = vadd.f32 %v8431_v53, %v7739_v13  ;;  %v8546_v28 = vadd.f32 %v8480_v51, %v7740_v9 }
 0xdc2   : > { %v8619_v43 = vadd.f32 %v14567_v21, %v8545_v10  ;;  %v8620_v1 = vadd.f32 %v14569_v4, %v8546_v28 }
 0xdc4   : > { %8683 = vst [vmem:[%s14563_s2 + $0x1f0] sm:$0xff] %v8619_v43 }
 0xdc5   : > { %8684 = vst [vmem:[%s14563_s2 + $0x1f8] sm:$0xff] %v8620_v1 }
 0xdc6   : > { %12131 = shalt.err (!%p12128_p9)
}
 0xdc7   : > { %s12200_s29 = smov 512   ;;  %s12201_s1 = smov 32  }
 0xdc8   : > { %11476 = dma.vmem_to_hbm [thread:$0]  (%p12371_p4), %s8699_s26, 8192, %s8701_s13, %s8686_s27, %s12200_s29, %s12200_s29, %s12201_s1  }
 0xdc9 PF: > { %s8715_s2 = sand.u32 1, %s12174_s30   ;;  %p15297_p10 = scmp.ge.s32.totalorder %s12186_s12, 2 }
 0xdca   : > { %s8716_s17 = scalar_lea.sflag [#allocation4], %s8715_s2 }
 0xdcb   : > { %p11508_p13 = pnand %p15297_p10, %p12375_p6 }
 0xdcd   : > { %p11509_p11 = pneg %p11508_p13 }
 0xdcf   : > { %12169 = dma.done.wait (%p11509_p11), %s8716_s17, 8192  }
 0xdd0   : > { %12171 = vsyncadd (%p11509_p11), %s8716_s17, 4294959104  ;;  %p26_p0 = scmp.ge.s32.totalorder %s12345_s14, 4   ;;  %s15298_s30 = smov %s12178_s10 }
 0xdd1   : > { %s15299_s10 = smov %s12182_s11  ;;  %s15300_s11 = smov %s12356_s24 }
 0xdd2   : > { %s15301_s12 = smov %s12345_s14  ;;  %28 = sbr.rel (!%p26_p0) target bundleno = 14 (0xe), region = 133 }
 0xdd7   :  { %8722 = vsyncpa [#allocation3], 1 }
 0xdd8   :  { %8724 = vsyncpa [#allocation3 + $0x1], 1 }
 0xdd9   :  { %8725 = vsyncpa [#allocation6], 1 }
 0xdda   :  { %8726 = vsyncpa [#allocation9], 1 }
 0xddb   :  { %8727 = vsyncpa [#allocation12], 1 }
 0xddc   :  { %8728 = vsyncpa [#allocation15], 1 }
 0xddd   :  { %8729 = vsyncpa [#allocation4], 1 }
 0xdde   :  { %8731 = vsyncpa [#allocation4 + $0x1], 1 }

</bundles_post_ra>
